<compile_context>
chip_gen: v5e
topology: v5e:2x2
jax: 0.10.0
libtpu: 0.0.40
codegen_flags: <defaults>
</compile_context>

<pallas_src>
import functools

import jax
import jax.numpy as jnp
from jax import lax
from jax.experimental import pallas as pl
from jax.experimental.pallas import tpu as pltpu


LRELU_SLOPE = 0.2
BN_EPS = 1e-5


# ------------------------------ VMEM budgeting ----------------------------- #
def _vmem_budgets():
    """(tile-sizing working-set budget, vmem_limit_bytes).

    Generation aware: ~48 MiB scoped limit on v7x (64 MiB per-core VMEM) and
    ~96 MiB on v5e/v6e (128 MiB physical), with a conservative fallback when
    the hardware query is unavailable."""
    phys = 64 * 1024 * 1024
    try:
        info = pltpu.get_tpu_info()
        phys = int(getattr(info, "vmem_capacity_bytes", phys))
    except Exception:
        pass
    limit = min((phys * 3) // 4, 96 * 1024 * 1024)
    budget = (limit * 3) // 5              # headroom for pipeline slack
    return budget, limit


def _choose_tm(M, K, C, budget_bytes):
    """Row tile for M-tiled kernels: a multiple of 8 that divides M, as large
    as possible (capped at 1024) while the working set -- double-buffered bf16
    LHS tile, output tile, and the x2-buffered resident weights -- fits."""
    per_row = 2 * K * 2 + 2 * C * 4
    fixed = 2 * (K * C * 2 + C * 4)        # weights + bias, double-buffered
    tm_max = max(8, (budget_bytes - fixed) // max(per_row, 1))
    divs = [d for d in range(8, min(M, 1024) + 1, 8) if M % d == 0]
    for d in reversed(divs):
        if d <= tm_max:
            return d
    if divs:
        return divs[0]                     # smallest multiple-of-8 divisor
    return M                               # tiny / odd M: single full block


# ----------------------------- Pallas kernels ------------------------------ #
def _matmul_bias_act_kernel(x_ref, w_ref, b_ref, o_ref, *, act):
    """(TM, K)bf16 @ (K, C)bf16 -> f32, + bias, activation, store."""
    y = jnp.dot(x_ref[...], w_ref[...], preferred_element_type=jnp.float32)
    y = y + b_ref[...]
    if act == "lrelu":
        y = jnp.where(y > 0, y, LRELU_SLOPE * y)
    elif act == "sigmoid":
        y = 1.0 / (1.0 + jnp.exp(-y))
    o_ref[...] = y.astype(o_ref.dtype)


def _conv5x5s2_bn_stats_kernel(x_ref, w_ref, b_ref, y_ref, s_ref, *,
                               k, Hh, Ho, Wo):
    """Fused 5x5 / stride-2 conv for one image.

    x_ref : (1, 4*Hh, Wh, Cin) bf16  -- the 4 stride-parity phases, stacked on
                                        the row axis (phase p occupies rows
                                        [p*Hh, (p+1)*Hh)).
    w_ref : (k*k, Cin, Cout)   bf16  -- per-tap weight matrices.
    b_ref : (1, Cout)          f32
    y_ref : (1, Ho, Wo, Cout)  bf16  -- pre-activation conv output.
    s_ref : (1, 2, Cout)       f32   -- per-image (mean, centered M2).
    """
    cout = w_ref.shape[-1]
    bias = b_ref[...]                                        # (1, Cout) f32

    def row_body(ho, ssum):
        acc = jnp.zeros((Wo, cout), jnp.float32)
        for kh in range(k):                                  # static unroll
            for kw in range(k):
                phase = (kh % 2) * 2 + (kw % 2)
                row = phase * Hh + (kh // 2) + ho
                lhs = x_ref[0, row, pl.ds(kw // 2, Wo), :]   # (Wo, Cin) bf16
                acc = acc + jnp.dot(lhs, w_ref[kh * k + kw],
                                    preferred_element_type=jnp.float32)
        yrow = acc + bias                                    # (Wo, Cout) f32
        y_ref[0, ho] = yrow.astype(y_ref.dtype)
        return ssum + jnp.sum(yrow, axis=0, keepdims=True)

    ssum = lax.fori_loop(0, Ho, row_body,
                         jnp.zeros((1, cout), jnp.float32))
    mean = ssum * (1.0 / (Ho * Wo))

    def m2_body(ho, m2):
        d = y_ref[0, ho].astype(jnp.float32) - mean          # centered -> no
        return m2 + jnp.sum(d * d, axis=0, keepdims=True)    # cancellation

    m2 = lax.fori_loop(0, Ho, m2_body,
                       jnp.zeros((1, cout), jnp.float32))
    s_ref[0, pl.ds(0, 1), :] = mean
    s_ref[0, pl.ds(1, 1), :] = m2


def _bn_lrelu_kernel(y_ref, sc_ref, sh_ref, o_ref):
    """y(bf16) * scale + shift (f32), LeakyReLU(0.2), bf16 store."""
    y = y_ref[...].astype(jnp.float32) * sc_ref[...] + sh_ref[...]
    o_ref[...] = jnp.where(y > 0, y, LRELU_SLOPE * y).astype(o_ref.dtype)


# ------------------------------ wrappers ----------------------------------- #
def matmul_bias_act(lhs, w_mat, bias, *, act, out_dtype):
    M, K = lhs.shape
    _, C = w_mat.shape
    budget, limit = _vmem_budgets()
    TM = _choose_tm(M, K, C, budget)
    kernel = functools.partial(_matmul_bias_act_kernel, act=act)
    return pl.pallas_call(
        kernel,
        out_shape=jax.ShapeDtypeStruct((M, C), out_dtype),
        grid=(M // TM,),
        in_specs=[pl.BlockSpec((TM, K), lambda i: (i, 0)),
                  pl.BlockSpec((K, C), lambda i: (0, 0)),
                  pl.BlockSpec((1, C), lambda i: (0, 0))],
        out_specs=pl.BlockSpec((TM, C), lambda i: (i, 0)),
        compiler_params=pltpu.CompilerParams(
            dimension_semantics=("parallel",), vmem_limit_bytes=limit),
    )(lhs, w_mat, bias)


def _make_stride2_phases(x, pad):
    """(N,H,W,C) -> (N, 4*Hh, Wh, C): spatially padded input split into the 4
    (row, col) stride-2 parity phases, so every in-kernel tap slice is a plain
    contiguous window (no strided VMEM loads).  ~1.1x input bytes of traffic
    vs the ~6-12x of a materialized im2col matrix."""
    N, H, W, C = x.shape
    xp = jnp.pad(x, ((0, 0), (pad, pad), (pad, pad), (0, 0)))
    Hh, Wh = (H + 2 * pad) // 2, (W + 2 * pad) // 2
    ph = [xp[:, a::2, b::2, :] for a in (0, 1) for b in (0, 1)]
    return jnp.stack(ph, axis=1).reshape(N, 4 * Hh, Wh, C)


def conv5x5s2_bn_stats(x, w_taps, bias):
    """Fused Conv(k=5, s=2, p=2) over an NHWC bf16 input, one image per grid
    step (grid shards across TensorCores on v7x).  Returns (y bf16, stats)."""
    N, H, W, Cin = x.shape
    k, pad = 5, 2
    Ho, Wo = H // 2, W // 2
    Hh, Wh = (H + 2 * pad) // 2, (W + 2 * pad) // 2
    cout = w_taps.shape[-1]
    phases = _make_stride2_phases(x, pad)           # (N, 4*Hh, Wh, Cin) bf16
    _, limit = _vmem_budgets()
    kernel = functools.partial(_conv5x5s2_bn_stats_kernel,
                               k=k, Hh=Hh, Ho=Ho, Wo=Wo)
    return pl.pallas_call(
        kernel,
        out_shape=(jax.ShapeDtypeStruct((N, Ho, Wo, cout), jnp.bfloat16),
                   jax.ShapeDtypeStruct((N, 2, cout), jnp.float32)),
        grid=(N,),
        in_specs=[pl.BlockSpec((1, 4 * Hh, Wh, Cin), lambda n: (n, 0, 0, 0)),
                  pl.BlockSpec((k * k, Cin, cout), lambda n: (0, 0, 0)),
                  pl.BlockSpec((1, cout), lambda n: (0, 0))],
        out_specs=(pl.BlockSpec((1, Ho, Wo, cout), lambda n: (n, 0, 0, 0)),
                   pl.BlockSpec((1, 2, cout), lambda n: (n, 0, 0))),
        compiler_params=pltpu.CompilerParams(
            dimension_semantics=("parallel",), vmem_limit_bytes=limit),
    )(phases, w_taps, bias)


def bn_lrelu(y2d, scale, shift):
    M, C = y2d.shape
    budget, limit = _vmem_budgets()
    TM = _choose_tm(M, C, C, budget)
    return pl.pallas_call(
        _bn_lrelu_kernel,
        out_shape=jax.ShapeDtypeStruct((M, C), jnp.bfloat16),
        grid=(M // TM,),
        in_specs=[pl.BlockSpec((TM, C), lambda i: (i, 0)),
                  pl.BlockSpec((1, C), lambda i: (0, 0)),
                  pl.BlockSpec((1, C), lambda i: (0, 0))],
        out_specs=pl.BlockSpec((TM, C), lambda i: (i, 0)),
        compiler_params=pltpu.CompilerParams(
            dimension_semantics=("parallel",), vmem_limit_bytes=limit),
    )(y2d, scale, shift)


# ------------------------------ JAX glue ----------------------------------- #
def _im2col(x, k, stride, pad):
    """(N,H,W,C) bf16 -> patches (N*Ho*Wo, k*k*C), feature order (kh, kw, cin).
    Only used for layer 1 (C=3), where the small patch duplication is cheaper
    than the 128-lane padding an NHWC phase layout would pay."""
    N, H, W, C = x.shape
    xp = jnp.pad(x, ((0, 0), (pad, pad), (pad, pad), (0, 0)))
    Ho = (H + 2 * pad - k) // stride + 1
    Wo = (W + 2 * pad - k) // stride + 1
    cols = [xp[:, i:i + stride * Ho:stride, j:j + stride * Wo:stride, :]
            for i in range(k) for j in range(k)]
    patches = jnp.concatenate(cols, axis=-1).reshape(N * Ho * Wo, k * k * C)
    return patches, (N, Ho, Wo)


def init_params(key, in_dim=3, dim=8):
    """Deterministic synthetic params following weights_init() / PyTorch
    defaults, plus the packed (unpadded-channel) matrices for the kernels."""
    layer_defs = [
        # (cin,     cout,    k, s, p, use_bn, act)
        (in_dim,    dim,     5, 2, 2, False, "lrelu"),
        (dim,       dim * 2, 5, 2, 2, True,  "lrelu"),
        (dim * 2,   dim * 4, 5, 2, 2, True,  "lrelu"),
        (dim * 4,   dim * 8, 5, 2, 2, True,  "lrelu"),
        (dim * 8,   1,       4, 1, 0, False, "sigmoid"),
    ]
    params = []
    for (cin, cout, k, s, p, use_bn, act) in layer_defs:
        key, kw_, kb_, kg_ = jax.random.split(key, 4)
        # weights_init: Conv weights ~ N(0, 0.02); PyTorch layout (O, I, KH, KW)
        w = 0.02 * jax.random.normal(kw_, (cout, cin, k, k), jnp.float32)
        bound = 1.0 / float(cin * k * k) ** 0.5
        b = jax.random.uniform(kb_, (cout,), jnp.float32, -bound, bound)
        if use_bn:
            gamma = 1.0 + 0.02 * jax.random.normal(kg_, (cout,), jnp.float32)
        else:
            gamma = jnp.ones((cout,), jnp.float32)
        beta = jnp.zeros((cout,), jnp.float32)

        w_hwio = jnp.transpose(w, (2, 3, 1, 0))              # (kh, kw, cin, cout)
        if use_bn:
            packed = dict(
                w_taps=w_hwio.reshape(k * k, cin, cout).astype(jnp.bfloat16))
        else:
            packed = dict(
                w_mat=w_hwio.reshape(k * k * cin, cout).astype(jnp.bfloat16))

        params.append(dict(w=w, b=b, gamma=gamma, beta=beta,
                           b2d=b.reshape(1, cout),
                           k=k, s=s, p=p, use_bn=use_bn, act=act, cout=cout,
                           **packed))
    return params


def discriminator_forward(x_nchw, params):
    # NCHW -> NHWC; bf16 activations everywhere (f32 MXU accumulation).
    x = jnp.transpose(x_nchw, (0, 2, 3, 1)).astype(jnp.bfloat16)

    # Layer 1: Conv(3, dim, 5, 2, 2) + LeakyReLU via im2col + fused matmul.
    lp = params[0]
    patches, (N, Ho, Wo) = _im2col(x, lp["k"], lp["s"], lp["p"])
    out = matmul_bias_act(patches, lp["w_mat"], lp["b2d"],
                          act="lrelu", out_dtype=jnp.bfloat16)
    x = out.reshape(N, Ho, Wo, lp["cout"])

    # Layers 2-4: fused per-image 5x5/2 conv + BN partials (pass 1), tiny JAX
    # stats fold (Chan combine), then BN-affine + LeakyReLU (pass 2).
    for lp in params[1:4]:
        y, stats = conv5x5s2_bn_stats(x, lp["w_taps"], lp["b2d"])
        N, Ho, Wo, cout = y.shape
        cnt = Ho * Wo
        mean_i, m2_i = stats[:, 0, :], stats[:, 1, :]          # (N, cout)
        mean = jnp.mean(mean_i, axis=0)
        m2 = (jnp.sum(m2_i, axis=0)
              + cnt * jnp.sum((mean_i - mean[None, :]) ** 2, axis=0))
        var = m2 / (N * cnt)                                   # biased (training)
        scale = lp["gamma"] * lax.rsqrt(var + BN_EPS)
        shift = lp["beta"] - mean * scale
        out2d = bn_lrelu(y.reshape(N * cnt, cout),
                         scale.reshape(1, cout), shift.reshape(1, cout))
        x = out2d.reshape(N, Ho, Wo, cout)

    # Layer 5: Conv(8*dim, 1, 4, 1, 0) on the 4x4 map == dense matmul + sigmoid.
    lp = params[4]
    feat = x.reshape(x.shape[0], -1)                           # (N, 16*8*dim)
    out = matmul_bias_act(feat, lp["w_mat"], lp["b2d"],
                          act="sigmoid", out_dtype=jnp.float32)
    return out[:, 0]                                           # y.view(-1) -> (N,)


# -------------------------- pure-JAX reference ----------------------------- #
def reference_forward(x_nchw, params):
    x = x_nchw
    for lp in params:
        y = lax.conv_general_dilated(
            x, lp["w"], (lp["s"], lp["s"]),
            [(lp["p"], lp["p"]), (lp["p"], lp["p"])],
            dimension_numbers=("NCHW", "OIHW", "NCHW"))
        y = y + lp["b"].reshape(1, -1, 1, 1)
        if lp["use_bn"]:
            mean = jnp.mean(y, axis=(0, 2, 3), keepdims=True)
            var = jnp.mean((y - mean) ** 2, axis=(0, 2, 3), keepdims=True)
            y = (y - mean) / jnp.sqrt(var + BN_EPS)
            y = (y * lp["gamma"].reshape(1, -1, 1, 1)
                 + lp["beta"].reshape(1, -1, 1, 1))
        if lp["act"] == "lrelu":
            y = jnp.where(y > 0, y, LRELU_SLOPE * y)
        else:
            y = jax.nn.sigmoid(y)
        x = y
    return x.reshape(-1)


if __name__ == "__main__":
    key = jax.random.PRNGKey(0)
    kx, kp = jax.random.split(key)

    # Spatial must be 64 for the final 4x4 VALID conv (64 -> 32 -> 16 -> 8 -> 4
    # -> 1); reduced width dim=8 (module default 64) and batch N=2 keep the
    # demo small.
    N, in_dim, dim, S = 2, 3, 8, 64
    x = jax.random.normal(kx, (N, in_dim, S, S), jnp.float32)
    params = init_params(kp, in_dim=in_dim, dim=dim)

    fwd = jax.jit(lambda xx: discriminator_forward(xx, params))
    y = jax.block_until_ready(fwd(x))

    y_ref = reference_forward(x, params)
    assert y.shape == (N,), y.shape
    # bf16 matmul inputs and a bf16 BN intermediate vs the all-f32 reference:
    # expected deviation is ~1e-3 on sigmoid outputs; 2e-2 is comfortable.
    assert jnp.allclose(y, y_ref, atol=2e-2, rtol=2e-2), (y, y_ref)
    print("KERNEL_OK")
</pallas_src>

<mosaic_0001>
module attributes {stable_mosaic.version = 11 : i64} {
  func.func @_matmul_bias_act_kernel(%arg0: i32, %arg1: memref<1024x75xbf16, #tpu.memory_space<vmem>>, %arg2: memref<75x8xbf16, #tpu.memory_space<vmem>>, %arg3: memref<1x8xf32, #tpu.memory_space<vmem>>, %arg4: memref<1024x8xbf16, #tpu.memory_space<vmem>>) attributes {dimension_semantics = [#tpu.dimension_semantics<parallel>], iteration_bounds = array<i64: 2>, scalar_prefetch = 0 : i64, scratch_operands = 0 : i64, tpu.core_type = #tpu.core_type<tc>, window_params = [{transform_indices = @transform_0, window_bounds = array<i64: 1024, 75>}, {pipeline_mode = #tpu.pipeline_mode<synchronous>, transform_indices = @transform_1, window_bounds = array<i64: 75, 8>}, {pipeline_mode = #tpu.pipeline_mode<synchronous>, transform_indices = @transform_2, window_bounds = array<i64: 1, 8>}, {transform_indices = @transform_3, window_bounds = array<i64: 1024, 8>}]} {
    %c0 = arith.constant 0 : index
    %c0_0 = arith.constant 0 : index
    %0 = vector.load %arg1[%c0, %c0_0] : memref<1024x75xbf16, #tpu.memory_space<vmem>>, vector<1024x75xbf16>
    %c0_1 = arith.constant 0 : index
    %c0_2 = arith.constant 0 : index
    %1 = vector.load %arg2[%c0_1, %c0_2] : memref<75x8xbf16, #tpu.memory_space<vmem>>, vector<75x8xbf16>
    %cst = arith.constant dense<0.000000e+00> : vector<1024x8xf32>
    %2 = tpu.matmul %0, %1, %cst {dimension_numbers = #tpu.dot_dimension_numbers<[1], [0], [0], [1], [0, 0, 1, 1], [], []>} : vector<1024x75xbf16>, vector<75x8xbf16>, vector<1024x8xf32> -> vector<1024x8xf32>
    %c0_3 = arith.constant 0 : index
    %c0_4 = arith.constant 0 : index
    %3 = vector.load %arg3[%c0_3, %c0_4] : memref<1x8xf32, #tpu.memory_space<vmem>>, vector<1x8xf32>
    %4 = vector.broadcast %3 : vector<1x8xf32> to vector<1024x8xf32>
    %5 = arith.addf %2, %4 : vector<1024x8xf32>
    %cst_5 = arith.constant 0.000000e+00 : f32
    %6 = vector.broadcast %cst_5 : f32 to vector<1024x8xf32>
    %7 = arith.cmpf ogt, %5, %6 : vector<1024x8xf32>
    %cst_6 = arith.constant 2.000000e-01 : f32
    %8 = vector.broadcast %cst_6 : f32 to vector<1024x8xf32>
    %9 = arith.mulf %8, %5 : vector<1024x8xf32>
    %10 = arith.select %7, %5, %9 : vector<1024x8xi1>, vector<1024x8xf32>
    %11 = arith.truncf %10 : vector<1024x8xf32> to vector<1024x8xbf16>
    %c0_7 = arith.constant 0 : index
    %c0_8 = arith.constant 0 : index
    %12 = vector.load %arg4[%c0_7, %c0_8] : memref<1024x8xbf16, #tpu.memory_space<vmem>>, vector<1024x8xbf16>
    tpu.vector_store %arg4[%c0_7, %c0_8], %11 {strides = array<i32>} : memref<1024x8xbf16, #tpu.memory_space<vmem>>, vector<1024x8xbf16>,
    return
  }
  func.func @transform_0(%arg0: i32) -> (i32, i32) {
    %c0_i32 = arith.constant 0 : i32
    %c0_i32_0 = arith.constant 0 : i32
    return %arg0, %c0_i32 : i32, i32
  }
  func.func @transform_1(%arg0: i32) -> (i32, i32) {
    %c0_i32 = arith.constant 0 : i32
    %c0_i32_0 = arith.constant 0 : i32
    %c0_i32_1 = arith.constant 0 : i32
    return %c0_i32, %c0_i32_0 : i32, i32
  }
  func.func @transform_2(%arg0: i32) -> (i32, i32) {
    %c0_i32 = arith.constant 0 : i32
    %c0_i32_0 = arith.constant 0 : i32
    %c0_i32_1 = arith.constant 0 : i32
    return %c0_i32, %c0_i32_0 : i32, i32
  }
  func.func @transform_3(%arg0: i32) -> (i32, i32) {
    %c0_i32 = arith.constant 0 : i32
    %c0_i32_0 = arith.constant 0 : i32
    return %arg0, %c0_i32 : i32, i32
  }
}

module attributes {stable_mosaic.version = 11 : i64} {
  func.func @_conv5x5s2_bn_stats_kernel(%arg0: i32, %arg1: memref<1x72x18x8xbf16, #tpu.memory_space<vmem>>, %arg2: memref<25x8x16xbf16, #tpu.memory_space<vmem>>, %arg3: memref<1x16xf32, #tpu.memory_space<vmem>>, %arg4: memref<1x16x16x16xbf16, #tpu.memory_space<vmem>>, %arg5: memref<1x2x16xf32, #tpu.memory_space<vmem>>) attributes {dimension_semantics = [#tpu.dimension_semantics<parallel>], iteration_bounds = array<i64: 2>, scalar_prefetch = 0 : i64, scratch_operands = 0 : i64, tpu.core_type = #tpu.core_type<tc>, window_params = [{transform_indices = @transform_0, window_bounds = array<i64: 1, 72, 18, 8>}, {pipeline_mode = #tpu.pipeline_mode<synchronous>, transform_indices = @transform_1, window_bounds = array<i64: 25, 8, 16>}, {pipeline_mode = #tpu.pipeline_mode<synchronous>, transform_indices = @transform_2, window_bounds = array<i64: 1, 16>}, {transform_indices = @transform_3, window_bounds = array<i64: 1, 16, 16, 16>}, {transform_indices = @transform_4, window_bounds = array<i64: 1, 2, 16>}]} {
    %c0 = arith.constant 0 : index
    %c0_0 = arith.constant 0 : index
    %0 = vector.load %arg3[%c0, %c0_0] : memref<1x16xf32, #tpu.memory_space<vmem>>, vector<1x16xf32>
    %cst = arith.constant 0.000000e+00 : f32
    %1 = vector.broadcast %cst : f32 to vector<1x16xf32>
    %c0_i32 = arith.constant 0 : i32
    %c16_i32 = arith.constant 16 : i32
    %2 = arith.addi %c0_i32, %c16_i32 : i32
    %c1_i32 = arith.constant 1 : i32
    %3 = scf.for %arg6 = %c0_i32 to %2 step %c1_i32 iter_args(%arg7 = %1) -> (vector<1x16xf32>)  : i32 {
      %cst_13 = arith.constant 0.000000e+00 : f32
      %15 = vector.broadcast %cst_13 : f32 to vector<16x16xf32>
      %c0_i32_14 = arith.constant 0 : i32
      %16 = arith.addi %c0_i32_14, %arg6 : i32
      %c0_15 = arith.constant 0 : index
      %17 = arith.index_cast %16 : i32 to index
      %c0_16 = arith.constant 0 : index
      %c0_17 = arith.constant 0 : index
      %18 = vector.load %arg1[%c0_15, %17, %c0_16, %c0_17] : memref<1x72x18x8xbf16, #tpu.memory_space<vmem>>, vector<1x1x16x8xbf16>
      %19 = vector.shape_cast %18 : vector<1x1x16x8xbf16> to vector<16x8xbf16>
      %c0_18 = arith.constant 0 : index
      %c0_19 = arith.constant 0 : index
      %c0_20 = arith.constant 0 : index
      %20 = vector.load %arg2[%c0_18, %c0_19, %c0_20] : memref<25x8x16xbf16, #tpu.memory_space<vmem>>, vector<1x8x16xbf16>
      %21 = vector.shape_cast %20 : vector<1x8x16xbf16> to vector<8x16xbf16>
      %cst_21 = arith.constant dense<0.000000e+00> : vector<16x16xf32>
      %22 = tpu.matmul %19, %21, %cst_21 {dimension_numbers = #tpu.dot_dimension_numbers<[1], [0], [0], [1], [0, 0, 1, 1], [], []>} : vector<16x8xbf16>, vector<8x16xbf16>, vector<16x16xf32> -> vector<16x16xf32>
      %23 = arith.addf %15, %22 : vector<16x16xf32>
      %c18_i32 = arith.constant 18 : i32
      %24 = arith.addi %c18_i32, %arg6 : i32
      %c0_22 = arith.constant 0 : index
      %25 = arith.index_cast %24 : i32 to index
      %c0_23 = arith.constant 0 : index
      %c0_24 = arith.constant 0 : index
      %26 = vector.load %arg1[%c0_22, %25, %c0_23, %c0_24] : memref<1x72x18x8xbf16, #tpu.memory_space<vmem>>, vector<1x1x16x8xbf16>
      %27 = vector.shape_cast %26 : vector<1x1x16x8xbf16> to vector<16x8xbf16>
      %c1_25 = arith.constant 1 : index
      %c0_26 = arith.constant 0 : index
      %c0_27 = arith.constant 0 : index
      %28 = vector.load %arg2[%c1_25, %c0_26, %c0_27] : memref<25x8x16xbf16, #tpu.memory_space<vmem>>, vector<1x8x16xbf16>
      %29 = vector.shape_cast %28 : vector<1x8x16xbf16> to vector<8x16xbf16>
      %cst_28 = arith.constant dense<0.000000e+00> : vector<16x16xf32>
      %30 = tpu.matmul %27, %29, %cst_28 {dimension_numbers = #tpu.dot_dimension_numbers<[1], [0], [0], [1], [0, 0, 1, 1], [], []>} : vector<16x8xbf16>, vector<8x16xbf16>, vector<16x16xf32> -> vector<16x16xf32>
      %31 = arith.addf %23, %30 : vector<16x16xf32>
      %c0_i32_29 = arith.constant 0 : i32
      %32 = arith.addi %c0_i32_29, %arg6 : i32
      %c0_30 = arith.constant 0 : index
      %33 = arith.index_cast %32 : i32 to index
      %c1_31 = arith.constant 1 : index
      %c0_32 = arith.constant 0 : index
      %34 = vector.load %arg1[%c0_30, %33, %c1_31, %c0_32] : memref<1x72x18x8xbf16, #tpu.memory_space<vmem>>, vector<1x1x16x8xbf16>
      %35 = vector.shape_cast %34 : vector<1x1x16x8xbf16> to vector<16x8xbf16>
      %c2 = arith.constant 2 : index
      %c0_33 = arith.constant 0 : index
      %c0_34 = arith.constant 0 : index
      %36 = vector.load %arg2[%c2, %c0_33, %c0_34] : memref<25x8x16xbf16, #tpu.memory_space<vmem>>, vector<1x8x16xbf16>
      %37 = vector.shape_cast %36 : vector<1x8x16xbf16> to vector<8x16xbf16>
      %cst_35 = arith.constant dense<0.000000e+00> : vector<16x16xf32>
      %38 = tpu.matmul %35, %37, %cst_35 {dimension_numbers = #tpu.dot_dimension_numbers<[1], [0], [0], [1], [0, 0, 1, 1], [], []>} : vector<16x8xbf16>, vector<8x16xbf16>, vector<16x16xf32> -> vector<16x16xf32>
      %39 = arith.addf %31, %38 : vector<16x16xf32>
      %c18_i32_36 = arith.constant 18 : i32
      %40 = arith.addi %c18_i32_36, %arg6 : i32
      %c0_37 = arith.constant 0 : index
      %41 = arith.index_cast %40 : i32 to index
      %c1_38 = arith.constant 1 : index
      %c0_39 = arith.constant 0 : index
      %42 = vector.load %arg1[%c0_37, %41, %c1_38, %c0_39] : memref<1x72x18x8xbf16, #tpu.memory_space<vmem>>, vector<1x1x16x8xbf16>
      %43 = vector.shape_cast %42 : vector<1x1x16x8xbf16> to vector<16x8xbf16>
      %c3 = arith.constant 3 : index
      %c0_40 = arith.constant 0 : index
      %c0_41 = arith.constant 0 : index
      %44 = vector.load %arg2[%c3, %c0_40, %c0_41] : memref<25x8x16xbf16, #tpu.memory_space<vmem>>, vector<1x8x16xbf16>
      %45 = vector.shape_cast %44 : vector<1x8x16xbf16> to vector<8x16xbf16>
      %cst_42 = arith.constant dense<0.000000e+00> : vector<16x16xf32>
      %46 = tpu.matmul %43, %45, %cst_42 {dimension_numbers = #tpu.dot_dimension_numbers<[1], [0], [0], [1], [0, 0, 1, 1], [], []>} : vector<16x8xbf16>, vector<8x16xbf16>, vector<16x16xf32> -> vector<16x16xf32>
      %47 = arith.addf %39, %46 : vector<16x16xf32>
      %c0_i32_43 = arith.constant 0 : i32
      %48 = arith.addi %c0_i32_43, %arg6 : i32
      %c0_44 = arith.constant 0 : index
      %49 = arith.index_cast %48 : i32 to index
      %c2_45 = arith.constant 2 : index
      %c0_46 = arith.constant 0 : index
      %50 = vector.load %arg1[%c0_44, %49, %c2_45, %c0_46] : memref<1x72x18x8xbf16, #tpu.memory_space<vmem>>, vector<1x1x16x8xbf16>
      %51 = vector.shape_cast %50 : vector<1x1x16x8xbf16> to vector<16x8xbf16>
      %c4 = arith.constant 4 : index
      %c0_47 = arith.constant 0 : index
      %c0_48 = arith.constant 0 : index
      %52 = vector.load %arg2[%c4, %c0_47, %c0_48] : memref<25x8x16xbf16, #tpu.memory_space<vmem>>, vector<1x8x16xbf16>
      %53 = vector.shape_cast %52 : vector<1x8x16xbf16> to vector<8x16xbf16>
      %cst_49 = arith.constant dense<0.000000e+00> : vector<16x16xf32>
      %54 = tpu.matmul %51, %53, %cst_49 {dimension_numbers = #tpu.dot_dimension_numbers<[1], [0], [0], [1], [0, 0, 1, 1], [], []>} : vector<16x8xbf16>, vector<8x16xbf16>, vector<16x16xf32> -> vector<16x16xf32>
      %55 = arith.addf %47, %54 : vector<16x16xf32>
      %c36_i32 = arith.constant 36 : i32
      %56 = arith.addi %c36_i32, %arg6 : i32
      %c0_50 = arith.constant 0 : index
      %57 = arith.index_cast %56 : i32 to index
      %c0_51 = arith.constant 0 : index
      %c0_52 = arith.constant 0 : index
      %58 = vector.load %arg1[%c0_50, %57, %c0_51, %c0_52] : memref<1x72x18x8xbf16, #tpu.memory_space<vmem>>, vector<1x1x16x8xbf16>
      %59 = vector.shape_cast %58 : vector<1x1x16x8xbf16> to vector<16x8xbf16>
      %c5 = arith.constant 5 : index
      %c0_53 = arith.constant 0 : index
      %c0_54 = arith.constant 0 : index
      %60 = vector.load %arg2[%c5, %c0_53, %c0_54] : memref<25x8x16xbf16, #tpu.memory_space<vmem>>, vector<1x8x16xbf16>
      %61 = vector.shape_cast %60 : vector<1x8x16xbf16> to vector<8x16xbf16>
      %cst_55 = arith.constant dense<0.000000e+00> : vector<16x16xf32>
      %62 = tpu.matmul %59, %61, %cst_55 {dimension_numbers = #tpu.dot_dimension_numbers<[1], [0], [0], [1], [0, 0, 1, 1], [], []>} : vector<16x8xbf16>, vector<8x16xbf16>, vector<16x16xf32> -> vector<16x16xf32>
      %63 = arith.addf %55, %62 : vector<16x16xf32>
      %c54_i32 = arith.constant 54 : i32
      %64 = arith.addi %c54_i32, %arg6 : i32
      %c0_56 = arith.constant 0 : index
      %65 = arith.index_cast %64 : i32 to index
      %c0_57 = arith.constant 0 : index
      %c0_58 = arith.constant 0 : index
      %66 = vector.load %arg1[%c0_56, %65, %c0_57, %c0_58] : memref<1x72x18x8xbf16, #tpu.memory_space<vmem>>, vector<1x1x16x8xbf16>
      %67 = vector.shape_cast %66 : vector<1x1x16x8xbf16> to vector<16x8xbf16>
      %c6 = arith.constant 6 : index
      %c0_59 = arith.constant 0 : index
      %c0_60 = arith.constant 0 : index
      %68 = vector.load %arg2[%c6, %c0_59, %c0_60] : memref<25x8x16xbf16, #tpu.memory_space<vmem>>, vector<1x8x16xbf16>
      %69 = vector.shape_cast %68 : vector<1x8x16xbf16> to vector<8x16xbf16>
      %cst_61 = arith.constant dense<0.000000e+00> : vector<16x16xf32>
      %70 = tpu.matmul %67, %69, %cst_61 {dimension_numbers = #tpu.dot_dimension_numbers<[1], [0], [0], [1], [0, 0, 1, 1], [], []>} : vector<16x8xbf16>, vector<8x16xbf16>, vector<16x16xf32> -> vector<16x16xf32>
      %71 = arith.addf %63, %70 : vector<16x16xf32>
      %c36_i32_62 = arith.constant 36 : i32
      %72 = arith.addi %c36_i32_62, %arg6 : i32
      %c0_63 = arith.constant 0 : index
      %73 = arith.index_cast %72 : i32 to index
      %c1_64 = arith.constant 1 : index
      %c0_65 = arith.constant 0 : index
      %74 = vector.load %arg1[%c0_63, %73, %c1_64, %c0_65] : memref<1x72x18x8xbf16, #tpu.memory_space<vmem>>, vector<1x1x16x8xbf16>
      %75 = vector.shape_cast %74 : vector<1x1x16x8xbf16> to vector<16x8xbf16>
      %c7 = arith.constant 7 : index
      %c0_66 = arith.constant 0 : index
      %c0_67 = arith.constant 0 : index
      %76 = vector.load %arg2[%c7, %c0_66, %c0_67] : memref<25x8x16xbf16, #tpu.memory_space<vmem>>, vector<1x8x16xbf16>
      %77 = vector.shape_cast %76 : vector<1x8x16xbf16> to vector<8x16xbf16>
      %cst_68 = arith.constant dense<0.000000e+00> : vector<16x16xf32>
      %78 = tpu.matmul %75, %77, %cst_68 {dimension_numbers = #tpu.dot_dimension_numbers<[1], [0], [0], [1], [0, 0, 1, 1], [], []>} : vector<16x8xbf16>, vector<8x16xbf16>, vector<16x16xf32> -> vector<16x16xf32>
      %79 = arith.addf %71, %78 : vector<16x16xf32>
      %c54_i32_69 = arith.constant 54 : i32
      %80 = arith.addi %c54_i32_69, %arg6 : i32
      %c0_70 = arith.constant 0 : index
      %81 = arith.index_cast %80 : i32 to index
      %c1_71 = arith.constant 1 : index
      %c0_72 = arith.constant 0 : index
      %82 = vector.load %arg1[%c0_70, %81, %c1_71, %c0_72] : memref<1x72x18x8xbf16, #tpu.memory_space<vmem>>, vector<1x1x16x8xbf16>
      %83 = vector.shape_cast %82 : vector<1x1x16x8xbf16> to vector<16x8xbf16>
      %c8 = arith.constant 8 : index
      %c0_73 = arith.constant 0 : index
      %c0_74 = arith.constant 0 : index
      %84 = vector.load %arg2[%c8, %c0_73, %c0_74] : memref<25x8x16xbf16, #tpu.memory_space<vmem>>, vector<1x8x16xbf16>
      %85 = vector.shape_cast %84 : vector<1x8x16xbf16> to vector<8x16xbf16>
      %cst_75 = arith.constant dense<0.000000e+00> : vector<16x16xf32>
      %86 = tpu.matmul %83, %85, %cst_75 {dimension_numbers = #tpu.dot_dimension_numbers<[1], [0], [0], [1], [0, 0, 1, 1], [], []>} : vector<16x8xbf16>, vector<8x16xbf16>, vector<16x16xf32> -> vector<16x16xf32>
      %87 = arith.addf %79, %86 : vector<16x16xf32>
      %c36_i32_76 = arith.constant 36 : i32
      %88 = arith.addi %c36_i32_76, %arg6 : i32
      %c0_77 = arith.constant 0 : index
      %89 = arith.index_cast %88 : i32 to index
      %c2_78 = arith.constant 2 : index
      %c0_79 = arith.constant 0 : index
      %90 = vector.load %arg1[%c0_77, %89, %c2_78, %c0_79] : memref<1x72x18x8xbf16, #tpu.memory_space<vmem>>, vector<1x1x16x8xbf16>
      %91 = vector.shape_cast %90 : vector<1x1x16x8xbf16> to vector<16x8xbf16>
      %c9 = arith.constant 9 : index
      %c0_80 = arith.constant 0 : index
      %c0_81 = arith.constant 0 : index
      %92 = vector.load %arg2[%c9, %c0_80, %c0_81] : memref<25x8x16xbf16, #tpu.memory_space<vmem>>, vector<1x8x16xbf16>
      %93 = vector.shape_cast %92 : vector<1x8x16xbf16> to vector<8x16xbf16>
      %cst_82 = arith.constant dense<0.000000e+00> : vector<16x16xf32>
      %94 = tpu.matmul %91, %93, %cst_82 {dimension_numbers = #tpu.dot_dimension_numbers<[1], [0], [0], [1], [0, 0, 1, 1], [], []>} : vector<16x8xbf16>, vector<8x16xbf16>, vector<16x16xf32> -> vector<16x16xf32>
      %95 = arith.addf %87, %94 : vector<16x16xf32>
      %c1_i32_83 = arith.constant 1 : i32
      %96 = arith.addi %c1_i32_83, %arg6 : i32
      %c0_84 = arith.constant 0 : index
      %97 = arith.index_cast %96 : i32 to index
      %c0_85 = arith.constant 0 : index
      %c0_86 = arith.constant 0 : index
      %98 = vector.load %arg1[%c0_84, %97, %c0_85, %c0_86] : memref<1x72x18x8xbf16, #tpu.memory_space<vmem>>, vector<1x1x16x8xbf16>
      %99 = vector.shape_cast %98 : vector<1x1x16x8xbf16> to vector<16x8xbf16>
      %c10 = arith.constant 10 : index
      %c0_87 = arith.constant 0 : index
      %c0_88 = arith.constant 0 : index
      %100 = vector.load %arg2[%c10, %c0_87, %c0_88] : memref<25x8x16xbf16, #tpu.memory_space<vmem>>, vector<1x8x16xbf16>
      %101 = vector.shape_cast %100 : vector<1x8x16xbf16> to vector<8x16xbf16>
      %cst_89 = arith.constant dense<0.000000e+00> : vector<16x16xf32>
      %102 = tpu.matmul %99, %101, %cst_89 {dimension_numbers = #tpu.dot_dimension_numbers<[1], [0], [0], [1], [0, 0, 1, 1], [], []>} : vector<16x8xbf16>, vector<8x16xbf16>, vector<16x16xf32> -> vector<16x16xf32>
      %103 = arith.addf %95, %102 : vector<16x16xf32>
      %c19_i32 = arith.constant 19 : i32
      %104 = arith.addi %c19_i32, %arg6 : i32
      %c0_90 = arith.constant 0 : index
      %105 = arith.index_cast %104 : i32 to index
      %c0_91 = arith.constant 0 : index
      %c0_92 = arith.constant 0 : index
      %106 = vector.load %arg1[%c0_90, %105, %c0_91, %c0_92] : memref<1x72x18x8xbf16, #tpu.memory_space<vmem>>, vector<1x1x16x8xbf16>
      %107 = vector.shape_cast %106 : vector<1x1x16x8xbf16> to vector<16x8xbf16>
      %c11 = arith.constant 11 : index
      %c0_93 = arith.constant 0 : index
      %c0_94 = arith.constant 0 : index
      %108 = vector.load %arg2[%c11, %c0_93, %c0_94] : memref<25x8x16xbf16, #tpu.memory_space<vmem>>, vector<1x8x16xbf16>
      %109 = vector.shape_cast %108 : vector<1x8x16xbf16> to vector<8x16xbf16>
      %cst_95 = arith.constant dense<0.000000e+00> : vector<16x16xf32>
      %110 = tpu.matmul %107, %109, %cst_95 {dimension_numbers = #tpu.dot_dimension_numbers<[1], [0], [0], [1], [0, 0, 1, 1], [], []>} : vector<16x8xbf16>, vector<8x16xbf16>, vector<16x16xf32> -> vector<16x16xf32>
      %111 = arith.addf %103, %110 : vector<16x16xf32>
      %c1_i32_96 = arith.constant 1 : i32
      %112 = arith.addi %c1_i32_96, %arg6 : i32
      %c0_97 = arith.constant 0 : index
      %113 = arith.index_cast %112 : i32 to index
      %c1_98 = arith.constant 1 : index
      %c0_99 = arith.constant 0 : index
      %114 = vector.load %arg1[%c0_97, %113, %c1_98, %c0_99] : memref<1x72x18x8xbf16, #tpu.memory_space<vmem>>, vector<1x1x16x8xbf16>
      %115 = vector.shape_cast %114 : vector<1x1x16x8xbf16> to vector<16x8xbf16>
      %c12 = arith.constant 12 : index
      %c0_100 = arith.constant 0 : index
      %c0_101 = arith.constant 0 : index
      %116 = vector.load %arg2[%c12, %c0_100, %c0_101] : memref<25x8x16xbf16, #tpu.memory_space<vmem>>, vector<1x8x16xbf16>
      %117 = vector.shape_cast %116 : vector<1x8x16xbf16> to vector<8x16xbf16>
      %cst_102 = arith.constant dense<0.000000e+00> : vector<16x16xf32>
      %118 = tpu.matmul %115, %117, %cst_102 {dimension_numbers = #tpu.dot_dimension_numbers<[1], [0], [0], [1], [0, 0, 1, 1], [], []>} : vector<16x8xbf16>, vector<8x16xbf16>, vector<16x16xf32> -> vector<16x16xf32>
      %119 = arith.addf %111, %118 : vector<16x16xf32>
      %c19_i32_103 = arith.constant 19 : i32
      %120 = arith.addi %c19_i32_103, %arg6 : i32
      %c0_104 = arith.constant 0 : index
      %121 = arith.index_cast %120 : i32 to index
      %c1_105 = arith.constant 1 : index
      %c0_106 = arith.constant 0 : index
      %122 = vector.load %arg1[%c0_104, %121, %c1_105, %c0_106] : memref<1x72x18x8xbf16, #tpu.memory_space<vmem>>, vector<1x1x16x8xbf16>
      %123 = vector.shape_cast %122 : vector<1x1x16x8xbf16> to vector<16x8xbf16>
      %c13 = arith.constant 13 : index
      %c0_107 = arith.constant 0 : index
      %c0_108 = arith.constant 0 : index
      %124 = vector.load %arg2[%c13, %c0_107, %c0_108] : memref<25x8x16xbf16, #tpu.memory_space<vmem>>, vector<1x8x16xbf16>
      %125 = vector.shape_cast %124 : vector<1x8x16xbf16> to vector<8x16xbf16>
      %cst_109 = arith.constant dense<0.000000e+00> : vector<16x16xf32>
      %126 = tpu.matmul %123, %125, %cst_109 {dimension_numbers = #tpu.dot_dimension_numbers<[1], [0], [0], [1], [0, 0, 1, 1], [], []>} : vector<16x8xbf16>, vector<8x16xbf16>, vector<16x16xf32> -> vector<16x16xf32>
      %127 = arith.addf %119, %126 : vector<16x16xf32>
      %c1_i32_110 = arith.constant 1 : i32
      %128 = arith.addi %c1_i32_110, %arg6 : i32
      %c0_111 = arith.constant 0 : index
      %129 = arith.index_cast %128 : i32 to index
      %c2_112 = arith.constant 2 : index
      %c0_113 = arith.constant 0 : index
      %130 = vector.load %arg1[%c0_111, %129, %c2_112, %c0_113] : memref<1x72x18x8xbf16, #tpu.memory_space<vmem>>, vector<1x1x16x8xbf16>
      %131 = vector.shape_cast %130 : vector<1x1x16x8xbf16> to vector<16x8xbf16>
      %c14 = arith.constant 14 : index
      %c0_114 = arith.constant 0 : index
      %c0_115 = arith.constant 0 : index
      %132 = vector.load %arg2[%c14, %c0_114, %c0_115] : memref<25x8x16xbf16, #tpu.memory_space<vmem>>, vector<1x8x16xbf16>
      %133 = vector.shape_cast %132 : vector<1x8x16xbf16> to vector<8x16xbf16>
      %cst_116 = arith.constant dense<0.000000e+00> : vector<16x16xf32>
      %134 = tpu.matmul %131, %133, %cst_116 {dimension_numbers = #tpu.dot_dimension_numbers<[1], [0], [0], [1], [0, 0, 1, 1], [], []>} : vector<16x8xbf16>, vector<8x16xbf16>, vector<16x16xf32> -> vector<16x16xf32>
      %135 = arith.addf %127, %134 : vector<16x16xf32>
      %c37_i32 = arith.constant 37 : i32
      %136 = arith.addi %c37_i32, %arg6 : i32
      %c0_117 = arith.constant 0 : index
      %137 = arith.index_cast %136 : i32 to index
      %c0_118 = arith.constant 0 : index
      %c0_119 = arith.constant 0 : index
      %138 = vector.load %arg1[%c0_117, %137, %c0_118, %c0_119] : memref<1x72x18x8xbf16, #tpu.memory_space<vmem>>, vector<1x1x16x8xbf16>
      %139 = vector.shape_cast %138 : vector<1x1x16x8xbf16> to vector<16x8xbf16>
      %c15 = arith.constant 15 : index
      %c0_120 = arith.constant 0 : index
      %c0_121 = arith.constant 0 : index
      %140 = vector.load %arg2[%c15, %c0_120, %c0_121] : memref<25x8x16xbf16, #tpu.memory_space<vmem>>, vector<1x8x16xbf16>
      %141 = vector.shape_cast %140 : vector<1x8x16xbf16> to vector<8x16xbf16>
      %cst_122 = arith.constant dense<0.000000e+00> : vector<16x16xf32>
      %142 = tpu.matmul %139, %141, %cst_122 {dimension_numbers = #tpu.dot_dimension_numbers<[1], [0], [0], [1], [0, 0, 1, 1], [], []>} : vector<16x8xbf16>, vector<8x16xbf16>, vector<16x16xf32> -> vector<16x16xf32>
      %143 = arith.addf %135, %142 : vector<16x16xf32>
      %c55_i32 = arith.constant 55 : i32
      %144 = arith.addi %c55_i32, %arg6 : i32
      %c0_123 = arith.constant 0 : index
      %145 = arith.index_cast %144 : i32 to index
      %c0_124 = arith.constant 0 : index
      %c0_125 = arith.constant 0 : index
      %146 = vector.load %arg1[%c0_123, %145, %c0_124, %c0_125] : memref<1x72x18x8xbf16, #tpu.memory_space<vmem>>, vector<1x1x16x8xbf16>
      %147 = vector.shape_cast %146 : vector<1x1x16x8xbf16> to vector<16x8xbf16>
      %c16 = arith.constant 16 : index
      %c0_126 = arith.constant 0 : index
      %c0_127 = arith.constant 0 : index
      %148 = vector.load %arg2[%c16, %c0_126, %c0_127] : memref<25x8x16xbf16, #tpu.memory_space<vmem>>, vector<1x8x16xbf16>
      %149 = vector.shape_cast %148 : vector<1x8x16xbf16> to vector<8x16xbf16>
      %cst_128 = arith.constant dense<0.000000e+00> : vector<16x16xf32>
      %150 = tpu.matmul %147, %149, %cst_128 {dimension_numbers = #tpu.dot_dimension_numbers<[1], [0], [0], [1], [0, 0, 1, 1], [], []>} : vector<16x8xbf16>, vector<8x16xbf16>, vector<16x16xf32> -> vector<16x16xf32>
      %151 = arith.addf %143, %150 : vector<16x16xf32>
      %c37_i32_129 = arith.constant 37 : i32
      %152 = arith.addi %c37_i32_129, %arg6 : i32
      %c0_130 = arith.constant 0 : index
      %153 = arith.index_cast %152 : i32 to index
      %c1_131 = arith.constant 1 : index
      %c0_132 = arith.constant 0 : index
      %154 = vector.load %arg1[%c0_130, %153, %c1_131, %c0_132] : memref<1x72x18x8xbf16, #tpu.memory_space<vmem>>, vector<1x1x16x8xbf16>
      %155 = vector.shape_cast %154 : vector<1x1x16x8xbf16> to vector<16x8xbf16>
      %c17 = arith.constant 17 : index
      %c0_133 = arith.constant 0 : index
      %c0_134 = arith.constant 0 : index
      %156 = vector.load %arg2[%c17, %c0_133, %c0_134] : memref<25x8x16xbf16, #tpu.memory_space<vmem>>, vector<1x8x16xbf16>
      %157 = vector.shape_cast %156 : vector<1x8x16xbf16> to vector<8x16xbf16>
      %cst_135 = arith.constant dense<0.000000e+00> : vector<16x16xf32>
      %158 = tpu.matmul %155, %157, %cst_135 {dimension_numbers = #tpu.dot_dimension_numbers<[1], [0], [0], [1], [0, 0, 1, 1], [], []>} : vector<16x8xbf16>, vector<8x16xbf16>, vector<16x16xf32> -> vector<16x16xf32>
      %159 = arith.addf %151, %158 : vector<16x16xf32>
      %c55_i32_136 = arith.constant 55 : i32
      %160 = arith.addi %c55_i32_136, %arg6 : i32
      %c0_137 = arith.constant 0 : index
      %161 = arith.index_cast %160 : i32 to index
      %c1_138 = arith.constant 1 : index
      %c0_139 = arith.constant 0 : index
      %162 = vector.load %arg1[%c0_137, %161, %c1_138, %c0_139] : memref<1x72x18x8xbf16, #tpu.memory_space<vmem>>, vector<1x1x16x8xbf16>
      %163 = vector.shape_cast %162 : vector<1x1x16x8xbf16> to vector<16x8xbf16>
      %c18 = arith.constant 18 : index
      %c0_140 = arith.constant 0 : index
      %c0_141 = arith.constant 0 : index
      %164 = vector.load %arg2[%c18, %c0_140, %c0_141] : memref<25x8x16xbf16, #tpu.memory_space<vmem>>, vector<1x8x16xbf16>
      %165 = vector.shape_cast %164 : vector<1x8x16xbf16> to vector<8x16xbf16>
      %cst_142 = arith.constant dense<0.000000e+00> : vector<16x16xf32>
      %166 = tpu.matmul %163, %165, %cst_142 {dimension_numbers = #tpu.dot_dimension_numbers<[1], [0], [0], [1], [0, 0, 1, 1], [], []>} : vector<16x8xbf16>, vector<8x16xbf16>, vector<16x16xf32> -> vector<16x16xf32>
      %167 = arith.addf %159, %166 : vector<16x16xf32>
      %c37_i32_143 = arith.constant 37 : i32
      %168 = arith.addi %c37_i32_143, %arg6 : i32
      %c0_144 = arith.constant 0 : index
      %169 = arith.index_cast %168 : i32 to index
      %c2_145 = arith.constant 2 : index
      %c0_146 = arith.constant 0 : index
      %170 = vector.load %arg1[%c0_144, %169, %c2_145, %c0_146] : memref<1x72x18x8xbf16, #tpu.memory_space<vmem>>, vector<1x1x16x8xbf16>
      %171 = vector.shape_cast %170 : vector<1x1x16x8xbf16> to vector<16x8xbf16>
      %c19 = arith.constant 19 : index
      %c0_147 = arith.constant 0 : index
      %c0_148 = arith.constant 0 : index
      %172 = vector.load %arg2[%c19, %c0_147, %c0_148] : memref<25x8x16xbf16, #tpu.memory_space<vmem>>, vector<1x8x16xbf16>
      %173 = vector.shape_cast %172 : vector<1x8x16xbf16> to vector<8x16xbf16>
      %cst_149 = arith.constant dense<0.000000e+00> : vector<16x16xf32>
      %174 = tpu.matmul %171, %173, %cst_149 {dimension_numbers = #tpu.dot_dimension_numbers<[1], [0], [0], [1], [0, 0, 1, 1], [], []>} : vector<16x8xbf16>, vector<8x16xbf16>, vector<16x16xf32> -> vector<16x16xf32>
      %175 = arith.addf %167, %174 : vector<16x16xf32>
      %c2_i32 = arith.constant 2 : i32
      %176 = arith.addi %c2_i32, %arg6 : i32
      %c0_150 = arith.constant 0 : index
      %177 = arith.index_cast %176 : i32 to index
      %c0_151 = arith.constant 0 : index
      %c0_152 = arith.constant 0 : index
      %178 = vector.load %arg1[%c0_150, %177, %c0_151, %c0_152] : memref<1x72x18x8xbf16, #tpu.memory_space<vmem>>, vector<1x1x16x8xbf16>
      %179 = vector.shape_cast %178 : vector<1x1x16x8xbf16> to vector<16x8xbf16>
      %c20 = arith.constant 20 : index
      %c0_153 = arith.constant 0 : index
      %c0_154 = arith.constant 0 : index
      %180 = vector.load %arg2[%c20, %c0_153, %c0_154] : memref<25x8x16xbf16, #tpu.memory_space<vmem>>, vector<1x8x16xbf16>
      %181 = vector.shape_cast %180 : vector<1x8x16xbf16> to vector<8x16xbf16>
      %cst_155 = arith.constant dense<0.000000e+00> : vector<16x16xf32>
      %182 = tpu.matmul %179, %181, %cst_155 {dimension_numbers = #tpu.dot_dimension_numbers<[1], [0], [0], [1], [0, 0, 1, 1], [], []>} : vector<16x8xbf16>, vector<8x16xbf16>, vector<16x16xf32> -> vector<16x16xf32>
      %183 = arith.addf %175, %182 : vector<16x16xf32>
      %c20_i32 = arith.constant 20 : i32
      %184 = arith.addi %c20_i32, %arg6 : i32
      %c0_156 = arith.constant 0 : index
      %185 = arith.index_cast %184 : i32 to index
      %c0_157 = arith.constant 0 : index
      %c0_158 = arith.constant 0 : index
      %186 = vector.load %arg1[%c0_156, %185, %c0_157, %c0_158] : memref<1x72x18x8xbf16, #tpu.memory_space<vmem>>, vector<1x1x16x8xbf16>
      %187 = vector.shape_cast %186 : vector<1x1x16x8xbf16> to vector<16x8xbf16>
      %c21 = arith.constant 21 : index
      %c0_159 = arith.constant 0 : index
      %c0_160 = arith.constant 0 : index
      %188 = vector.load %arg2[%c21, %c0_159, %c0_160] : memref<25x8x16xbf16, #tpu.memory_space<vmem>>, vector<1x8x16xbf16>
      %189 = vector.shape_cast %188 : vector<1x8x16xbf16> to vector<8x16xbf16>
      %cst_161 = arith.constant dense<0.000000e+00> : vector<16x16xf32>
      %190 = tpu.matmul %187, %189, %cst_161 {dimension_numbers = #tpu.dot_dimension_numbers<[1], [0], [0], [1], [0, 0, 1, 1], [], []>} : vector<16x8xbf16>, vector<8x16xbf16>, vector<16x16xf32> -> vector<16x16xf32>
      %191 = arith.addf %183, %190 : vector<16x16xf32>
      %c2_i32_162 = arith.constant 2 : i32
      %192 = arith.addi %c2_i32_162, %arg6 : i32
      %c0_163 = arith.constant 0 : index
      %193 = arith.index_cast %192 : i32 to index
      %c1_164 = arith.constant 1 : index
      %c0_165 = arith.constant 0 : index
      %194 = vector.load %arg1[%c0_163, %193, %c1_164, %c0_165] : memref<1x72x18x8xbf16, #tpu.memory_space<vmem>>, vector<1x1x16x8xbf16>
      %195 = vector.shape_cast %194 : vector<1x1x16x8xbf16> to vector<16x8xbf16>
      %c22 = arith.constant 22 : index
      %c0_166 = arith.constant 0 : index
      %c0_167 = arith.constant 0 : index
      %196 = vector.load %arg2[%c22, %c0_166, %c0_167] : memref<25x8x16xbf16, #tpu.memory_space<vmem>>, vector<1x8x16xbf16>
      %197 = vector.shape_cast %196 : vector<1x8x16xbf16> to vector<8x16xbf16>
      %cst_168 = arith.constant dense<0.000000e+00> : vector<16x16xf32>
      %198 = tpu.matmul %195, %197, %cst_168 {dimension_numbers = #tpu.dot_dimension_numbers<[1], [0], [0], [1], [0, 0, 1, 1], [], []>} : vector<16x8xbf16>, vector<8x16xbf16>, vector<16x16xf32> -> vector<16x16xf32>
      %199 = arith.addf %191, %198 : vector<16x16xf32>
      %c20_i32_169 = arith.constant 20 : i32
      %200 = arith.addi %c20_i32_169, %arg6 : i32
      %c0_170 = arith.constant 0 : index
      %201 = arith.index_cast %200 : i32 to index
      %c1_171 = arith.constant 1 : index
      %c0_172 = arith.constant 0 : index
      %202 = vector.load %arg1[%c0_170, %201, %c1_171, %c0_172] : memref<1x72x18x8xbf16, #tpu.memory_space<vmem>>, vector<1x1x16x8xbf16>
      %203 = vector.shape_cast %202 : vector<1x1x16x8xbf16> to vector<16x8xbf16>
      %c23 = arith.constant 23 : index
      %c0_173 = arith.constant 0 : index
      %c0_174 = arith.constant 0 : index
      %204 = vector.load %arg2[%c23, %c0_173, %c0_174] : memref<25x8x16xbf16, #tpu.memory_space<vmem>>, vector<1x8x16xbf16>
      %205 = vector.shape_cast %204 : vector<1x8x16xbf16> to vector<8x16xbf16>
      %cst_175 = arith.constant dense<0.000000e+00> : vector<16x16xf32>
      %206 = tpu.matmul %203, %205, %cst_175 {dimension_numbers = #tpu.dot_dimension_numbers<[1], [0], [0], [1], [0, 0, 1, 1], [], []>} : vector<16x8xbf16>, vector<8x16xbf16>, vector<16x16xf32> -> vector<16x16xf32>
      %207 = arith.addf %199, %206 : vector<16x16xf32>
      %c2_i32_176 = arith.constant 2 : i32
      %208 = arith.addi %c2_i32_176, %arg6 : i32
      %c0_177 = arith.constant 0 : index
      %209 = arith.index_cast %208 : i32 to index
      %c2_178 = arith.constant 2 : index
      %c0_179 = arith.constant 0 : index
      %210 = vector.load %arg1[%c0_177, %209, %c2_178, %c0_179] : memref<1x72x18x8xbf16, #tpu.memory_space<vmem>>, vector<1x1x16x8xbf16>
      %211 = vector.shape_cast %210 : vector<1x1x16x8xbf16> to vector<16x8xbf16>
      %c24 = arith.constant 24 : index
      %c0_180 = arith.constant 0 : index
      %c0_181 = arith.constant 0 : index
      %212 = vector.load %arg2[%c24, %c0_180, %c0_181] : memref<25x8x16xbf16, #tpu.memory_space<vmem>>, vector<1x8x16xbf16>
      %213 = vector.shape_cast %212 : vector<1x8x16xbf16> to vector<8x16xbf16>
      %cst_182 = arith.constant dense<0.000000e+00> : vector<16x16xf32>
      %214 = tpu.matmul %211, %213, %cst_182 {dimension_numbers = #tpu.dot_dimension_numbers<[1], [0], [0], [1], [0, 0, 1, 1], [], []>} : vector<16x8xbf16>, vector<8x16xbf16>, vector<16x16xf32> -> vector<16x16xf32>
      %215 = arith.addf %207, %214 : vector<16x16xf32>
      %216 = vector.broadcast %0 : vector<1x16xf32> to vector<16x16xf32>
      %217 = arith.addf %215, %216 : vector<16x16xf32>
      %218 = arith.truncf %217 : vector<16x16xf32> to vector<16x16xbf16>
      %c0_183 = arith.constant 0 : index
      %219 = arith.index_cast %arg6 : i32 to index
      %c0_184 = arith.constant 0 : index
      %c0_185 = arith.constant 0 : index
      %220 = vector.load %arg4[%c0_183, %219, %c0_184, %c0_185] : memref<1x16x16x16xbf16, #tpu.memory_space<vmem>>, vector<1x1x16x16xbf16>
      %221 = vector.shape_cast %220 : vector<1x1x16x16xbf16> to vector<16x16xbf16>
      %222 = vector.shape_cast %218 : vector<16x16xbf16> to vector<1x1x16x16xbf16>
      tpu.vector_store %arg4[%c0_183, %219, %c0_184, %c0_185], %222 {strides = array<i32>} : memref<1x16x16x16xbf16, #tpu.memory_space<vmem>>, vector<1x1x16x16xbf16>,
      %cst_186 = arith.constant dense<0.000000e+00> : vector<16xf32>
      %223 = vector.multi_reduction <add>, %217, %cst_186 [0] : vector<16x16xf32> to vector<16xf32>
      %224 = vector.shape_cast %223 : vector<16xf32> to vector<1x16xf32>
      %225 = arith.addf %arg7, %224 : vector<1x16xf32>
      scf.yield %225 : vector<1x16xf32>
    }
    %c16_i32_1 = arith.constant 16 : i32
    %cst_2 = arith.constant 3.906250e-03 : f32
    %4 = vector.broadcast %cst_2 : f32 to vector<1x16xf32>
    %5 = arith.mulf %3, %4 : vector<1x16xf32>
    %cst_3 = arith.constant 0.000000e+00 : f32
    %6 = vector.broadcast %cst_3 : f32 to vector<1x16xf32>
    %c0_i32_4 = arith.constant 0 : i32
    %c16_i32_5 = arith.constant 16 : i32
    %7 = arith.addi %c0_i32_4, %c16_i32_5 : i32
    %c1_i32_6 = arith.constant 1 : i32
    %8 = scf.for %arg6 = %c0_i32_4 to %7 step %c1_i32_6 iter_args(%arg7 = %6) -> (vector<1x16xf32>)  : i32 {
      %c0_13 = arith.constant 0 : index
      %15 = arith.index_cast %arg6 : i32 to index
      %c0_14 = arith.constant 0 : index
      %c0_15 = arith.constant 0 : index
      %16 = vector.load %arg4[%c0_13, %15, %c0_14, %c0_15] : memref<1x16x16x16xbf16, #tpu.memory_space<vmem>>, vector<1x1x16x16xbf16>
      %17 = vector.shape_cast %16 : vector<1x1x16x16xbf16> to vector<16x16xbf16>
      %18 = arith.extf %17 : vector<16x16xbf16> to vector<16x16xf32>
      %19 = vector.broadcast %5 : vector<1x16xf32> to vector<16x16xf32>
      %20 = arith.subf %18, %19 : vector<16x16xf32>
      %21 = arith.mulf %20, %20 : vector<16x16xf32>
      %cst_16 = arith.constant dense<0.000000e+00> : vector<16xf32>
      %22 = vector.multi_reduction <add>, %21, %cst_16 [0] : vector<16x16xf32> to vector<16xf32>
      %23 = vector.shape_cast %22 : vector<16xf32> to vector<1x16xf32>
      %24 = arith.addf %arg7, %23 : vector<1x16xf32>
      scf.yield %24 : vector<1x16xf32>
    }
    %c16_i32_7 = arith.constant 16 : i32
    %c0_8 = arith.constant 0 : index
    %c0_9 = arith.constant 0 : index
    %c0_10 = arith.constant 0 : index
    %9 = vector.load %arg5[%c0_8, %c0_9, %c0_10] : memref<1x2x16xf32, #tpu.memory_space<vmem>>, vector<1x1x16xf32>
    %10 = vector.shape_cast %9 : vector<1x1x16xf32> to vector<1x16xf32>
    %11 = vector.shape_cast %5 : vector<1x16xf32> to vector<1x1x16xf32>
    tpu.vector_store %arg5[%c0_8, %c0_9, %c0_10], %11 {strides = array<i32>} : memref<1x2x16xf32, #tpu.memory_space<vmem>>, vector<1x1x16xf32>,
    %c0_11 = arith.constant 0 : index
    %c1 = arith.constant 1 : index
    %c0_12 = arith.constant 0 : index
    %12 = vector.load %arg5[%c0_11, %c1, %c0_12] : memref<1x2x16xf32, #tpu.memory_space<vmem>>, vector<1x1x16xf32>
    %13 = vector.shape_cast %12 : vector<1x1x16xf32> to vector<1x16xf32>
    %14 = vector.shape_cast %8 : vector<1x16xf32> to vector<1x1x16xf32>
    tpu.vector_store %arg5[%c0_11, %c1, %c0_12], %14 {strides = array<i32>} : memref<1x2x16xf32, #tpu.memory_space<vmem>>, vector<1x1x16xf32>,
    return
  }
  func.func @transform_0(%arg0: i32) -> (i32, i32, i32, i32) {
    %c0_i32 = arith.constant 0 : i32
    %c0_i32_0 = arith.constant 0 : i32
    %c0_i32_1 = arith.constant 0 : i32
    %c0_i32_2 = arith.constant 0 : i32
    return %arg0, %c0_i32, %c0_i32_0, %c0_i32_1 : i32, i32, i32, i32
  }
  func.func @transform_1(%arg0: i32) -> (i32, i32, i32) {
    %c0_i32 = arith.constant 0 : i32
    %c0_i32_0 = arith.constant 0 : i32
    %c0_i32_1 = arith.constant 0 : i32
    %c0_i32_2 = arith.constant 0 : i32
    return %c0_i32, %c0_i32_0, %c0_i32_1 : i32, i32, i32
  }
  func.func @transform_2(%arg0: i32) -> (i32, i32) {
    %c0_i32 = arith.constant 0 : i32
    %c0_i32_0 = arith.constant 0 : i32
    %c0_i32_1 = arith.constant 0 : i32
    return %c0_i32, %c0_i32_0 : i32, i32
  }
  func.func @transform_3(%arg0: i32) -> (i32, i32, i32, i32) {
    %c0_i32 = arith.constant 0 : i32
    %c0_i32_0 = arith.constant 0 : i32
    %c0_i32_1 = arith.constant 0 : i32
    %c0_i32_2 = arith.constant 0 : i32
    return %arg0, %c0_i32, %c0_i32_0, %c0_i32_1 : i32, i32, i32, i32
  }
  func.func @transform_4(%arg0: i32) -> (i32, i32, i32) {
    %c0_i32 = arith.constant 0 : i32
    %c0_i32_0 = arith.constant 0 : i32
    %c0_i32_1 = arith.constant 0 : i32
    return %arg0, %c0_i32, %c0_i32_0 : i32, i32, i32
  }
}

module attributes {stable_mosaic.version = 11 : i64} {
  func.func @_bn_lrelu_kernel(%arg0: i32, %arg1: memref<512x16xbf16, #tpu.memory_space<vmem>>, %arg2: memref<1x16xf32, #tpu.memory_space<vmem>>, %arg3: memref<1x16xf32, #tpu.memory_space<vmem>>, %arg4: memref<512x16xbf16, #tpu.memory_space<vmem>>) attributes {dimension_semantics = [#tpu.dimension_semantics<parallel>], iteration_bounds = array<i64: 1>, scalar_prefetch = 0 : i64, scratch_operands = 0 : i64, tpu.core_type = #tpu.core_type<tc>, window_params = [{transform_indices = @transform_0, window_bounds = array<i64: 512, 16>}, {pipeline_mode = #tpu.pipeline_mode<synchronous>, transform_indices = @transform_1, window_bounds = array<i64: 1, 16>}, {pipeline_mode = #tpu.pipeline_mode<synchronous>, transform_indices = @transform_2, window_bounds = array<i64: 1, 16>}, {transform_indices = @transform_3, window_bounds = array<i64: 512, 16>}]} {
    %c0 = arith.constant 0 : index
    %c0_0 = arith.constant 0 : index
    %0 = vector.load %arg1[%c0, %c0_0] : memref<512x16xbf16, #tpu.memory_space<vmem>>, vector<512x16xbf16>
    %1 = arith.extf %0 : vector<512x16xbf16> to vector<512x16xf32>
    %c0_1 = arith.constant 0 : index
    %c0_2 = arith.constant 0 : index
    %2 = vector.load %arg2[%c0_1, %c0_2] : memref<1x16xf32, #tpu.memory_space<vmem>>, vector<1x16xf32>
    %3 = vector.broadcast %2 : vector<1x16xf32> to vector<512x16xf32>
    %4 = arith.mulf %1, %3 : vector<512x16xf32>
    %c0_3 = arith.constant 0 : index
    %c0_4 = arith.constant 0 : index
    %5 = vector.load %arg3[%c0_3, %c0_4] : memref<1x16xf32, #tpu.memory_space<vmem>>, vector<1x16xf32>
    %6 = vector.broadcast %5 : vector<1x16xf32> to vector<512x16xf32>
    %7 = arith.addf %4, %6 : vector<512x16xf32>
    %cst = arith.constant 0.000000e+00 : f32
    %8 = vector.broadcast %cst : f32 to vector<512x16xf32>
    %9 = arith.cmpf ogt, %7, %8 : vector<512x16xf32>
    %cst_5 = arith.constant 2.000000e-01 : f32
    %10 = vector.broadcast %cst_5 : f32 to vector<512x16xf32>
    %11 = arith.mulf %10, %7 : vector<512x16xf32>
    %12 = arith.select %9, %7, %11 : vector<512x16xi1>, vector<512x16xf32>
    %13 = arith.truncf %12 : vector<512x16xf32> to vector<512x16xbf16>
    %c0_6 = arith.constant 0 : index
    %c0_7 = arith.constant 0 : index
    %14 = vector.load %arg4[%c0_6, %c0_7] : memref<512x16xbf16, #tpu.memory_space<vmem>>, vector<512x16xbf16>
    tpu.vector_store %arg4[%c0_6, %c0_7], %13 {strides = array<i32>} : memref<512x16xbf16, #tpu.memory_space<vmem>>, vector<512x16xbf16>,
    return
  }
  func.func @transform_0(%arg0: i32) -> (i32, i32) {
    %c0_i32 = arith.constant 0 : i32
    %c0_i32_0 = arith.constant 0 : i32
    return %arg0, %c0_i32 : i32, i32
  }
  func.func @transform_1(%arg0: i32) -> (i32, i32) {
    %c0_i32 = arith.constant 0 : i32
    %c0_i32_0 = arith.constant 0 : i32
    %c0_i32_1 = arith.constant 0 : i32
    return %c0_i32, %c0_i32_0 : i32, i32
  }
  func.func @transform_2(%arg0: i32) -> (i32, i32) {
    %c0_i32 = arith.constant 0 : i32
    %c0_i32_0 = arith.constant 0 : i32
    %c0_i32_1 = arith.constant 0 : i32
    return %c0_i32, %c0_i32_0 : i32, i32
  }
  func.func @transform_3(%arg0: i32) -> (i32, i32) {
    %c0_i32 = arith.constant 0 : i32
    %c0_i32_0 = arith.constant 0 : i32
    return %arg0, %c0_i32 : i32, i32
  }
}

module attributes {stable_mosaic.version = 11 : i64} {
  func.func @_conv5x5s2_bn_stats_kernel(%arg0: i32, %arg1: memref<1x40x10x16xbf16, #tpu.memory_space<vmem>>, %arg2: memref<25x16x32xbf16, #tpu.memory_space<vmem>>, %arg3: memref<1x32xf32, #tpu.memory_space<vmem>>, %arg4: memref<1x8x8x32xbf16, #tpu.memory_space<vmem>>, %arg5: memref<1x2x32xf32, #tpu.memory_space<vmem>>) attributes {dimension_semantics = [#tpu.dimension_semantics<parallel>], iteration_bounds = array<i64: 2>, scalar_prefetch = 0 : i64, scratch_operands = 0 : i64, tpu.core_type = #tpu.core_type<tc>, window_params = [{transform_indices = @transform_0, window_bounds = array<i64: 1, 40, 10, 16>}, {pipeline_mode = #tpu.pipeline_mode<synchronous>, transform_indices = @transform_1, window_bounds = array<i64: 25, 16, 32>}, {pipeline_mode = #tpu.pipeline_mode<synchronous>, transform_indices = @transform_2, window_bounds = array<i64: 1, 32>}, {transform_indices = @transform_3, window_bounds = array<i64: 1, 8, 8, 32>}, {transform_indices = @transform_4, window_bounds = array<i64: 1, 2, 32>}]} {
    %c0 = arith.constant 0 : index
    %c0_0 = arith.constant 0 : index
    %0 = vector.load %arg3[%c0, %c0_0] : memref<1x32xf32, #tpu.memory_space<vmem>>, vector<1x32xf32>
    %cst = arith.constant 0.000000e+00 : f32
    %1 = vector.broadcast %cst : f32 to vector<1x32xf32>
    %c0_i32 = arith.constant 0 : i32
    %c8_i32 = arith.constant 8 : i32
    %2 = arith.addi %c0_i32, %c8_i32 : i32
    %c1_i32 = arith.constant 1 : i32
    %3 = scf.for %arg6 = %c0_i32 to %2 step %c1_i32 iter_args(%arg7 = %1) -> (vector<1x32xf32>)  : i32 {
      %cst_13 = arith.constant 0.000000e+00 : f32
      %15 = vector.broadcast %cst_13 : f32 to vector<8x32xf32>
      %c0_i32_14 = arith.constant 0 : i32
      %16 = arith.addi %c0_i32_14, %arg6 : i32
      %c0_15 = arith.constant 0 : index
      %17 = arith.index_cast %16 : i32 to index
      %c0_16 = arith.constant 0 : index
      %c0_17 = arith.constant 0 : index
      %18 = vector.load %arg1[%c0_15, %17, %c0_16, %c0_17] : memref<1x40x10x16xbf16, #tpu.memory_space<vmem>>, vector<1x1x8x16xbf16>
      %19 = vector.shape_cast %18 : vector<1x1x8x16xbf16> to vector<8x16xbf16>
      %c0_18 = arith.constant 0 : index
      %c0_19 = arith.constant 0 : index
      %c0_20 = arith.constant 0 : index
      %20 = vector.load %arg2[%c0_18, %c0_19, %c0_20] : memref<25x16x32xbf16, #tpu.memory_space<vmem>>, vector<1x16x32xbf16>
      %21 = vector.shape_cast %20 : vector<1x16x32xbf16> to vector<16x32xbf16>
      %cst_21 = arith.constant dense<0.000000e+00> : vector<8x32xf32>
      %22 = tpu.matmul %19, %21, %cst_21 {dimension_numbers = #tpu.dot_dimension_numbers<[1], [0], [0], [1], [0, 0, 1, 1], [], []>} : vector<8x16xbf16>, vector<16x32xbf16>, vector<8x32xf32> -> vector<8x32xf32>
      %23 = arith.addf %15, %22 : vector<8x32xf32>
      %c10_i32 = arith.constant 10 : i32
      %24 = arith.addi %c10_i32, %arg6 : i32
      %c0_22 = arith.constant 0 : index
      %25 = arith.index_cast %24 : i32 to index
      %c0_23 = arith.constant 0 : index
      %c0_24 = arith.constant 0 : index
      %26 = vector.load %arg1[%c0_22, %25, %c0_23, %c0_24] : memref<1x40x10x16xbf16, #tpu.memory_space<vmem>>, vector<1x1x8x16xbf16>
      %27 = vector.shape_cast %26 : vector<1x1x8x16xbf16> to vector<8x16xbf16>
      %c1_25 = arith.constant 1 : index
      %c0_26 = arith.constant 0 : index
      %c0_27 = arith.constant 0 : index
      %28 = vector.load %arg2[%c1_25, %c0_26, %c0_27] : memref<25x16x32xbf16, #tpu.memory_space<vmem>>, vector<1x16x32xbf16>
      %29 = vector.shape_cast %28 : vector<1x16x32xbf16> to vector<16x32xbf16>
      %cst_28 = arith.constant dense<0.000000e+00> : vector<8x32xf32>
      %30 = tpu.matmul %27, %29, %cst_28 {dimension_numbers = #tpu.dot_dimension_numbers<[1], [0], [0], [1], [0, 0, 1, 1], [], []>} : vector<8x16xbf16>, vector<16x32xbf16>, vector<8x32xf32> -> vector<8x32xf32>
      %31 = arith.addf %23, %30 : vector<8x32xf32>
      %c0_i32_29 = arith.constant 0 : i32
      %32 = arith.addi %c0_i32_29, %arg6 : i32
      %c0_30 = arith.constant 0 : index
      %33 = arith.index_cast %32 : i32 to index
      %c1_31 = arith.constant 1 : index
      %c0_32 = arith.constant 0 : index
      %34 = vector.load %arg1[%c0_30, %33, %c1_31, %c0_32] : memref<1x40x10x16xbf16, #tpu.memory_space<vmem>>, vector<1x1x8x16xbf16>
      %35 = vector.shape_cast %34 : vector<1x1x8x16xbf16> to vector<8x16xbf16>
      %c2 = arith.constant 2 : index
      %c0_33 = arith.constant 0 : index
      %c0_34 = arith.constant 0 : index
      %36 = vector.load %arg2[%c2, %c0_33, %c0_34] : memref<25x16x32xbf16, #tpu.memory_space<vmem>>, vector<1x16x32xbf16>
      %37 = vector.shape_cast %36 : vector<1x16x32xbf16> to vector<16x32xbf16>
      %cst_35 = arith.constant dense<0.000000e+00> : vector<8x32xf32>
      %38 = tpu.matmul %35, %37, %cst_35 {dimension_numbers = #tpu.dot_dimension_numbers<[1], [0], [0], [1], [0, 0, 1, 1], [], []>} : vector<8x16xbf16>, vector<16x32xbf16>, vector<8x32xf32> -> vector<8x32xf32>
      %39 = arith.addf %31, %38 : vector<8x32xf32>
      %c10_i32_36 = arith.constant 10 : i32
      %40 = arith.addi %c10_i32_36, %arg6 : i32
      %c0_37 = arith.constant 0 : index
      %41 = arith.index_cast %40 : i32 to index
      %c1_38 = arith.constant 1 : index
      %c0_39 = arith.constant 0 : index
      %42 = vector.load %arg1[%c0_37, %41, %c1_38, %c0_39] : memref<1x40x10x16xbf16, #tpu.memory_space<vmem>>, vector<1x1x8x16xbf16>
      %43 = vector.shape_cast %42 : vector<1x1x8x16xbf16> to vector<8x16xbf16>
      %c3 = arith.constant 3 : index
      %c0_40 = arith.constant 0 : index
      %c0_41 = arith.constant 0 : index
      %44 = vector.load %arg2[%c3, %c0_40, %c0_41] : memref<25x16x32xbf16, #tpu.memory_space<vmem>>, vector<1x16x32xbf16>
      %45 = vector.shape_cast %44 : vector<1x16x32xbf16> to vector<16x32xbf16>
      %cst_42 = arith.constant dense<0.000000e+00> : vector<8x32xf32>
      %46 = tpu.matmul %43, %45, %cst_42 {dimension_numbers = #tpu.dot_dimension_numbers<[1], [0], [0], [1], [0, 0, 1, 1], [], []>} : vector<8x16xbf16>, vector<16x32xbf16>, vector<8x32xf32> -> vector<8x32xf32>
      %47 = arith.addf %39, %46 : vector<8x32xf32>
      %c0_i32_43 = arith.constant 0 : i32
      %48 = arith.addi %c0_i32_43, %arg6 : i32
      %c0_44 = arith.constant 0 : index
      %49 = arith.index_cast %48 : i32 to index
      %c2_45 = arith.constant 2 : index
      %c0_46 = arith.constant 0 : index
      %50 = vector.load %arg1[%c0_44, %49, %c2_45, %c0_46] : memref<1x40x10x16xbf16, #tpu.memory_space<vmem>>, vector<1x1x8x16xbf16>
      %51 = vector.shape_cast %50 : vector<1x1x8x16xbf16> to vector<8x16xbf16>
      %c4 = arith.constant 4 : index
      %c0_47 = arith.constant 0 : index
      %c0_48 = arith.constant 0 : index
      %52 = vector.load %arg2[%c4, %c0_47, %c0_48] : memref<25x16x32xbf16, #tpu.memory_space<vmem>>, vector<1x16x32xbf16>
      %53 = vector.shape_cast %52 : vector<1x16x32xbf16> to vector<16x32xbf16>
      %cst_49 = arith.constant dense<0.000000e+00> : vector<8x32xf32>
      %54 = tpu.matmul %51, %53, %cst_49 {dimension_numbers = #tpu.dot_dimension_numbers<[1], [0], [0], [1], [0, 0, 1, 1], [], []>} : vector<8x16xbf16>, vector<16x32xbf16>, vector<8x32xf32> -> vector<8x32xf32>
      %55 = arith.addf %47, %54 : vector<8x32xf32>
      %c20_i32 = arith.constant 20 : i32
      %56 = arith.addi %c20_i32, %arg6 : i32
      %c0_50 = arith.constant 0 : index
      %57 = arith.index_cast %56 : i32 to index
      %c0_51 = arith.constant 0 : index
      %c0_52 = arith.constant 0 : index
      %58 = vector.load %arg1[%c0_50, %57, %c0_51, %c0_52] : memref<1x40x10x16xbf16, #tpu.memory_space<vmem>>, vector<1x1x8x16xbf16>
      %59 = vector.shape_cast %58 : vector<1x1x8x16xbf16> to vector<8x16xbf16>
      %c5 = arith.constant 5 : index
      %c0_53 = arith.constant 0 : index
      %c0_54 = arith.constant 0 : index
      %60 = vector.load %arg2[%c5, %c0_53, %c0_54] : memref<25x16x32xbf16, #tpu.memory_space<vmem>>, vector<1x16x32xbf16>
      %61 = vector.shape_cast %60 : vector<1x16x32xbf16> to vector<16x32xbf16>
      %cst_55 = arith.constant dense<0.000000e+00> : vector<8x32xf32>
      %62 = tpu.matmul %59, %61, %cst_55 {dimension_numbers = #tpu.dot_dimension_numbers<[1], [0], [0], [1], [0, 0, 1, 1], [], []>} : vector<8x16xbf16>, vector<16x32xbf16>, vector<8x32xf32> -> vector<8x32xf32>
      %63 = arith.addf %55, %62 : vector<8x32xf32>
      %c30_i32 = arith.constant 30 : i32
      %64 = arith.addi %c30_i32, %arg6 : i32
      %c0_56 = arith.constant 0 : index
      %65 = arith.index_cast %64 : i32 to index
      %c0_57 = arith.constant 0 : index
      %c0_58 = arith.constant 0 : index
      %66 = vector.load %arg1[%c0_56, %65, %c0_57, %c0_58] : memref<1x40x10x16xbf16, #tpu.memory_space<vmem>>, vector<1x1x8x16xbf16>
      %67 = vector.shape_cast %66 : vector<1x1x8x16xbf16> to vector<8x16xbf16>
      %c6 = arith.constant 6 : index
      %c0_59 = arith.constant 0 : index
      %c0_60 = arith.constant 0 : index
      %68 = vector.load %arg2[%c6, %c0_59, %c0_60] : memref<25x16x32xbf16, #tpu.memory_space<vmem>>, vector<1x16x32xbf16>
      %69 = vector.shape_cast %68 : vector<1x16x32xbf16> to vector<16x32xbf16>
      %cst_61 = arith.constant dense<0.000000e+00> : vector<8x32xf32>
      %70 = tpu.matmul %67, %69, %cst_61 {dimension_numbers = #tpu.dot_dimension_numbers<[1], [0], [0], [1], [0, 0, 1, 1], [], []>} : vector<8x16xbf16>, vector<16x32xbf16>, vector<8x32xf32> -> vector<8x32xf32>
      %71 = arith.addf %63, %70 : vector<8x32xf32>
      %c20_i32_62 = arith.constant 20 : i32
      %72 = arith.addi %c20_i32_62, %arg6 : i32
      %c0_63 = arith.constant 0 : index
      %73 = arith.index_cast %72 : i32 to index
      %c1_64 = arith.constant 1 : index
      %c0_65 = arith.constant 0 : index
      %74 = vector.load %arg1[%c0_63, %73, %c1_64, %c0_65] : memref<1x40x10x16xbf16, #tpu.memory_space<vmem>>, vector<1x1x8x16xbf16>
      %75 = vector.shape_cast %74 : vector<1x1x8x16xbf16> to vector<8x16xbf16>
      %c7 = arith.constant 7 : index
      %c0_66 = arith.constant 0 : index
      %c0_67 = arith.constant 0 : index
      %76 = vector.load %arg2[%c7, %c0_66, %c0_67] : memref<25x16x32xbf16, #tpu.memory_space<vmem>>, vector<1x16x32xbf16>
      %77 = vector.shape_cast %76 : vector<1x16x32xbf16> to vector<16x32xbf16>
      %cst_68 = arith.constant dense<0.000000e+00> : vector<8x32xf32>
      %78 = tpu.matmul %75, %77, %cst_68 {dimension_numbers = #tpu.dot_dimension_numbers<[1], [0], [0], [1], [0, 0, 1, 1], [], []>} : vector<8x16xbf16>, vector<16x32xbf16>, vector<8x32xf32> -> vector<8x32xf32>
      %79 = arith.addf %71, %78 : vector<8x32xf32>
      %c30_i32_69 = arith.constant 30 : i32
      %80 = arith.addi %c30_i32_69, %arg6 : i32
      %c0_70 = arith.constant 0 : index
      %81 = arith.index_cast %80 : i32 to index
      %c1_71 = arith.constant 1 : index
      %c0_72 = arith.constant 0 : index
      %82 = vector.load %arg1[%c0_70, %81, %c1_71, %c0_72] : memref<1x40x10x16xbf16, #tpu.memory_space<vmem>>, vector<1x1x8x16xbf16>
      %83 = vector.shape_cast %82 : vector<1x1x8x16xbf16> to vector<8x16xbf16>
      %c8 = arith.constant 8 : index
      %c0_73 = arith.constant 0 : index
      %c0_74 = arith.constant 0 : index
      %84 = vector.load %arg2[%c8, %c0_73, %c0_74] : memref<25x16x32xbf16, #tpu.memory_space<vmem>>, vector<1x16x32xbf16>
      %85 = vector.shape_cast %84 : vector<1x16x32xbf16> to vector<16x32xbf16>
      %cst_75 = arith.constant dense<0.000000e+00> : vector<8x32xf32>
      %86 = tpu.matmul %83, %85, %cst_75 {dimension_numbers = #tpu.dot_dimension_numbers<[1], [0], [0], [1], [0, 0, 1, 1], [], []>} : vector<8x16xbf16>, vector<16x32xbf16>, vector<8x32xf32> -> vector<8x32xf32>
      %87 = arith.addf %79, %86 : vector<8x32xf32>
      %c20_i32_76 = arith.constant 20 : i32
      %88 = arith.addi %c20_i32_76, %arg6 : i32
      %c0_77 = arith.constant 0 : index
      %89 = arith.index_cast %88 : i32 to index
      %c2_78 = arith.constant 2 : index
      %c0_79 = arith.constant 0 : index
      %90 = vector.load %arg1[%c0_77, %89, %c2_78, %c0_79] : memref<1x40x10x16xbf16, #tpu.memory_space<vmem>>, vector<1x1x8x16xbf16>
      %91 = vector.shape_cast %90 : vector<1x1x8x16xbf16> to vector<8x16xbf16>
      %c9 = arith.constant 9 : index
      %c0_80 = arith.constant 0 : index
      %c0_81 = arith.constant 0 : index
      %92 = vector.load %arg2[%c9, %c0_80, %c0_81] : memref<25x16x32xbf16, #tpu.memory_space<vmem>>, vector<1x16x32xbf16>
      %93 = vector.shape_cast %92 : vector<1x16x32xbf16> to vector<16x32xbf16>
      %cst_82 = arith.constant dense<0.000000e+00> : vector<8x32xf32>
      %94 = tpu.matmul %91, %93, %cst_82 {dimension_numbers = #tpu.dot_dimension_numbers<[1], [0], [0], [1], [0, 0, 1, 1], [], []>} : vector<8x16xbf16>, vector<16x32xbf16>, vector<8x32xf32> -> vector<8x32xf32>
      %95 = arith.addf %87, %94 : vector<8x32xf32>
      %c1_i32_83 = arith.constant 1 : i32
      %96 = arith.addi %c1_i32_83, %arg6 : i32
      %c0_84 = arith.constant 0 : index
      %97 = arith.index_cast %96 : i32 to index
      %c0_85 = arith.constant 0 : index
      %c0_86 = arith.constant 0 : index
      %98 = vector.load %arg1[%c0_84, %97, %c0_85, %c0_86] : memref<1x40x10x16xbf16, #tpu.memory_space<vmem>>, vector<1x1x8x16xbf16>
      %99 = vector.shape_cast %98 : vector<1x1x8x16xbf16> to vector<8x16xbf16>
      %c10 = arith.constant 10 : index
      %c0_87 = arith.constant 0 : index
      %c0_88 = arith.constant 0 : index
      %100 = vector.load %arg2[%c10, %c0_87, %c0_88] : memref<25x16x32xbf16, #tpu.memory_space<vmem>>, vector<1x16x32xbf16>
      %101 = vector.shape_cast %100 : vector<1x16x32xbf16> to vector<16x32xbf16>
      %cst_89 = arith.constant dense<0.000000e+00> : vector<8x32xf32>
      %102 = tpu.matmul %99, %101, %cst_89 {dimension_numbers = #tpu.dot_dimension_numbers<[1], [0], [0], [1], [0, 0, 1, 1], [], []>} : vector<8x16xbf16>, vector<16x32xbf16>, vector<8x32xf32> -> vector<8x32xf32>
      %103 = arith.addf %95, %102 : vector<8x32xf32>
      %c11_i32 = arith.constant 11 : i32
      %104 = arith.addi %c11_i32, %arg6 : i32
      %c0_90 = arith.constant 0 : index
      %105 = arith.index_cast %104 : i32 to index
      %c0_91 = arith.constant 0 : index
      %c0_92 = arith.constant 0 : index
      %106 = vector.load %arg1[%c0_90, %105, %c0_91, %c0_92] : memref<1x40x10x16xbf16, #tpu.memory_space<vmem>>, vector<1x1x8x16xbf16>
      %107 = vector.shape_cast %106 : vector<1x1x8x16xbf16> to vector<8x16xbf16>
      %c11 = arith.constant 11 : index
      %c0_93 = arith.constant 0 : index
      %c0_94 = arith.constant 0 : index
      %108 = vector.load %arg2[%c11, %c0_93, %c0_94] : memref<25x16x32xbf16, #tpu.memory_space<vmem>>, vector<1x16x32xbf16>
      %109 = vector.shape_cast %108 : vector<1x16x32xbf16> to vector<16x32xbf16>
      %cst_95 = arith.constant dense<0.000000e+00> : vector<8x32xf32>
      %110 = tpu.matmul %107, %109, %cst_95 {dimension_numbers = #tpu.dot_dimension_numbers<[1], [0], [0], [1], [0, 0, 1, 1], [], []>} : vector<8x16xbf16>, vector<16x32xbf16>, vector<8x32xf32> -> vector<8x32xf32>
      %111 = arith.addf %103, %110 : vector<8x32xf32>
      %c1_i32_96 = arith.constant 1 : i32
      %112 = arith.addi %c1_i32_96, %arg6 : i32
      %c0_97 = arith.constant 0 : index
      %113 = arith.index_cast %112 : i32 to index
      %c1_98 = arith.constant 1 : index
      %c0_99 = arith.constant 0 : index
      %114 = vector.load %arg1[%c0_97, %113, %c1_98, %c0_99] : memref<1x40x10x16xbf16, #tpu.memory_space<vmem>>, vector<1x1x8x16xbf16>
      %115 = vector.shape_cast %114 : vector<1x1x8x16xbf16> to vector<8x16xbf16>
      %c12 = arith.constant 12 : index
      %c0_100 = arith.constant 0 : index
      %c0_101 = arith.constant 0 : index
      %116 = vector.load %arg2[%c12, %c0_100, %c0_101] : memref<25x16x32xbf16, #tpu.memory_space<vmem>>, vector<1x16x32xbf16>
      %117 = vector.shape_cast %116 : vector<1x16x32xbf16> to vector<16x32xbf16>
      %cst_102 = arith.constant dense<0.000000e+00> : vector<8x32xf32>
      %118 = tpu.matmul %115, %117, %cst_102 {dimension_numbers = #tpu.dot_dimension_numbers<[1], [0], [0], [1], [0, 0, 1, 1], [], []>} : vector<8x16xbf16>, vector<16x32xbf16>, vector<8x32xf32> -> vector<8x32xf32>
      %119 = arith.addf %111, %118 : vector<8x32xf32>
      %c11_i32_103 = arith.constant 11 : i32
      %120 = arith.addi %c11_i32_103, %arg6 : i32
      %c0_104 = arith.constant 0 : index
      %121 = arith.index_cast %120 : i32 to index
      %c1_105 = arith.constant 1 : index
      %c0_106 = arith.constant 0 : index
      %122 = vector.load %arg1[%c0_104, %121, %c1_105, %c0_106] : memref<1x40x10x16xbf16, #tpu.memory_space<vmem>>, vector<1x1x8x16xbf16>
      %123 = vector.shape_cast %122 : vector<1x1x8x16xbf16> to vector<8x16xbf16>
      %c13 = arith.constant 13 : index
      %c0_107 = arith.constant 0 : index
      %c0_108 = arith.constant 0 : index
      %124 = vector.load %arg2[%c13, %c0_107, %c0_108] : memref<25x16x32xbf16, #tpu.memory_space<vmem>>, vector<1x16x32xbf16>
      %125 = vector.shape_cast %124 : vector<1x16x32xbf16> to vector<16x32xbf16>
      %cst_109 = arith.constant dense<0.000000e+00> : vector<8x32xf32>
      %126 = tpu.matmul %123, %125, %cst_109 {dimension_numbers = #tpu.dot_dimension_numbers<[1], [0], [0], [1], [0, 0, 1, 1], [], []>} : vector<8x16xbf16>, vector<16x32xbf16>, vector<8x32xf32> -> vector<8x32xf32>
      %127 = arith.addf %119, %126 : vector<8x32xf32>
      %c1_i32_110 = arith.constant 1 : i32
      %128 = arith.addi %c1_i32_110, %arg6 : i32
      %c0_111 = arith.constant 0 : index
      %129 = arith.index_cast %128 : i32 to index
      %c2_112 = arith.constant 2 : index
      %c0_113 = arith.constant 0 : index
      %130 = vector.load %arg1[%c0_111, %129, %c2_112, %c0_113] : memref<1x40x10x16xbf16, #tpu.memory_space<vmem>>, vector<1x1x8x16xbf16>
      %131 = vector.shape_cast %130 : vector<1x1x8x16xbf16> to vector<8x16xbf16>
      %c14 = arith.constant 14 : index
      %c0_114 = arith.constant 0 : index
      %c0_115 = arith.constant 0 : index
      %132 = vector.load %arg2[%c14, %c0_114, %c0_115] : memref<25x16x32xbf16, #tpu.memory_space<vmem>>, vector<1x16x32xbf16>
      %133 = vector.shape_cast %132 : vector<1x16x32xbf16> to vector<16x32xbf16>
      %cst_116 = arith.constant dense<0.000000e+00> : vector<8x32xf32>
      %134 = tpu.matmul %131, %133, %cst_116 {dimension_numbers = #tpu.dot_dimension_numbers<[1], [0], [0], [1], [0, 0, 1, 1], [], []>} : vector<8x16xbf16>, vector<16x32xbf16>, vector<8x32xf32> -> vector<8x32xf32>
      %135 = arith.addf %127, %134 : vector<8x32xf32>
      %c21_i32 = arith.constant 21 : i32
      %136 = arith.addi %c21_i32, %arg6 : i32
      %c0_117 = arith.constant 0 : index
      %137 = arith.index_cast %136 : i32 to index
      %c0_118 = arith.constant 0 : index
      %c0_119 = arith.constant 0 : index
      %138 = vector.load %arg1[%c0_117, %137, %c0_118, %c0_119] : memref<1x40x10x16xbf16, #tpu.memory_space<vmem>>, vector<1x1x8x16xbf16>
      %139 = vector.shape_cast %138 : vector<1x1x8x16xbf16> to vector<8x16xbf16>
      %c15 = arith.constant 15 : index
      %c0_120 = arith.constant 0 : index
      %c0_121 = arith.constant 0 : index
      %140 = vector.load %arg2[%c15, %c0_120, %c0_121] : memref<25x16x32xbf16, #tpu.memory_space<vmem>>, vector<1x16x32xbf16>
      %141 = vector.shape_cast %140 : vector<1x16x32xbf16> to vector<16x32xbf16>
      %cst_122 = arith.constant dense<0.000000e+00> : vector<8x32xf32>
      %142 = tpu.matmul %139, %141, %cst_122 {dimension_numbers = #tpu.dot_dimension_numbers<[1], [0], [0], [1], [0, 0, 1, 1], [], []>} : vector<8x16xbf16>, vector<16x32xbf16>, vector<8x32xf32> -> vector<8x32xf32>
      %143 = arith.addf %135, %142 : vector<8x32xf32>
      %c31_i32 = arith.constant 31 : i32
      %144 = arith.addi %c31_i32, %arg6 : i32
      %c0_123 = arith.constant 0 : index
      %145 = arith.index_cast %144 : i32 to index
      %c0_124 = arith.constant 0 : index
      %c0_125 = arith.constant 0 : index
      %146 = vector.load %arg1[%c0_123, %145, %c0_124, %c0_125] : memref<1x40x10x16xbf16, #tpu.memory_space<vmem>>, vector<1x1x8x16xbf16>
      %147 = vector.shape_cast %146 : vector<1x1x8x16xbf16> to vector<8x16xbf16>
      %c16 = arith.constant 16 : index
      %c0_126 = arith.constant 0 : index
      %c0_127 = arith.constant 0 : index
      %148 = vector.load %arg2[%c16, %c0_126, %c0_127] : memref<25x16x32xbf16, #tpu.memory_space<vmem>>, vector<1x16x32xbf16>
      %149 = vector.shape_cast %148 : vector<1x16x32xbf16> to vector<16x32xbf16>
      %cst_128 = arith.constant dense<0.000000e+00> : vector<8x32xf32>
      %150 = tpu.matmul %147, %149, %cst_128 {dimension_numbers = #tpu.dot_dimension_numbers<[1], [0], [0], [1], [0, 0, 1, 1], [], []>} : vector<8x16xbf16>, vector<16x32xbf16>, vector<8x32xf32> -> vector<8x32xf32>
      %151 = arith.addf %143, %150 : vector<8x32xf32>
      %c21_i32_129 = arith.constant 21 : i32
      %152 = arith.addi %c21_i32_129, %arg6 : i32
      %c0_130 = arith.constant 0 : index
      %153 = arith.index_cast %152 : i32 to index
      %c1_131 = arith.constant 1 : index
      %c0_132 = arith.constant 0 : index
      %154 = vector.load %arg1[%c0_130, %153, %c1_131, %c0_132] : memref<1x40x10x16xbf16, #tpu.memory_space<vmem>>, vector<1x1x8x16xbf16>
      %155 = vector.shape_cast %154 : vector<1x1x8x16xbf16> to vector<8x16xbf16>
      %c17 = arith.constant 17 : index
      %c0_133 = arith.constant 0 : index
      %c0_134 = arith.constant 0 : index
      %156 = vector.load %arg2[%c17, %c0_133, %c0_134] : memref<25x16x32xbf16, #tpu.memory_space<vmem>>, vector<1x16x32xbf16>
      %157 = vector.shape_cast %156 : vector<1x16x32xbf16> to vector<16x32xbf16>
      %cst_135 = arith.constant dense<0.000000e+00> : vector<8x32xf32>
      %158 = tpu.matmul %155, %157, %cst_135 {dimension_numbers = #tpu.dot_dimension_numbers<[1], [0], [0], [1], [0, 0, 1, 1], [], []>} : vector<8x16xbf16>, vector<16x32xbf16>, vector<8x32xf32> -> vector<8x32xf32>
      %159 = arith.addf %151, %158 : vector<8x32xf32>
      %c31_i32_136 = arith.constant 31 : i32
      %160 = arith.addi %c31_i32_136, %arg6 : i32
      %c0_137 = arith.constant 0 : index
      %161 = arith.index_cast %160 : i32 to index
      %c1_138 = arith.constant 1 : index
      %c0_139 = arith.constant 0 : index
      %162 = vector.load %arg1[%c0_137, %161, %c1_138, %c0_139] : memref<1x40x10x16xbf16, #tpu.memory_space<vmem>>, vector<1x1x8x16xbf16>
      %163 = vector.shape_cast %162 : vector<1x1x8x16xbf16> to vector<8x16xbf16>
      %c18 = arith.constant 18 : index
      %c0_140 = arith.constant 0 : index
      %c0_141 = arith.constant 0 : index
      %164 = vector.load %arg2[%c18, %c0_140, %c0_141] : memref<25x16x32xbf16, #tpu.memory_space<vmem>>, vector<1x16x32xbf16>
      %165 = vector.shape_cast %164 : vector<1x16x32xbf16> to vector<16x32xbf16>
      %cst_142 = arith.constant dense<0.000000e+00> : vector<8x32xf32>
      %166 = tpu.matmul %163, %165, %cst_142 {dimension_numbers = #tpu.dot_dimension_numbers<[1], [0], [0], [1], [0, 0, 1, 1], [], []>} : vector<8x16xbf16>, vector<16x32xbf16>, vector<8x32xf32> -> vector<8x32xf32>
      %167 = arith.addf %159, %166 : vector<8x32xf32>
      %c21_i32_143 = arith.constant 21 : i32
      %168 = arith.addi %c21_i32_143, %arg6 : i32
      %c0_144 = arith.constant 0 : index
      %169 = arith.index_cast %168 : i32 to index
      %c2_145 = arith.constant 2 : index
      %c0_146 = arith.constant 0 : index
      %170 = vector.load %arg1[%c0_144, %169, %c2_145, %c0_146] : memref<1x40x10x16xbf16, #tpu.memory_space<vmem>>, vector<1x1x8x16xbf16>
      %171 = vector.shape_cast %170 : vector<1x1x8x16xbf16> to vector<8x16xbf16>
      %c19 = arith.constant 19 : index
      %c0_147 = arith.constant 0 : index
      %c0_148 = arith.constant 0 : index
      %172 = vector.load %arg2[%c19, %c0_147, %c0_148] : memref<25x16x32xbf16, #tpu.memory_space<vmem>>, vector<1x16x32xbf16>
      %173 = vector.shape_cast %172 : vector<1x16x32xbf16> to vector<16x32xbf16>
      %cst_149 = arith.constant dense<0.000000e+00> : vector<8x32xf32>
      %174 = tpu.matmul %171, %173, %cst_149 {dimension_numbers = #tpu.dot_dimension_numbers<[1], [0], [0], [1], [0, 0, 1, 1], [], []>} : vector<8x16xbf16>, vector<16x32xbf16>, vector<8x32xf32> -> vector<8x32xf32>
      %175 = arith.addf %167, %174 : vector<8x32xf32>
      %c2_i32 = arith.constant 2 : i32
      %176 = arith.addi %c2_i32, %arg6 : i32
      %c0_150 = arith.constant 0 : index
      %177 = arith.index_cast %176 : i32 to index
      %c0_151 = arith.constant 0 : index
      %c0_152 = arith.constant 0 : index
      %178 = vector.load %arg1[%c0_150, %177, %c0_151, %c0_152] : memref<1x40x10x16xbf16, #tpu.memory_space<vmem>>, vector<1x1x8x16xbf16>
      %179 = vector.shape_cast %178 : vector<1x1x8x16xbf16> to vector<8x16xbf16>
      %c20 = arith.constant 20 : index
      %c0_153 = arith.constant 0 : index
      %c0_154 = arith.constant 0 : index
      %180 = vector.load %arg2[%c20, %c0_153, %c0_154] : memref<25x16x32xbf16, #tpu.memory_space<vmem>>, vector<1x16x32xbf16>
      %181 = vector.shape_cast %180 : vector<1x16x32xbf16> to vector<16x32xbf16>
      %cst_155 = arith.constant dense<0.000000e+00> : vector<8x32xf32>
      %182 = tpu.matmul %179, %181, %cst_155 {dimension_numbers = #tpu.dot_dimension_numbers<[1], [0], [0], [1], [0, 0, 1, 1], [], []>} : vector<8x16xbf16>, vector<16x32xbf16>, vector<8x32xf32> -> vector<8x32xf32>
      %183 = arith.addf %175, %182 : vector<8x32xf32>
      %c12_i32 = arith.constant 12 : i32
      %184 = arith.addi %c12_i32, %arg6 : i32
      %c0_156 = arith.constant 0 : index
      %185 = arith.index_cast %184 : i32 to index
      %c0_157 = arith.constant 0 : index
      %c0_158 = arith.constant 0 : index
      %186 = vector.load %arg1[%c0_156, %185, %c0_157, %c0_158] : memref<1x40x10x16xbf16, #tpu.memory_space<vmem>>, vector<1x1x8x16xbf16>
      %187 = vector.shape_cast %186 : vector<1x1x8x16xbf16> to vector<8x16xbf16>
      %c21 = arith.constant 21 : index
      %c0_159 = arith.constant 0 : index
      %c0_160 = arith.constant 0 : index
      %188 = vector.load %arg2[%c21, %c0_159, %c0_160] : memref<25x16x32xbf16, #tpu.memory_space<vmem>>, vector<1x16x32xbf16>
      %189 = vector.shape_cast %188 : vector<1x16x32xbf16> to vector<16x32xbf16>
      %cst_161 = arith.constant dense<0.000000e+00> : vector<8x32xf32>
      %190 = tpu.matmul %187, %189, %cst_161 {dimension_numbers = #tpu.dot_dimension_numbers<[1], [0], [0], [1], [0, 0, 1, 1], [], []>} : vector<8x16xbf16>, vector<16x32xbf16>, vector<8x32xf32> -> vector<8x32xf32>
      %191 = arith.addf %183, %190 : vector<8x32xf32>
      %c2_i32_162 = arith.constant 2 : i32
      %192 = arith.addi %c2_i32_162, %arg6 : i32
      %c0_163 = arith.constant 0 : index
      %193 = arith.index_cast %192 : i32 to index
      %c1_164 = arith.constant 1 : index
      %c0_165 = arith.constant 0 : index
      %194 = vector.load %arg1[%c0_163, %193, %c1_164, %c0_165] : memref<1x40x10x16xbf16, #tpu.memory_space<vmem>>, vector<1x1x8x16xbf16>
      %195 = vector.shape_cast %194 : vector<1x1x8x16xbf16> to vector<8x16xbf16>
      %c22 = arith.constant 22 : index
      %c0_166 = arith.constant 0 : index
      %c0_167 = arith.constant 0 : index
      %196 = vector.load %arg2[%c22, %c0_166, %c0_167] : memref<25x16x32xbf16, #tpu.memory_space<vmem>>, vector<1x16x32xbf16>
      %197 = vector.shape_cast %196 : vector<1x16x32xbf16> to vector<16x32xbf16>
      %cst_168 = arith.constant dense<0.000000e+00> : vector<8x32xf32>
      %198 = tpu.matmul %195, %197, %cst_168 {dimension_numbers = #tpu.dot_dimension_numbers<[1], [0], [0], [1], [0, 0, 1, 1], [], []>} : vector<8x16xbf16>, vector<16x32xbf16>, vector<8x32xf32> -> vector<8x32xf32>
      %199 = arith.addf %191, %198 : vector<8x32xf32>
      %c12_i32_169 = arith.constant 12 : i32
      %200 = arith.addi %c12_i32_169, %arg6 : i32
      %c0_170 = arith.constant 0 : index
      %201 = arith.index_cast %200 : i32 to index
      %c1_171 = arith.constant 1 : index
      %c0_172 = arith.constant 0 : index
      %202 = vector.load %arg1[%c0_170, %201, %c1_171, %c0_172] : memref<1x40x10x16xbf16, #tpu.memory_space<vmem>>, vector<1x1x8x16xbf16>
      %203 = vector.shape_cast %202 : vector<1x1x8x16xbf16> to vector<8x16xbf16>
      %c23 = arith.constant 23 : index
      %c0_173 = arith.constant 0 : index
      %c0_174 = arith.constant 0 : index
      %204 = vector.load %arg2[%c23, %c0_173, %c0_174] : memref<25x16x32xbf16, #tpu.memory_space<vmem>>, vector<1x16x32xbf16>
      %205 = vector.shape_cast %204 : vector<1x16x32xbf16> to vector<16x32xbf16>
      %cst_175 = arith.constant dense<0.000000e+00> : vector<8x32xf32>
      %206 = tpu.matmul %203, %205, %cst_175 {dimension_numbers = #tpu.dot_dimension_numbers<[1], [0], [0], [1], [0, 0, 1, 1], [], []>} : vector<8x16xbf16>, vector<16x32xbf16>, vector<8x32xf32> -> vector<8x32xf32>
      %207 = arith.addf %199, %206 : vector<8x32xf32>
      %c2_i32_176 = arith.constant 2 : i32
      %208 = arith.addi %c2_i32_176, %arg6 : i32
      %c0_177 = arith.constant 0 : index
      %209 = arith.index_cast %208 : i32 to index
      %c2_178 = arith.constant 2 : index
      %c0_179 = arith.constant 0 : index
      %210 = vector.load %arg1[%c0_177, %209, %c2_178, %c0_179] : memref<1x40x10x16xbf16, #tpu.memory_space<vmem>>, vector<1x1x8x16xbf16>
      %211 = vector.shape_cast %210 : vector<1x1x8x16xbf16> to vector<8x16xbf16>
      %c24 = arith.constant 24 : index
      %c0_180 = arith.constant 0 : index
      %c0_181 = arith.constant 0 : index
      %212 = vector.load %arg2[%c24, %c0_180, %c0_181] : memref<25x16x32xbf16, #tpu.memory_space<vmem>>, vector<1x16x32xbf16>
      %213 = vector.shape_cast %212 : vector<1x16x32xbf16> to vector<16x32xbf16>
      %cst_182 = arith.constant dense<0.000000e+00> : vector<8x32xf32>
      %214 = tpu.matmul %211, %213, %cst_182 {dimension_numbers = #tpu.dot_dimension_numbers<[1], [0], [0], [1], [0, 0, 1, 1], [], []>} : vector<8x16xbf16>, vector<16x32xbf16>, vector<8x32xf32> -> vector<8x32xf32>
      %215 = arith.addf %207, %214 : vector<8x32xf32>
      %216 = vector.broadcast %0 : vector<1x32xf32> to vector<8x32xf32>
      %217 = arith.addf %215, %216 : vector<8x32xf32>
      %218 = arith.truncf %217 : vector<8x32xf32> to vector<8x32xbf16>
      %c0_183 = arith.constant 0 : index
      %219 = arith.index_cast %arg6 : i32 to index
      %c0_184 = arith.constant 0 : index
      %c0_185 = arith.constant 0 : index
      %220 = vector.load %arg4[%c0_183, %219, %c0_184, %c0_185] : memref<1x8x8x32xbf16, #tpu.memory_space<vmem>>, vector<1x1x8x32xbf16>
      %221 = vector.shape_cast %220 : vector<1x1x8x32xbf16> to vector<8x32xbf16>
      %222 = vector.shape_cast %218 : vector<8x32xbf16> to vector<1x1x8x32xbf16>
      tpu.vector_store %arg4[%c0_183, %219, %c0_184, %c0_185], %222 {strides = array<i32>} : memref<1x8x8x32xbf16, #tpu.memory_space<vmem>>, vector<1x1x8x32xbf16>,
      %cst_186 = arith.constant dense<0.000000e+00> : vector<32xf32>
      %223 = vector.multi_reduction <add>, %217, %cst_186 [0] : vector<8x32xf32> to vector<32xf32>
      %224 = vector.shape_cast %223 : vector<32xf32> to vector<1x32xf32>
      %225 = arith.addf %arg7, %224 : vector<1x32xf32>
      scf.yield %225 : vector<1x32xf32>
    }
    %c8_i32_1 = arith.constant 8 : i32
    %cst_2 = arith.constant 1.562500e-02 : f32
    %4 = vector.broadcast %cst_2 : f32 to vector<1x32xf32>
    %5 = arith.mulf %3, %4 : vector<1x32xf32>
    %cst_3 = arith.constant 0.000000e+00 : f32
    %6 = vector.broadcast %cst_3 : f32 to vector<1x32xf32>
    %c0_i32_4 = arith.constant 0 : i32
    %c8_i32_5 = arith.constant 8 : i32
    %7 = arith.addi %c0_i32_4, %c8_i32_5 : i32
    %c1_i32_6 = arith.constant 1 : i32
    %8 = scf.for %arg6 = %c0_i32_4 to %7 step %c1_i32_6 iter_args(%arg7 = %6) -> (vector<1x32xf32>)  : i32 {
      %c0_13 = arith.constant 0 : index
      %15 = arith.index_cast %arg6 : i32 to index
      %c0_14 = arith.constant 0 : index
      %c0_15 = arith.constant 0 : index
      %16 = vector.load %arg4[%c0_13, %15, %c0_14, %c0_15] : memref<1x8x8x32xbf16, #tpu.memory_space<vmem>>, vector<1x1x8x32xbf16>
      %17 = vector.shape_cast %16 : vector<1x1x8x32xbf16> to vector<8x32xbf16>
      %18 = arith.extf %17 : vector<8x32xbf16> to vector<8x32xf32>
      %19 = vector.broadcast %5 : vector<1x32xf32> to vector<8x32xf32>
      %20 = arith.subf %18, %19 : vector<8x32xf32>
      %21 = arith.mulf %20, %20 : vector<8x32xf32>
      %cst_16 = arith.constant dense<0.000000e+00> : vector<32xf32>
      %22 = vector.multi_reduction <add>, %21, %cst_16 [0] : vector<8x32xf32> to vector<32xf32>
      %23 = vector.shape_cast %22 : vector<32xf32> to vector<1x32xf32>
      %24 = arith.addf %arg7, %23 : vector<1x32xf32>
      scf.yield %24 : vector<1x32xf32>
    }
    %c8_i32_7 = arith.constant 8 : i32
    %c0_8 = arith.constant 0 : index
    %c0_9 = arith.constant 0 : index
    %c0_10 = arith.constant 0 : index
    %9 = vector.load %arg5[%c0_8, %c0_9, %c0_10] : memref<1x2x32xf32, #tpu.memory_space<vmem>>, vector<1x1x32xf32>
    %10 = vector.shape_cast %9 : vector<1x1x32xf32> to vector<1x32xf32>
    %11 = vector.shape_cast %5 : vector<1x32xf32> to vector<1x1x32xf32>
    tpu.vector_store %arg5[%c0_8, %c0_9, %c0_10], %11 {strides = array<i32>} : memref<1x2x32xf32, #tpu.memory_space<vmem>>, vector<1x1x32xf32>,
    %c0_11 = arith.constant 0 : index
    %c1 = arith.constant 1 : index
    %c0_12 = arith.constant 0 : index
    %12 = vector.load %arg5[%c0_11, %c1, %c0_12] : memref<1x2x32xf32, #tpu.memory_space<vmem>>, vector<1x1x32xf32>
    %13 = vector.shape_cast %12 : vector<1x1x32xf32> to vector<1x32xf32>
    %14 = vector.shape_cast %8 : vector<1x32xf32> to vector<1x1x32xf32>
    tpu.vector_store %arg5[%c0_11, %c1, %c0_12], %14 {strides = array<i32>} : memref<1x2x32xf32, #tpu.memory_space<vmem>>, vector<1x1x32xf32>,
    return
  }
  func.func @transform_0(%arg0: i32) -> (i32, i32, i32, i32) {
    %c0_i32 = arith.constant 0 : i32
    %c0_i32_0 = arith.constant 0 : i32
    %c0_i32_1 = arith.constant 0 : i32
    %c0_i32_2 = arith.constant 0 : i32
    return %arg0, %c0_i32, %c0_i32_0, %c0_i32_1 : i32, i32, i32, i32
  }
  func.func @transform_1(%arg0: i32) -> (i32, i32, i32) {
    %c0_i32 = arith.constant 0 : i32
    %c0_i32_0 = arith.constant 0 : i32
    %c0_i32_1 = arith.constant 0 : i32
    %c0_i32_2 = arith.constant 0 : i32
    return %c0_i32, %c0_i32_0, %c0_i32_1 : i32, i32, i32
  }
  func.func @transform_2(%arg0: i32) -> (i32, i32) {
    %c0_i32 = arith.constant 0 : i32
    %c0_i32_0 = arith.constant 0 : i32
    %c0_i32_1 = arith.constant 0 : i32
    return %c0_i32, %c0_i32_0 : i32, i32
  }
  func.func @transform_3(%arg0: i32) -> (i32, i32, i32, i32) {
    %c0_i32 = arith.constant 0 : i32
    %c0_i32_0 = arith.constant 0 : i32
    %c0_i32_1 = arith.constant 0 : i32
    %c0_i32_2 = arith.constant 0 : i32
    return %arg0, %c0_i32, %c0_i32_0, %c0_i32_1 : i32, i32, i32, i32
  }
  func.func @transform_4(%arg0: i32) -> (i32, i32, i32) {
    %c0_i32 = arith.constant 0 : i32
    %c0_i32_0 = arith.constant 0 : i32
    %c0_i32_1 = arith.constant 0 : i32
    return %arg0, %c0_i32, %c0_i32_0 : i32, i32, i32
  }
}

module attributes {stable_mosaic.version = 11 : i64} {
  func.func @_bn_lrelu_kernel(%arg0: i32, %arg1: memref<128x32xbf16, #tpu.memory_space<vmem>>, %arg2: memref<1x32xf32, #tpu.memory_space<vmem>>, %arg3: memref<1x32xf32, #tpu.memory_space<vmem>>, %arg4: memref<128x32xbf16, #tpu.memory_space<vmem>>) attributes {dimension_semantics = [#tpu.dimension_semantics<parallel>], iteration_bounds = array<i64: 1>, scalar_prefetch = 0 : i64, scratch_operands = 0 : i64, tpu.core_type = #tpu.core_type<tc>, window_params = [{transform_indices = @transform_0, window_bounds = array<i64: 128, 32>}, {pipeline_mode = #tpu.pipeline_mode<synchronous>, transform_indices = @transform_1, window_bounds = array<i64: 1, 32>}, {pipeline_mode = #tpu.pipeline_mode<synchronous>, transform_indices = @transform_2, window_bounds = array<i64: 1, 32>}, {transform_indices = @transform_3, window_bounds = array<i64: 128, 32>}]} {
    %c0 = arith.constant 0 : index
    %c0_0 = arith.constant 0 : index
    %0 = vector.load %arg1[%c0, %c0_0] : memref<128x32xbf16, #tpu.memory_space<vmem>>, vector<128x32xbf16>
    %1 = arith.extf %0 : vector<128x32xbf16> to vector<128x32xf32>
    %c0_1 = arith.constant 0 : index
    %c0_2 = arith.constant 0 : index
    %2 = vector.load %arg2[%c0_1, %c0_2] : memref<1x32xf32, #tpu.memory_space<vmem>>, vector<1x32xf32>
    %3 = vector.broadcast %2 : vector<1x32xf32> to vector<128x32xf32>
    %4 = arith.mulf %1, %3 : vector<128x32xf32>
    %c0_3 = arith.constant 0 : index
    %c0_4 = arith.constant 0 : index
    %5 = vector.load %arg3[%c0_3, %c0_4] : memref<1x32xf32, #tpu.memory_space<vmem>>, vector<1x32xf32>
    %6 = vector.broadcast %5 : vector<1x32xf32> to vector<128x32xf32>
    %7 = arith.addf %4, %6 : vector<128x32xf32>
    %cst = arith.constant 0.000000e+00 : f32
    %8 = vector.broadcast %cst : f32 to vector<128x32xf32>
    %9 = arith.cmpf ogt, %7, %8 : vector<128x32xf32>
    %cst_5 = arith.constant 2.000000e-01 : f32
    %10 = vector.broadcast %cst_5 : f32 to vector<128x32xf32>
    %11 = arith.mulf %10, %7 : vector<128x32xf32>
    %12 = arith.select %9, %7, %11 : vector<128x32xi1>, vector<128x32xf32>
    %13 = arith.truncf %12 : vector<128x32xf32> to vector<128x32xbf16>
    %c0_6 = arith.constant 0 : index
    %c0_7 = arith.constant 0 : index
    %14 = vector.load %arg4[%c0_6, %c0_7] : memref<128x32xbf16, #tpu.memory_space<vmem>>, vector<128x32xbf16>
    tpu.vector_store %arg4[%c0_6, %c0_7], %13 {strides = array<i32>} : memref<128x32xbf16, #tpu.memory_space<vmem>>, vector<128x32xbf16>,
    return
  }
  func.func @transform_0(%arg0: i32) -> (i32, i32) {
    %c0_i32 = arith.constant 0 : i32
    %c0_i32_0 = arith.constant 0 : i32
    return %arg0, %c0_i32 : i32, i32
  }
  func.func @transform_1(%arg0: i32) -> (i32, i32) {
    %c0_i32 = arith.constant 0 : i32
    %c0_i32_0 = arith.constant 0 : i32
    %c0_i32_1 = arith.constant 0 : i32
    return %c0_i32, %c0_i32_0 : i32, i32
  }
  func.func @transform_2(%arg0: i32) -> (i32, i32) {
    %c0_i32 = arith.constant 0 : i32
    %c0_i32_0 = arith.constant 0 : i32
    %c0_i32_1 = arith.constant 0 : i32
    return %c0_i32, %c0_i32_0 : i32, i32
  }
  func.func @transform_3(%arg0: i32) -> (i32, i32) {
    %c0_i32 = arith.constant 0 : i32
    %c0_i32_0 = arith.constant 0 : i32
    return %arg0, %c0_i32 : i32, i32
  }
}

module attributes {stable_mosaic.version = 11 : i64} {
  func.func @_bn_lrelu_kernel(%arg0: i32, %arg1: memref<32x64xbf16, #tpu.memory_space<vmem>>, %arg2: memref<1x64xf32, #tpu.memory_space<vmem>>, %arg3: memref<1x64xf32, #tpu.memory_space<vmem>>, %arg4: memref<32x64xbf16, #tpu.memory_space<vmem>>) attributes {dimension_semantics = [#tpu.dimension_semantics<parallel>], iteration_bounds = array<i64: 1>, scalar_prefetch = 0 : i64, scratch_operands = 0 : i64, tpu.core_type = #tpu.core_type<tc>, window_params = [{transform_indices = @transform_0, window_bounds = array<i64: 32, 64>}, {pipeline_mode = #tpu.pipeline_mode<synchronous>, transform_indices = @transform_1, window_bounds = array<i64: 1, 64>}, {pipeline_mode = #tpu.pipeline_mode<synchronous>, transform_indices = @transform_2, window_bounds = array<i64: 1, 64>}, {transform_indices = @transform_3, window_bounds = array<i64: 32, 64>}]} {
    %c0 = arith.constant 0 : index
    %c0_0 = arith.constant 0 : index
    %0 = vector.load %arg1[%c0, %c0_0] : memref<32x64xbf16, #tpu.memory_space<vmem>>, vector<32x64xbf16>
    %1 = arith.extf %0 : vector<32x64xbf16> to vector<32x64xf32>
    %c0_1 = arith.constant 0 : index
    %c0_2 = arith.constant 0 : index
    %2 = vector.load %arg2[%c0_1, %c0_2] : memref<1x64xf32, #tpu.memory_space<vmem>>, vector<1x64xf32>
    %3 = vector.broadcast %2 : vector<1x64xf32> to vector<32x64xf32>
    %4 = arith.mulf %1, %3 : vector<32x64xf32>
    %c0_3 = arith.constant 0 : index
    %c0_4 = arith.constant 0 : index
    %5 = vector.load %arg3[%c0_3, %c0_4] : memref<1x64xf32, #tpu.memory_space<vmem>>, vector<1x64xf32>
    %6 = vector.broadcast %5 : vector<1x64xf32> to vector<32x64xf32>
    %7 = arith.addf %4, %6 : vector<32x64xf32>
    %cst = arith.constant 0.000000e+00 : f32
    %8 = vector.broadcast %cst : f32 to vector<32x64xf32>
    %9 = arith.cmpf ogt, %7, %8 : vector<32x64xf32>
    %cst_5 = arith.constant 2.000000e-01 : f32
    %10 = vector.broadcast %cst_5 : f32 to vector<32x64xf32>
    %11 = arith.mulf %10, %7 : vector<32x64xf32>
    %12 = arith.select %9, %7, %11 : vector<32x64xi1>, vector<32x64xf32>
    %13 = arith.truncf %12 : vector<32x64xf32> to vector<32x64xbf16>
    %c0_6 = arith.constant 0 : index
    %c0_7 = arith.constant 0 : index
    %14 = vector.load %arg4[%c0_6, %c0_7] : memref<32x64xbf16, #tpu.memory_space<vmem>>, vector<32x64xbf16>
    tpu.vector_store %arg4[%c0_6, %c0_7], %13 {strides = array<i32>} : memref<32x64xbf16, #tpu.memory_space<vmem>>, vector<32x64xbf16>,
    return
  }
  func.func @transform_0(%arg0: i32) -> (i32, i32) {
    %c0_i32 = arith.constant 0 : i32
    %c0_i32_0 = arith.constant 0 : i32
    return %arg0, %c0_i32 : i32, i32
  }
  func.func @transform_1(%arg0: i32) -> (i32, i32) {
    %c0_i32 = arith.constant 0 : i32
    %c0_i32_0 = arith.constant 0 : i32
    %c0_i32_1 = arith.constant 0 : i32
    return %c0_i32, %c0_i32_0 : i32, i32
  }
  func.func @transform_2(%arg0: i32) -> (i32, i32) {
    %c0_i32 = arith.constant 0 : i32
    %c0_i32_0 = arith.constant 0 : i32
    %c0_i32_1 = arith.constant 0 : i32
    return %c0_i32, %c0_i32_0 : i32, i32
  }
  func.func @transform_3(%arg0: i32) -> (i32, i32) {
    %c0_i32 = arith.constant 0 : i32
    %c0_i32_0 = arith.constant 0 : i32
    return %arg0, %c0_i32 : i32, i32
  }
}

module attributes {stable_mosaic.version = 11 : i64} {
  func.func @_conv5x5s2_bn_stats_kernel(%arg0: i32, %arg1: memref<1x24x6x32xbf16, #tpu.memory_space<vmem>>, %arg2: memref<25x32x64xbf16, #tpu.memory_space<vmem>>, %arg3: memref<1x64xf32, #tpu.memory_space<vmem>>, %arg4: memref<1x4x4x64xbf16, #tpu.memory_space<vmem>>, %arg5: memref<1x2x64xf32, #tpu.memory_space<vmem>>) attributes {dimension_semantics = [#tpu.dimension_semantics<parallel>], iteration_bounds = array<i64: 2>, scalar_prefetch = 0 : i64, scratch_operands = 0 : i64, tpu.core_type = #tpu.core_type<tc>, window_params = [{transform_indices = @transform_0, window_bounds = array<i64: 1, 24, 6, 32>}, {pipeline_mode = #tpu.pipeline_mode<synchronous>, transform_indices = @transform_1, window_bounds = array<i64: 25, 32, 64>}, {pipeline_mode = #tpu.pipeline_mode<synchronous>, transform_indices = @transform_2, window_bounds = array<i64: 1, 64>}, {transform_indices = @transform_3, window_bounds = array<i64: 1, 4, 4, 64>}, {transform_indices = @transform_4, window_bounds = array<i64: 1, 2, 64>}]} {
    %c0 = arith.constant 0 : index
    %c0_0 = arith.constant 0 : index
    %0 = vector.load %arg3[%c0, %c0_0] : memref<1x64xf32, #tpu.memory_space<vmem>>, vector<1x64xf32>
    %cst = arith.constant 0.000000e+00 : f32
    %1 = vector.broadcast %cst : f32 to vector<1x64xf32>
    %c0_i32 = arith.constant 0 : i32
    %c4_i32 = arith.constant 4 : i32
    %2 = arith.addi %c0_i32, %c4_i32 : i32
    %c1_i32 = arith.constant 1 : i32
    %3 = scf.for %arg6 = %c0_i32 to %2 step %c1_i32 iter_args(%arg7 = %1) -> (vector<1x64xf32>)  : i32 {
      %cst_13 = arith.constant 0.000000e+00 : f32
      %15 = vector.broadcast %cst_13 : f32 to vector<4x64xf32>
      %c0_i32_14 = arith.constant 0 : i32
      %16 = arith.addi %c0_i32_14, %arg6 : i32
      %c0_15 = arith.constant 0 : index
      %17 = arith.index_cast %16 : i32 to index
      %c0_16 = arith.constant 0 : index
      %c0_17 = arith.constant 0 : index
      %18 = vector.load %arg1[%c0_15, %17, %c0_16, %c0_17] : memref<1x24x6x32xbf16, #tpu.memory_space<vmem>>, vector<1x1x4x32xbf16>
      %19 = vector.shape_cast %18 : vector<1x1x4x32xbf16> to vector<4x32xbf16>
      %c0_18 = arith.constant 0 : index
      %c0_19 = arith.constant 0 : index
      %c0_20 = arith.constant 0 : index
      %20 = vector.load %arg2[%c0_18, %c0_19, %c0_20] : memref<25x32x64xbf16, #tpu.memory_space<vmem>>, vector<1x32x64xbf16>
      %21 = vector.shape_cast %20 : vector<1x32x64xbf16> to vector<32x64xbf16>
      %cst_21 = arith.constant dense<0.000000e+00> : vector<4x64xf32>
      %22 = tpu.matmul %19, %21, %cst_21 {dimension_numbers = #tpu.dot_dimension_numbers<[1], [0], [0], [1], [0, 0, 1, 1], [], []>} : vector<4x32xbf16>, vector<32x64xbf16>, vector<4x64xf32> -> vector<4x64xf32>
      %23 = arith.addf %15, %22 : vector<4x64xf32>
      %c6_i32 = arith.constant 6 : i32
      %24 = arith.addi %c6_i32, %arg6 : i32
      %c0_22 = arith.constant 0 : index
      %25 = arith.index_cast %24 : i32 to index
      %c0_23 = arith.constant 0 : index
      %c0_24 = arith.constant 0 : index
      %26 = vector.load %arg1[%c0_22, %25, %c0_23, %c0_24] : memref<1x24x6x32xbf16, #tpu.memory_space<vmem>>, vector<1x1x4x32xbf16>
      %27 = vector.shape_cast %26 : vector<1x1x4x32xbf16> to vector<4x32xbf16>
      %c1_25 = arith.constant 1 : index
      %c0_26 = arith.constant 0 : index
      %c0_27 = arith.constant 0 : index
      %28 = vector.load %arg2[%c1_25, %c0_26, %c0_27] : memref<25x32x64xbf16, #tpu.memory_space<vmem>>, vector<1x32x64xbf16>
      %29 = vector.shape_cast %28 : vector<1x32x64xbf16> to vector<32x64xbf16>
      %cst_28 = arith.constant dense<0.000000e+00> : vector<4x64xf32>
      %30 = tpu.matmul %27, %29, %cst_28 {dimension_numbers = #tpu.dot_dimension_numbers<[1], [0], [0], [1], [0, 0, 1, 1], [], []>} : vector<4x32xbf16>, vector<32x64xbf16>, vector<4x64xf32> -> vector<4x64xf32>
      %31 = arith.addf %23, %30 : vector<4x64xf32>
      %c0_i32_29 = arith.constant 0 : i32
      %32 = arith.addi %c0_i32_29, %arg6 : i32
      %c0_30 = arith.constant 0 : index
      %33 = arith.index_cast %32 : i32 to index
      %c1_31 = arith.constant 1 : index
      %c0_32 = arith.constant 0 : index
      %34 = vector.load %arg1[%c0_30, %33, %c1_31, %c0_32] : memref<1x24x6x32xbf16, #tpu.memory_space<vmem>>, vector<1x1x4x32xbf16>
      %35 = vector.shape_cast %34 : vector<1x1x4x32xbf16> to vector<4x32xbf16>
      %c2 = arith.constant 2 : index
      %c0_33 = arith.constant 0 : index
      %c0_34 = arith.constant 0 : index
      %36 = vector.load %arg2[%c2, %c0_33, %c0_34] : memref<25x32x64xbf16, #tpu.memory_space<vmem>>, vector<1x32x64xbf16>
      %37 = vector.shape_cast %36 : vector<1x32x64xbf16> to vector<32x64xbf16>
      %cst_35 = arith.constant dense<0.000000e+00> : vector<4x64xf32>
      %38 = tpu.matmul %35, %37, %cst_35 {dimension_numbers = #tpu.dot_dimension_numbers<[1], [0], [0], [1], [0, 0, 1, 1], [], []>} : vector<4x32xbf16>, vector<32x64xbf16>, vector<4x64xf32> -> vector<4x64xf32>
      %39 = arith.addf %31, %38 : vector<4x64xf32>
      %c6_i32_36 = arith.constant 6 : i32
      %40 = arith.addi %c6_i32_36, %arg6 : i32
      %c0_37 = arith.constant 0 : index
      %41 = arith.index_cast %40 : i32 to index
      %c1_38 = arith.constant 1 : index
      %c0_39 = arith.constant 0 : index
      %42 = vector.load %arg1[%c0_37, %41, %c1_38, %c0_39] : memref<1x24x6x32xbf16, #tpu.memory_space<vmem>>, vector<1x1x4x32xbf16>
      %43 = vector.shape_cast %42 : vector<1x1x4x32xbf16> to vector<4x32xbf16>
      %c3 = arith.constant 3 : index
      %c0_40 = arith.constant 0 : index
      %c0_41 = arith.constant 0 : index
      %44 = vector.load %arg2[%c3, %c0_40, %c0_41] : memref<25x32x64xbf16, #tpu.memory_space<vmem>>, vector<1x32x64xbf16>
      %45 = vector.shape_cast %44 : vector<1x32x64xbf16> to vector<32x64xbf16>
      %cst_42 = arith.constant dense<0.000000e+00> : vector<4x64xf32>
      %46 = tpu.matmul %43, %45, %cst_42 {dimension_numbers = #tpu.dot_dimension_numbers<[1], [0], [0], [1], [0, 0, 1, 1], [], []>} : vector<4x32xbf16>, vector<32x64xbf16>, vector<4x64xf32> -> vector<4x64xf32>
      %47 = arith.addf %39, %46 : vector<4x64xf32>
      %c0_i32_43 = arith.constant 0 : i32
      %48 = arith.addi %c0_i32_43, %arg6 : i32
      %c0_44 = arith.constant 0 : index
      %49 = arith.index_cast %48 : i32 to index
      %c2_45 = arith.constant 2 : index
      %c0_46 = arith.constant 0 : index
      %50 = vector.load %arg1[%c0_44, %49, %c2_45, %c0_46] : memref<1x24x6x32xbf16, #tpu.memory_space<vmem>>, vector<1x1x4x32xbf16>
      %51 = vector.shape_cast %50 : vector<1x1x4x32xbf16> to vector<4x32xbf16>
      %c4 = arith.constant 4 : index
      %c0_47 = arith.constant 0 : index
      %c0_48 = arith.constant 0 : index
      %52 = vector.load %arg2[%c4, %c0_47, %c0_48] : memref<25x32x64xbf16, #tpu.memory_space<vmem>>, vector<1x32x64xbf16>
      %53 = vector.shape_cast %52 : vector<1x32x64xbf16> to vector<32x64xbf16>
      %cst_49 = arith.constant dense<0.000000e+00> : vector<4x64xf32>
      %54 = tpu.matmul %51, %53, %cst_49 {dimension_numbers = #tpu.dot_dimension_numbers<[1], [0], [0], [1], [0, 0, 1, 1], [], []>} : vector<4x32xbf16>, vector<32x64xbf16>, vector<4x64xf32> -> vector<4x64xf32>
      %55 = arith.addf %47, %54 : vector<4x64xf32>
      %c12_i32 = arith.constant 12 : i32
      %56 = arith.addi %c12_i32, %arg6 : i32
      %c0_50 = arith.constant 0 : index
      %57 = arith.index_cast %56 : i32 to index
      %c0_51 = arith.constant 0 : index
      %c0_52 = arith.constant 0 : index
      %58 = vector.load %arg1[%c0_50, %57, %c0_51, %c0_52] : memref<1x24x6x32xbf16, #tpu.memory_space<vmem>>, vector<1x1x4x32xbf16>
      %59 = vector.shape_cast %58 : vector<1x1x4x32xbf16> to vector<4x32xbf16>
      %c5 = arith.constant 5 : index
      %c0_53 = arith.constant 0 : index
      %c0_54 = arith.constant 0 : index
      %60 = vector.load %arg2[%c5, %c0_53, %c0_54] : memref<25x32x64xbf16, #tpu.memory_space<vmem>>, vector<1x32x64xbf16>
      %61 = vector.shape_cast %60 : vector<1x32x64xbf16> to vector<32x64xbf16>
      %cst_55 = arith.constant dense<0.000000e+00> : vector<4x64xf32>
      %62 = tpu.matmul %59, %61, %cst_55 {dimension_numbers = #tpu.dot_dimension_numbers<[1], [0], [0], [1], [0, 0, 1, 1], [], []>} : vector<4x32xbf16>, vector<32x64xbf16>, vector<4x64xf32> -> vector<4x64xf32>
      %63 = arith.addf %55, %62 : vector<4x64xf32>
      %c18_i32 = arith.constant 18 : i32
      %64 = arith.addi %c18_i32, %arg6 : i32
      %c0_56 = arith.constant 0 : index
      %65 = arith.index_cast %64 : i32 to index
      %c0_57 = arith.constant 0 : index
      %c0_58 = arith.constant 0 : index
      %66 = vector.load %arg1[%c0_56, %65, %c0_57, %c0_58] : memref<1x24x6x32xbf16, #tpu.memory_space<vmem>>, vector<1x1x4x32xbf16>
      %67 = vector.shape_cast %66 : vector<1x1x4x32xbf16> to vector<4x32xbf16>
      %c6 = arith.constant 6 : index
      %c0_59 = arith.constant 0 : index
      %c0_60 = arith.constant 0 : index
      %68 = vector.load %arg2[%c6, %c0_59, %c0_60] : memref<25x32x64xbf16, #tpu.memory_space<vmem>>, vector<1x32x64xbf16>
      %69 = vector.shape_cast %68 : vector<1x32x64xbf16> to vector<32x64xbf16>
      %cst_61 = arith.constant dense<0.000000e+00> : vector<4x64xf32>
      %70 = tpu.matmul %67, %69, %cst_61 {dimension_numbers = #tpu.dot_dimension_numbers<[1], [0], [0], [1], [0, 0, 1, 1], [], []>} : vector<4x32xbf16>, vector<32x64xbf16>, vector<4x64xf32> -> vector<4x64xf32>
      %71 = arith.addf %63, %70 : vector<4x64xf32>
      %c12_i32_62 = arith.constant 12 : i32
      %72 = arith.addi %c12_i32_62, %arg6 : i32
      %c0_63 = arith.constant 0 : index
      %73 = arith.index_cast %72 : i32 to index
      %c1_64 = arith.constant 1 : index
      %c0_65 = arith.constant 0 : index
      %74 = vector.load %arg1[%c0_63, %73, %c1_64, %c0_65] : memref<1x24x6x32xbf16, #tpu.memory_space<vmem>>, vector<1x1x4x32xbf16>
      %75 = vector.shape_cast %74 : vector<1x1x4x32xbf16> to vector<4x32xbf16>
      %c7 = arith.constant 7 : index
      %c0_66 = arith.constant 0 : index
      %c0_67 = arith.constant 0 : index
      %76 = vector.load %arg2[%c7, %c0_66, %c0_67] : memref<25x32x64xbf16, #tpu.memory_space<vmem>>, vector<1x32x64xbf16>
      %77 = vector.shape_cast %76 : vector<1x32x64xbf16> to vector<32x64xbf16>
      %cst_68 = arith.constant dense<0.000000e+00> : vector<4x64xf32>
      %78 = tpu.matmul %75, %77, %cst_68 {dimension_numbers = #tpu.dot_dimension_numbers<[1], [0], [0], [1], [0, 0, 1, 1], [], []>} : vector<4x32xbf16>, vector<32x64xbf16>, vector<4x64xf32> -> vector<4x64xf32>
      %79 = arith.addf %71, %78 : vector<4x64xf32>
      %c18_i32_69 = arith.constant 18 : i32
      %80 = arith.addi %c18_i32_69, %arg6 : i32
      %c0_70 = arith.constant 0 : index
      %81 = arith.index_cast %80 : i32 to index
      %c1_71 = arith.constant 1 : index
      %c0_72 = arith.constant 0 : index
      %82 = vector.load %arg1[%c0_70, %81, %c1_71, %c0_72] : memref<1x24x6x32xbf16, #tpu.memory_space<vmem>>, vector<1x1x4x32xbf16>
      %83 = vector.shape_cast %82 : vector<1x1x4x32xbf16> to vector<4x32xbf16>
      %c8 = arith.constant 8 : index
      %c0_73 = arith.constant 0 : index
      %c0_74 = arith.constant 0 : index
      %84 = vector.load %arg2[%c8, %c0_73, %c0_74] : memref<25x32x64xbf16, #tpu.memory_space<vmem>>, vector<1x32x64xbf16>
      %85 = vector.shape_cast %84 : vector<1x32x64xbf16> to vector<32x64xbf16>
      %cst_75 = arith.constant dense<0.000000e+00> : vector<4x64xf32>
      %86 = tpu.matmul %83, %85, %cst_75 {dimension_numbers = #tpu.dot_dimension_numbers<[1], [0], [0], [1], [0, 0, 1, 1], [], []>} : vector<4x32xbf16>, vector<32x64xbf16>, vector<4x64xf32> -> vector<4x64xf32>
      %87 = arith.addf %79, %86 : vector<4x64xf32>
      %c12_i32_76 = arith.constant 12 : i32
      %88 = arith.addi %c12_i32_76, %arg6 : i32
      %c0_77 = arith.constant 0 : index
      %89 = arith.index_cast %88 : i32 to index
      %c2_78 = arith.constant 2 : index
      %c0_79 = arith.constant 0 : index
      %90 = vector.load %arg1[%c0_77, %89, %c2_78, %c0_79] : memref<1x24x6x32xbf16, #tpu.memory_space<vmem>>, vector<1x1x4x32xbf16>
      %91 = vector.shape_cast %90 : vector<1x1x4x32xbf16> to vector<4x32xbf16>
      %c9 = arith.constant 9 : index
      %c0_80 = arith.constant 0 : index
      %c0_81 = arith.constant 0 : index
      %92 = vector.load %arg2[%c9, %c0_80, %c0_81] : memref<25x32x64xbf16, #tpu.memory_space<vmem>>, vector<1x32x64xbf16>
      %93 = vector.shape_cast %92 : vector<1x32x64xbf16> to vector<32x64xbf16>
      %cst_82 = arith.constant dense<0.000000e+00> : vector<4x64xf32>
      %94 = tpu.matmul %91, %93, %cst_82 {dimension_numbers = #tpu.dot_dimension_numbers<[1], [0], [0], [1], [0, 0, 1, 1], [], []>} : vector<4x32xbf16>, vector<32x64xbf16>, vector<4x64xf32> -> vector<4x64xf32>
      %95 = arith.addf %87, %94 : vector<4x64xf32>
      %c1_i32_83 = arith.constant 1 : i32
      %96 = arith.addi %c1_i32_83, %arg6 : i32
      %c0_84 = arith.constant 0 : index
      %97 = arith.index_cast %96 : i32 to index
      %c0_85 = arith.constant 0 : index
      %c0_86 = arith.constant 0 : index
      %98 = vector.load %arg1[%c0_84, %97, %c0_85, %c0_86] : memref<1x24x6x32xbf16, #tpu.memory_space<vmem>>, vector<1x1x4x32xbf16>
      %99 = vector.shape_cast %98 : vector<1x1x4x32xbf16> to vector<4x32xbf16>
      %c10 = arith.constant 10 : index
      %c0_87 = arith.constant 0 : index
      %c0_88 = arith.constant 0 : index
      %100 = vector.load %arg2[%c10, %c0_87, %c0_88] : memref<25x32x64xbf16, #tpu.memory_space<vmem>>, vector<1x32x64xbf16>
      %101 = vector.shape_cast %100 : vector<1x32x64xbf16> to vector<32x64xbf16>
      %cst_89 = arith.constant dense<0.000000e+00> : vector<4x64xf32>
      %102 = tpu.matmul %99, %101, %cst_89 {dimension_numbers = #tpu.dot_dimension_numbers<[1], [0], [0], [1], [0, 0, 1, 1], [], []>} : vector<4x32xbf16>, vector<32x64xbf16>, vector<4x64xf32> -> vector<4x64xf32>
      %103 = arith.addf %95, %102 : vector<4x64xf32>
      %c7_i32 = arith.constant 7 : i32
      %104 = arith.addi %c7_i32, %arg6 : i32
      %c0_90 = arith.constant 0 : index
      %105 = arith.index_cast %104 : i32 to index
      %c0_91 = arith.constant 0 : index
      %c0_92 = arith.constant 0 : index
      %106 = vector.load %arg1[%c0_90, %105, %c0_91, %c0_92] : memref<1x24x6x32xbf16, #tpu.memory_space<vmem>>, vector<1x1x4x32xbf16>
      %107 = vector.shape_cast %106 : vector<1x1x4x32xbf16> to vector<4x32xbf16>
      %c11 = arith.constant 11 : index
      %c0_93 = arith.constant 0 : index
      %c0_94 = arith.constant 0 : index
      %108 = vector.load %arg2[%c11, %c0_93, %c0_94] : memref<25x32x64xbf16, #tpu.memory_space<vmem>>, vector<1x32x64xbf16>
      %109 = vector.shape_cast %108 : vector<1x32x64xbf16> to vector<32x64xbf16>
      %cst_95 = arith.constant dense<0.000000e+00> : vector<4x64xf32>
      %110 = tpu.matmul %107, %109, %cst_95 {dimension_numbers = #tpu.dot_dimension_numbers<[1], [0], [0], [1], [0, 0, 1, 1], [], []>} : vector<4x32xbf16>, vector<32x64xbf16>, vector<4x64xf32> -> vector<4x64xf32>
      %111 = arith.addf %103, %110 : vector<4x64xf32>
      %c1_i32_96 = arith.constant 1 : i32
      %112 = arith.addi %c1_i32_96, %arg6 : i32
      %c0_97 = arith.constant 0 : index
      %113 = arith.index_cast %112 : i32 to index
      %c1_98 = arith.constant 1 : index
      %c0_99 = arith.constant 0 : index
      %114 = vector.load %arg1[%c0_97, %113, %c1_98, %c0_99] : memref<1x24x6x32xbf16, #tpu.memory_space<vmem>>, vector<1x1x4x32xbf16>
      %115 = vector.shape_cast %114 : vector<1x1x4x32xbf16> to vector<4x32xbf16>
      %c12 = arith.constant 12 : index
      %c0_100 = arith.constant 0 : index
      %c0_101 = arith.constant 0 : index
      %116 = vector.load %arg2[%c12, %c0_100, %c0_101] : memref<25x32x64xbf16, #tpu.memory_space<vmem>>, vector<1x32x64xbf16>
      %117 = vector.shape_cast %116 : vector<1x32x64xbf16> to vector<32x64xbf16>
      %cst_102 = arith.constant dense<0.000000e+00> : vector<4x64xf32>
      %118 = tpu.matmul %115, %117, %cst_102 {dimension_numbers = #tpu.dot_dimension_numbers<[1], [0], [0], [1], [0, 0, 1, 1], [], []>} : vector<4x32xbf16>, vector<32x64xbf16>, vector<4x64xf32> -> vector<4x64xf32>
      %119 = arith.addf %111, %118 : vector<4x64xf32>
      %c7_i32_103 = arith.constant 7 : i32
      %120 = arith.addi %c7_i32_103, %arg6 : i32
      %c0_104 = arith.constant 0 : index
      %121 = arith.index_cast %120 : i32 to index
      %c1_105 = arith.constant 1 : index
      %c0_106 = arith.constant 0 : index
      %122 = vector.load %arg1[%c0_104, %121, %c1_105, %c0_106] : memref<1x24x6x32xbf16, #tpu.memory_space<vmem>>, vector<1x1x4x32xbf16>
      %123 = vector.shape_cast %122 : vector<1x1x4x32xbf16> to vector<4x32xbf16>
      %c13 = arith.constant 13 : index
      %c0_107 = arith.constant 0 : index
      %c0_108 = arith.constant 0 : index
      %124 = vector.load %arg2[%c13, %c0_107, %c0_108] : memref<25x32x64xbf16, #tpu.memory_space<vmem>>, vector<1x32x64xbf16>
      %125 = vector.shape_cast %124 : vector<1x32x64xbf16> to vector<32x64xbf16>
      %cst_109 = arith.constant dense<0.000000e+00> : vector<4x64xf32>
      %126 = tpu.matmul %123, %125, %cst_109 {dimension_numbers = #tpu.dot_dimension_numbers<[1], [0], [0], [1], [0, 0, 1, 1], [], []>} : vector<4x32xbf16>, vector<32x64xbf16>, vector<4x64xf32> -> vector<4x64xf32>
      %127 = arith.addf %119, %126 : vector<4x64xf32>
      %c1_i32_110 = arith.constant 1 : i32
      %128 = arith.addi %c1_i32_110, %arg6 : i32
      %c0_111 = arith.constant 0 : index
      %129 = arith.index_cast %128 : i32 to index
      %c2_112 = arith.constant 2 : index
      %c0_113 = arith.constant 0 : index
      %130 = vector.load %arg1[%c0_111, %129, %c2_112, %c0_113] : memref<1x24x6x32xbf16, #tpu.memory_space<vmem>>, vector<1x1x4x32xbf16>
      %131 = vector.shape_cast %130 : vector<1x1x4x32xbf16> to vector<4x32xbf16>
      %c14 = arith.constant 14 : index
      %c0_114 = arith.constant 0 : index
      %c0_115 = arith.constant 0 : index
      %132 = vector.load %arg2[%c14, %c0_114, %c0_115] : memref<25x32x64xbf16, #tpu.memory_space<vmem>>, vector<1x32x64xbf16>
      %133 = vector.shape_cast %132 : vector<1x32x64xbf16> to vector<32x64xbf16>
      %cst_116 = arith.constant dense<0.000000e+00> : vector<4x64xf32>
      %134 = tpu.matmul %131, %133, %cst_116 {dimension_numbers = #tpu.dot_dimension_numbers<[1], [0], [0], [1], [0, 0, 1, 1], [], []>} : vector<4x32xbf16>, vector<32x64xbf16>, vector<4x64xf32> -> vector<4x64xf32>
      %135 = arith.addf %127, %134 : vector<4x64xf32>
      %c13_i32 = arith.constant 13 : i32
      %136 = arith.addi %c13_i32, %arg6 : i32
      %c0_117 = arith.constant 0 : index
      %137 = arith.index_cast %136 : i32 to index
      %c0_118 = arith.constant 0 : index
      %c0_119 = arith.constant 0 : index
      %138 = vector.load %arg1[%c0_117, %137, %c0_118, %c0_119] : memref<1x24x6x32xbf16, #tpu.memory_space<vmem>>, vector<1x1x4x32xbf16>
      %139 = vector.shape_cast %138 : vector<1x1x4x32xbf16> to vector<4x32xbf16>
      %c15 = arith.constant 15 : index
      %c0_120 = arith.constant 0 : index
      %c0_121 = arith.constant 0 : index
      %140 = vector.load %arg2[%c15, %c0_120, %c0_121] : memref<25x32x64xbf16, #tpu.memory_space<vmem>>, vector<1x32x64xbf16>
      %141 = vector.shape_cast %140 : vector<1x32x64xbf16> to vector<32x64xbf16>
      %cst_122 = arith.constant dense<0.000000e+00> : vector<4x64xf32>
      %142 = tpu.matmul %139, %141, %cst_122 {dimension_numbers = #tpu.dot_dimension_numbers<[1], [0], [0], [1], [0, 0, 1, 1], [], []>} : vector<4x32xbf16>, vector<32x64xbf16>, vector<4x64xf32> -> vector<4x64xf32>
      %143 = arith.addf %135, %142 : vector<4x64xf32>
      %c19_i32 = arith.constant 19 : i32
      %144 = arith.addi %c19_i32, %arg6 : i32
      %c0_123 = arith.constant 0 : index
      %145 = arith.index_cast %144 : i32 to index
      %c0_124 = arith.constant 0 : index
      %c0_125 = arith.constant 0 : index
      %146 = vector.load %arg1[%c0_123, %145, %c0_124, %c0_125] : memref<1x24x6x32xbf16, #tpu.memory_space<vmem>>, vector<1x1x4x32xbf16>
      %147 = vector.shape_cast %146 : vector<1x1x4x32xbf16> to vector<4x32xbf16>
      %c16 = arith.constant 16 : index
      %c0_126 = arith.constant 0 : index
      %c0_127 = arith.constant 0 : index
      %148 = vector.load %arg2[%c16, %c0_126, %c0_127] : memref<25x32x64xbf16, #tpu.memory_space<vmem>>, vector<1x32x64xbf16>
      %149 = vector.shape_cast %148 : vector<1x32x64xbf16> to vector<32x64xbf16>
      %cst_128 = arith.constant dense<0.000000e+00> : vector<4x64xf32>
      %150 = tpu.matmul %147, %149, %cst_128 {dimension_numbers = #tpu.dot_dimension_numbers<[1], [0], [0], [1], [0, 0, 1, 1], [], []>} : vector<4x32xbf16>, vector<32x64xbf16>, vector<4x64xf32> -> vector<4x64xf32>
      %151 = arith.addf %143, %150 : vector<4x64xf32>
      %c13_i32_129 = arith.constant 13 : i32
      %152 = arith.addi %c13_i32_129, %arg6 : i32
      %c0_130 = arith.constant 0 : index
      %153 = arith.index_cast %152 : i32 to index
      %c1_131 = arith.constant 1 : index
      %c0_132 = arith.constant 0 : index
      %154 = vector.load %arg1[%c0_130, %153, %c1_131, %c0_132] : memref<1x24x6x32xbf16, #tpu.memory_space<vmem>>, vector<1x1x4x32xbf16>
      %155 = vector.shape_cast %154 : vector<1x1x4x32xbf16> to vector<4x32xbf16>
      %c17 = arith.constant 17 : index
      %c0_133 = arith.constant 0 : index
      %c0_134 = arith.constant 0 : index
      %156 = vector.load %arg2[%c17, %c0_133, %c0_134] : memref<25x32x64xbf16, #tpu.memory_space<vmem>>, vector<1x32x64xbf16>
      %157 = vector.shape_cast %156 : vector<1x32x64xbf16> to vector<32x64xbf16>
      %cst_135 = arith.constant dense<0.000000e+00> : vector<4x64xf32>
      %158 = tpu.matmul %155, %157, %cst_135 {dimension_numbers = #tpu.dot_dimension_numbers<[1], [0], [0], [1], [0, 0, 1, 1], [], []>} : vector<4x32xbf16>, vector<32x64xbf16>, vector<4x64xf32> -> vector<4x64xf32>
      %159 = arith.addf %151, %158 : vector<4x64xf32>
      %c19_i32_136 = arith.constant 19 : i32
      %160 = arith.addi %c19_i32_136, %arg6 : i32
      %c0_137 = arith.constant 0 : index
      %161 = arith.index_cast %160 : i32 to index
      %c1_138 = arith.constant 1 : index
      %c0_139 = arith.constant 0 : index
      %162 = vector.load %arg1[%c0_137, %161, %c1_138, %c0_139] : memref<1x24x6x32xbf16, #tpu.memory_space<vmem>>, vector<1x1x4x32xbf16>
      %163 = vector.shape_cast %162 : vector<1x1x4x32xbf16> to vector<4x32xbf16>
      %c18 = arith.constant 18 : index
      %c0_140 = arith.constant 0 : index
      %c0_141 = arith.constant 0 : index
      %164 = vector.load %arg2[%c18, %c0_140, %c0_141] : memref<25x32x64xbf16, #tpu.memory_space<vmem>>, vector<1x32x64xbf16>
      %165 = vector.shape_cast %164 : vector<1x32x64xbf16> to vector<32x64xbf16>
      %cst_142 = arith.constant dense<0.000000e+00> : vector<4x64xf32>
      %166 = tpu.matmul %163, %165, %cst_142 {dimension_numbers = #tpu.dot_dimension_numbers<[1], [0], [0], [1], [0, 0, 1, 1], [], []>} : vector<4x32xbf16>, vector<32x64xbf16>, vector<4x64xf32> -> vector<4x64xf32>
      %167 = arith.addf %159, %166 : vector<4x64xf32>
      %c13_i32_143 = arith.constant 13 : i32
      %168 = arith.addi %c13_i32_143, %arg6 : i32
      %c0_144 = arith.constant 0 : index
      %169 = arith.index_cast %168 : i32 to index
      %c2_145 = arith.constant 2 : index
      %c0_146 = arith.constant 0 : index
      %170 = vector.load %arg1[%c0_144, %169, %c2_145, %c0_146] : memref<1x24x6x32xbf16, #tpu.memory_space<vmem>>, vector<1x1x4x32xbf16>
      %171 = vector.shape_cast %170 : vector<1x1x4x32xbf16> to vector<4x32xbf16>
      %c19 = arith.constant 19 : index
      %c0_147 = arith.constant 0 : index
      %c0_148 = arith.constant 0 : index
      %172 = vector.load %arg2[%c19, %c0_147, %c0_148] : memref<25x32x64xbf16, #tpu.memory_space<vmem>>, vector<1x32x64xbf16>
      %173 = vector.shape_cast %172 : vector<1x32x64xbf16> to vector<32x64xbf16>
      %cst_149 = arith.constant dense<0.000000e+00> : vector<4x64xf32>
      %174 = tpu.matmul %171, %173, %cst_149 {dimension_numbers = #tpu.dot_dimension_numbers<[1], [0], [0], [1], [0, 0, 1, 1], [], []>} : vector<4x32xbf16>, vector<32x64xbf16>, vector<4x64xf32> -> vector<4x64xf32>
      %175 = arith.addf %167, %174 : vector<4x64xf32>
      %c2_i32 = arith.constant 2 : i32
      %176 = arith.addi %c2_i32, %arg6 : i32
      %c0_150 = arith.constant 0 : index
      %177 = arith.index_cast %176 : i32 to index
      %c0_151 = arith.constant 0 : index
      %c0_152 = arith.constant 0 : index
      %178 = vector.load %arg1[%c0_150, %177, %c0_151, %c0_152] : memref<1x24x6x32xbf16, #tpu.memory_space<vmem>>, vector<1x1x4x32xbf16>
      %179 = vector.shape_cast %178 : vector<1x1x4x32xbf16> to vector<4x32xbf16>
      %c20 = arith.constant 20 : index
      %c0_153 = arith.constant 0 : index
      %c0_154 = arith.constant 0 : index
      %180 = vector.load %arg2[%c20, %c0_153, %c0_154] : memref<25x32x64xbf16, #tpu.memory_space<vmem>>, vector<1x32x64xbf16>
      %181 = vector.shape_cast %180 : vector<1x32x64xbf16> to vector<32x64xbf16>
      %cst_155 = arith.constant dense<0.000000e+00> : vector<4x64xf32>
      %182 = tpu.matmul %179, %181, %cst_155 {dimension_numbers = #tpu.dot_dimension_numbers<[1], [0], [0], [1], [0, 0, 1, 1], [], []>} : vector<4x32xbf16>, vector<32x64xbf16>, vector<4x64xf32> -> vector<4x64xf32>
      %183 = arith.addf %175, %182 : vector<4x64xf32>
      %c8_i32 = arith.constant 8 : i32
      %184 = arith.addi %c8_i32, %arg6 : i32
      %c0_156 = arith.constant 0 : index
      %185 = arith.index_cast %184 : i32 to index
      %c0_157 = arith.constant 0 : index
      %c0_158 = arith.constant 0 : index
      %186 = vector.load %arg1[%c0_156, %185, %c0_157, %c0_158] : memref<1x24x6x32xbf16, #tpu.memory_space<vmem>>, vector<1x1x4x32xbf16>
      %187 = vector.shape_cast %186 : vector<1x1x4x32xbf16> to vector<4x32xbf16>
      %c21 = arith.constant 21 : index
      %c0_159 = arith.constant 0 : index
      %c0_160 = arith.constant 0 : index
      %188 = vector.load %arg2[%c21, %c0_159, %c0_160] : memref<25x32x64xbf16, #tpu.memory_space<vmem>>, vector<1x32x64xbf16>
      %189 = vector.shape_cast %188 : vector<1x32x64xbf16> to vector<32x64xbf16>
      %cst_161 = arith.constant dense<0.000000e+00> : vector<4x64xf32>
      %190 = tpu.matmul %187, %189, %cst_161 {dimension_numbers = #tpu.dot_dimension_numbers<[1], [0], [0], [1], [0, 0, 1, 1], [], []>} : vector<4x32xbf16>, vector<32x64xbf16>, vector<4x64xf32> -> vector<4x64xf32>
      %191 = arith.addf %183, %190 : vector<4x64xf32>
      %c2_i32_162 = arith.constant 2 : i32
      %192 = arith.addi %c2_i32_162, %arg6 : i32
      %c0_163 = arith.constant 0 : index
      %193 = arith.index_cast %192 : i32 to index
      %c1_164 = arith.constant 1 : index
      %c0_165 = arith.constant 0 : index
      %194 = vector.load %arg1[%c0_163, %193, %c1_164, %c0_165] : memref<1x24x6x32xbf16, #tpu.memory_space<vmem>>, vector<1x1x4x32xbf16>
      %195 = vector.shape_cast %194 : vector<1x1x4x32xbf16> to vector<4x32xbf16>
      %c22 = arith.constant 22 : index
      %c0_166 = arith.constant 0 : index
      %c0_167 = arith.constant 0 : index
      %196 = vector.load %arg2[%c22, %c0_166, %c0_167] : memref<25x32x64xbf16, #tpu.memory_space<vmem>>, vector<1x32x64xbf16>
      %197 = vector.shape_cast %196 : vector<1x32x64xbf16> to vector<32x64xbf16>
      %cst_168 = arith.constant dense<0.000000e+00> : vector<4x64xf32>
      %198 = tpu.matmul %195, %197, %cst_168 {dimension_numbers = #tpu.dot_dimension_numbers<[1], [0], [0], [1], [0, 0, 1, 1], [], []>} : vector<4x32xbf16>, vector<32x64xbf16>, vector<4x64xf32> -> vector<4x64xf32>
      %199 = arith.addf %191, %198 : vector<4x64xf32>
      %c8_i32_169 = arith.constant 8 : i32
      %200 = arith.addi %c8_i32_169, %arg6 : i32
      %c0_170 = arith.constant 0 : index
      %201 = arith.index_cast %200 : i32 to index
      %c1_171 = arith.constant 1 : index
      %c0_172 = arith.constant 0 : index
      %202 = vector.load %arg1[%c0_170, %201, %c1_171, %c0_172] : memref<1x24x6x32xbf16, #tpu.memory_space<vmem>>, vector<1x1x4x32xbf16>
      %203 = vector.shape_cast %202 : vector<1x1x4x32xbf16> to vector<4x32xbf16>
      %c23 = arith.constant 23 : index
      %c0_173 = arith.constant 0 : index
      %c0_174 = arith.constant 0 : index
      %204 = vector.load %arg2[%c23, %c0_173, %c0_174] : memref<25x32x64xbf16, #tpu.memory_space<vmem>>, vector<1x32x64xbf16>
      %205 = vector.shape_cast %204 : vector<1x32x64xbf16> to vector<32x64xbf16>
      %cst_175 = arith.constant dense<0.000000e+00> : vector<4x64xf32>
      %206 = tpu.matmul %203, %205, %cst_175 {dimension_numbers = #tpu.dot_dimension_numbers<[1], [0], [0], [1], [0, 0, 1, 1], [], []>} : vector<4x32xbf16>, vector<32x64xbf16>, vector<4x64xf32> -> vector<4x64xf32>
      %207 = arith.addf %199, %206 : vector<4x64xf32>
      %c2_i32_176 = arith.constant 2 : i32
      %208 = arith.addi %c2_i32_176, %arg6 : i32
      %c0_177 = arith.constant 0 : index
      %209 = arith.index_cast %208 : i32 to index
      %c2_178 = arith.constant 2 : index
      %c0_179 = arith.constant 0 : index
      %210 = vector.load %arg1[%c0_177, %209, %c2_178, %c0_179] : memref<1x24x6x32xbf16, #tpu.memory_space<vmem>>, vector<1x1x4x32xbf16>
      %211 = vector.shape_cast %210 : vector<1x1x4x32xbf16> to vector<4x32xbf16>
      %c24 = arith.constant 24 : index
      %c0_180 = arith.constant 0 : index
      %c0_181 = arith.constant 0 : index
      %212 = vector.load %arg2[%c24, %c0_180, %c0_181] : memref<25x32x64xbf16, #tpu.memory_space<vmem>>, vector<1x32x64xbf16>
      %213 = vector.shape_cast %212 : vector<1x32x64xbf16> to vector<32x64xbf16>
      %cst_182 = arith.constant dense<0.000000e+00> : vector<4x64xf32>
      %214 = tpu.matmul %211, %213, %cst_182 {dimension_numbers = #tpu.dot_dimension_numbers<[1], [0], [0], [1], [0, 0, 1, 1], [], []>} : vector<4x32xbf16>, vector<32x64xbf16>, vector<4x64xf32> -> vector<4x64xf32>
      %215 = arith.addf %207, %214 : vector<4x64xf32>
      %216 = vector.broadcast %0 : vector<1x64xf32> to vector<4x64xf32>
      %217 = arith.addf %215, %216 : vector<4x64xf32>
      %218 = arith.truncf %217 : vector<4x64xf32> to vector<4x64xbf16>
      %c0_183 = arith.constant 0 : index
      %219 = arith.index_cast %arg6 : i32 to index
      %c0_184 = arith.constant 0 : index
      %c0_185 = arith.constant 0 : index
      %220 = vector.load %arg4[%c0_183, %219, %c0_184, %c0_185] : memref<1x4x4x64xbf16, #tpu.memory_space<vmem>>, vector<1x1x4x64xbf16>
      %221 = vector.shape_cast %220 : vector<1x1x4x64xbf16> to vector<4x64xbf16>
      %222 = vector.shape_cast %218 : vector<4x64xbf16> to vector<1x1x4x64xbf16>
      tpu.vector_store %arg4[%c0_183, %219, %c0_184, %c0_185], %222 {strides = array<i32>} : memref<1x4x4x64xbf16, #tpu.memory_space<vmem>>, vector<1x1x4x64xbf16>,
      %cst_186 = arith.constant dense<0.000000e+00> : vector<64xf32>
      %223 = vector.multi_reduction <add>, %217, %cst_186 [0] : vector<4x64xf32> to vector<64xf32>
      %224 = vector.shape_cast %223 : vector<64xf32> to vector<1x64xf32>
      %225 = arith.addf %arg7, %224 : vector<1x64xf32>
      scf.yield %225 : vector<1x64xf32>
    }
    %c4_i32_1 = arith.constant 4 : i32
    %cst_2 = arith.constant 6.250000e-02 : f32
    %4 = vector.broadcast %cst_2 : f32 to vector<1x64xf32>
    %5 = arith.mulf %3, %4 : vector<1x64xf32>
    %cst_3 = arith.constant 0.000000e+00 : f32
    %6 = vector.broadcast %cst_3 : f32 to vector<1x64xf32>
    %c0_i32_4 = arith.constant 0 : i32
    %c4_i32_5 = arith.constant 4 : i32
    %7 = arith.addi %c0_i32_4, %c4_i32_5 : i32
    %c1_i32_6 = arith.constant 1 : i32
    %8 = scf.for %arg6 = %c0_i32_4 to %7 step %c1_i32_6 iter_args(%arg7 = %6) -> (vector<1x64xf32>)  : i32 {
      %c0_13 = arith.constant 0 : index
      %15 = arith.index_cast %arg6 : i32 to index
      %c0_14 = arith.constant 0 : index
      %c0_15 = arith.constant 0 : index
      %16 = vector.load %arg4[%c0_13, %15, %c0_14, %c0_15] : memref<1x4x4x64xbf16, #tpu.memory_space<vmem>>, vector<1x1x4x64xbf16>
      %17 = vector.shape_cast %16 : vector<1x1x4x64xbf16> to vector<4x64xbf16>
      %18 = arith.extf %17 : vector<4x64xbf16> to vector<4x64xf32>
      %19 = vector.broadcast %5 : vector<1x64xf32> to vector<4x64xf32>
      %20 = arith.subf %18, %19 : vector<4x64xf32>
      %21 = arith.mulf %20, %20 : vector<4x64xf32>
      %cst_16 = arith.constant dense<0.000000e+00> : vector<64xf32>
      %22 = vector.multi_reduction <add>, %21, %cst_16 [0] : vector<4x64xf32> to vector<64xf32>
      %23 = vector.shape_cast %22 : vector<64xf32> to vector<1x64xf32>
      %24 = arith.addf %arg7, %23 : vector<1x64xf32>
      scf.yield %24 : vector<1x64xf32>
    }
    %c4_i32_7 = arith.constant 4 : i32
    %c0_8 = arith.constant 0 : index
    %c0_9 = arith.constant 0 : index
    %c0_10 = arith.constant 0 : index
    %9 = vector.load %arg5[%c0_8, %c0_9, %c0_10] : memref<1x2x64xf32, #tpu.memory_space<vmem>>, vector<1x1x64xf32>
    %10 = vector.shape_cast %9 : vector<1x1x64xf32> to vector<1x64xf32>
    %11 = vector.shape_cast %5 : vector<1x64xf32> to vector<1x1x64xf32>
    tpu.vector_store %arg5[%c0_8, %c0_9, %c0_10], %11 {strides = array<i32>} : memref<1x2x64xf32, #tpu.memory_space<vmem>>, vector<1x1x64xf32>,
    %c0_11 = arith.constant 0 : index
    %c1 = arith.constant 1 : index
    %c0_12 = arith.constant 0 : index
    %12 = vector.load %arg5[%c0_11, %c1, %c0_12] : memref<1x2x64xf32, #tpu.memory_space<vmem>>, vector<1x1x64xf32>
    %13 = vector.shape_cast %12 : vector<1x1x64xf32> to vector<1x64xf32>
    %14 = vector.shape_cast %8 : vector<1x64xf32> to vector<1x1x64xf32>
    tpu.vector_store %arg5[%c0_11, %c1, %c0_12], %14 {strides = array<i32>} : memref<1x2x64xf32, #tpu.memory_space<vmem>>, vector<1x1x64xf32>,
    return
  }
  func.func @transform_0(%arg0: i32) -> (i32, i32, i32, i32) {
    %c0_i32 = arith.constant 0 : i32
    %c0_i32_0 = arith.constant 0 : i32
    %c0_i32_1 = arith.constant 0 : i32
    %c0_i32_2 = arith.constant 0 : i32
    return %arg0, %c0_i32, %c0_i32_0, %c0_i32_1 : i32, i32, i32, i32
  }
  func.func @transform_1(%arg0: i32) -> (i32, i32, i32) {
    %c0_i32 = arith.constant 0 : i32
    %c0_i32_0 = arith.constant 0 : i32
    %c0_i32_1 = arith.constant 0 : i32
    %c0_i32_2 = arith.constant 0 : i32
    return %c0_i32, %c0_i32_0, %c0_i32_1 : i32, i32, i32
  }
  func.func @transform_2(%arg0: i32) -> (i32, i32) {
    %c0_i32 = arith.constant 0 : i32
    %c0_i32_0 = arith.constant 0 : i32
    %c0_i32_1 = arith.constant 0 : i32
    return %c0_i32, %c0_i32_0 : i32, i32
  }
  func.func @transform_3(%arg0: i32) -> (i32, i32, i32, i32) {
    %c0_i32 = arith.constant 0 : i32
    %c0_i32_0 = arith.constant 0 : i32
    %c0_i32_1 = arith.constant 0 : i32
    %c0_i32_2 = arith.constant 0 : i32
    return %arg0, %c0_i32, %c0_i32_0, %c0_i32_1 : i32, i32, i32, i32
  }
  func.func @transform_4(%arg0: i32) -> (i32, i32, i32) {
    %c0_i32 = arith.constant 0 : i32
    %c0_i32_0 = arith.constant 0 : i32
    %c0_i32_1 = arith.constant 0 : i32
    return %arg0, %c0_i32, %c0_i32_0 : i32, i32, i32
  }
}

module attributes {stable_mosaic.version = 11 : i64} {
  func.func @_matmul_bias_act_kernel(%arg0: i32, %arg1: memref<2x1024xbf16, #tpu.memory_space<vmem>>, %arg2: memref<1024x1xbf16, #tpu.memory_space<vmem>>, %arg3: memref<1x1xf32, #tpu.memory_space<vmem>>, %arg4: memref<2x1xf32, #tpu.memory_space<vmem>>) attributes {dimension_semantics = [#tpu.dimension_semantics<parallel>], iteration_bounds = array<i64: 1>, scalar_prefetch = 0 : i64, scratch_operands = 0 : i64, tpu.core_type = #tpu.core_type<tc>, window_params = [{transform_indices = @transform_0, window_bounds = array<i64: 2, 1024>}, {pipeline_mode = #tpu.pipeline_mode<synchronous>, transform_indices = @transform_1, window_bounds = array<i64: 1024, 1>}, {pipeline_mode = #tpu.pipeline_mode<synchronous>, transform_indices = @transform_2, window_bounds = array<i64: 1, 1>}, {transform_indices = @transform_3, window_bounds = array<i64: 2, 1>}]} {
    %c0 = arith.constant 0 : index
    %c0_0 = arith.constant 0 : index
    %0 = vector.load %arg1[%c0, %c0_0] : memref<2x1024xbf16, #tpu.memory_space<vmem>>, vector<2x1024xbf16>
    %c0_1 = arith.constant 0 : index
    %c0_2 = arith.constant 0 : index
    %1 = vector.load %arg2[%c0_1, %c0_2] : memref<1024x1xbf16, #tpu.memory_space<vmem>>, vector<1024x1xbf16>
    %cst = arith.constant dense<0.000000e+00> : vector<2x1xf32>
    %2 = tpu.matmul %0, %1, %cst {dimension_numbers = #tpu.dot_dimension_numbers<[1], [0], [0], [1], [0, 0, 1, 1], [], []>} : vector<2x1024xbf16>, vector<1024x1xbf16>, vector<2x1xf32> -> vector<2x1xf32>
    %c0_3 = arith.constant 0 : index
    %c0_4 = arith.constant 0 : index
    %3 = vector.load %arg3[%c0_3, %c0_4] : memref<1x1xf32, #tpu.memory_space<vmem>>, vector<1x1xf32>
    %4 = vector.broadcast %3 : vector<1x1xf32> to vector<2x1xf32>
    %5 = arith.addf %2, %4 : vector<2x1xf32>
    %cst_5 = arith.constant 0.000000e+00 : f32
    %6 = vector.broadcast %cst_5 : f32 to vector<2x1xf32>
    %7 = arith.subf %6, %5 : vector<2x1xf32>
    %8 = math.exp %7 : vector<2x1xf32>
    %cst_6 = arith.constant 1.000000e+00 : f32
    %9 = vector.broadcast %cst_6 : f32 to vector<2x1xf32>
    %10 = arith.addf %9, %8 : vector<2x1xf32>
    %cst_7 = arith.constant 1.000000e+00 : f32
    %11 = vector.broadcast %cst_7 : f32 to vector<2x1xf32>
    %12 = arith.divf %11, %10 : vector<2x1xf32>
    %c0_8 = arith.constant 0 : index
    %c0_9 = arith.constant 0 : index
    %13 = vector.load %arg4[%c0_8, %c0_9] : memref<2x1xf32, #tpu.memory_space<vmem>>, vector<2x1xf32>
    tpu.vector_store %arg4[%c0_8, %c0_9], %12 {strides = array<i32>} : memref<2x1xf32, #tpu.memory_space<vmem>>, vector<2x1xf32>,
    return
  }
  func.func @transform_0(%arg0: i32) -> (i32, i32) {
    %c0_i32 = arith.constant 0 : i32
    %c0_i32_0 = arith.constant 0 : i32
    return %arg0, %c0_i32 : i32, i32
  }
  func.func @transform_1(%arg0: i32) -> (i32, i32) {
    %c0_i32 = arith.constant 0 : i32
    %c0_i32_0 = arith.constant 0 : i32
    %c0_i32_1 = arith.constant 0 : i32
    return %c0_i32, %c0_i32_0 : i32, i32
  }
  func.func @transform_2(%arg0: i32) -> (i32, i32) {
    %c0_i32 = arith.constant 0 : i32
    %c0_i32_0 = arith.constant 0 : i32
    %c0_i32_1 = arith.constant 0 : i32
    return %c0_i32, %c0_i32_0 : i32, i32
  }
  func.func @transform_3(%arg0: i32) -> (i32, i32) {
    %c0_i32 = arith.constant 0 : i32
    %c0_i32_0 = arith.constant 0 : i32
    return %arg0, %c0_i32 : i32, i32
  }
}

</mosaic_0001>

<bundles_post_ra>
// kernel: _lambda_.8
= control target key start
LH: loop header
LB: loop body
LE: loop exit
PB: predicated region body
PF: predicated region fallthrough
CT: control target
= control target key end

     0   :  { %s2367_s12 = smov 0   ;;  %s2935_s0 = inlined_call_operand.vmem [shape: bf16[2048,75], index: 0, kind: input, shape index: {}]   ;;  %s2936_s1 = inlined_call_operand.vmem [shape: bf16[75,8], index: 1, kind: input, shape index: {}]   ;;  %s2937_s2 = inlined_call_operand.vmem [shape: f32[1,8], index: 2, kind: input, shape index: {}]   ;;  %s2938_s3 = inlined_call_operand.vmem [shape: bf16[2048,8], index: 3, kind: output, shape index: {}]  }
   0x1 LB: > { %s1892_s13 = sadd.s32 4294967295, %s2344_s12   ;;  %p1896_p0 = scmp.ge.s32.totalorder %s2344_s12, 1  ;;  %s2344_s12 = sphi %s2367_s12, %s13_s12  }
   0x2   : > { %p138_p1 = scmp.lt.s32.totalorder %s2344_s12, 3 }
   0x4   : > { %p139_p2 = pnand %p1896_p0, %p138_p1 }
   0x5   : > { %s1897_s18 = sshll.u32 (!%p139_p2), %s1892_s13, 7 }
   0x6   : > { %142 = sbr.rel (%p139_p2) target bundleno = 426 (0x1aa), region = 32  ;;  %p163_p3 = scmp.lt.s32.totalorder (!%p139_p2), %s1897_s18, 255 }
   0xb   : > { %v2175_v0 = vld [vmem:[%s2936_s1 + $0x20] sm:$0xf]  ;;  %v2311_v1 = vld [vmem:[%s2936_s1 + $0x20] sm:$0x30]  ;;  %vm859_vm0 = vcmask 1044480   ;;  %vm860_vm1 = vcmask 1045504  }
   0xc   : > { %v2176_v2 = vor.u32 %v2311_v1, %v2175_v0  ;;  %v2346_v3 = vmov 65535   ;;  %v2310_v7 = vld [vmem:[%s2936_s1 + $0x18] sm:$0xff]  ;;  %v2309_v8 = vld [vmem:[%s2936_s1 + $0x10] sm:$0xff]  ;;  %s2940_s18 = smov (!%p163_p3, %s1897_s18), 255  ;;  %v2308_v9 = vld [vmem:[%s2936_s1 + $0x8] sm:$0xff]  ;;  %vm666_vm2 = vcmask 613376  }
   0xd   : > { %v861_v4 = vsel %vm859_vm0, 4294967295, %v2346_v3  ;;  %s1898_s25 = sshll.u32 %s2940_s18, 2  ;;  %v2307_v10 = vld [vmem:[%s2936_s1] sm:$0xff]  ;;  %vm1707_vm5 = vcmask 60416  }
   0xe   : > { %v862_v5 = vsel %vm860_vm1, %v861_v4, 0  ;;  %s2401_s30 = scalar_lea.vmem %s2935_s0, %s1898_s25  ;;  %v2470_v43 = vld [vmem:[%s2937_s2] ss:$0 sm:$0xff]  ;;  %s2487_s8 = scalar_lea.vmem %s2938_s3, %s1898_s25 }
   0xf   : > { %v864_v6 = vand.u32 %v2176_v2, %v862_v5  ;;  %v2243_v11 = vld [vmem:[%s2401_s30] sm:$0xff]  ;;  %v2244_v15 = vld [vmem:[%s2401_s30 + $0x8] sm:$0xff]  ;;  %v2245_v19 = vld [vmem:[%s2401_s30 + $0x10] sm:$0xff] }
  0x10   : > { %v2259_v12 = vld [vmem:[%s2401_s30 + $0x80] sm:$0xff]  ;;  %v2260_v16 = vld [vmem:[%s2401_s30 + $0x88] sm:$0xff]  ;;  %v2261_v20 = vld [vmem:[%s2401_s30 + $0x90] sm:$0xff] }
  0x11   : > { %869 = vmatpush.bf16.msra.mxu0 %v864_v6  ;;  %2312 = vmatpush.bf16.msra.mxu1 %v864_v6  ;;  %v2275_v13 = vld [vmem:[%s2401_s30 + $0x100] sm:$0xff]  ;;  %v2276_v17 = vld [vmem:[%s2401_s30 + $0x108] sm:$0xff]  ;;  %v2277_v21 = vld [vmem:[%s2401_s30 + $0x110] sm:$0xff] }
  0x12   : > { %2313 = vmatpush.bf16.msra.mxu2 %v864_v6  ;;  %2314 = vmatpush.bf16.msra.mxu3 %v864_v6  ;;  %v2291_v14 = vld [vmem:[%s2401_s30 + $0x180] sm:$0xff]  ;;  %v2292_v18 = vld [vmem:[%s2401_s30 + $0x188] sm:$0xff]  ;;  %v2293_v22 = vld [vmem:[%s2401_s30 + $0x190] sm:$0xff] }
  0x13   : > { %v2246_v23 = vld [vmem:[%s2401_s30 + $0x18] sm:$0xff]  ;;  %v2247_v27 = vld [vmem:[%s2401_s30 + $0x20] sm:$0xff]  ;;  %v2248_v31 = vld [vmem:[%s2401_s30 + $0x28] sm:$0xff] }
  0x14   : > { %v2262_v24 = vld [vmem:[%s2401_s30 + $0x98] sm:$0xff]  ;;  %v2263_v28 = vld [vmem:[%s2401_s30 + $0xa0] sm:$0xff]  ;;  %v2264_v32 = vld [vmem:[%s2401_s30 + $0xa8] sm:$0xff] }
  0x15   : > { %870 = vmatpush.bf16.msra.mxu0 %v2310_v7  ;;  %2315 = vmatpush.bf16.msra.mxu1 %v2310_v7  ;;  %v2278_v25 = vld [vmem:[%s2401_s30 + $0x118] sm:$0xff]  ;;  %v2279_v29 = vld [vmem:[%s2401_s30 + $0x120] sm:$0xff]  ;;  %v2280_v33 = vld [vmem:[%s2401_s30 + $0x128] sm:$0xff] }
  0x16   : > { %2316 = vmatpush.bf16.msra.mxu2 %v2310_v7  ;;  %2317 = vmatpush.bf16.msra.mxu3 %v2310_v7  ;;  %v2294_v26 = vld [vmem:[%s2401_s30 + $0x198] sm:$0xff]  ;;  %v2295_v30 = vld [vmem:[%s2401_s30 + $0x1a0] sm:$0xff]  ;;  %v2296_v34 = vld [vmem:[%s2401_s30 + $0x1a8] sm:$0xff] }
  0x17   : > { %v2249_v35 = vld [vmem:[%s2401_s30 + $0x30] sm:$0xff]  ;;  %v2250_v39 = vld [vmem:[%s2401_s30 + $0x38] sm:$0xff]  ;;  %v2251_v44 = vld [vmem:[%s2401_s30 + $0x40] sm:$0xff] }
  0x18   : > { %v2265_v36 = vld [vmem:[%s2401_s30 + $0xb0] sm:$0xff]  ;;  %v2266_v40 = vld [vmem:[%s2401_s30 + $0xb8] sm:$0xff]  ;;  %v2267_v45 = vld [vmem:[%s2401_s30 + $0xc0] sm:$0xff] }
  0x19   : > { %871 = vmatpush.bf16.msra.mxu0 %v2309_v8  ;;  %2318 = vmatpush.bf16.msra.mxu1 %v2309_v8  ;;  %v2281_v37 = vld [vmem:[%s2401_s30 + $0x130] sm:$0xff]  ;;  %v2282_v41 = vld [vmem:[%s2401_s30 + $0x138] sm:$0xff]  ;;  %v2283_v48 = vld [vmem:[%s2401_s30 + $0x140] sm:$0xff] }
  0x1a   : > { %2319 = vmatpush.bf16.msra.mxu2 %v2309_v8  ;;  %2320 = vmatpush.bf16.msra.mxu3 %v2309_v8  ;;  %v2297_v38 = vld [vmem:[%s2401_s30 + $0x1b0] sm:$0xff]  ;;  %v2298_v42 = vld [vmem:[%s2401_s30 + $0x1b8] sm:$0xff]  ;;  %v2299_v49 = vld [vmem:[%s2401_s30 + $0x1c0] sm:$0xff] }
  0x1d   : > { %872 = vmatpush.bf16.msra.mxu0 %v2308_v9  ;;  %2321 = vmatpush.bf16.msra.mxu1 %v2308_v9 }
  0x1e   : > { %2322 = vmatpush.bf16.msra.mxu2 %v2308_v9  ;;  %2323 = vmatpush.bf16.msra.mxu3 %v2308_v9 }
  0x21   : > { %873 = vmatpush.bf16.msra.mxu0 %v2307_v10  ;;  %2324 = vmatpush.bf16.msra.mxu1 %v2307_v10 }
  0x22   : > { %2325 = vmatpush.bf16.msra.mxu2 %v2307_v10  ;;  %2326 = vmatpush.bf16.msra.mxu3 %v2307_v10 }
  0x24   : > { %2177 = vmatmul.msk.bf16.vlgmr.msra.gmra.mxu0 %vm666_vm2, %v2243_v11  ;;  %2193 = vmatmul.msk.bf16.vlgmr.msra.gmra.mxu1 %vm666_vm2, %v2259_v12 }
  0x25   : > { %2209 = vmatmul.msk.bf16.vlgmr.msra.gmra.mxu2 %vm666_vm2, %v2275_v13  ;;  %2225 = vmatmul.msk.bf16.vlgmr.msra.gmra.mxu3 %vm666_vm2, %v2291_v14 }
  0x34   : > { %2178 = vmatmul.msk.bf16.gmra.mxu0 %vm666_vm2, %v2244_v15  ;;  %2194 = vmatmul.msk.bf16.gmra.mxu1 %vm666_vm2, %v2260_v16  ;;  %v2252_v16 = vld [vmem:[%s2401_s30 + $0x48] sm:$0xff] }
  0x35   : > { %2210 = vmatmul.msk.bf16.gmra.mxu2 %vm666_vm2, %v2276_v17  ;;  %2226 = vmatmul.msk.bf16.gmra.mxu3 %vm666_vm2, %v2292_v18  ;;  %v2268_v17 = vld [vmem:[%s2401_s30 + $0xc8] sm:$0xff] }
  0x44   : > { %2179 = vmatmul.msk.bf16.gmra.mxu0 %vm666_vm2, %v2245_v19  ;;  %2195 = vmatmul.msk.bf16.gmra.mxu1 %vm666_vm2, %v2261_v20 }
  0x45   : > { %2211 = vmatmul.msk.bf16.gmra.mxu2 %vm666_vm2, %v2277_v21  ;;  %2227 = vmatmul.msk.bf16.gmra.mxu3 %vm666_vm2, %v2293_v22  ;;  %v2284_v22 = vld [vmem:[%s2401_s30 + $0x148] sm:$0xff] }
  0x54   : > { %2180 = vmatmul.msk.bf16.gmra.mxu0 %vm666_vm2, %v2246_v23  ;;  %2196 = vmatmul.msk.bf16.gmra.mxu1 %vm666_vm2, %v2262_v24  ;;  %v2300_v23 = vld [vmem:[%s2401_s30 + $0x1c8] sm:$0xff] }
  0x55   : > { %2212 = vmatmul.msk.bf16.gmra.mxu2 %vm666_vm2, %v2278_v25  ;;  %2228 = vmatmul.msk.bf16.gmra.mxu3 %vm666_vm2, %v2294_v26 }
  0x64   : > { %2181 = vmatmul.msk.bf16.gmra.mxu0 %vm666_vm2, %v2247_v27  ;;  %2197 = vmatmul.msk.bf16.gmra.mxu1 %vm666_vm2, %v2263_v28 }
  0x65   : > { %2213 = vmatmul.msk.bf16.gmra.mxu2 %vm666_vm2, %v2279_v29  ;;  %2229 = vmatmul.msk.bf16.gmra.mxu3 %vm666_vm2, %v2295_v30 }
  0x74   : > { %2182 = vmatmul.msk.bf16.gmra.mxu0 %vm666_vm2, %v2248_v31  ;;  %2198 = vmatmul.msk.bf16.gmra.mxu1 %vm666_vm2, %v2264_v32 }
  0x75   : > { %2214 = vmatmul.msk.bf16.gmra.mxu2 %vm666_vm2, %v2280_v33  ;;  %2230 = vmatmul.msk.bf16.gmra.mxu3 %vm666_vm2, %v2296_v34 }
  0x84   : > { %2183 = vmatmul.msk.bf16.gmra.mxu0 %vm666_vm2, %v2249_v35  ;;  %2199 = vmatmul.msk.bf16.gmra.mxu1 %vm666_vm2, %v2265_v36 }
  0x85   : > { %2215 = vmatmul.msk.bf16.gmra.mxu2 %vm666_vm2, %v2281_v37  ;;  %2231 = vmatmul.msk.bf16.gmra.mxu3 %vm666_vm2, %v2297_v38 }
  0x94   : > { %2184 = vmatmul.msk.bf16.gmra.mxu0 %vm666_vm2, %v2250_v39  ;;  %2200 = vmatmul.msk.bf16.gmra.mxu1 %vm666_vm2, %v2266_v40 }
  0x95   : > { %2216 = vmatmul.msk.bf16.gmra.mxu2 %vm666_vm2, %v2282_v41  ;;  %2232 = vmatmul.msk.bf16.gmra.mxu3 %vm666_vm2, %v2298_v42 }
  0xa1   : > { %v875_v46 = vpop.f32.mrf.mxu0  ;;  %v955_v47 = vpop.f32.mrf.mxu1 }
  0xa2   : > { %v876_v50 = vadd.f32 %v2470_v43, %v875_v46  ;;  %v956_v51 = vadd.f32 %v2470_v43, %v955_v47 }
  0xa4   : > { %vm1195_vm3 = vcmp.gt.f32.partialorder %v876_v50, 0.0  ;;  %v1323_v52 = vmul.f32 0.2, %v876_v50  ;;  %vm1227_vm4 = vcmp.gt.f32.partialorder %v956_v51, 0.0  ;;  %v1355_v53 = vmul.f32 0.2, %v956_v51  ;;  %2185 = vmatmul.msk.bf16.gmra.mxu0 %vm666_vm2, %v2251_v44  ;;  %2201 = vmatmul.msk.bf16.gmra.mxu1 %vm666_vm2, %v2267_v45 }
  0xa5   : > { %2217 = vmatmul.msk.bf16.gmra.mxu2 %vm666_vm2, %v2283_v48  ;;  %2233 = vmatmul.msk.bf16.gmra.mxu3 %vm666_vm2, %v2299_v49 }
  0xa6   : > { %v1451_v54 = vsel %vm1195_vm3, %v876_v50, %v1323_v52  ;;  %v1483_v55 = vsel %vm1227_vm4, %v956_v51, %v1355_v53 }
  0xa7   : > { %v1579_v56 = vpack.c.bf16 %v1451_v54, %v1451_v54  ;;  %v1611_v57 = vpack.c.bf16 %v1483_v55, %v1483_v55 }
  0xa8   : > { %v1035_v58 = vpop.f32.mrf.mxu2  ;;  %v1115_v59 = vpop.f32.mrf.mxu3 }
  0xa9   : > { %1708 = vst.msk [vmem:[%s2487_s8] sm:$0xf] %vm1707_vm5, %v1579_v56  ;;  %v1036_v60 = vadd.f32 %v2470_v43, %v1035_v58  ;;  %v1116_v61 = vadd.f32 %v2470_v43, %v1115_v59  ;;  %v877_v62 = vpop.f32.mrf.mxu0  ;;  %v957_v63 = vpop.f32.mrf.mxu1 }
  0xaa   : > { %1740 = vst.msk [vmem:[%s2487_s8 + $0x80] sm:$0xf] %vm1707_vm5, %v1611_v57  ;;  %v878_v0 = vadd.f32 %v2470_v43, %v877_v62  ;;  %v958_v1 = vadd.f32 %v2470_v43, %v957_v63  ;;  %v2269_v62 = vld [vmem:[%s2401_s30 + $0xd0] sm:$0xff] }
  0xab   : > { %vm1259_vm6 = vcmp.gt.f32.partialorder %v1036_v60, 0.0  ;;  %v1387_v2 = vmul.f32 0.2, %v1036_v60  ;;  %vm1291_vm7 = vcmp.gt.f32.partialorder %v1116_v61, 0.0  ;;  %v1419_v3 = vmul.f32 0.2, %v1116_v61 }
  0xac   : > { %vm1196_vm8 = vcmp.gt.f32.partialorder %v878_v0, 0.0  ;;  %v1324_v4 = vmul.f32 0.2, %v878_v0  ;;  %vm1228_vm9 = vcmp.gt.f32.partialorder %v958_v1, 0.0  ;;  %v1356_v5 = vmul.f32 0.2, %v958_v1 }
  0xad   : > { %v1515_v6 = vsel %vm1259_vm6, %v1036_v60, %v1387_v2  ;;  %v1547_v7 = vsel %vm1291_vm7, %v1116_v61, %v1419_v3  ;;  %v2253_v61 = vld [vmem:[%s2401_s30 + $0x50] sm:$0xff] }
  0xae   : > { %v1643_v8 = vpack.c.bf16 %v1515_v6, %v1515_v6  ;;  %v1675_v9 = vpack.c.bf16 %v1547_v7, %v1547_v7  ;;  %v1452_v10 = vsel %vm1196_vm8, %v878_v0, %v1324_v4  ;;  %v1484_v11 = vsel %vm1228_vm9, %v958_v1, %v1356_v5  ;;  %v2285_v3 = vld [vmem:[%s2401_s30 + $0x150] sm:$0xff] }
  0xaf   : > { %v1580_v12 = vpack.c.bf16 %v1452_v10, %v1452_v10  ;;  %v1612_v13 = vpack.c.bf16 %v1484_v11, %v1484_v11  ;;  %v2301_v4 = vld [vmem:[%s2401_s30 + $0x1d0] sm:$0xff] }
  0xb0   : > { %1772 = vst.msk [vmem:[%s2487_s8 + $0x100] sm:$0xf] %vm1707_vm5, %v1643_v8  ;;  %v1037_v14 = vpop.f32.mrf.mxu2  ;;  %v1117_v15 = vpop.f32.mrf.mxu3 }
  0xb1   : > { %1804 = vst.msk [vmem:[%s2487_s8 + $0x180] sm:$0xf] %vm1707_vm5, %v1675_v9  ;;  %v1038_v18 = vadd.f32 %v2470_v43, %v1037_v14  ;;  %v1118_v19 = vadd.f32 %v2470_v43, %v1117_v15  ;;  %v880_v20 = vpop.f32.mrf.mxu0  ;;  %v960_v21 = vpop.f32.mrf.mxu1 }
  0xb2   : > { %1709 = vst.msk [vmem:[%s2487_s8 + $0x4] sm:$0xf] %vm1707_vm5, %v1580_v12  ;;  %v881_v24 = vadd.f32 %v2470_v43, %v880_v20  ;;  %v961_v25 = vadd.f32 %v2470_v43, %v960_v21 }
  0xb3   : > { %1741 = vst.msk [vmem:[%s2487_s8 + $0x84] sm:$0xf] %vm1707_vm5, %v1612_v13  ;;  %vm1260_vm10 = vcmp.gt.f32.partialorder %v1038_v18, 0.0  ;;  %v1388_v26 = vmul.f32 0.2, %v1038_v18  ;;  %vm1292_vm11 = vcmp.gt.f32.partialorder %v1118_v19, 0.0 }
  0xb4   : > { %v1420_v27 = vmul.f32 0.2, %v1118_v19  ;;  %vm1197_vm12 = vcmp.gt.f32.partialorder %v881_v24, 0.0  ;;  %v1325_v28 = vmul.f32 0.2, %v881_v24  ;;  %vm1229_vm13 = vcmp.gt.f32.partialorder %v961_v25, 0.0  ;;  %2186 = vmatmul.msk.bf16.gmra.mxu0 %vm666_vm2, %v2252_v16  ;;  %2202 = vmatmul.msk.bf16.gmra.mxu1 %vm666_vm2, %v2268_v17 }
  0xb5   : > { %v1516_v29 = vsel %vm1260_vm10, %v1038_v18, %v1388_v26  ;;  %v1357_v30 = vmul.f32 0.2, %v961_v25  ;;  %2218 = vmatmul.msk.bf16.gmra.mxu2 %vm666_vm2, %v2284_v22  ;;  %2234 = vmatmul.msk.bf16.gmra.mxu3 %vm666_vm2, %v2300_v23 }
  0xb6   : > { %v1644_v31 = vpack.c.bf16 %v1516_v29, %v1516_v29  ;;  %v1548_v32 = vsel %vm1292_vm11, %v1118_v19, %v1420_v27  ;;  %v1453_v33 = vsel %vm1197_vm12, %v881_v24, %v1325_v28 }
  0xb7   : > { %v1676_v34 = vpack.c.bf16 %v1548_v32, %v1548_v32  ;;  %v1581_v35 = vpack.c.bf16 %v1453_v33, %v1453_v33  ;;  %v1485_v36 = vsel %vm1229_vm13, %v961_v25, %v1357_v30 }
  0xb8   : > { %1773 = vst.msk [vmem:[%s2487_s8 + $0x104] sm:$0xf] %vm1707_vm5, %v1644_v31  ;;  %v1613_v37 = vpack.c.bf16 %v1485_v36, %v1485_v36  ;;  %v1040_v38 = vpop.f32.mrf.mxu2  ;;  %v1120_v39 = vpop.f32.mrf.mxu3 }
  0xb9   : > { %1805 = vst.msk [vmem:[%s2487_s8 + $0x184] sm:$0xf] %vm1707_vm5, %v1676_v34  ;;  %v1041_v40 = vadd.f32 %v2470_v43, %v1040_v38  ;;  %v1121_v41 = vadd.f32 %v2470_v43, %v1120_v39  ;;  %v882_v42 = vpop.f32.mrf.mxu0  ;;  %v962_v44 = vpop.f32.mrf.mxu1 }
  0xba   : > { %1710 = vst.msk [vmem:[%s2487_s8 + $0x8] sm:$0xf] %vm1707_vm5, %v1581_v35  ;;  %v883_v45 = vadd.f32 %v2470_v43, %v882_v42  ;;  %v963_v46 = vadd.f32 %v2470_v43, %v962_v44  ;;  %v2270_v42 = vld [vmem:[%s2401_s30 + $0xd8] sm:$0xff] }
  0xbb   : > { %1742 = vst.msk [vmem:[%s2487_s8 + $0x88] sm:$0xf] %vm1707_vm5, %v1613_v37  ;;  %vm1261_vm14 = vcmp.gt.f32.partialorder %v1041_v40, 0.0  ;;  %v1389_v47 = vmul.f32 0.2, %v1041_v40  ;;  %vm1293_vm15 = vcmp.gt.f32.partialorder %v1121_v41, 0.0 }
  0xbc   : > { %v1421_v48 = vmul.f32 0.2, %v1121_v41  ;;  %vm1198_vm0 = vcmp.gt.f32.partialorder %v883_v45, 0.0  ;;  %v1326_v49 = vmul.f32 0.2, %v883_v45  ;;  %vm1230_vm1 = vcmp.gt.f32.partialorder %v963_v46, 0.0 }
  0xbd   : > { %v1517_v50 = vsel %vm1261_vm14, %v1041_v40, %v1389_v47  ;;  %v1358_v51 = vmul.f32 0.2, %v963_v46 }
  0xbe   : > { %v1645_v52 = vpack.c.bf16 %v1517_v50, %v1517_v50  ;;  %v1549_v53 = vsel %vm1293_vm15, %v1121_v41, %v1421_v48  ;;  %v1454_v54 = vsel %vm1198_vm0, %v883_v45, %v1326_v49  ;;  %v2254_v41 = vld [vmem:[%s2401_s30 + $0x58] sm:$0xff] }
  0xbf   : > { %v1677_v55 = vpack.c.bf16 %v1549_v53, %v1549_v53  ;;  %v1582_v56 = vpack.c.bf16 %v1454_v54, %v1454_v54  ;;  %v1486_v57 = vsel %vm1230_vm1, %v963_v46, %v1358_v51  ;;  %v2286_v48 = vld [vmem:[%s2401_s30 + $0x158] sm:$0xff] }
  0xc0   : > { %1774 = vst.msk [vmem:[%s2487_s8 + $0x108] sm:$0xf] %vm1707_vm5, %v1645_v52  ;;  %v1614_v58 = vpack.c.bf16 %v1486_v57, %v1486_v57  ;;  %v1042_v59 = vpop.f32.mrf.mxu2  ;;  %v1122_v60 = vpop.f32.mrf.mxu3  ;;  %v2302_v49 = vld [vmem:[%s2401_s30 + $0x1d8] sm:$0xff] }
  0xc1   : > { %1806 = vst.msk [vmem:[%s2487_s8 + $0x188] sm:$0xf] %vm1707_vm5, %v1677_v55  ;;  %v1043_v63 = vadd.f32 %v2470_v43, %v1042_v59  ;;  %v1123_v0 = vadd.f32 %v2470_v43, %v1122_v60  ;;  %v885_v1 = vpop.f32.mrf.mxu0  ;;  %v965_v2 = vpop.f32.mrf.mxu1 }
  0xc2   : > { %1711 = vst.msk [vmem:[%s2487_s8 + $0xc] sm:$0xf] %vm1707_vm5, %v1582_v56  ;;  %v886_v5 = vadd.f32 %v2470_v43, %v885_v1  ;;  %v966_v6 = vadd.f32 %v2470_v43, %v965_v2 }
  0xc3   : > { %1743 = vst.msk [vmem:[%s2487_s8 + $0x8c] sm:$0xf] %vm1707_vm5, %v1614_v58  ;;  %vm1262_vm3 = vcmp.gt.f32.partialorder %v1043_v63, 0.0  ;;  %v1390_v7 = vmul.f32 0.2, %v1043_v63  ;;  %vm1294_vm4 = vcmp.gt.f32.partialorder %v1123_v0, 0.0 }
  0xc4   : > { %v1422_v8 = vmul.f32 0.2, %v1123_v0  ;;  %vm1199_vm6 = vcmp.gt.f32.partialorder %v886_v5, 0.0  ;;  %v1327_v9 = vmul.f32 0.2, %v886_v5  ;;  %vm1231_vm7 = vcmp.gt.f32.partialorder %v966_v6, 0.0  ;;  %2187 = vmatmul.msk.bf16.gmra.mxu0 %vm666_vm2, %v2253_v61  ;;  %2203 = vmatmul.msk.bf16.gmra.mxu1 %vm666_vm2, %v2269_v62 }
  0xc5   : > { %v1518_v10 = vsel %vm1262_vm3, %v1043_v63, %v1390_v7  ;;  %v1359_v11 = vmul.f32 0.2, %v966_v6  ;;  %2219 = vmatmul.msk.bf16.gmra.mxu2 %vm666_vm2, %v2285_v3  ;;  %2235 = vmatmul.msk.bf16.gmra.mxu3 %vm666_vm2, %v2301_v4 }
  0xc6   : > { %v1646_v12 = vpack.c.bf16 %v1518_v10, %v1518_v10  ;;  %v1550_v13 = vsel %vm1294_vm4, %v1123_v0, %v1422_v8  ;;  %v1455_v14 = vsel %vm1199_vm6, %v886_v5, %v1327_v9 }
  0xc7   : > { %v1678_v15 = vpack.c.bf16 %v1550_v13, %v1550_v13  ;;  %v1583_v16 = vpack.c.bf16 %v1455_v14, %v1455_v14  ;;  %v1487_v17 = vsel %vm1231_vm7, %v966_v6, %v1359_v11 }
  0xc8   : > { %1775 = vst.msk [vmem:[%s2487_s8 + $0x10c] sm:$0xf] %vm1707_vm5, %v1646_v12  ;;  %v1615_v18 = vpack.c.bf16 %v1487_v17, %v1487_v17  ;;  %v1045_v19 = vpop.f32.mrf.mxu2  ;;  %v1125_v20 = vpop.f32.mrf.mxu3 }
  0xc9   : > { %1807 = vst.msk [vmem:[%s2487_s8 + $0x18c] sm:$0xf] %vm1707_vm5, %v1678_v15  ;;  %v1046_v21 = vadd.f32 %v2470_v43, %v1045_v19  ;;  %v1126_v22 = vadd.f32 %v2470_v43, %v1125_v20  ;;  %v887_v23 = vpop.f32.mrf.mxu0  ;;  %v967_v24 = vpop.f32.mrf.mxu1 }
  0xca   : > { %1712 = vst.msk [vmem:[%s2487_s8 + $0x10] sm:$0xf] %vm1707_vm5, %v1583_v16  ;;  %v888_v25 = vadd.f32 %v2470_v43, %v887_v23  ;;  %v968_v26 = vadd.f32 %v2470_v43, %v967_v24  ;;  %v2271_v23 = vld [vmem:[%s2401_s30 + $0xe0] sm:$0xff] }
  0xcb   : > { %1744 = vst.msk [vmem:[%s2487_s8 + $0x90] sm:$0xf] %vm1707_vm5, %v1615_v18  ;;  %vm1263_vm8 = vcmp.gt.f32.partialorder %v1046_v21, 0.0  ;;  %v1391_v27 = vmul.f32 0.2, %v1046_v21  ;;  %vm1295_vm9 = vcmp.gt.f32.partialorder %v1126_v22, 0.0 }
  0xcc   : > { %v1423_v28 = vmul.f32 0.2, %v1126_v22  ;;  %vm1200_vm10 = vcmp.gt.f32.partialorder %v888_v25, 0.0  ;;  %v1328_v29 = vmul.f32 0.2, %v888_v25  ;;  %vm1232_vm11 = vcmp.gt.f32.partialorder %v968_v26, 0.0 }
  0xcd   : > { %v1519_v30 = vsel %vm1263_vm8, %v1046_v21, %v1391_v27  ;;  %v1360_v31 = vmul.f32 0.2, %v968_v26 }
  0xce   : > { %v1647_v32 = vpack.c.bf16 %v1519_v30, %v1519_v30  ;;  %v1551_v33 = vsel %vm1295_vm9, %v1126_v22, %v1423_v28  ;;  %v1456_v34 = vsel %vm1200_vm10, %v888_v25, %v1328_v29  ;;  %v2255_v22 = vld [vmem:[%s2401_s30 + $0x60] sm:$0xff] }
  0xcf   : > { %v1679_v35 = vpack.c.bf16 %v1551_v33, %v1551_v33  ;;  %v1584_v36 = vpack.c.bf16 %v1456_v34, %v1456_v34  ;;  %v1488_v37 = vsel %vm1232_vm11, %v968_v26, %v1360_v31  ;;  %v2287_v28 = vld [vmem:[%s2401_s30 + $0x160] sm:$0xff] }
  0xd0   : > { %1776 = vst.msk [vmem:[%s2487_s8 + $0x110] sm:$0xf] %vm1707_vm5, %v1647_v32  ;;  %v1616_v38 = vpack.c.bf16 %v1488_v37, %v1488_v37  ;;  %v1047_v39 = vpop.f32.mrf.mxu2  ;;  %v1127_v40 = vpop.f32.mrf.mxu3  ;;  %v2303_v29 = vld [vmem:[%s2401_s30 + $0x1e0] sm:$0xff] }
  0xd1   : > { %1808 = vst.msk [vmem:[%s2487_s8 + $0x190] sm:$0xf] %vm1707_vm5, %v1679_v35  ;;  %v1048_v44 = vadd.f32 %v2470_v43, %v1047_v39  ;;  %v1128_v45 = vadd.f32 %v2470_v43, %v1127_v40  ;;  %v890_v46 = vpop.f32.mrf.mxu0  ;;  %v970_v47 = vpop.f32.mrf.mxu1 }
  0xd2   : > { %1713 = vst.msk [vmem:[%s2487_s8 + $0x14] sm:$0xf] %vm1707_vm5, %v1584_v36  ;;  %v891_v50 = vadd.f32 %v2470_v43, %v890_v46  ;;  %v971_v51 = vadd.f32 %v2470_v43, %v970_v47 }
  0xd3   : > { %1745 = vst.msk [vmem:[%s2487_s8 + $0x94] sm:$0xf] %vm1707_vm5, %v1616_v38  ;;  %vm1264_vm12 = vcmp.gt.f32.partialorder %v1048_v44, 0.0  ;;  %v1392_v52 = vmul.f32 0.2, %v1048_v44  ;;  %vm1296_vm13 = vcmp.gt.f32.partialorder %v1128_v45, 0.0 }
  0xd4   : > { %v1424_v53 = vmul.f32 0.2, %v1128_v45  ;;  %vm1201_vm14 = vcmp.gt.f32.partialorder %v891_v50, 0.0  ;;  %v1329_v54 = vmul.f32 0.2, %v891_v50  ;;  %vm1233_vm15 = vcmp.gt.f32.partialorder %v971_v51, 0.0  ;;  %2188 = vmatmul.msk.bf16.gmra.mxu0 %vm666_vm2, %v2254_v41  ;;  %2204 = vmatmul.msk.bf16.gmra.mxu1 %vm666_vm2, %v2270_v42 }
  0xd5   : > { %v1520_v55 = vsel %vm1264_vm12, %v1048_v44, %v1392_v52  ;;  %v1361_v56 = vmul.f32 0.2, %v971_v51  ;;  %2220 = vmatmul.msk.bf16.gmra.mxu2 %vm666_vm2, %v2286_v48  ;;  %2236 = vmatmul.msk.bf16.gmra.mxu3 %vm666_vm2, %v2302_v49 }
  0xd6   : > { %v1648_v57 = vpack.c.bf16 %v1520_v55, %v1520_v55  ;;  %v1552_v58 = vsel %vm1296_vm13, %v1128_v45, %v1424_v53  ;;  %v1457_v59 = vsel %vm1201_vm14, %v891_v50, %v1329_v54 }
  0xd7   : > { %v1680_v60 = vpack.c.bf16 %v1552_v58, %v1552_v58  ;;  %v1585_v61 = vpack.c.bf16 %v1457_v59, %v1457_v59  ;;  %v1489_v62 = vsel %vm1233_vm15, %v971_v51, %v1361_v56 }
  0xd8   : > { %1777 = vst.msk [vmem:[%s2487_s8 + $0x114] sm:$0xf] %vm1707_vm5, %v1648_v57  ;;  %v1617_v63 = vpack.c.bf16 %v1489_v62, %v1489_v62  ;;  %v1050_v0 = vpop.f32.mrf.mxu2  ;;  %v1130_v1 = vpop.f32.mrf.mxu3 }
  0xd9   : > { %1809 = vst.msk [vmem:[%s2487_s8 + $0x194] sm:$0xf] %vm1707_vm5, %v1680_v60  ;;  %v1051_v2 = vadd.f32 %v2470_v43, %v1050_v0  ;;  %v1131_v3 = vadd.f32 %v2470_v43, %v1130_v1  ;;  %v892_v4 = vpop.f32.mrf.mxu0  ;;  %v972_v5 = vpop.f32.mrf.mxu1 }
  0xda   : > { %1714 = vst.msk [vmem:[%s2487_s8 + $0x18] sm:$0xf] %vm1707_vm5, %v1585_v61  ;;  %v893_v6 = vadd.f32 %v2470_v43, %v892_v4  ;;  %v973_v7 = vadd.f32 %v2470_v43, %v972_v5  ;;  %v2272_v4 = vld [vmem:[%s2401_s30 + $0xe8] sm:$0xff] }
  0xdb   : > { %1746 = vst.msk [vmem:[%s2487_s8 + $0x98] sm:$0xf] %vm1707_vm5, %v1617_v63  ;;  %vm1265_vm0 = vcmp.gt.f32.partialorder %v1051_v2, 0.0  ;;  %v1393_v8 = vmul.f32 0.2, %v1051_v2  ;;  %vm1297_vm1 = vcmp.gt.f32.partialorder %v1131_v3, 0.0 }
  0xdc   : > { %v1425_v9 = vmul.f32 0.2, %v1131_v3  ;;  %vm1202_vm3 = vcmp.gt.f32.partialorder %v893_v6, 0.0  ;;  %v1330_v10 = vmul.f32 0.2, %v893_v6  ;;  %vm1234_vm4 = vcmp.gt.f32.partialorder %v973_v7, 0.0 }
  0xdd   : > { %v1521_v11 = vsel %vm1265_vm0, %v1051_v2, %v1393_v8  ;;  %v1362_v12 = vmul.f32 0.2, %v973_v7 }
  0xde   : > { %v1649_v13 = vpack.c.bf16 %v1521_v11, %v1521_v11  ;;  %v1553_v14 = vsel %vm1297_vm1, %v1131_v3, %v1425_v9  ;;  %v1458_v15 = vsel %vm1202_vm3, %v893_v6, %v1330_v10  ;;  %v2256_v3 = vld [vmem:[%s2401_s30 + $0x68] sm:$0xff] }
  0xdf   : > { %v1681_v16 = vpack.c.bf16 %v1553_v14, %v1553_v14  ;;  %v1586_v17 = vpack.c.bf16 %v1458_v15, %v1458_v15  ;;  %v1490_v18 = vsel %vm1234_vm4, %v973_v7, %v1362_v12  ;;  %v2288_v9 = vld [vmem:[%s2401_s30 + $0x168] sm:$0xff] }
  0xe0   : > { %1778 = vst.msk [vmem:[%s2487_s8 + $0x118] sm:$0xf] %vm1707_vm5, %v1649_v13  ;;  %v1618_v19 = vpack.c.bf16 %v1490_v18, %v1490_v18  ;;  %v1052_v20 = vpop.f32.mrf.mxu2  ;;  %v1132_v21 = vpop.f32.mrf.mxu3  ;;  %v2304_v10 = vld [vmem:[%s2401_s30 + $0x1e8] sm:$0xff] }
  0xe1   : > { %1810 = vst.msk [vmem:[%s2487_s8 + $0x198] sm:$0xf] %vm1707_vm5, %v1681_v16  ;;  %v1053_v24 = vadd.f32 %v2470_v43, %v1052_v20  ;;  %v1133_v25 = vadd.f32 %v2470_v43, %v1132_v21  ;;  %v895_v26 = vpop.f32.mrf.mxu0  ;;  %v975_v27 = vpop.f32.mrf.mxu1 }
  0xe2   : > { %1715 = vst.msk [vmem:[%s2487_s8 + $0x1c] sm:$0xf] %vm1707_vm5, %v1586_v17  ;;  %v896_v30 = vadd.f32 %v2470_v43, %v895_v26  ;;  %v976_v31 = vadd.f32 %v2470_v43, %v975_v27 }
  0xe3   : > { %1747 = vst.msk [vmem:[%s2487_s8 + $0x9c] sm:$0xf] %vm1707_vm5, %v1618_v19  ;;  %vm1266_vm6 = vcmp.gt.f32.partialorder %v1053_v24, 0.0  ;;  %v1394_v32 = vmul.f32 0.2, %v1053_v24  ;;  %vm1298_vm7 = vcmp.gt.f32.partialorder %v1133_v25, 0.0 }
  0xe4   : > { %v1426_v33 = vmul.f32 0.2, %v1133_v25  ;;  %vm1203_vm8 = vcmp.gt.f32.partialorder %v896_v30, 0.0  ;;  %v1331_v34 = vmul.f32 0.2, %v896_v30  ;;  %vm1235_vm9 = vcmp.gt.f32.partialorder %v976_v31, 0.0  ;;  %2189 = vmatmul.msk.bf16.gmra.mxu0 %vm666_vm2, %v2255_v22  ;;  %2205 = vmatmul.msk.bf16.gmra.mxu1 %vm666_vm2, %v2271_v23 }
  0xe5   : > { %v1522_v35 = vsel %vm1266_vm6, %v1053_v24, %v1394_v32  ;;  %v1363_v36 = vmul.f32 0.2, %v976_v31  ;;  %2221 = vmatmul.msk.bf16.gmra.mxu2 %vm666_vm2, %v2287_v28  ;;  %2237 = vmatmul.msk.bf16.gmra.mxu3 %vm666_vm2, %v2303_v29 }
  0xe6   : > { %v1650_v37 = vpack.c.bf16 %v1522_v35, %v1522_v35  ;;  %v1554_v38 = vsel %vm1298_vm7, %v1133_v25, %v1426_v33  ;;  %v1459_v39 = vsel %vm1203_vm8, %v896_v30, %v1331_v34 }
  0xe7   : > { %v1682_v40 = vpack.c.bf16 %v1554_v38, %v1554_v38  ;;  %v1587_v41 = vpack.c.bf16 %v1459_v39, %v1459_v39  ;;  %v1491_v42 = vsel %vm1235_vm9, %v976_v31, %v1363_v36 }
  0xe8   : > { %1779 = vst.msk [vmem:[%s2487_s8 + $0x11c] sm:$0xf] %vm1707_vm5, %v1650_v37  ;;  %v1619_v44 = vpack.c.bf16 %v1491_v42, %v1491_v42  ;;  %v1055_v45 = vpop.f32.mrf.mxu2  ;;  %v1135_v46 = vpop.f32.mrf.mxu3 }
  0xe9   : > { %1811 = vst.msk [vmem:[%s2487_s8 + $0x19c] sm:$0xf] %vm1707_vm5, %v1682_v40  ;;  %v1056_v47 = vadd.f32 %v2470_v43, %v1055_v45  ;;  %v1136_v48 = vadd.f32 %v2470_v43, %v1135_v46  ;;  %v897_v49 = vpop.f32.mrf.mxu0  ;;  %v977_v50 = vpop.f32.mrf.mxu1 }
  0xea   : > { %1716 = vst.msk [vmem:[%s2487_s8 + $0x20] sm:$0xf] %vm1707_vm5, %v1587_v41  ;;  %v898_v51 = vadd.f32 %v2470_v43, %v897_v49  ;;  %v978_v52 = vadd.f32 %v2470_v43, %v977_v50  ;;  %v2273_v49 = vld [vmem:[%s2401_s30 + $0xf0] sm:$0xff] }
  0xeb   : > { %1748 = vst.msk [vmem:[%s2487_s8 + $0xa0] sm:$0xf] %vm1707_vm5, %v1619_v44  ;;  %vm1267_vm10 = vcmp.gt.f32.partialorder %v1056_v47, 0.0  ;;  %v1395_v53 = vmul.f32 0.2, %v1056_v47  ;;  %vm1299_vm11 = vcmp.gt.f32.partialorder %v1136_v48, 0.0 }
  0xec   : > { %v1427_v54 = vmul.f32 0.2, %v1136_v48  ;;  %vm1204_vm12 = vcmp.gt.f32.partialorder %v898_v51, 0.0  ;;  %v1332_v55 = vmul.f32 0.2, %v898_v51  ;;  %vm1236_vm13 = vcmp.gt.f32.partialorder %v978_v52, 0.0 }
  0xed   : > { %v1523_v56 = vsel %vm1267_vm10, %v1056_v47, %v1395_v53  ;;  %v1364_v57 = vmul.f32 0.2, %v978_v52 }
  0xee   : > { %v1651_v58 = vpack.c.bf16 %v1523_v56, %v1523_v56  ;;  %v1555_v59 = vsel %vm1299_vm11, %v1136_v48, %v1427_v54  ;;  %v1460_v60 = vsel %vm1204_vm12, %v898_v51, %v1332_v55  ;;  %v2257_v48 = vld [vmem:[%s2401_s30 + $0x70] sm:$0xff] }
  0xef   : > { %v1683_v61 = vpack.c.bf16 %v1555_v59, %v1555_v59  ;;  %v1588_v62 = vpack.c.bf16 %v1460_v60, %v1460_v60  ;;  %v1492_v63 = vsel %vm1236_vm13, %v978_v52, %v1364_v57  ;;  %v2289_v54 = vld [vmem:[%s2401_s30 + $0x170] sm:$0xff] }
  0xf0   : > { %1780 = vst.msk [vmem:[%s2487_s8 + $0x120] sm:$0xf] %vm1707_vm5, %v1651_v58  ;;  %v1620_v0 = vpack.c.bf16 %v1492_v63, %v1492_v63  ;;  %v1057_v1 = vpop.f32.mrf.mxu2  ;;  %v1137_v2 = vpop.f32.mrf.mxu3  ;;  %v2305_v55 = vld [vmem:[%s2401_s30 + $0x1f0] sm:$0xff] }
  0xf1   : > { %1812 = vst.msk [vmem:[%s2487_s8 + $0x1a0] sm:$0xf] %vm1707_vm5, %v1683_v61  ;;  %v1058_v5 = vadd.f32 %v2470_v43, %v1057_v1  ;;  %v1138_v6 = vadd.f32 %v2470_v43, %v1137_v2  ;;  %v900_v7 = vpop.f32.mrf.mxu0  ;;  %v980_v8 = vpop.f32.mrf.mxu1 }
  0xf2   : > { %1717 = vst.msk [vmem:[%s2487_s8 + $0x24] sm:$0xf] %vm1707_vm5, %v1588_v62  ;;  %v901_v11 = vadd.f32 %v2470_v43, %v900_v7  ;;  %v981_v12 = vadd.f32 %v2470_v43, %v980_v8 }
  0xf3   : > { %1749 = vst.msk [vmem:[%s2487_s8 + $0xa4] sm:$0xf] %vm1707_vm5, %v1620_v0  ;;  %vm1268_vm14 = vcmp.gt.f32.partialorder %v1058_v5, 0.0  ;;  %v1396_v13 = vmul.f32 0.2, %v1058_v5  ;;  %vm1300_vm15 = vcmp.gt.f32.partialorder %v1138_v6, 0.0 }
  0xf4   : > { %v1428_v14 = vmul.f32 0.2, %v1138_v6  ;;  %vm1205_vm0 = vcmp.gt.f32.partialorder %v901_v11, 0.0  ;;  %v1333_v15 = vmul.f32 0.2, %v901_v11  ;;  %vm1237_vm1 = vcmp.gt.f32.partialorder %v981_v12, 0.0  ;;  %2190 = vmatmul.msk.bf16.gmra.mxu0 %vm666_vm2, %v2256_v3  ;;  %2206 = vmatmul.msk.bf16.gmra.mxu1 %vm666_vm2, %v2272_v4 }
  0xf5   : > { %v1524_v16 = vsel %vm1268_vm14, %v1058_v5, %v1396_v13  ;;  %v1365_v17 = vmul.f32 0.2, %v981_v12  ;;  %2222 = vmatmul.msk.bf16.gmra.mxu2 %vm666_vm2, %v2288_v9  ;;  %2238 = vmatmul.msk.bf16.gmra.mxu3 %vm666_vm2, %v2304_v10 }
  0xf6   : > { %v1652_v18 = vpack.c.bf16 %v1524_v16, %v1524_v16  ;;  %v1556_v19 = vsel %vm1300_vm15, %v1138_v6, %v1428_v14  ;;  %v1461_v20 = vsel %vm1205_vm0, %v901_v11, %v1333_v15 }
  0xf7   : > { %v1684_v21 = vpack.c.bf16 %v1556_v19, %v1556_v19  ;;  %v1589_v22 = vpack.c.bf16 %v1461_v20, %v1461_v20  ;;  %v1493_v23 = vsel %vm1237_vm1, %v981_v12, %v1365_v17 }
  0xf8   : > { %1781 = vst.msk [vmem:[%s2487_s8 + $0x124] sm:$0xf] %vm1707_vm5, %v1652_v18  ;;  %v1621_v24 = vpack.c.bf16 %v1493_v23, %v1493_v23  ;;  %v1060_v25 = vpop.f32.mrf.mxu2  ;;  %v1140_v26 = vpop.f32.mrf.mxu3 }
  0xf9   : > { %1813 = vst.msk [vmem:[%s2487_s8 + $0x1a4] sm:$0xf] %vm1707_vm5, %v1684_v21  ;;  %v1061_v27 = vadd.f32 %v2470_v43, %v1060_v25  ;;  %v1141_v28 = vadd.f32 %v2470_v43, %v1140_v26  ;;  %v902_v29 = vpop.f32.mrf.mxu0  ;;  %v982_v30 = vpop.f32.mrf.mxu1 }
  0xfa   : > { %1718 = vst.msk [vmem:[%s2487_s8 + $0x28] sm:$0xf] %vm1707_vm5, %v1589_v22  ;;  %v903_v31 = vadd.f32 %v2470_v43, %v902_v29  ;;  %v983_v32 = vadd.f32 %v2470_v43, %v982_v30  ;;  %v2274_v29 = vld [vmem:[%s2401_s30 + $0xf8] sm:$0xff] }
  0xfb   : > { %1750 = vst.msk [vmem:[%s2487_s8 + $0xa8] sm:$0xf] %vm1707_vm5, %v1621_v24  ;;  %vm1269_vm3 = vcmp.gt.f32.partialorder %v1061_v27, 0.0  ;;  %v1397_v33 = vmul.f32 0.2, %v1061_v27  ;;  %vm1301_vm4 = vcmp.gt.f32.partialorder %v1141_v28, 0.0 }
  0xfc   : > { %v1429_v34 = vmul.f32 0.2, %v1141_v28  ;;  %vm1206_vm6 = vcmp.gt.f32.partialorder %v903_v31, 0.0  ;;  %v1334_v35 = vmul.f32 0.2, %v903_v31  ;;  %vm1238_vm7 = vcmp.gt.f32.partialorder %v983_v32, 0.0 }
  0xfd   : > { %v1525_v36 = vsel %vm1269_vm3, %v1061_v27, %v1397_v33  ;;  %v1366_v37 = vmul.f32 0.2, %v983_v32 }
  0xfe   : > { %v1653_v38 = vpack.c.bf16 %v1525_v36, %v1525_v36  ;;  %v1557_v39 = vsel %vm1301_vm4, %v1141_v28, %v1429_v34  ;;  %v1462_v40 = vsel %vm1206_vm6, %v903_v31, %v1334_v35  ;;  %v2258_v28 = vld [vmem:[%s2401_s30 + $0x78] sm:$0xff] }
  0xff   : > { %v1685_v41 = vpack.c.bf16 %v1557_v39, %v1557_v39  ;;  %v1590_v42 = vpack.c.bf16 %v1462_v40, %v1462_v40  ;;  %v1494_v44 = vsel %vm1238_vm7, %v983_v32, %v1366_v37  ;;  %v2290_v34 = vld [vmem:[%s2401_s30 + $0x178] sm:$0xff] }
 0x100   : > { %1782 = vst.msk [vmem:[%s2487_s8 + $0x128] sm:$0xf] %vm1707_vm5, %v1653_v38  ;;  %v1622_v45 = vpack.c.bf16 %v1494_v44, %v1494_v44  ;;  %v1062_v46 = vpop.f32.mrf.mxu2  ;;  %v1142_v47 = vpop.f32.mrf.mxu3  ;;  %v2306_v35 = vld [vmem:[%s2401_s30 + $0x1f8] sm:$0xff] }
 0x101   : > { %1814 = vst.msk [vmem:[%s2487_s8 + $0x1a8] sm:$0xf] %vm1707_vm5, %v1685_v41  ;;  %v1063_v50 = vadd.f32 %v2470_v43, %v1062_v46  ;;  %v1143_v51 = vadd.f32 %v2470_v43, %v1142_v47  ;;  %v905_v52 = vpop.f32.mrf.mxu0  ;;  %v985_v53 = vpop.f32.mrf.mxu1 }
 0x102   : > { %1719 = vst.msk [vmem:[%s2487_s8 + $0x2c] sm:$0xf] %vm1707_vm5, %v1590_v42  ;;  %v906_v56 = vadd.f32 %v2470_v43, %v905_v52  ;;  %v986_v57 = vadd.f32 %v2470_v43, %v985_v53 }
 0x103   : > { %1751 = vst.msk [vmem:[%s2487_s8 + $0xac] sm:$0xf] %vm1707_vm5, %v1622_v45  ;;  %vm1270_vm8 = vcmp.gt.f32.partialorder %v1063_v50, 0.0  ;;  %v1398_v58 = vmul.f32 0.2, %v1063_v50  ;;  %vm1302_vm9 = vcmp.gt.f32.partialorder %v1143_v51, 0.0 }
 0x104   : > { %v1430_v59 = vmul.f32 0.2, %v1143_v51  ;;  %vm1207_vm10 = vcmp.gt.f32.partialorder %v906_v56, 0.0  ;;  %v1335_v60 = vmul.f32 0.2, %v906_v56  ;;  %vm1239_vm11 = vcmp.gt.f32.partialorder %v986_v57, 0.0  ;;  %2191 = vmatmul.msk.bf16.gmra.mxu0 %vm666_vm2, %v2257_v48  ;;  %2207 = vmatmul.msk.bf16.gmra.mxu1 %vm666_vm2, %v2273_v49 }
 0x105   : > { %v1526_v61 = vsel %vm1270_vm8, %v1063_v50, %v1398_v58  ;;  %v1367_v62 = vmul.f32 0.2, %v986_v57  ;;  %2223 = vmatmul.msk.bf16.gmra.mxu2 %vm666_vm2, %v2289_v54  ;;  %2239 = vmatmul.msk.bf16.gmra.mxu3 %vm666_vm2, %v2305_v55 }
 0x106   : > { %v1654_v63 = vpack.c.bf16 %v1526_v61, %v1526_v61  ;;  %v1558_v0 = vsel %vm1302_vm9, %v1143_v51, %v1430_v59  ;;  %v1463_v1 = vsel %vm1207_vm10, %v906_v56, %v1335_v60 }
 0x107   : > { %v1686_v2 = vpack.c.bf16 %v1558_v0, %v1558_v0  ;;  %v1591_v3 = vpack.c.bf16 %v1463_v1, %v1463_v1  ;;  %v1495_v4 = vsel %vm1239_vm11, %v986_v57, %v1367_v62 }
 0x108   : > { %1783 = vst.msk [vmem:[%s2487_s8 + $0x12c] sm:$0xf] %vm1707_vm5, %v1654_v63  ;;  %v1623_v5 = vpack.c.bf16 %v1495_v4, %v1495_v4  ;;  %v1065_v6 = vpop.f32.mrf.mxu2  ;;  %v1145_v7 = vpop.f32.mrf.mxu3 }
 0x109   : > { %1815 = vst.msk [vmem:[%s2487_s8 + $0x1ac] sm:$0xf] %vm1707_vm5, %v1686_v2  ;;  %v1066_v8 = vadd.f32 %v2470_v43, %v1065_v6  ;;  %v1146_v9 = vadd.f32 %v2470_v43, %v1145_v7  ;;  %v907_v10 = vpop.f32.mrf.mxu0  ;;  %v987_v11 = vpop.f32.mrf.mxu1 }
 0x10a   : > { %1720 = vst.msk [vmem:[%s2487_s8 + $0x30] sm:$0xf] %vm1707_vm5, %v1591_v3  ;;  %v908_v12 = vadd.f32 %v2470_v43, %v907_v10  ;;  %v988_v13 = vadd.f32 %v2470_v43, %v987_v11 }
 0x10b   : > { %1752 = vst.msk [vmem:[%s2487_s8 + $0xb0] sm:$0xf] %vm1707_vm5, %v1623_v5  ;;  %vm1271_vm12 = vcmp.gt.f32.partialorder %v1066_v8, 0.0  ;;  %v1399_v14 = vmul.f32 0.2, %v1066_v8  ;;  %vm1303_vm13 = vcmp.gt.f32.partialorder %v1146_v9, 0.0 }
 0x10c   : > { %v1431_v15 = vmul.f32 0.2, %v1146_v9  ;;  %vm1208_vm14 = vcmp.gt.f32.partialorder %v908_v12, 0.0  ;;  %v1336_v16 = vmul.f32 0.2, %v908_v12  ;;  %vm1240_vm15 = vcmp.gt.f32.partialorder %v988_v13, 0.0 }
 0x10d   : > { %v1527_v17 = vsel %vm1271_vm12, %v1066_v8, %v1399_v14  ;;  %v1368_v18 = vmul.f32 0.2, %v988_v13 }
 0x10e   : > { %v1655_v19 = vpack.c.bf16 %v1527_v17, %v1527_v17  ;;  %v1559_v20 = vsel %vm1303_vm13, %v1146_v9, %v1431_v15  ;;  %v1464_v21 = vsel %vm1208_vm14, %v908_v12, %v1336_v16 }
 0x10f   : > { %v1687_v22 = vpack.c.bf16 %v1559_v20, %v1559_v20  ;;  %v1592_v23 = vpack.c.bf16 %v1464_v21, %v1464_v21  ;;  %v1496_v24 = vsel %vm1240_vm15, %v988_v13, %v1368_v18 }
 0x110   : > { %1784 = vst.msk [vmem:[%s2487_s8 + $0x130] sm:$0xf] %vm1707_vm5, %v1655_v19  ;;  %v1624_v25 = vpack.c.bf16 %v1496_v24, %v1496_v24  ;;  %v1067_v26 = vpop.f32.mrf.mxu2  ;;  %v1147_v27 = vpop.f32.mrf.mxu3 }
 0x111   : > { %1816 = vst.msk [vmem:[%s2487_s8 + $0x1b0] sm:$0xf] %vm1707_vm5, %v1687_v22  ;;  %v1068_v30 = vadd.f32 %v2470_v43, %v1067_v26  ;;  %v1148_v31 = vadd.f32 %v2470_v43, %v1147_v27  ;;  %v910_v32 = vpop.f32.mrf.mxu0  ;;  %v990_v33 = vpop.f32.mrf.mxu1 }
 0x112   : > { %1721 = vst.msk [vmem:[%s2487_s8 + $0x34] sm:$0xf] %vm1707_vm5, %v1592_v23  ;;  %v911_v36 = vadd.f32 %v2470_v43, %v910_v32  ;;  %v991_v37 = vadd.f32 %v2470_v43, %v990_v33 }
 0x113   : > { %1753 = vst.msk [vmem:[%s2487_s8 + $0xb4] sm:$0xf] %vm1707_vm5, %v1624_v25  ;;  %vm1272_vm0 = vcmp.gt.f32.partialorder %v1068_v30, 0.0  ;;  %v1400_v38 = vmul.f32 0.2, %v1068_v30  ;;  %vm1304_vm1 = vcmp.gt.f32.partialorder %v1148_v31, 0.0 }
 0x114   : > { %v1432_v39 = vmul.f32 0.2, %v1148_v31  ;;  %vm1209_vm3 = vcmp.gt.f32.partialorder %v911_v36, 0.0  ;;  %v1337_v40 = vmul.f32 0.2, %v911_v36  ;;  %vm1241_vm4 = vcmp.gt.f32.partialorder %v991_v37, 0.0  ;;  %2192 = vmatmul.msk.bf16.gmra.mxu0 %vm666_vm2, %v2258_v28  ;;  %2208 = vmatmul.msk.bf16.gmra.mxu1 %vm666_vm2, %v2274_v29 }
 0x115   : > { %v1528_v41 = vsel %vm1272_vm0, %v1068_v30, %v1400_v38  ;;  %v1369_v42 = vmul.f32 0.2, %v991_v37  ;;  %2224 = vmatmul.msk.bf16.gmra.mxu2 %vm666_vm2, %v2290_v34  ;;  %2240 = vmatmul.msk.bf16.gmra.mxu3 %vm666_vm2, %v2306_v35  ;;  %v2740_v28 = vld [vmem:[%s2937_s2] ss:$0 sm:$0xff] }
 0x116   : > { %v1656_v44 = vpack.c.bf16 %v1528_v41, %v1528_v41  ;;  %v1560_v45 = vsel %vm1304_vm1, %v1148_v31, %v1432_v39  ;;  %v1465_v46 = vsel %vm1209_vm3, %v911_v36, %v1337_v40 }
 0x117   : > { %v1688_v47 = vpack.c.bf16 %v1560_v45, %v1560_v45  ;;  %v1593_v48 = vpack.c.bf16 %v1465_v46, %v1465_v46  ;;  %v1497_v49 = vsel %vm1241_vm4, %v991_v37, %v1369_v42 }
 0x118   : > { %1785 = vst.msk [vmem:[%s2487_s8 + $0x134] sm:$0xf] %vm1707_vm5, %v1656_v44  ;;  %v1625_v50 = vpack.c.bf16 %v1497_v49, %v1497_v49  ;;  %v1070_v51 = vpop.f32.mrf.mxu2  ;;  %v1150_v52 = vpop.f32.mrf.mxu3 }
 0x119   : > { %1817 = vst.msk [vmem:[%s2487_s8 + $0x1b4] sm:$0xf] %vm1707_vm5, %v1688_v47  ;;  %v1071_v53 = vadd.f32 %v2470_v43, %v1070_v51  ;;  %v1151_v54 = vadd.f32 %v2470_v43, %v1150_v52  ;;  %v912_v55 = vpop.f32.mrf.mxu0  ;;  %v992_v56 = vpop.f32.mrf.mxu1 }
 0x11a   : > { %1722 = vst.msk [vmem:[%s2487_s8 + $0x38] sm:$0xf] %vm1707_vm5, %v1593_v48  ;;  %v913_v57 = vadd.f32 %v2470_v43, %v912_v55  ;;  %v993_v58 = vadd.f32 %v2470_v43, %v992_v56 }
 0x11b   : > { %1754 = vst.msk [vmem:[%s2487_s8 + $0xb8] sm:$0xf] %vm1707_vm5, %v1625_v50  ;;  %vm1273_vm2 = vcmp.gt.f32.partialorder %v1071_v53, 0.0  ;;  %v1401_v59 = vmul.f32 0.2, %v1071_v53  ;;  %vm1305_vm6 = vcmp.gt.f32.partialorder %v1151_v54, 0.0 }
 0x11c   : > { %v1433_v60 = vmul.f32 0.2, %v1151_v54  ;;  %vm1210_vm7 = vcmp.gt.f32.partialorder %v913_v57, 0.0  ;;  %v1338_v61 = vmul.f32 0.2, %v913_v57  ;;  %vm1242_vm8 = vcmp.gt.f32.partialorder %v993_v58, 0.0 }
 0x11d   : > { %v1529_v62 = vsel %vm1273_vm2, %v1071_v53, %v1401_v59  ;;  %v1370_v63 = vmul.f32 0.2, %v993_v58 }
 0x11e   : > { %v1657_v0 = vpack.c.bf16 %v1529_v62, %v1529_v62  ;;  %v1561_v1 = vsel %vm1305_vm6, %v1151_v54, %v1433_v60  ;;  %v1466_v2 = vsel %vm1210_vm7, %v913_v57, %v1338_v61 }
 0x11f   : > { %v1689_v3 = vpack.c.bf16 %v1561_v1, %v1561_v1  ;;  %v1594_v4 = vpack.c.bf16 %v1466_v2, %v1466_v2  ;;  %v1498_v5 = vsel %vm1242_vm8, %v993_v58, %v1370_v63 }
 0x120   : > { %1786 = vst.msk [vmem:[%s2487_s8 + $0x138] sm:$0xf] %vm1707_vm5, %v1657_v0  ;;  %v1626_v6 = vpack.c.bf16 %v1498_v5, %v1498_v5  ;;  %v1072_v7 = vpop.f32.mrf.mxu2  ;;  %v1152_v8 = vpop.f32.mrf.mxu3 }
 0x121   : > { %1818 = vst.msk [vmem:[%s2487_s8 + $0x1b8] sm:$0xf] %vm1707_vm5, %v1689_v3  ;;  %v1073_v9 = vadd.f32 %v2470_v43, %v1072_v7  ;;  %v1153_v10 = vadd.f32 %v2470_v43, %v1152_v8  ;;  %v915_v11 = vpop.f32.mrf.mxu0  ;;  %v995_v12 = vpop.f32.mrf.mxu1 }
 0x122   : > { %1723 = vst.msk [vmem:[%s2487_s8 + $0x3c] sm:$0xf] %vm1707_vm5, %v1594_v4  ;;  %v916_v13 = vadd.f32 %v2470_v43, %v915_v11  ;;  %v996_v14 = vadd.f32 %v2470_v43, %v995_v12 }
 0x123   : > { %1755 = vst.msk [vmem:[%s2487_s8 + $0xbc] sm:$0xf] %vm1707_vm5, %v1626_v6  ;;  %vm1274_vm9 = vcmp.gt.f32.partialorder %v1073_v9, 0.0  ;;  %v1402_v15 = vmul.f32 0.2, %v1073_v9  ;;  %vm1306_vm10 = vcmp.gt.f32.partialorder %v1153_v10, 0.0 }
 0x124   : > { %v1434_v16 = vmul.f32 0.2, %v1153_v10  ;;  %vm1211_vm11 = vcmp.gt.f32.partialorder %v916_v13, 0.0  ;;  %v1339_v17 = vmul.f32 0.2, %v916_v13  ;;  %vm1243_vm12 = vcmp.gt.f32.partialorder %v996_v14, 0.0 }
 0x125   : > { %v1530_v18 = vsel %vm1274_vm9, %v1073_v9, %v1402_v15  ;;  %v1371_v19 = vmul.f32 0.2, %v996_v14 }
 0x126   : > { %v1658_v20 = vpack.c.bf16 %v1530_v18, %v1530_v18  ;;  %v1562_v21 = vsel %vm1306_vm10, %v1153_v10, %v1434_v16  ;;  %v1467_v22 = vsel %vm1211_vm11, %v916_v13, %v1339_v17 }
 0x127   : > { %v1690_v23 = vpack.c.bf16 %v1562_v21, %v1562_v21  ;;  %v1595_v43 = vpack.c.bf16 %v1467_v22, %v1467_v22  ;;  %v1499_v24 = vsel %vm1243_vm12, %v996_v14, %v1371_v19 }
 0x128   : > { %1787 = vst.msk [vmem:[%s2487_s8 + $0x13c] sm:$0xf] %vm1707_vm5, %v1658_v20  ;;  %v1627_v25 = vpack.c.bf16 %v1499_v24, %v1499_v24  ;;  %v1075_v26 = vpop.f32.mrf.mxu2  ;;  %v1155_v27 = vpop.f32.mrf.mxu3 }
 0x129   : > { %1819 = vst.msk [vmem:[%s2487_s8 + $0x1bc] sm:$0xf] %vm1707_vm5, %v1690_v23  ;;  %v1076_v29 = vadd.f32 %v2740_v28, %v1075_v26  ;;  %v1156_v30 = vadd.f32 %v2740_v28, %v1155_v27  ;;  %v917_v31 = vpop.f32.mrf.mxu0  ;;  %v997_v32 = vpop.f32.mrf.mxu1 }
 0x12a   : > { %1724 = vst.msk [vmem:[%s2487_s8 + $0x40] sm:$0xf] %vm1707_vm5, %v1595_v43  ;;  %v918_v33 = vadd.f32 %v2740_v28, %v917_v31  ;;  %v998_v34 = vadd.f32 %v2740_v28, %v997_v32 }
 0x12b   : > { %1756 = vst.msk [vmem:[%s2487_s8 + $0xc0] sm:$0xf] %vm1707_vm5, %v1627_v25  ;;  %vm1275_vm13 = vcmp.gt.f32.partialorder %v1076_v29, 0.0  ;;  %v1403_v35 = vmul.f32 0.2, %v1076_v29  ;;  %vm1307_vm14 = vcmp.gt.f32.partialorder %v1156_v30, 0.0 }
 0x12c   : > { %v1435_v36 = vmul.f32 0.2, %v1156_v30  ;;  %vm1212_vm15 = vcmp.gt.f32.partialorder %v918_v33, 0.0  ;;  %v1340_v37 = vmul.f32 0.2, %v918_v33  ;;  %vm1244_vm0 = vcmp.gt.f32.partialorder %v998_v34, 0.0 }
 0x12d   : > { %v1531_v38 = vsel %vm1275_vm13, %v1076_v29, %v1403_v35  ;;  %v1372_v39 = vmul.f32 0.2, %v998_v34 }
 0x12e   : > { %v1659_v40 = vpack.c.bf16 %v1531_v38, %v1531_v38  ;;  %v1563_v41 = vsel %vm1307_vm14, %v1156_v30, %v1435_v36  ;;  %v1468_v42 = vsel %vm1212_vm15, %v918_v33, %v1340_v37 }
 0x12f   : > { %v1691_v44 = vpack.c.bf16 %v1563_v41, %v1563_v41  ;;  %v1596_v45 = vpack.c.bf16 %v1468_v42, %v1468_v42  ;;  %v1500_v46 = vsel %vm1244_vm0, %v998_v34, %v1372_v39 }
 0x130   : > { %1788 = vst.msk [vmem:[%s2487_s8 + $0x140] sm:$0xf] %vm1707_vm5, %v1659_v40  ;;  %v1628_v47 = vpack.c.bf16 %v1500_v46, %v1500_v46  ;;  %v1077_v48 = vpop.f32.mrf.mxu2  ;;  %v1157_v49 = vpop.f32.mrf.mxu3 }
 0x131   : > { %1820 = vst.msk [vmem:[%s2487_s8 + $0x1c0] sm:$0xf] %vm1707_vm5, %v1691_v44  ;;  %v1078_v50 = vadd.f32 %v2740_v28, %v1077_v48  ;;  %v1158_v51 = vadd.f32 %v2740_v28, %v1157_v49  ;;  %v920_v52 = vpop.f32.mrf.mxu0  ;;  %v1000_v53 = vpop.f32.mrf.mxu1 }
 0x132   : > { %1725 = vst.msk [vmem:[%s2487_s8 + $0x44] sm:$0xf] %vm1707_vm5, %v1596_v45  ;;  %v921_v54 = vadd.f32 %v2740_v28, %v920_v52  ;;  %v1001_v55 = vadd.f32 %v2740_v28, %v1000_v53 }
 0x133   : > { %1757 = vst.msk [vmem:[%s2487_s8 + $0xc4] sm:$0xf] %vm1707_vm5, %v1628_v47  ;;  %vm1276_vm1 = vcmp.gt.f32.partialorder %v1078_v50, 0.0  ;;  %v1404_v56 = vmul.f32 0.2, %v1078_v50  ;;  %vm1308_vm3 = vcmp.gt.f32.partialorder %v1158_v51, 0.0 }
 0x134   : > { %v1436_v57 = vmul.f32 0.2, %v1158_v51  ;;  %vm1213_vm4 = vcmp.gt.f32.partialorder %v921_v54, 0.0  ;;  %v1341_v58 = vmul.f32 0.2, %v921_v54  ;;  %vm1245_vm2 = vcmp.gt.f32.partialorder %v1001_v55, 0.0 }
 0x135   : > { %v1532_v59 = vsel %vm1276_vm1, %v1078_v50, %v1404_v56  ;;  %v1373_v60 = vmul.f32 0.2, %v1001_v55 }
 0x136   : > { %v1660_v61 = vpack.c.bf16 %v1532_v59, %v1532_v59  ;;  %v1564_v62 = vsel %vm1308_vm3, %v1158_v51, %v1436_v57  ;;  %v1469_v63 = vsel %vm1213_vm4, %v921_v54, %v1341_v58 }
 0x137   : > { %v1692_v0 = vpack.c.bf16 %v1564_v62, %v1564_v62  ;;  %v1597_v1 = vpack.c.bf16 %v1469_v63, %v1469_v63  ;;  %v1501_v2 = vsel %vm1245_vm2, %v1001_v55, %v1373_v60 }
 0x138   : > { %1789 = vst.msk [vmem:[%s2487_s8 + $0x144] sm:$0xf] %vm1707_vm5, %v1660_v61  ;;  %v1629_v3 = vpack.c.bf16 %v1501_v2, %v1501_v2  ;;  %v1080_v4 = vpop.f32.mrf.mxu2  ;;  %v1160_v5 = vpop.f32.mrf.mxu3 }
 0x139   : > { %1821 = vst.msk [vmem:[%s2487_s8 + $0x1c4] sm:$0xf] %vm1707_vm5, %v1692_v0  ;;  %v1081_v6 = vadd.f32 %v2740_v28, %v1080_v4  ;;  %v1161_v7 = vadd.f32 %v2740_v28, %v1160_v5  ;;  %v922_v8 = vpop.f32.mrf.mxu0  ;;  %v1002_v9 = vpop.f32.mrf.mxu1 }
 0x13a   : > { %1726 = vst.msk [vmem:[%s2487_s8 + $0x48] sm:$0xf] %vm1707_vm5, %v1597_v1  ;;  %v923_v10 = vadd.f32 %v2740_v28, %v922_v8  ;;  %v1003_v11 = vadd.f32 %v2740_v28, %v1002_v9 }
 0x13b   : > { %1758 = vst.msk [vmem:[%s2487_s8 + $0xc8] sm:$0xf] %vm1707_vm5, %v1629_v3  ;;  %vm1277_vm6 = vcmp.gt.f32.partialorder %v1081_v6, 0.0  ;;  %v1405_v12 = vmul.f32 0.2, %v1081_v6  ;;  %vm1309_vm7 = vcmp.gt.f32.partialorder %v1161_v7, 0.0 }
 0x13c   : > { %v1437_v13 = vmul.f32 0.2, %v1161_v7  ;;  %vm1214_vm8 = vcmp.gt.f32.partialorder %v923_v10, 0.0  ;;  %v1342_v14 = vmul.f32 0.2, %v923_v10  ;;  %vm1246_vm9 = vcmp.gt.f32.partialorder %v1003_v11, 0.0 }
 0x13d   : > { %v1533_v15 = vsel %vm1277_vm6, %v1081_v6, %v1405_v12  ;;  %v1374_v16 = vmul.f32 0.2, %v1003_v11 }
 0x13e   : > { %v1661_v17 = vpack.c.bf16 %v1533_v15, %v1533_v15  ;;  %v1565_v18 = vsel %vm1309_vm7, %v1161_v7, %v1437_v13  ;;  %v1470_v19 = vsel %vm1214_vm8, %v923_v10, %v1342_v14 }
 0x13f   : > { %v1693_v20 = vpack.c.bf16 %v1565_v18, %v1565_v18  ;;  %v1598_v21 = vpack.c.bf16 %v1470_v19, %v1470_v19  ;;  %v1502_v22 = vsel %vm1246_vm9, %v1003_v11, %v1374_v16 }
 0x140   : > { %1790 = vst.msk [vmem:[%s2487_s8 + $0x148] sm:$0xf] %vm1707_vm5, %v1661_v17  ;;  %v1630_v23 = vpack.c.bf16 %v1502_v22, %v1502_v22  ;;  %v1082_v43 = vpop.f32.mrf.mxu2  ;;  %v1162_v24 = vpop.f32.mrf.mxu3 }
 0x141   : > { %1822 = vst.msk [vmem:[%s2487_s8 + $0x1c8] sm:$0xf] %vm1707_vm5, %v1693_v20  ;;  %v1083_v25 = vadd.f32 %v2740_v28, %v1082_v43  ;;  %v1163_v26 = vadd.f32 %v2740_v28, %v1162_v24  ;;  %v925_v27 = vpop.f32.mrf.mxu0  ;;  %v1005_v29 = vpop.f32.mrf.mxu1 }
 0x142   : > { %1727 = vst.msk [vmem:[%s2487_s8 + $0x4c] sm:$0xf] %vm1707_vm5, %v1598_v21  ;;  %v926_v30 = vadd.f32 %v2740_v28, %v925_v27  ;;  %v1006_v31 = vadd.f32 %v2740_v28, %v1005_v29 }
 0x143   : > { %1759 = vst.msk [vmem:[%s2487_s8 + $0xcc] sm:$0xf] %vm1707_vm5, %v1630_v23  ;;  %vm1278_vm10 = vcmp.gt.f32.partialorder %v1083_v25, 0.0  ;;  %v1406_v32 = vmul.f32 0.2, %v1083_v25  ;;  %vm1310_vm11 = vcmp.gt.f32.partialorder %v1163_v26, 0.0 }
 0x144   : > { %v1438_v33 = vmul.f32 0.2, %v1163_v26  ;;  %vm1215_vm12 = vcmp.gt.f32.partialorder %v926_v30, 0.0  ;;  %v1343_v34 = vmul.f32 0.2, %v926_v30  ;;  %vm1247_vm13 = vcmp.gt.f32.partialorder %v1006_v31, 0.0 }
 0x145   : > { %v1534_v35 = vsel %vm1278_vm10, %v1083_v25, %v1406_v32  ;;  %v1375_v36 = vmul.f32 0.2, %v1006_v31 }
 0x146   : > { %v1662_v37 = vpack.c.bf16 %v1534_v35, %v1534_v35  ;;  %v1566_v38 = vsel %vm1310_vm11, %v1163_v26, %v1438_v33  ;;  %v1471_v39 = vsel %vm1215_vm12, %v926_v30, %v1343_v34 }
 0x147   : > { %v1694_v40 = vpack.c.bf16 %v1566_v38, %v1566_v38  ;;  %v1599_v41 = vpack.c.bf16 %v1471_v39, %v1471_v39  ;;  %v1503_v42 = vsel %vm1247_vm13, %v1006_v31, %v1375_v36 }
 0x148   : > { %1791 = vst.msk [vmem:[%s2487_s8 + $0x14c] sm:$0xf] %vm1707_vm5, %v1662_v37  ;;  %v1631_v44 = vpack.c.bf16 %v1503_v42, %v1503_v42  ;;  %v1085_v45 = vpop.f32.mrf.mxu2  ;;  %v1165_v46 = vpop.f32.mrf.mxu3 }
 0x149   : > { %1823 = vst.msk [vmem:[%s2487_s8 + $0x1cc] sm:$0xf] %vm1707_vm5, %v1694_v40  ;;  %v1086_v47 = vadd.f32 %v2740_v28, %v1085_v45  ;;  %v1166_v48 = vadd.f32 %v2740_v28, %v1165_v46  ;;  %v927_v49 = vpop.f32.mrf.mxu0  ;;  %v1007_v50 = vpop.f32.mrf.mxu1 }
 0x14a   : > { %1728 = vst.msk [vmem:[%s2487_s8 + $0x50] sm:$0xf] %vm1707_vm5, %v1599_v41  ;;  %v928_v51 = vadd.f32 %v2740_v28, %v927_v49  ;;  %v1008_v52 = vadd.f32 %v2740_v28, %v1007_v50 }
 0x14b   : > { %1760 = vst.msk [vmem:[%s2487_s8 + $0xd0] sm:$0xf] %vm1707_vm5, %v1631_v44  ;;  %vm1279_vm14 = vcmp.gt.f32.partialorder %v1086_v47, 0.0  ;;  %v1407_v53 = vmul.f32 0.2, %v1086_v47  ;;  %vm1311_vm15 = vcmp.gt.f32.partialorder %v1166_v48, 0.0 }
 0x14c   : > { %v1439_v54 = vmul.f32 0.2, %v1166_v48  ;;  %vm1216_vm0 = vcmp.gt.f32.partialorder %v928_v51, 0.0  ;;  %v1344_v55 = vmul.f32 0.2, %v928_v51  ;;  %vm1248_vm1 = vcmp.gt.f32.partialorder %v1008_v52, 0.0 }
 0x14d   : > { %v1535_v56 = vsel %vm1279_vm14, %v1086_v47, %v1407_v53  ;;  %v1376_v57 = vmul.f32 0.2, %v1008_v52 }
 0x14e   : > { %v1663_v58 = vpack.c.bf16 %v1535_v56, %v1535_v56  ;;  %v1567_v59 = vsel %vm1311_vm15, %v1166_v48, %v1439_v54  ;;  %v1472_v60 = vsel %vm1216_vm0, %v928_v51, %v1344_v55 }
 0x14f   : > { %v1695_v61 = vpack.c.bf16 %v1567_v59, %v1567_v59  ;;  %v1600_v62 = vpack.c.bf16 %v1472_v60, %v1472_v60  ;;  %v1504_v63 = vsel %vm1248_vm1, %v1008_v52, %v1376_v57 }
 0x150   : > { %1792 = vst.msk [vmem:[%s2487_s8 + $0x150] sm:$0xf] %vm1707_vm5, %v1663_v58  ;;  %v1632_v0 = vpack.c.bf16 %v1504_v63, %v1504_v63  ;;  %v1087_v1 = vpop.f32.mrf.mxu2  ;;  %v1167_v2 = vpop.f32.mrf.mxu3 }
 0x151   : > { %1824 = vst.msk [vmem:[%s2487_s8 + $0x1d0] sm:$0xf] %vm1707_vm5, %v1695_v61  ;;  %v1088_v3 = vadd.f32 %v2740_v28, %v1087_v1  ;;  %v1168_v4 = vadd.f32 %v2740_v28, %v1167_v2  ;;  %v930_v5 = vpop.f32.mrf.mxu0  ;;  %v1010_v6 = vpop.f32.mrf.mxu1 }
 0x152   : > { %1729 = vst.msk [vmem:[%s2487_s8 + $0x54] sm:$0xf] %vm1707_vm5, %v1600_v62  ;;  %v931_v7 = vadd.f32 %v2740_v28, %v930_v5  ;;  %v1011_v8 = vadd.f32 %v2740_v28, %v1010_v6 }
 0x153   : > { %1761 = vst.msk [vmem:[%s2487_s8 + $0xd4] sm:$0xf] %vm1707_vm5, %v1632_v0  ;;  %vm1280_vm3 = vcmp.gt.f32.partialorder %v1088_v3, 0.0  ;;  %v1408_v9 = vmul.f32 0.2, %v1088_v3  ;;  %vm1312_vm4 = vcmp.gt.f32.partialorder %v1168_v4, 0.0 }
 0x154   : > { %v1440_v10 = vmul.f32 0.2, %v1168_v4  ;;  %vm1217_vm2 = vcmp.gt.f32.partialorder %v931_v7, 0.0  ;;  %v1345_v11 = vmul.f32 0.2, %v931_v7  ;;  %vm1249_vm6 = vcmp.gt.f32.partialorder %v1011_v8, 0.0 }
 0x155   : > { %v1536_v12 = vsel %vm1280_vm3, %v1088_v3, %v1408_v9  ;;  %v1377_v13 = vmul.f32 0.2, %v1011_v8 }
 0x156   : > { %v1664_v14 = vpack.c.bf16 %v1536_v12, %v1536_v12  ;;  %v1568_v15 = vsel %vm1312_vm4, %v1168_v4, %v1440_v10  ;;  %v1473_v16 = vsel %vm1217_vm2, %v931_v7, %v1345_v11 }
 0x157   : > { %v1696_v17 = vpack.c.bf16 %v1568_v15, %v1568_v15  ;;  %v1601_v18 = vpack.c.bf16 %v1473_v16, %v1473_v16  ;;  %v1505_v19 = vsel %vm1249_vm6, %v1011_v8, %v1377_v13 }
 0x158   : > { %1793 = vst.msk [vmem:[%s2487_s8 + $0x154] sm:$0xf] %vm1707_vm5, %v1664_v14  ;;  %v1633_v20 = vpack.c.bf16 %v1505_v19, %v1505_v19  ;;  %v1090_v21 = vpop.f32.mrf.mxu2  ;;  %v1170_v22 = vpop.f32.mrf.mxu3 }
 0x159   : > { %1825 = vst.msk [vmem:[%s2487_s8 + $0x1d4] sm:$0xf] %vm1707_vm5, %v1696_v17  ;;  %v1091_v23 = vadd.f32 %v2740_v28, %v1090_v21  ;;  %v1171_v43 = vadd.f32 %v2740_v28, %v1170_v22  ;;  %v932_v24 = vpop.f32.mrf.mxu0  ;;  %v1012_v25 = vpop.f32.mrf.mxu1 }
 0x15a   : > { %1730 = vst.msk [vmem:[%s2487_s8 + $0x58] sm:$0xf] %vm1707_vm5, %v1601_v18  ;;  %v933_v26 = vadd.f32 %v2740_v28, %v932_v24  ;;  %v1013_v27 = vadd.f32 %v2740_v28, %v1012_v25 }
 0x15b   : > { %1762 = vst.msk [vmem:[%s2487_s8 + $0xd8] sm:$0xf] %vm1707_vm5, %v1633_v20  ;;  %vm1281_vm7 = vcmp.gt.f32.partialorder %v1091_v23, 0.0  ;;  %v1409_v29 = vmul.f32 0.2, %v1091_v23  ;;  %vm1313_vm8 = vcmp.gt.f32.partialorder %v1171_v43, 0.0 }
 0x15c   : > { %v1441_v30 = vmul.f32 0.2, %v1171_v43  ;;  %vm1218_vm9 = vcmp.gt.f32.partialorder %v933_v26, 0.0  ;;  %v1346_v31 = vmul.f32 0.2, %v933_v26  ;;  %vm1250_vm10 = vcmp.gt.f32.partialorder %v1013_v27, 0.0 }
 0x15d   : > { %v1537_v32 = vsel %vm1281_vm7, %v1091_v23, %v1409_v29  ;;  %v1378_v33 = vmul.f32 0.2, %v1013_v27 }
 0x15e   : > { %v1665_v34 = vpack.c.bf16 %v1537_v32, %v1537_v32  ;;  %v1569_v35 = vsel %vm1313_vm8, %v1171_v43, %v1441_v30  ;;  %v1474_v36 = vsel %vm1218_vm9, %v933_v26, %v1346_v31 }
 0x15f   : > { %v1697_v37 = vpack.c.bf16 %v1569_v35, %v1569_v35  ;;  %v1602_v38 = vpack.c.bf16 %v1474_v36, %v1474_v36  ;;  %v1506_v39 = vsel %vm1250_vm10, %v1013_v27, %v1378_v33 }
 0x160   : > { %1794 = vst.msk [vmem:[%s2487_s8 + $0x158] sm:$0xf] %vm1707_vm5, %v1665_v34  ;;  %v1634_v40 = vpack.c.bf16 %v1506_v39, %v1506_v39  ;;  %v1092_v41 = vpop.f32.mrf.mxu2  ;;  %v1172_v42 = vpop.f32.mrf.mxu3 }
 0x161   : > { %1826 = vst.msk [vmem:[%s2487_s8 + $0x1d8] sm:$0xf] %vm1707_vm5, %v1697_v37  ;;  %v1093_v44 = vadd.f32 %v2740_v28, %v1092_v41  ;;  %v1173_v45 = vadd.f32 %v2740_v28, %v1172_v42  ;;  %v935_v46 = vpop.f32.mrf.mxu0  ;;  %v1015_v47 = vpop.f32.mrf.mxu1 }
 0x162   : > { %1731 = vst.msk [vmem:[%s2487_s8 + $0x5c] sm:$0xf] %vm1707_vm5, %v1602_v38  ;;  %v936_v48 = vadd.f32 %v2740_v28, %v935_v46  ;;  %v1016_v49 = vadd.f32 %v2740_v28, %v1015_v47 }
 0x163   : > { %1763 = vst.msk [vmem:[%s2487_s8 + $0xdc] sm:$0xf] %vm1707_vm5, %v1634_v40  ;;  %vm1282_vm11 = vcmp.gt.f32.partialorder %v1093_v44, 0.0  ;;  %v1410_v50 = vmul.f32 0.2, %v1093_v44  ;;  %vm1314_vm12 = vcmp.gt.f32.partialorder %v1173_v45, 0.0 }
 0x164   : > { %v1442_v51 = vmul.f32 0.2, %v1173_v45  ;;  %vm1219_vm13 = vcmp.gt.f32.partialorder %v936_v48, 0.0  ;;  %v1347_v52 = vmul.f32 0.2, %v936_v48  ;;  %vm1251_vm14 = vcmp.gt.f32.partialorder %v1016_v49, 0.0 }
 0x165   : > { %v1538_v53 = vsel %vm1282_vm11, %v1093_v44, %v1410_v50  ;;  %v1379_v54 = vmul.f32 0.2, %v1016_v49 }
 0x166   : > { %v1666_v55 = vpack.c.bf16 %v1538_v53, %v1538_v53  ;;  %v1570_v56 = vsel %vm1314_vm12, %v1173_v45, %v1442_v51  ;;  %v1475_v57 = vsel %vm1219_vm13, %v936_v48, %v1347_v52 }
 0x167   : > { %v1698_v58 = vpack.c.bf16 %v1570_v56, %v1570_v56  ;;  %v1603_v59 = vpack.c.bf16 %v1475_v57, %v1475_v57  ;;  %v1507_v60 = vsel %vm1251_vm14, %v1016_v49, %v1379_v54 }
 0x168   : > { %1795 = vst.msk [vmem:[%s2487_s8 + $0x15c] sm:$0xf] %vm1707_vm5, %v1666_v55  ;;  %v1635_v61 = vpack.c.bf16 %v1507_v60, %v1507_v60  ;;  %v1095_v62 = vpop.f32.mrf.mxu2  ;;  %v1175_v63 = vpop.f32.mrf.mxu3 }
 0x169   : > { %1827 = vst.msk [vmem:[%s2487_s8 + $0x1dc] sm:$0xf] %vm1707_vm5, %v1698_v58  ;;  %v1096_v0 = vadd.f32 %v2740_v28, %v1095_v62  ;;  %v1176_v1 = vadd.f32 %v2740_v28, %v1175_v63  ;;  %v937_v2 = vpop.f32.mrf.mxu0  ;;  %v1017_v3 = vpop.f32.mrf.mxu1 }
 0x16a   : > { %1732 = vst.msk [vmem:[%s2487_s8 + $0x60] sm:$0xf] %vm1707_vm5, %v1603_v59  ;;  %v938_v4 = vadd.f32 %v2740_v28, %v937_v2  ;;  %v1018_v5 = vadd.f32 %v2740_v28, %v1017_v3 }
 0x16b   : > { %1764 = vst.msk [vmem:[%s2487_s8 + $0xe0] sm:$0xf] %vm1707_vm5, %v1635_v61  ;;  %vm1283_vm15 = vcmp.gt.f32.partialorder %v1096_v0, 0.0  ;;  %v1411_v6 = vmul.f32 0.2, %v1096_v0  ;;  %vm1315_vm0 = vcmp.gt.f32.partialorder %v1176_v1, 0.0 }
 0x16c   : > { %v1443_v7 = vmul.f32 0.2, %v1176_v1  ;;  %vm1220_vm1 = vcmp.gt.f32.partialorder %v938_v4, 0.0  ;;  %v1348_v8 = vmul.f32 0.2, %v938_v4  ;;  %vm1252_vm3 = vcmp.gt.f32.partialorder %v1018_v5, 0.0 }
 0x16d   : > { %v1539_v9 = vsel %vm1283_vm15, %v1096_v0, %v1411_v6  ;;  %v1380_v10 = vmul.f32 0.2, %v1018_v5 }
 0x16e   : > { %v1667_v11 = vpack.c.bf16 %v1539_v9, %v1539_v9  ;;  %v1571_v12 = vsel %vm1315_vm0, %v1176_v1, %v1443_v7  ;;  %v1476_v13 = vsel %vm1220_vm1, %v938_v4, %v1348_v8 }
 0x16f   : > { %v1699_v14 = vpack.c.bf16 %v1571_v12, %v1571_v12  ;;  %v1604_v15 = vpack.c.bf16 %v1476_v13, %v1476_v13  ;;  %v1508_v16 = vsel %vm1252_vm3, %v1018_v5, %v1380_v10 }
 0x170   : > { %1796 = vst.msk [vmem:[%s2487_s8 + $0x160] sm:$0xf] %vm1707_vm5, %v1667_v11  ;;  %v1636_v17 = vpack.c.bf16 %v1508_v16, %v1508_v16  ;;  %v1097_v18 = vpop.f32.mrf.mxu2  ;;  %v1177_v19 = vpop.f32.mrf.mxu3 }
 0x171   : > { %1828 = vst.msk [vmem:[%s2487_s8 + $0x1e0] sm:$0xf] %vm1707_vm5, %v1699_v14  ;;  %v1098_v20 = vadd.f32 %v2740_v28, %v1097_v18  ;;  %v1178_v21 = vadd.f32 %v2740_v28, %v1177_v19  ;;  %v940_v22 = vpop.f32.mrf.mxu0  ;;  %v1020_v23 = vpop.f32.mrf.mxu1 }
 0x172   : > { %1733 = vst.msk [vmem:[%s2487_s8 + $0x64] sm:$0xf] %vm1707_vm5, %v1604_v15  ;;  %v941_v43 = vadd.f32 %v2740_v28, %v940_v22  ;;  %v1021_v24 = vadd.f32 %v2740_v28, %v1020_v23 }
 0x173   : > { %1765 = vst.msk [vmem:[%s2487_s8 + $0xe4] sm:$0xf] %vm1707_vm5, %v1636_v17  ;;  %vm1284_vm4 = vcmp.gt.f32.partialorder %v1098_v20, 0.0  ;;  %v1412_v25 = vmul.f32 0.2, %v1098_v20  ;;  %vm1316_vm2 = vcmp.gt.f32.partialorder %v1178_v21, 0.0 }
 0x174   : > { %v1444_v26 = vmul.f32 0.2, %v1178_v21  ;;  %vm1221_vm6 = vcmp.gt.f32.partialorder %v941_v43, 0.0  ;;  %v1349_v27 = vmul.f32 0.2, %v941_v43  ;;  %vm1253_vm7 = vcmp.gt.f32.partialorder %v1021_v24, 0.0 }
 0x175   : > { %v1540_v29 = vsel %vm1284_vm4, %v1098_v20, %v1412_v25  ;;  %v1381_v30 = vmul.f32 0.2, %v1021_v24 }
 0x176   : > { %v1668_v31 = vpack.c.bf16 %v1540_v29, %v1540_v29  ;;  %v1572_v32 = vsel %vm1316_vm2, %v1178_v21, %v1444_v26  ;;  %v1477_v33 = vsel %vm1221_vm6, %v941_v43, %v1349_v27 }
 0x177   : > { %v1700_v34 = vpack.c.bf16 %v1572_v32, %v1572_v32  ;;  %v1605_v35 = vpack.c.bf16 %v1477_v33, %v1477_v33  ;;  %v1509_v36 = vsel %vm1253_vm7, %v1021_v24, %v1381_v30 }
 0x178   : > { %1797 = vst.msk [vmem:[%s2487_s8 + $0x164] sm:$0xf] %vm1707_vm5, %v1668_v31  ;;  %v1637_v37 = vpack.c.bf16 %v1509_v36, %v1509_v36  ;;  %v1100_v38 = vpop.f32.mrf.mxu2  ;;  %v1180_v39 = vpop.f32.mrf.mxu3 }
 0x179   : > { %1829 = vst.msk [vmem:[%s2487_s8 + $0x1e4] sm:$0xf] %vm1707_vm5, %v1700_v34  ;;  %v1101_v40 = vadd.f32 %v2740_v28, %v1100_v38  ;;  %v1181_v41 = vadd.f32 %v2740_v28, %v1180_v39  ;;  %v942_v42 = vpop.f32.mrf.mxu0  ;;  %v1022_v44 = vpop.f32.mrf.mxu1 }
 0x17a   : > { %1734 = vst.msk [vmem:[%s2487_s8 + $0x68] sm:$0xf] %vm1707_vm5, %v1605_v35  ;;  %v943_v45 = vadd.f32 %v2740_v28, %v942_v42  ;;  %v1023_v46 = vadd.f32 %v2740_v28, %v1022_v44 }
 0x17b   : > { %1766 = vst.msk [vmem:[%s2487_s8 + $0xe8] sm:$0xf] %vm1707_vm5, %v1637_v37  ;;  %vm1285_vm8 = vcmp.gt.f32.partialorder %v1101_v40, 0.0  ;;  %v1413_v47 = vmul.f32 0.2, %v1101_v40  ;;  %vm1317_vm9 = vcmp.gt.f32.partialorder %v1181_v41, 0.0 }
 0x17c   : > { %v1445_v48 = vmul.f32 0.2, %v1181_v41  ;;  %vm1222_vm10 = vcmp.gt.f32.partialorder %v943_v45, 0.0  ;;  %v1350_v49 = vmul.f32 0.2, %v943_v45  ;;  %vm1254_vm11 = vcmp.gt.f32.partialorder %v1023_v46, 0.0 }
 0x17d   : > { %v1541_v50 = vsel %vm1285_vm8, %v1101_v40, %v1413_v47  ;;  %v1382_v51 = vmul.f32 0.2, %v1023_v46 }
 0x17e   : > { %v1669_v52 = vpack.c.bf16 %v1541_v50, %v1541_v50  ;;  %v1573_v53 = vsel %vm1317_vm9, %v1181_v41, %v1445_v48  ;;  %v1478_v54 = vsel %vm1222_vm10, %v943_v45, %v1350_v49 }
 0x17f   : > { %v1701_v55 = vpack.c.bf16 %v1573_v53, %v1573_v53  ;;  %v1606_v56 = vpack.c.bf16 %v1478_v54, %v1478_v54  ;;  %v1510_v57 = vsel %vm1254_vm11, %v1023_v46, %v1382_v51 }
 0x180   : > { %1798 = vst.msk [vmem:[%s2487_s8 + $0x168] sm:$0xf] %vm1707_vm5, %v1669_v52  ;;  %v1638_v58 = vpack.c.bf16 %v1510_v57, %v1510_v57  ;;  %v1102_v59 = vpop.f32.mrf.mxu2  ;;  %v1182_v60 = vpop.f32.mrf.mxu3 }
 0x181   : > { %1830 = vst.msk [vmem:[%s2487_s8 + $0x1e8] sm:$0xf] %vm1707_vm5, %v1701_v55  ;;  %v1103_v61 = vadd.f32 %v2740_v28, %v1102_v59  ;;  %v1183_v62 = vadd.f32 %v2740_v28, %v1182_v60  ;;  %v945_v63 = vpop.f32.mrf.mxu0  ;;  %v1025_v0 = vpop.f32.mrf.mxu1 }
 0x182   : > { %1735 = vst.msk [vmem:[%s2487_s8 + $0x6c] sm:$0xf] %vm1707_vm5, %v1606_v56  ;;  %v946_v1 = vadd.f32 %v2740_v28, %v945_v63  ;;  %v1026_v2 = vadd.f32 %v2740_v28, %v1025_v0 }
 0x183   : > { %1767 = vst.msk [vmem:[%s2487_s8 + $0xec] sm:$0xf] %vm1707_vm5, %v1638_v58  ;;  %vm1286_vm12 = vcmp.gt.f32.partialorder %v1103_v61, 0.0  ;;  %v1414_v3 = vmul.f32 0.2, %v1103_v61  ;;  %vm1318_vm13 = vcmp.gt.f32.partialorder %v1183_v62, 0.0 }
 0x184   : > { %v1446_v4 = vmul.f32 0.2, %v1183_v62  ;;  %vm1223_vm14 = vcmp.gt.f32.partialorder %v946_v1, 0.0  ;;  %v1351_v5 = vmul.f32 0.2, %v946_v1  ;;  %vm1255_vm15 = vcmp.gt.f32.partialorder %v1026_v2, 0.0 }
 0x185   : > { %v1542_v6 = vsel %vm1286_vm12, %v1103_v61, %v1414_v3  ;;  %v1383_v7 = vmul.f32 0.2, %v1026_v2 }
 0x186   : > { %v1670_v8 = vpack.c.bf16 %v1542_v6, %v1542_v6  ;;  %v1574_v9 = vsel %vm1318_vm13, %v1183_v62, %v1446_v4  ;;  %v1479_v10 = vsel %vm1223_vm14, %v946_v1, %v1351_v5 }
 0x187   : > { %v1702_v11 = vpack.c.bf16 %v1574_v9, %v1574_v9  ;;  %v1607_v12 = vpack.c.bf16 %v1479_v10, %v1479_v10  ;;  %v1511_v13 = vsel %vm1255_vm15, %v1026_v2, %v1383_v7 }
 0x188   : > { %1799 = vst.msk [vmem:[%s2487_s8 + $0x16c] sm:$0xf] %vm1707_vm5, %v1670_v8  ;;  %v1639_v14 = vpack.c.bf16 %v1511_v13, %v1511_v13  ;;  %v1105_v15 = vpop.f32.mrf.mxu2  ;;  %v1185_v16 = vpop.f32.mrf.mxu3 }
 0x189   : > { %1831 = vst.msk [vmem:[%s2487_s8 + $0x1ec] sm:$0xf] %vm1707_vm5, %v1702_v11  ;;  %v1106_v17 = vadd.f32 %v2740_v28, %v1105_v15  ;;  %v1186_v18 = vadd.f32 %v2740_v28, %v1185_v16  ;;  %v947_v19 = vpop.f32.mrf.mxu0  ;;  %v1027_v20 = vpop.f32.mrf.mxu1 }
 0x18a   : > { %1736 = vst.msk [vmem:[%s2487_s8 + $0x70] sm:$0xf] %vm1707_vm5, %v1607_v12  ;;  %v948_v21 = vadd.f32 %v2740_v28, %v947_v19  ;;  %v1028_v22 = vadd.f32 %v2740_v28, %v1027_v20 }
 0x18b   : > { %1768 = vst.msk [vmem:[%s2487_s8 + $0xf0] sm:$0xf] %vm1707_vm5, %v1639_v14  ;;  %vm1287_vm0 = vcmp.gt.f32.partialorder %v1106_v17, 0.0  ;;  %v1415_v23 = vmul.f32 0.2, %v1106_v17  ;;  %vm1319_vm1 = vcmp.gt.f32.partialorder %v1186_v18, 0.0 }
 0x18c   : > { %v1447_v43 = vmul.f32 0.2, %v1186_v18  ;;  %vm1224_vm3 = vcmp.gt.f32.partialorder %v948_v21, 0.0  ;;  %v1352_v24 = vmul.f32 0.2, %v948_v21  ;;  %vm1256_vm4 = vcmp.gt.f32.partialorder %v1028_v22, 0.0 }
 0x18d   : > { %v1543_v25 = vsel %vm1287_vm0, %v1106_v17, %v1415_v23  ;;  %v1384_v26 = vmul.f32 0.2, %v1028_v22 }
 0x18e   : > { %v1671_v27 = vpack.c.bf16 %v1543_v25, %v1543_v25  ;;  %v1575_v29 = vsel %vm1319_vm1, %v1186_v18, %v1447_v43  ;;  %v1480_v30 = vsel %vm1224_vm3, %v948_v21, %v1352_v24 }
 0x18f   : > { %v1703_v31 = vpack.c.bf16 %v1575_v29, %v1575_v29  ;;  %v1608_v32 = vpack.c.bf16 %v1480_v30, %v1480_v30  ;;  %v1512_v33 = vsel %vm1256_vm4, %v1028_v22, %v1384_v26 }
 0x190   : > { %1800 = vst.msk [vmem:[%s2487_s8 + $0x170] sm:$0xf] %vm1707_vm5, %v1671_v27  ;;  %v1640_v34 = vpack.c.bf16 %v1512_v33, %v1512_v33  ;;  %v1107_v35 = vpop.f32.mrf.mxu2  ;;  %v1187_v36 = vpop.f32.mrf.mxu3 }
 0x191   : > { %1832 = vst.msk [vmem:[%s2487_s8 + $0x1f0] sm:$0xf] %vm1707_vm5, %v1703_v31  ;;  %v1108_v37 = vadd.f32 %v2740_v28, %v1107_v35  ;;  %v1188_v38 = vadd.f32 %v2740_v28, %v1187_v36  ;;  %v950_v39 = vpop.f32.mrf.mxu0  ;;  %v1030_v40 = vpop.f32.mrf.mxu1 }
 0x192   : > { %1737 = vst.msk [vmem:[%s2487_s8 + $0x74] sm:$0xf] %vm1707_vm5, %v1608_v32  ;;  %v951_v41 = vadd.f32 %v2740_v28, %v950_v39  ;;  %v1031_v42 = vadd.f32 %v2740_v28, %v1030_v40 }
 0x193   : > { %1769 = vst.msk [vmem:[%s2487_s8 + $0xf4] sm:$0xf] %vm1707_vm5, %v1640_v34  ;;  %vm1288_vm2 = vcmp.gt.f32.partialorder %v1108_v37, 0.0  ;;  %v1416_v44 = vmul.f32 0.2, %v1108_v37  ;;  %vm1320_vm6 = vcmp.gt.f32.partialorder %v1188_v38, 0.0 }
 0x194   : > { %v1448_v45 = vmul.f32 0.2, %v1188_v38  ;;  %vm1225_vm7 = vcmp.gt.f32.partialorder %v951_v41, 0.0  ;;  %v1353_v46 = vmul.f32 0.2, %v951_v41  ;;  %vm1257_vm8 = vcmp.gt.f32.partialorder %v1031_v42, 0.0 }
 0x195   : > { %v1544_v47 = vsel %vm1288_vm2, %v1108_v37, %v1416_v44  ;;  %v1385_v48 = vmul.f32 0.2, %v1031_v42 }
 0x196   : > { %v1672_v49 = vpack.c.bf16 %v1544_v47, %v1544_v47  ;;  %v1576_v50 = vsel %vm1320_vm6, %v1188_v38, %v1448_v45  ;;  %v1481_v51 = vsel %vm1225_vm7, %v951_v41, %v1353_v46 }
 0x197   : > { %v1704_v52 = vpack.c.bf16 %v1576_v50, %v1576_v50  ;;  %v1609_v53 = vpack.c.bf16 %v1481_v51, %v1481_v51  ;;  %v1513_v54 = vsel %vm1257_vm8, %v1031_v42, %v1385_v48 }
 0x198   : > { %1801 = vst.msk [vmem:[%s2487_s8 + $0x174] sm:$0xf] %vm1707_vm5, %v1672_v49  ;;  %v1641_v55 = vpack.c.bf16 %v1513_v54, %v1513_v54  ;;  %v1110_v56 = vpop.f32.mrf.mxu2  ;;  %v1190_v57 = vpop.f32.mrf.mxu3 }
 0x199   : > { %1833 = vst.msk [vmem:[%s2487_s8 + $0x1f4] sm:$0xf] %vm1707_vm5, %v1704_v52  ;;  %v1111_v58 = vadd.f32 %v2740_v28, %v1110_v56  ;;  %v1191_v59 = vadd.f32 %v2740_v28, %v1190_v57  ;;  %v952_v60 = vpop.f32.mrf.mxu0  ;;  %v1032_v61 = vpop.f32.mrf.mxu1 }
 0x19a   : > { %1738 = vst.msk [vmem:[%s2487_s8 + $0x78] sm:$0xf] %vm1707_vm5, %v1609_v53  ;;  %v953_v62 = vadd.f32 %v2740_v28, %v952_v60  ;;  %v1033_v63 = vadd.f32 %v2740_v28, %v1032_v61 }
 0x19b   : > { %1770 = vst.msk [vmem:[%s2487_s8 + $0xf8] sm:$0xf] %vm1707_vm5, %v1641_v55  ;;  %vm1289_vm9 = vcmp.gt.f32.partialorder %v1111_v58, 0.0  ;;  %v1417_v0 = vmul.f32 0.2, %v1111_v58  ;;  %vm1321_vm10 = vcmp.gt.f32.partialorder %v1191_v59, 0.0 }
 0x19c   : > { %v1449_v1 = vmul.f32 0.2, %v1191_v59  ;;  %vm1226_vm11 = vcmp.gt.f32.partialorder %v953_v62, 0.0  ;;  %v1354_v2 = vmul.f32 0.2, %v953_v62  ;;  %vm1258_vm12 = vcmp.gt.f32.partialorder %v1033_v63, 0.0 }
 0x19d   : > { %v1545_v3 = vsel %vm1289_vm9, %v1111_v58, %v1417_v0  ;;  %v1386_v4 = vmul.f32 0.2, %v1033_v63 }
 0x19e   : > { %v1673_v5 = vpack.c.bf16 %v1545_v3, %v1545_v3  ;;  %v1577_v6 = vsel %vm1321_vm10, %v1191_v59, %v1449_v1  ;;  %v1482_v7 = vsel %vm1226_vm11, %v953_v62, %v1354_v2 }
 0x19f   : > { %v1705_v8 = vpack.c.bf16 %v1577_v6, %v1577_v6  ;;  %v1610_v9 = vpack.c.bf16 %v1482_v7, %v1482_v7  ;;  %v1514_v10 = vsel %vm1258_vm12, %v1033_v63, %v1386_v4 }
 0x1a0   : > { %1802 = vst.msk [vmem:[%s2487_s8 + $0x178] sm:$0xf] %vm1707_vm5, %v1673_v5  ;;  %v1642_v11 = vpack.c.bf16 %v1514_v10, %v1514_v10  ;;  %v1112_v12 = vpop.f32.mrf.mxu2  ;;  %v1192_v13 = vpop.f32.mrf.mxu3 }
 0x1a1   : > { %1834 = vst.msk [vmem:[%s2487_s8 + $0x1f8] sm:$0xf] %vm1707_vm5, %v1705_v8  ;;  %v1113_v14 = vadd.f32 %v2740_v28, %v1112_v12  ;;  %v1193_v15 = vadd.f32 %v2740_v28, %v1192_v13 }
 0x1a2   : > { %1739 = vst.msk [vmem:[%s2487_s8 + $0x7c] sm:$0xf] %vm1707_vm5, %v1610_v9 }
 0x1a3   : > { %1771 = vst.msk [vmem:[%s2487_s8 + $0xfc] sm:$0xf] %vm1707_vm5, %v1642_v11  ;;  %vm1290_vm13 = vcmp.gt.f32.partialorder %v1113_v14, 0.0  ;;  %v1418_v16 = vmul.f32 0.2, %v1113_v14  ;;  %vm1322_vm14 = vcmp.gt.f32.partialorder %v1193_v15, 0.0 }
 0x1a4   : > { %v1450_v17 = vmul.f32 0.2, %v1193_v15 }
 0x1a5   : > { %v1546_v18 = vsel %vm1290_vm13, %v1113_v14, %v1418_v16 }
 0x1a6   : > { %v1674_v19 = vpack.c.bf16 %v1546_v18, %v1546_v18  ;;  %v1578_v20 = vsel %vm1322_vm14, %v1193_v15, %v1450_v17 }
 0x1a7   : > { %v1706_v21 = vpack.c.bf16 %v1578_v20, %v1578_v20 }
 0x1a8   : > { %1803 = vst.msk [vmem:[%s2487_s8 + $0x17c] sm:$0xf] %vm1707_vm5, %v1674_v19 }
 0x1a9   : > { %1835 = vst.msk [vmem:[%s2487_s8 + $0x1fc] sm:$0xf] %vm1707_vm5, %v1706_v21 }
 0x1aa PF: > { %s13_s12 = sadd.s32 1, %s2344_s12  }
 0x1ab   : > { %p10_p4 = scmp.ge.s32.totalorder %s13_s12, 4  }
 0x1ad   :  { %12 = sbr.rel (!%p10_p4) target bundleno = 1 (0x1), region = 62 }

// kernel: _lambda_.9
= control target key start
LH: loop header
LB: loop body
LE: loop exit
PB: predicated region body
PF: predicated region fallthrough
CT: control target
= control target key end

     0   :  { %s1715_s15 = smov 0   ;;  %s1978_s0 = inlined_call_operand.vmem [shape: bf16[2,72,18,8], index: 0, kind: input, shape index: {}]   ;;  %s1979_s1 = inlined_call_operand.vmem [shape: bf16[25,8,16], index: 1, kind: input, shape index: {}]   ;;  %s1980_s2 = inlined_call_operand.vmem [shape: f32[1,16], index: 2, kind: input, shape index: {}]   ;;  %s1981_s3 = inlined_call_operand.vmem [shape: bf16[2,16,16,16], index: 3, kind: output, shape index: {0}]   ;;  %s1982_s4 = inlined_call_operand.vmem [shape: f32[2,2,16], index: 4, kind: output, shape index: {1}]  }
   0x1 LB: > { %s1383_s16 = sadd.s32 4294967295, %s1672_s15   ;;  %p1387_p0 = scmp.ge.s32.totalorder %s1672_s15, 1  ;;  %s1672_s15 = sphi %s1715_s15, %s15_s15  }
   0x2   : > { %p165_p1 = scmp.lt.s32.totalorder %s1672_s15, 3 }
   0x4   : > { %p166_p2 = pnand %p1387_p0, %p165_p1 }
   0x5   : > { %p195_p3 = scmp.lt.s32.totalorder (!%p166_p2), %s1383_s16, 1  ;;  %s1745_s5 = smov (!%p166_p2), 0  }
   0x6   : > { %169 = sbr.rel (%p166_p2) target bundleno = 303 (0x12f), region = 32 }
   0xb   : > { %v1726_v0 = vld [vmem:[%s1980_s2] sm:$0x1]  ;;  %s1985_s16 = smov (!%p195_p3, %s1383_s16), 1  ;;  %v1743_v1 = vmov 0.0  }
   0xc   : > { %s1603_s19 = smul.u32 864, %s1985_s16  ;;  %s1557_s20 = sshll.u32 %s1985_s16, 7 }
   0xd   : > { %s1731_s23 = scalar_lea.vmem %s1981_s3, %s1557_s20  ;;  %s1391_s24 = sshll.u32 %s1985_s16, 1 }
   0xe   : > { %s1736_s27 = scalar_lea.vmem %s1978_s0, %s1603_s19  ;;  %s1741_s30 = scalar_lea.vmem %s1982_s4, %s1391_s24 }
   0xf LB: >> { %v1395_v2 = vld [vmem:[%s1979_s1 + $0x4] sm:$0xf]  ;;  %vm241_vm0 = vcmask 1043456   ;;  %v223_v3 = vld [vmem:[%s1979_s1] sm:$0xf]  ;;  %s1558_s14 = smul.u32 12, %s1680_s5  ;;  %s1680_s5 = sphi %s1745_s5, %s216_s5   ;;  %v1676_v1 = vphi %v1743_v1, %v1983_v1  }
  0x10   : >> { %v243_v4 = vsel %vm241_vm0, %v1395_v2, 0  ;;  %v268_v5 = vsel %vm241_vm0, %v223_v3, 0  ;;  %v1417_v6 = vld [vmem:[%s1979_s1 + $0x10] sm:$0xf]  ;;  %v1406_v7 = vld [vmem:[%s1979_s1 + $0x8] sm:$0xf] }
  0x11   : >> { %252 = vmatpush.bf16.msra.mxu0 %v243_v4  ;;  %277 = vmatpush.bf16.msra.mxu1 %v268_v5  ;;  %v393_v8 = vsel %vm241_vm0, %v1417_v6, 0  ;;  %v314_v9 = vsel %vm241_vm0, %v1406_v7, 0  ;;  %v1411_v10 = vld [vmem:[%s1979_s1 + $0xc] sm:$0xf]  ;;  %v1429_v12 = vld [vmem:[%s1979_s1 + $0x18] sm:$0xf]  ;;  %s1778_s20 = scalar_lea.vmem %s1736_s27, %s1558_s14 }
  0x12   : >> { %323 = vmatpush.bf16.msra.mxu2 %v314_v9  ;;  %v361_v11 = vsel %vm241_vm0, %v1411_v10, 0  ;;  %vm237_vm1 = vcmask 64512   ;;  %v463_v13 = vsel %vm241_vm0, %v1429_v12, 0  ;;  %v1438_v14 = vld [vmem:[%s1979_s1 + $0x1c] sm:$0xf]  ;;  %v1559_v17 = vld [vmem:[%s1778_s20] sm:$0xff] }
  0x13   : >> { %370 = vmatpush.bf16.msra.mxu3 %v361_v11  ;;  %v1421_v15 = vld [vmem:[%s1979_s1 + $0x14] sm:$0xf]  ;;  %v1560_v16 = vld [vmem:[%s1778_s20 + $0xd8] sm:$0xff]  ;;  %v1577_v18 = vld [vmem:[%s1778_s20] sm:$0xff]   ;;  %v510_v19 = vsel %vm241_vm0, %v1438_v14, 0  ;;  %vm385_vm3 = vcmask 1046528  }
  0x14   : >> { %v428_v20 = vsel %vm241_vm0, %v1421_v15, 0  ;;  %v286_v21 = vld [vmem:[%s1778_s20 + $0x8] sm:$0x1]  ;;  %v301_v22 = vshll.u32 %v1577_v18, 16  ;;  %v1561_v23 = vld [vmem:[%s1778_s20 + $0xd8] sm:$0xff]  ;;  %1400 = vmatmul.msk.bf16.vlgmr.msra.gmra.mxu0 %vm237_vm1, %v1560_v16  ;;  %1405 = vmatmul.msk.bf16.vlgmr.msra.gmra.mxu1 %vm237_vm1, %v1559_v17  ;;  %v299_v25 = vshrl.u32 %v1577_v18, 16 }
  0x15   : >> { %402 = vmatpush.bf16.msrb.mxu0 %v393_v8  ;;  %437 = vmatpush.bf16.msrb.mxu1 %v428_v20  ;;  %v294_v24 = vunpack.c.l.b16 %v286_v21  ;;  %v1410_v26 = vld [vmem:[%s1778_s20 + $0xe0] sm:$0x1]  ;;  %v346_v29 = vshrl.u32 %v1561_v23, 16  ;;  %v348_v30 = vshll.u32 %v1561_v23, 16  ;;  %v1592_v33 = vld [vmem:[%s1778_s20] sm:$0xf0] }
  0x16   : >> { %472 = vmatpush.bf16.msrb.mxu2 %v463_v13  ;;  %v303_v27 = vrot.slane %v301_v22, 1  ;;  %v342_v28 = vunpack.c.l.b16 %v1410_v26  ;;  %v1443_v31 = vld [vmem:[%s1979_s1 + $0x20] sm:$0xf]  ;;  %v1437_v38 = vld [vmem:[%s1778_s20 + $0x1b8] sm:$0x1]  ;;  %v1595_v53 = vld [vmem:[%s1778_s20 + $0x1b0] sm:$0xff]  }
  0x17   : >> { %519 = vmatpush.bf16.msrb.mxu3 %v510_v19  ;;  %v296_v32 = vpack.c.b16 %v294_v24, %v294_v24  ;;  %v1593_v34 = vld [vmem:[%s1778_s20] sm:$0xe]  ;;  %v557_v35 = vsel %vm241_vm0, %v1443_v31, 0  ;;  %v350_v37 = vrot.slane %v348_v30, 1  ;;  %v1454_v41 = vld [vmem:[%s1979_s1 + $0x28] sm:$0xf]  ;;  %v491_v49 = vunpack.c.l.b16 %v1437_v38 }
  0x18   : >> { %v344_v36 = vpack.c.b16 %v342_v28, %v342_v28  ;;  %v304_v39 = vor.u32 %v303_v27, %v299_v25  ;;  %v1450_v42 = vld [vmem:[%s1979_s1 + $0x24] sm:$0xf]  ;;  %vm297_vm2 = vsmask.f32 7424  ;;  %v1594_v45 = vor.u32 %v1593_v34, %v1592_v33  ;;  %v1462_v46 = vld [vmem:[%s1979_s1 + $0x2c] sm:$0xf] }
  0x19   : >> { %566 = vmatpush.bf16.msra.mxu0 %v557_v35  ;;  %v306_v40 = vshll.u32 %v296_v32, 16  ;;  %v351_v43 = vor.u32 %v350_v37, %v346_v29  ;;  %v623_v50 = vsel %vm241_vm0, %v1454_v41, 0  ;;  %v588_v51 = vsel %vm241_vm0, %v1450_v42, 0  ;;  %v1442_v58 = vld [vmem:[%s1778_s20 + $0x290] sm:$0x1]  ;;  %v1564_v3 = vld [vmem:[%s1778_s20 + $0x288] sm:$0xff] }
  0x1a   : >> { %v353_v44 = vshll.u32 %v344_v36, 16  ;;  %v658_v54 = vsel %vm241_vm0, %v1462_v46, 0  ;;  %597 = vmatpush.bf16.msra.mxu1 %v588_v51  ;;  %v386_v56 = vrot.slane %v1594_v45, 1  ;;  %v387_v57 = vrot.slane %v296_v32, 1  ;;  %v1471_v61 = vld [vmem:[%s1979_s1 + $0x30] sm:$0xf] }
  0x1b   : >> { %v308_v47 = vrot.slane %v306_v40, 1  ;;  %v493_v59 = vpack.c.b16 %v491_v49, %v491_v49  ;;  %v497_v60 = vshll.u32 %v1595_v53, 16  ;;  %v1476_v62 = vld [vmem:[%s1979_s1 + $0x34] sm:$0xf]  ;;  %v538_v4 = vunpack.c.l.b16 %v1442_v58  ;;  %v1597_v13 = vld [vmem:[%s1778_s20 + $0x1b0] sm:$0xe] }
  0x1c   : >> { %v355_v48 = vrot.slane %v353_v44, 1  ;;  %v1562_v63 = vld [vmem:[%s1778_s20 + $0x1b0] sm:$0xff]  ;;  %v388_v2 = vsel %vm385_vm3, %v386_v56, %v387_v57  ;;  %v705_v5 = vsel %vm241_vm0, %v1471_v61, 0  ;;  %v752_v6 = vsel %vm241_vm0, %v1476_v62, 0  ;;  %v1563_v16 = vld [vmem:[%s1778_s20 + $0x288] sm:$0xff] }
  0x1d   : >> { %v309_v52 = vsel %vm297_vm2, %v304_v39, %v308_v47  ;;  %v495_v7 = vshrl.u32 %v1595_v53, 16  ;;  %v499_v8 = vrot.slane %v497_v60, 1  ;;  %v502_v9 = vshll.u32 %v493_v59, 16  ;;  %v1596_v12 = vld [vmem:[%s1778_s20 + $0x1b0] sm:$0xf0]  ;;  %v1468_v23 = vld [vmem:[%s1778_s20 + $0xc] sm:$0xff]  }
  0x1e   : >> { %1407 = vmatmul.msk.bf16.vlgmr.msra.gmra.mxu2 %vm237_vm1, %v309_v52  ;;  %v356_v55 = vsel %vm297_vm2, %v351_v43, %v355_v48  ;;  %v540_v10 = vpack.c.b16 %v538_v4, %v538_v4  ;;  %v544_v11 = vshll.u32 %v1564_v3, 16  ;;  %v1483_v17 = vld [vmem:[%s1979_s1 + $0x38] sm:$0xf]  ;;  %v542_v18 = vshrl.u32 %v1564_v3, 16  ;;  %v1487_v22 = vld [vmem:[%s1979_s1 + $0x3c] sm:$0xf] }
  0x1f   : >> { %1416 = vmatmul.msk.bf16.vlgmr.msra.gmra.mxu3 %vm237_vm1, %v356_v55  ;;  %632 = vmatpush.bf16.msra.mxu2 %v623_v50  ;;  %v500_v14 = vor.u32 %v499_v8, %v495_v7  ;;  %v504_v15 = vrot.slane %v502_v9, 1  ;;  %v1598_v21 = vor.u32 %v1597_v13, %v1596_v12  ;;  %v1846_v24 = vld [vmem:[%s1778_s20 + $0xc] sm:$0xf0]  ;;  %v783_v26 = vsel %vm241_vm0, %v1483_v17, 0  ;;  %v1470_v32 = vld [vmem:[%s1778_s20 + $0x14] sm:$0x1] }
  0x20   : >> { %667 = vmatpush.bf16.msra.mxu3 %v658_v54  ;;  %v546_v19 = vrot.slane %v544_v11, 1  ;;  %v549_v20 = vshll.u32 %v540_v10, 16  ;;  %v582_v27 = vrot.slane %v493_v59, 1  ;;  %v818_v28 = vsel %vm241_vm0, %v1487_v22, 0  ;;  %v1475_v33 = vld [vmem:[%s1778_s20 + $0xec] sm:$0x1] }
  0x21   : >> { %v505_v25 = vsel %vm297_vm2, %v500_v14, %v504_v15  ;;  %v581_v31 = vrot.slane %v1598_v21, 1  ;;  %v1495_v34 = vld [vmem:[%s1979_s1 + $0x40] sm:$0xf]  ;;  %v1504_v35 = vld [vmem:[%s1979_s1 + $0x44] sm:$0xf]  ;;  %v686_v36 = vunpack.c.l.b16 %v1470_v32  ;;  %v733_v40 = vunpack.c.l.b16 %v1475_v33  ;;  %v1570_v45 = vld [vmem:[%s1778_s20 + $0x294] sm:$0xff] }
  0x22   : >> { %v547_v29 = vor.u32 %v546_v19, %v542_v18  ;;  %v551_v30 = vrot.slane %v549_v20, 1  ;;  %v1567_v37 = vld [vmem:[%s1778_s20 + $0xe4] sm:$0xff]  ;;  %v853_v41 = vsel %vm241_vm0, %v1495_v34, 0  ;;  %v900_v42 = vsel %vm241_vm0, %v1504_v35, 0  ;;  %v1508_v48 = vld [vmem:[%s1778_s20 + $0x29c] sm:$0x1] }
  0x23   : >> { %v583_v39 = vsel %vm385_vm3, %v581_v31, %v582_v27  ;;  %v1868_v43 = vpack.c.b16 %v686_v36, %v686_v36  ;;  %v739_v44 = vshll.u32 %v1567_v37, 16  ;;  %v692_v46 = vshll.u32 %v1468_v23, 16  ;;  %v1509_v55 = vld [vmem:[%s1979_s1 + $0x48] sm:$0xf]  ;;  %v1565_v58 = vld [vmem:[%s1778_s20 + $0xc] sm:$0xff] }
  0x24   : >> { %1418 = vmatmul.msk.bf16.vlgmr.msrb.gmra.mxu0 %vm237_vm1, %v388_v2  ;;  %1426 = vmatmul.msk.bf16.vlgmr.msrb.gmra.mxu1 %vm237_vm1, %v1562_v63  ;;  %v552_v38 = vsel %vm297_vm2, %v547_v29, %v551_v30  ;;  %v735_v47 = vpack.c.b16 %v733_v40, %v733_v40  ;;  %v928_v49 = vunpack.c.l.b16 %v1508_v48  ;;  %v932_v50 = vshrl.u32 %v1570_v45, 16  ;;  %v1516_v62 = vld [vmem:[%s1979_s1 + $0x4c] sm:$0xf]  ;;  %v1566_v63 = vld [vmem:[%s1778_s20 + $0xe4] sm:$0xff]  ;;  %v1882_v2 = vld [vmem:[%s1778_s20 + $0x1bc] sm:$0xff]  }
  0x25   : >> { %714 = vmatpush.bf16.msrb.mxu0 %v705_v5  ;;  %761 = vmatpush.bf16.msrb.mxu1 %v752_v6  ;;  %v934_v51 = vshll.u32 %v1570_v45, 16  ;;  %v737_v52 = vshrl.u32 %v1567_v37, 16  ;;  %v697_v53 = vshll.u32 %v1868_v43, 16  ;;  %v741_v54 = vrot.slane %v739_v44, 1  ;;  %v1885_v3 = vld [vmem:[%s1778_s20 + $0x1bc] sm:$0xf0] }
  0x26   : >> { %v930_v56 = vpack.c.b16 %v928_v49, %v928_v49  ;;  %v690_v59 = vshrl.u32 %v1468_v23, 16  ;;  %v694_v60 = vrot.slane %v692_v46, 1  ;;  %v744_v61 = vshll.u32 %v735_v47, 16  ;;  %v1645_v6 = vld [vmem:[%s1778_s20 + $0xc] sm:$0xe]  ;;  %v1573_v30 = vld [vmem:[%s1778_s20 + $0xf0] sm:$0xff] }
  0x27   : >> { %v936_v57 = vrot.slane %v934_v51, 1  ;;  %v947_v7 = vsel %vm241_vm0, %v1509_v55, 0  ;;  %v699_v8 = vrot.slane %v697_v53, 1  ;;  %v742_v9 = vor.u32 %v741_v54, %v737_v52  ;;  %v1503_v14 = vld [vmem:[%s1778_s20 + $0x1c4] sm:$0x1]  ;;  %v1568_v48 = vld [vmem:[%s1778_s20 + $0x1bc] sm:$0xff] }
  0x28   : >> { %v939_v5 = vshll.u32 %v930_v56, 16  ;;  %v978_v10 = vsel %vm241_vm0, %v1516_v62, 0  ;;  %v695_v12 = vor.u32 %v694_v60, %v690_v59  ;;  %v746_v13 = vrot.slane %v744_v61, 1  ;;  %v1528_v17 = vld [vmem:[%s1979_s1 + $0x54] sm:$0xf] }
  0x29   : >> { %v937_v4 = vor.u32 %v936_v57, %v932_v50  ;;  %v881_v18 = vunpack.c.l.b16 %v1503_v14  ;;  %v1646_v21 = vor.u32 %v1645_v6, %v1846_v24  ;;  %v1048_v23 = vsel %vm241_vm0, %v1528_v17, 0  ;;  %v1541_v34 = vld [vmem:[%s1778_s20 + $0xf8] sm:$0x1]  ;;  %v1648_v54 = vld [vmem:[%s1778_s20 + $0x1bc] sm:$0xe]  ;;  %v1572_v17 = vld [vmem:[%s1778_s20 + $0xf0] sm:$0xff] }
  0x2a   : >> { %v941_v11 = vrot.slane %v939_v5, 1  ;;  %v700_v19 = vsel %vm297_vm2, %v695_v12, %v699_v8  ;;  %v747_v20 = vsel %vm297_vm2, %v742_v9, %v746_v13  ;;  %v887_v27 = vshll.u32 %v1882_v2, 16  ;;  %v1537_v40 = vld [vmem:[%s1979_s1 + $0x58] sm:$0xf]  ;;  %v1600_v61 = vld [vmem:[%s1778_s20 + $0x18] sm:$0xf0] }
  0x2b   : >> { %v776_v31 = vrot.slane %v1646_v21, 1  ;;  %v777_v24 = vrot.slane %v1868_v43, 1  ;;  %v1123_v36 = vunpack.c.l.b16 %v1541_v34  ;;  %v1129_v37 = vshll.u32 %v1573_v30, 16  ;;  %v1542_v43 = vld [vmem:[%s1979_s1 + $0x5c] sm:$0xf]  ;;  %v1569_v6 = vld [vmem:[%s1778_s20 + $0x294] sm:$0xff] }
  0x2c   : >> { %v1894_v15 = vsel %vm297_vm2, %v937_v4, %v941_v11  ;;  %v1127_v45 = vshrl.u32 %v1573_v30, 16  ;;  %v1095_v51 = vsel %vm241_vm0, %v1537_v40, 0  ;;  %v1142_v55 = vsel %vm241_vm0, %v1542_v43, 0  ;;  %v1601_v62 = vld [vmem:[%s1778_s20 + $0x18] sm:$0xe] }
  0x2d   : >> { %v1125_v44 = vpack.c.b16 %v1123_v36, %v1123_v36  ;;  %v1131_v46 = vrot.slane %v1129_v37, 1  ;;  %v778_v47 = vsel %vm385_vm3, %v776_v31, %v777_v24  ;;  %v1602_v4 = vor.u32 %v1601_v62, %v1600_v61 }
  0x2e   : >> { %1434 = vmatmul.msk.bf16.vlgmr.msrb.gmra.mxu2 %vm237_vm1, %v1563_v16  ;;  %v1520_v16 = vld [vmem:[%s1979_s1 + $0x50] sm:$0xf]  ;;  %vm1201_vm4 = vcmask 125952   ;;  %vm1204_vm5 = vcmask 130048  }
  0x2f   : >> { %1439 = vmatmul.msk.bf16.vlgmr.msrb.gmra.mxu3 %vm237_vm1, %v505_v25  ;;  %792 = vmatpush.bf16.msrb.mxu2 %v783_v26  ;;  %v1013_v22 = vsel %vm241_vm0, %v1520_v16, 0  ;;  %v883_v25 = vpack.c.b16 %v881_v18, %v881_v18  ;;  %v1599_v26 = vld [vmem:[%s1778_s20 + $0x18] sm:$0xff]   ;;  %v1132_v52 = vor.u32 %v1131_v46, %v1127_v45  ;;  %v1134_v53 = vshll.u32 %v1125_v44, 16 }
  0x30   : >> { %827 = vmatpush.bf16.msrb.mxu3 %v818_v28  ;;  %v1536_v28 = vld [vmem:[%s1778_s20 + $0x20] sm:$0x1]  ;;  %v1082_v29 = vshll.u32 %v1599_v26, 16  ;;  %v1080_v33 = vshrl.u32 %v1599_v26, 16  ;;  %v1166_v8 = vrot.slane %v1602_v4, 1  ;;  %v1571_v16 = vld [vmem:[%s1778_s20 + $0x18] sm:$0xff] }
  0x31   : >> { %v1076_v32 = vunpack.c.l.b16 %v1536_v28  ;;  %v1136_v59 = vrot.slane %v1134_v53, 1  ;;  %v972_v13 = vrot.slane %v883_v25, 1  ;;  %s1574_s20 = sshll.u32 %s1680_s5, 3  ;;  %s216_s5 = sadd.s32 1, %s1680_s5  }
  0x32   : >> { %v1084_v35 = vrot.slane %v1082_v29, 1  ;;  %s1200_s18 = scalar_lea.vmem %s1731_s23, %s1574_s20  ;;  %p213_p4 = scmp.ge.s32.totalorder %s216_s5, 16  }
  0x33   : > { %s1965_s19 = smov (%p213_p4), 0  }
  0x34   : >> { %1448 = vmatmul.msk.bf16.vlgmr.msra.gmra.mxu0 %vm237_vm1, %v552_v38  ;;  %1451 = vmatmul.msk.bf16.vlgmr.msra.gmra.mxu1 %vm237_vm1, %v583_v39  ;;  %v885_v38 = vshrl.u32 %v1882_v2, 16  ;;  %v892_v39 = vshll.u32 %v883_v25, 16  ;;  %v1085_v49 = vor.u32 %v1084_v35, %v1080_v33  ;;  %v1137_v2 = vsel %vm297_vm2, %v1132_v52, %v1136_v59 }
  0x35   : >> { %862 = vmatpush.bf16.msra.mxu0 %v853_v41  ;;  %909 = vmatpush.bf16.msra.mxu1 %v900_v42  ;;  %v1078_v41 = vpack.c.b16 %v1076_v32, %v1076_v32  ;;  %v889_v42 = vrot.slane %v887_v27, 1 }
  0x37   : >> { %v1087_v50 = vshll.u32 %v1078_v41, 16  ;;  %v890_v57 = vor.u32 %v889_v42, %v885_v38  ;;  %v1167_v5 = vrot.slane %v1078_v41, 1 }
  0x39   : >> { %v1089_v56 = vrot.slane %v1087_v50, 1  ;;  %v1168_v11 = vsel %vm385_vm3, %v1166_v8, %v1167_v5 }
  0x3b   : >> { %v1090_v60 = vsel %vm297_vm2, %v1085_v49, %v1089_v56 }
  0x3e   : >> { %1459 = vmatmul.msk.bf16.vlgmr.msra.gmra.mxu2 %vm237_vm1, %v1565_v58  ;;  %v894_v58 = vrot.slane %v892_v39, 1 }
  0x3f   : >> { %1467 = vmatmul.msk.bf16.vlgmr.msra.gmra.mxu3 %vm237_vm1, %v1566_v63  ;;  %956 = vmatpush.bf16.msra.mxu2 %v947_v7  ;;  %v1549_v63 = vld [vmem:[%s1979_s1 + $0x60] sm:$0xf] }
  0x40   : >> { %987 = vmatpush.bf16.msra.mxu3 %v978_v10  ;;  %v895_v7 = vsel %vm297_vm2, %v890_v57, %v894_v58  ;;  %v1173_v9 = vsel %vm241_vm0, %v1549_v63, 0  ;;  %v1649_v10 = vor.u32 %v1648_v54, %v1885_v3 }
  0x42   : >> { %v971_v12 = vrot.slane %v1649_v10, 1 }
  0x44   : >> { %1472 = vmatmul.msk.bf16.vlgmr.msrb.gmra.mxu0 %vm237_vm1, %v700_v19  ;;  %1481 = vmatmul.msk.bf16.vlgmr.msrb.gmra.mxu1 %vm237_vm1, %v747_v20  ;;  %v973_v14 = vsel %vm385_vm3, %v971_v12, %v972_v13 }
  0x45   : >> { %1022 = vmatpush.bf16.msrb.mxu0 %v1013_v22  ;;  %1057 = vmatpush.bf16.msrb.mxu1 %v1048_v23 }
  0x4e   : >> { %1484 = vmatmul.msk.bf16.vlgmr.msrb.gmra.mxu2 %vm237_vm1, %v778_v47 }
  0x4f   : >> { %1492 = vmatmul.msk.bf16.vlgmr.msrb.gmra.mxu3 %vm237_vm1, %v1568_v48  ;;  %1104 = vmatpush.bf16.msrb.mxu2 %v1095_v51 }
  0x50   : >> { %1151 = vmatpush.bf16.msrb.mxu3 %v1142_v55 }
  0x54   : >> { %1500 = vmatmul.msk.bf16.vlgmr.msra.gmra.mxu0 %vm237_vm1, %v1569_v6  ;;  %1505 = vmatmul.msk.bf16.vlgmr.msra.gmra.mxu1 %vm237_vm1, %v895_v7 }
  0x55   : >> { %1182 = vmatpush.bf16.msra.mxu0 %v1173_v9 }
  0x5e   : >> { %1514 = vmatmul.msk.bf16.vlgmr.msra.gmra.mxu2 %vm237_vm1, %v1894_v15 }
  0x5f   : >> { %1517 = vmatmul.msk.bf16.vlgmr.msra.gmra.mxu3 %vm237_vm1, %v973_v14 }
  0x64   : >> { %1525 = vmatmul.msk.bf16.vlgmr.msrb.gmra.mxu0 %vm237_vm1, %v1571_v16  ;;  %1533 = vmatmul.msk.bf16.vlgmr.msrb.gmra.mxu1 %vm237_vm1, %v1572_v17 }
  0x6e   : >> { %1538 = vmatmul.msk.bf16.vlgmr.msrb.gmra.mxu2 %vm237_vm1, %v1090_v60 }
  0x6f   : >> { %1547 = vmatmul.msk.bf16.vlgmr.msrb.gmra.mxu3 %vm237_vm1, %v1137_v2 }
  0x74   : >> { %1550 = vmatmul.msk.bf16.vlgmr.msra.gmra.mxu0 %vm237_vm1, %v1168_v11 }
  0x91   : >> { %v254_v3 = vpop.f32.mrf.mxu0  ;;  %v279_v18 = vpop.f32.mrf.mxu1 }
  0x92   : >> { %v280_v26 = vadd.f32 %v279_v18, %v254_v3 }
  0x99   : >> { %v256_v19 = vpop.f32.mrf.mxu0  ;;  %v281_v20 = vpop.f32.mrf.mxu1 }
  0x9a   : >> { %v282_v32 = vadd.f32 %v281_v20, %v256_v19 }
  0xa1   : >> { %v325_v21 = vpop.f32.mrf.mxu2  ;;  %v404_v22 = vpop.f32.mrf.mxu0 }
  0xa2   : >> { %v372_v15 = vpop.f32.mrf.mxu3  ;;  %v439_v23 = vpop.f32.mrf.mxu1  ;;  %v330_v30 = vadd.f32 %v325_v21, %v280_v26 }
  0xa4   : >> { %v377_v31 = vadd.f32 %v372_v15, %v330_v30 }
  0xa6   : >> { %v409_v36 = vadd.f32 %v404_v22, %v377_v31 }
  0xa8   : >> { %v444_v38 = vadd.f32 %v439_v23, %v409_v36 }
  0xa9   : >> { %v327_v25 = vpop.f32.mrf.mxu2  ;;  %v406_v28 = vpop.f32.mrf.mxu0 }
  0xaa   : >> { %v374_v27 = vpop.f32.mrf.mxu3  ;;  %v441_v29 = vpop.f32.mrf.mxu1  ;;  %v331_v37 = vadd.f32 %v327_v25, %v282_v32 }
  0xac   : >> { %v378_v39 = vadd.f32 %v374_v27, %v331_v37 }
  0xae   : >> { %v410_v45 = vadd.f32 %v406_v28, %v378_v39 }
  0xb0   : >> { %v445_v47 = vadd.f32 %v441_v29, %v410_v45 }
  0xb1   : >> { %v474_v24 = vpop.f32.mrf.mxu2  ;;  %v568_v34 = vpop.f32.mrf.mxu0 }
  0xb2   : >> { %v521_v33 = vpop.f32.mrf.mxu3  ;;  %v599_v35 = vpop.f32.mrf.mxu1  ;;  %v479_v41 = vadd.f32 %v474_v24, %v444_v38 }
  0xb4   : >> { %v526_v46 = vadd.f32 %v521_v33, %v479_v41 }
  0xb6   : >> { %v573_v49 = vadd.f32 %v568_v34, %v526_v46 }
  0xb8   : >> { %v604_v54 = vadd.f32 %v599_v35, %v573_v49 }
  0xb9   : >> { %v476_v40 = vpop.f32.mrf.mxu2  ;;  %v570_v43 = vpop.f32.mrf.mxu0 }
  0xba   : >> { %v523_v42 = vpop.f32.mrf.mxu3  ;;  %v601_v44 = vpop.f32.mrf.mxu1  ;;  %v480_v50 = vadd.f32 %v476_v40, %v445_v47 }
  0xbc   : >> { %v527_v55 = vadd.f32 %v523_v42, %v480_v50 }
  0xbe   : >> { %v574_v58 = vadd.f32 %v570_v43, %v527_v55  ;;  %v1192_v43 = vperm.slane %v1726_v0, 0 }
  0xc0   : >> { %v605_v63 = vadd.f32 %v601_v44, %v574_v58 }
  0xc1   : >> { %v634_v48 = vpop.f32.mrf.mxu2  ;;  %v716_v52 = vpop.f32.mrf.mxu0 }
  0xc2   : >> { %v669_v51 = vpop.f32.mrf.mxu3  ;;  %v763_v53 = vpop.f32.mrf.mxu1  ;;  %v639_v56 = vadd.f32 %v634_v48, %v604_v54 }
  0xc4   : >> { %v674_v61 = vadd.f32 %v669_v51, %v639_v56 }
  0xc6   : >> { %v721_v2 = vadd.f32 %v716_v52, %v674_v61 }
  0xc8   : >> { %v768_v8 = vadd.f32 %v763_v53, %v721_v2 }
  0xc9   : >> { %v636_v57 = vpop.f32.mrf.mxu2  ;;  %v718_v60 = vpop.f32.mrf.mxu0 }
  0xca   : >> { %v671_v59 = vpop.f32.mrf.mxu3  ;;  %v765_v62 = vpop.f32.mrf.mxu1  ;;  %v640_v4 = vadd.f32 %v636_v57, %v605_v63 }
  0xcc   : >> { %v675_v9 = vadd.f32 %v671_v59, %v640_v4 }
  0xce   : >> { %v722_v12 = vadd.f32 %v718_v60, %v675_v9 }
  0xd0   : >> { %v769_v3 = vadd.f32 %v765_v62, %v722_v12 }
  0xd1   : >> { %v794_v5 = vpop.f32.mrf.mxu2  ;;  %v864_v7 = vpop.f32.mrf.mxu0 }
  0xd2   : >> { %v829_v6 = vpop.f32.mrf.mxu3  ;;  %v799_v10 = vadd.f32 %v794_v5, %v768_v8  ;;  %v911_v11 = vpop.f32.mrf.mxu1 }
  0xd4   : >> { %v834_v14 = vadd.f32 %v829_v6, %v799_v10 }
  0xd6   : >> { %v869_v18 = vadd.f32 %v864_v7, %v834_v14  ;;  %v1682_v7 = vmov (%p213_p4), 0.0  }
  0xd8   : >> { %v916_v15 = vadd.f32 %v911_v11, %v869_v18 }
  0xd9   : >> { %v796_v13 = vpop.f32.mrf.mxu2  ;;  %v866_v17 = vpop.f32.mrf.mxu0 }
  0xda   : >> { %v831_v16 = vpop.f32.mrf.mxu3  ;;  %v800_v19 = vadd.f32 %v796_v13, %v769_v3  ;;  %v913_v20 = vpop.f32.mrf.mxu1 }
  0xdc   : >> { %v835_v22 = vadd.f32 %v831_v16, %v800_v19 }
  0xde   : >> { %v870_v27 = vadd.f32 %v866_v17, %v835_v22 }
  0xe0   : >> { %v917_v30 = vadd.f32 %v913_v20, %v870_v27 }
  0xe1   : >> { %v958_v21 = vpop.f32.mrf.mxu2  ;;  %v1024_v25 = vpop.f32.mrf.mxu0 }
  0xe2   : >> { %v989_v23 = vpop.f32.mrf.mxu3  ;;  %v963_v26 = vadd.f32 %v958_v21, %v916_v15  ;;  %v1059_v32 = vpop.f32.mrf.mxu1 }
  0xe4   : >> { %v994_v28 = vadd.f32 %v989_v23, %v963_v26 }
  0xe6   : >> { %v1029_v33 = vadd.f32 %v1024_v25, %v994_v28 }
  0xe8   : >> { %v1064_v35 = vadd.f32 %v1059_v32, %v1029_v33 }
  0xe9   : >> { %v960_v29 = vpop.f32.mrf.mxu2  ;;  %v1026_v24 = vpop.f32.mrf.mxu0 }
  0xea   : >> { %v991_v31 = vpop.f32.mrf.mxu3  ;;  %v964_v34 = vadd.f32 %v960_v29, %v917_v30  ;;  %v1061_v44 = vpop.f32.mrf.mxu1 }
  0xec   : >> { %v995_v36 = vadd.f32 %v991_v31, %v964_v34 }
  0xee   : >> { %v1030_v41 = vadd.f32 %v1026_v24, %v995_v36 }
  0xf0   : >> { %v1065_v46 = vadd.f32 %v1061_v44, %v1030_v41 }
  0xf1   : >> { %v1106_v37 = vpop.f32.mrf.mxu2  ;;  %v1184_v40 = vpop.f32.mrf.mxu0 }
  0xf2   : >> { %v1111_v38 = vadd.f32 %v1106_v37, %v1064_v35  ;;  %v1153_v39 = vpop.f32.mrf.mxu3 }
  0xf4   : >> { %v1158_v42 = vadd.f32 %v1153_v39, %v1111_v38 }
  0xf6   : >> { %v1189_v45 = vadd.f32 %v1184_v40, %v1158_v42 }
  0xf8   : >> { %v1194_v47 = vadd.f32 %v1192_v43, %v1189_v45 }
  0xf9   : >> { %v1108_v48 = vpop.f32.mrf.mxu2  ;;  %v1186_v53 = vpop.f32.mrf.mxu0 }
  0xfa   : >> { %v1196_v49 = vpack.c.bf16 %v1194_v47, %v1194_v47  ;;  %v1112_v50 = vadd.f32 %v1108_v48, %v1065_v46  ;;  %v1155_v51 = vpop.f32.mrf.mxu3  ;;  %v1205_v56 = vsel %vm1204_vm5, %v1194_v47, 0.0 }
  0xfc   : >> { %1202 = vst.msk [vmem:[%s1200_s18] sm:$0xf] %vm1201_vm4, %v1196_v49  ;;  %v1159_v52 = vadd.f32 %v1155_v51, %v1112_v50 }
  0xfe   : >> { %v1190_v54 = vadd.f32 %v1186_v53, %v1159_v52 }
 0x100   : >> { %v1195_v55 = vadd.f32 %v1192_v43, %v1190_v54 }
 0x102   : >> { %v1197_v57 = vpack.c.bf16 %v1195_v55, %v1195_v55  ;;  %v1206_v58 = vsel %vm1204_vm5, %v1195_v55, 0.0 }
 0x103   : >> { %v1207_v59 = vadd.f32 %v1206_v58, %v1205_v56 }
 0x104   : >> { %1203 = vst.msk [vmem:[%s1200_s18 + $0x4] sm:$0xf] %vm1201_vm4, %v1197_v57 }
 0x105   : >> { %v1208_v60 = vrot.slane %v1207_v59, 4 }
 0x107   : >> { %v1209_v61 = vadd.f32 %v1208_v60, %v1207_v59 }
 0x109   : >> { %v1210_v62 = vrot.slane %v1209_v61, 2 }
 0x10b   : >> { %v1211_v63 = vadd.f32 %v1210_v62, %v1209_v61 }
 0x10d   : >> { %v1212_v2 = vrot.slane %v1211_v63, 1 }
 0x10f   : >> { %v1213_v4 = vadd.f32 %v1212_v2, %v1211_v63  ;;  %215 = sbr.rel (!%p213_p4) target bundleno = 15 (0xf), region = 124 }
 0x111   : >> { %v1214_v5 = vadd.f32 %v1676_v1, %v1213_v4  }
 0x113   : >> { %v1983_v1 = vmov %v1214_v5  ;;  %v1215_v6 = vmul.f32 (%p213_p4), 0.00390625, %v1214_v5 }
 0x114 LB: >> { %s1575_s21 = sshll.u32 %s1688_s19, 3  ;;  %s1221_s19 = sadd.s32 1, %s1688_s19   ;;  %s1688_s19 = sphi %s1965_s19, %s1221_s19   ;;  %v1684_v7 = vphi %v1682_v7, %v1683_v7  }
 0x115   : >> { %s1225_s22 = scalar_lea.vmem %s1731_s23, %s1575_s21  ;;  %p1218_p5 = scmp.ge.s32.totalorder %s1221_s19, 16  }
 0x116   : >> { %v1589_v1 = vld [vmem:[%s1225_s22] sm:$0xff]   ;;  %vm1245_vm6 = vcmask (%p1218_p5), 122880  }
 0x117   : >> { %v1590_v8 = vunpack.c.l.bf16 %v1589_v1  ;;  %v1591_v9 = vunpack.c.h.bf16 %v1589_v1  ;;  %1246 = vst.msk [vmem:[%s1741_s30] sm:$0x1] (%p1218_p5), %vm1245_vm6, %v1215_v6 }
 0x119   : >> { %v1230_v10 = vsub.f32 %v1590_v8, %v1215_v6  ;;  %v1231_v11 = vsub.f32 %v1591_v9, %v1215_v6 }
 0x11b   : >> { %v1232_v12 = vmul.f32 %v1230_v10, %v1230_v10  ;;  %v1233_v13 = vmul.f32 %v1231_v11, %v1231_v11 }
 0x11d   : >> { %v1235_v0 = vsel %vm1204_vm5, %v1232_v12, 0.0  ;;  %v1236_v14 = vsel %vm1204_vm5, %v1233_v13, 0.0 }
 0x11e   : >> { %v1237_v16 = vadd.f32 %v1236_v14, %v1235_v0 }
 0x120   : >> { %v1238_v17 = vrot.slane %v1237_v16, 4 }
 0x122   : >> { %v1239_v3 = vadd.f32 %v1238_v17, %v1237_v16 }
 0x124   : >> { %v1240_v18 = vrot.slane %v1239_v3, 2 }
 0x126   : >> { %v1241_v19 = vadd.f32 %v1240_v18, %v1239_v3 }
 0x128   : >> { %v1242_v20 = vrot.slane %v1241_v19, 1 }
 0x12a   : >> { %v1243_v21 = vadd.f32 %v1242_v20, %v1241_v19  ;;  %1220 = sbr.rel (!%p1218_p5) target bundleno = 276 (0x114), region = 135 }
 0x12c   : >> { %v1244_v15 = vadd.f32 %v1684_v7, %v1243_v21  }
 0x12e   : >> { %v1683_v7 = vmov %v1244_v15   ;;  %1247 = vst.msk [vmem:[%s1741_s30 + $0x1] sm:$0x1] (%p1218_p5), %vm1245_vm6, %v1244_v15 }
 0x12f PF: > { %s15_s15 = sadd.s32 1, %s1672_s15  }
 0x130   : > { %p12_p6 = scmp.ge.s32.totalorder %s15_s15, 4  }
 0x132   :  { %14 = sbr.rel (!%p12_p6) target bundleno = 1 (0x1), region = 146 }

// kernel: _lambda_.10
= control target key start
LH: loop header
LB: loop body
LE: loop exit
PB: predicated region body
PF: predicated region fallthrough
CT: control target
= control target key end

     0   :  { %vm534_vm0 = vcmask 125952   ;;  %s1282_s0 = inlined_call_operand.vmem [shape: bf16[512,16], index: 0, kind: input, shape index: {}]   ;;  %s1283_s1 = inlined_call_operand.vmem [shape: f32[1,16], index: 1, kind: input, shape index: {}]   ;;  %s1284_s2 = inlined_call_operand.vmem [shape: f32[1,16], index: 2, kind: input, shape index: {}]   ;;  %s1285_s3 = inlined_call_operand.vmem [shape: bf16[512,16], index: 3, kind: output, shape index: {}]  }
   0x1   :  { %v604_v0 = vld [vmem:[%s1282_s0] sm:$0xff]   ;;  %v731_v5 = vld [vmem:[%s1282_s0 + $0x8] sm:$0xff]   ;;  %v732_v8 = vld [vmem:[%s1282_s0 + $0x10] sm:$0xff]  }
   0x2   :  { %v792_v1 = vld [vmem:[%s1283_s1] ss:$0 sm:$0xff]  ;;  %v605_v2 = vunpack.c.l.bf16 %v604_v0  ;;  %v606_v4 = vunpack.c.h.bf16 %v604_v0  ;;  %v609_v6 = vunpack.c.l.bf16 %v731_v5  ;;  %v610_v7 = vunpack.c.h.bf16 %v731_v5  ;;  %v733_v9 = vld [vmem:[%s1282_s0 + $0x18] sm:$0xff]   ;;  %v735_v39 = vld [vmem:[%s1282_s0 + $0x28] sm:$0xff]  }
   0x3   :  { %v797_v3 = vld [vmem:[%s1284_s2] ss:$0 sm:$0xff]  ;;  %v613_v12 = vunpack.c.l.bf16 %v732_v8  ;;  %v614_v13 = vunpack.c.h.bf16 %v732_v8  ;;  %v617_v16 = vunpack.c.l.bf16 %v733_v9  ;;  %v618_v17 = vunpack.c.h.bf16 %v733_v9  ;;  %v736_v53 = vld [vmem:[%s1282_s0 + $0x30] sm:$0xff]  }
   0x4   :  { %v146_v10 = vmul.f32 %v792_v1, %v605_v2  ;;  %v147_v11 = vmul.f32 %v792_v1, %v606_v4  ;;  %v148_v14 = vmul.f32 %v792_v1, %v609_v6  ;;  %v149_v15 = vmul.f32 %v792_v1, %v610_v7  ;;  %v734_v38 = vld [vmem:[%s1282_s0 + $0x20] sm:$0xff]  }
   0x5   :  { %v150_v20 = vmul.f32 %v792_v1, %v613_v12  ;;  %v151_v21 = vmul.f32 %v792_v1, %v614_v13  ;;  %v152_v24 = vmul.f32 %v792_v1, %v617_v16  ;;  %v153_v25 = vmul.f32 %v792_v1, %v618_v17  ;;  %v737_v16 = vld [vmem:[%s1282_s0 + $0x38] sm:$0xff]  }
   0x6   :  { %v214_v18 = vadd.f32 %v797_v3, %v146_v10  ;;  %v215_v19 = vadd.f32 %v797_v3, %v147_v11  ;;  %v216_v22 = vadd.f32 %v797_v3, %v148_v14  ;;  %v217_v23 = vadd.f32 %v797_v3, %v149_v15 }
   0x7   :  { %v218_v32 = vadd.f32 %v797_v3, %v150_v20  ;;  %v219_v33 = vadd.f32 %v797_v3, %v151_v21  ;;  %v220_v44 = vadd.f32 %v797_v3, %v152_v24  ;;  %v221_v45 = vadd.f32 %v797_v3, %v153_v25  ;;  %v738_v20 = vld [vmem:[%s1282_s0 + $0x40] sm:$0xff]  }
   0x8   :  { %vm278_vm1 = vcmp.gt.f32.partialorder %v214_v18, 0.0  ;;  %v342_v26 = vmul.f32 0.2, %v214_v18  ;;  %vm279_vm2 = vcmp.gt.f32.partialorder %v215_v19, 0.0  ;;  %v343_v27 = vmul.f32 0.2, %v215_v19 }
   0x9   :  { %vm280_vm3 = vcmp.gt.f32.partialorder %v216_v22, 0.0  ;;  %v344_v28 = vmul.f32 0.2, %v216_v22  ;;  %vm281_vm4 = vcmp.gt.f32.partialorder %v217_v23, 0.0  ;;  %v345_v29 = vmul.f32 0.2, %v217_v23 }
   0xa   :  { %v406_v30 = vsel %vm278_vm1, %v214_v18, %v342_v26  ;;  %v407_v31 = vsel %vm279_vm2, %v215_v19, %v343_v27  ;;  %vm282_vm5 = vcmp.gt.f32.partialorder %v218_v32, 0.0  ;;  %v346_v42 = vmul.f32 0.2, %v218_v32 }
   0xb   :  { %v470_v34 = vpack.c.bf16 %v406_v30, %v406_v30  ;;  %v471_v35 = vpack.c.bf16 %v407_v31, %v407_v31  ;;  %v408_v36 = vsel %vm280_vm3, %v216_v22, %v344_v28  ;;  %v409_v37 = vsel %vm281_vm4, %v217_v23, %v345_v29  ;;  %v739_v28 = vld [vmem:[%s1282_s0 + $0x48] sm:$0xff]  }
   0xc   :  { %v472_v40 = vpack.c.bf16 %v408_v36, %v408_v36  ;;  %v473_v41 = vpack.c.bf16 %v409_v37, %v409_v37  ;;  %vm283_vm6 = vcmp.gt.f32.partialorder %v219_v33, 0.0  ;;  %v347_v43 = vmul.f32 0.2, %v219_v33 }
   0xd   :  { %535 = vst.msk [vmem:[%s1285_s3] sm:$0xf] %vm534_vm0, %v470_v34  ;;  %v410_v46 = vsel %vm282_vm5, %v218_v32, %v346_v42  ;;  %v621_v47 = vunpack.c.l.bf16 %v734_v38  ;;  %v622_v48 = vunpack.c.h.bf16 %v734_v38  ;;  %v625_v49 = vunpack.c.l.bf16 %v735_v39 }
   0xe   :  { %536 = vst.msk [vmem:[%s1285_s3 + $0x4] sm:$0xf] %vm534_vm0, %v471_v35  ;;  %v474_v50 = vpack.c.bf16 %v410_v46, %v410_v46  ;;  %v411_v51 = vsel %vm283_vm6, %v219_v33, %v347_v43  ;;  %vm284_vm7 = vcmp.gt.f32.partialorder %v220_v44, 0.0  ;;  %v348_v52 = vmul.f32 0.2, %v220_v44  ;;  %v897_v33 = vld [vmem:[%s1282_s0 + $0x50] sm:$0xff]  }
   0xf   :  { %537 = vst.msk [vmem:[%s1285_s3 + $0x8] sm:$0xf] %vm534_vm0, %v472_v40  ;;  %v475_v54 = vpack.c.bf16 %v411_v51, %v411_v51  ;;  %vm285_vm8 = vcmp.gt.f32.partialorder %v221_v45, 0.0  ;;  %v349_v55 = vmul.f32 0.2, %v221_v45  ;;  %v154_v56 = vmul.f32 %v792_v1, %v621_v47 }
  0x10   :  { %538 = vst.msk [vmem:[%s1285_s3 + $0xc] sm:$0xf] %vm534_vm0, %v473_v41  ;;  %v412_v57 = vsel %vm284_vm7, %v220_v44, %v348_v52  ;;  %v155_v58 = vmul.f32 %v792_v1, %v622_v48  ;;  %v156_v59 = vmul.f32 %v792_v1, %v625_v49  ;;  %v626_v60 = vunpack.c.h.bf16 %v735_v39 }
  0x11   :  { %539 = vst.msk [vmem:[%s1285_s3 + $0x10] sm:$0xf] %vm534_vm0, %v474_v50  ;;  %v476_v61 = vpack.c.bf16 %v412_v57, %v412_v57  ;;  %v413_v62 = vsel %vm285_vm8, %v221_v45, %v349_v55  ;;  %v222_v63 = vadd.f32 %v797_v3, %v154_v56  ;;  %v629_v0 = vunpack.c.l.bf16 %v736_v53 }
  0x12   :  { %540 = vst.msk [vmem:[%s1285_s3 + $0x14] sm:$0xf] %vm534_vm0, %v475_v54  ;;  %v477_v2 = vpack.c.bf16 %v413_v62, %v413_v62  ;;  %v223_v4 = vadd.f32 %v797_v3, %v155_v58  ;;  %v224_v5 = vadd.f32 %v797_v3, %v156_v59  ;;  %v157_v6 = vmul.f32 %v792_v1, %v626_v60 }
  0x13   :  { %541 = vst.msk [vmem:[%s1285_s3 + $0x18] sm:$0xf] %vm534_vm0, %v476_v61  ;;  %vm286_vm9 = vcmp.gt.f32.partialorder %v222_v63, 0.0  ;;  %v350_v7 = vmul.f32 0.2, %v222_v63  ;;  %v158_v8 = vmul.f32 %v792_v1, %v629_v0  ;;  %v630_v9 = vunpack.c.h.bf16 %v736_v53  ;;  %v741_v0 = vld [vmem:[%s1282_s0 + $0x58] sm:$0xff]  }
  0x14   :  { %542 = vst.msk [vmem:[%s1285_s3 + $0x1c] sm:$0xf] %vm534_vm0, %v477_v2  ;;  %vm287_vm10 = vcmp.gt.f32.partialorder %v223_v4, 0.0  ;;  %v351_v10 = vmul.f32 0.2, %v223_v4  ;;  %vm288_vm11 = vcmp.gt.f32.partialorder %v224_v5, 0.0  ;;  %v225_v11 = vadd.f32 %v797_v3, %v157_v6 }
  0x15   :  { %v414_v12 = vsel %vm286_vm9, %v222_v63, %v350_v7  ;;  %v352_v13 = vmul.f32 0.2, %v224_v5  ;;  %v226_v14 = vadd.f32 %v797_v3, %v158_v8  ;;  %v159_v15 = vmul.f32 %v792_v1, %v630_v9  ;;  %v742_v6 = vld [vmem:[%s1282_s0 + $0x60] sm:$0xff]  }
  0x16   :  { %v478_v17 = vpack.c.bf16 %v414_v12, %v414_v12  ;;  %v415_v18 = vsel %vm287_vm10, %v223_v4, %v351_v10  ;;  %vm289_vm12 = vcmp.gt.f32.partialorder %v225_v11, 0.0  ;;  %v353_v19 = vmul.f32 0.2, %v225_v11 }
  0x17   :  { %v479_v21 = vpack.c.bf16 %v415_v18, %v415_v18  ;;  %v416_v22 = vsel %vm288_vm11, %v224_v5, %v352_v13  ;;  %vm290_vm13 = vcmp.gt.f32.partialorder %v226_v14, 0.0  ;;  %v354_v23 = vmul.f32 0.2, %v226_v14 }
  0x18   :  { %543 = vst.msk [vmem:[%s1285_s3 + $0x20] sm:$0xf] %vm534_vm0, %v478_v17  ;;  %v480_v24 = vpack.c.bf16 %v416_v22, %v416_v22  ;;  %v417_v25 = vsel %vm289_vm12, %v225_v11, %v353_v19  ;;  %v227_v26 = vadd.f32 %v797_v3, %v159_v15  ;;  %v633_v27 = vunpack.c.l.bf16 %v737_v16  ;;  %v743_v11 = vld [vmem:[%s1282_s0 + $0x68] sm:$0xff]  }
  0x19   :  { %544 = vst.msk [vmem:[%s1285_s3 + $0x24] sm:$0xf] %vm534_vm0, %v479_v21  ;;  %v481_v29 = vpack.c.bf16 %v417_v25, %v417_v25  ;;  %v418_v30 = vsel %vm290_vm13, %v226_v14, %v354_v23  ;;  %v634_v31 = vunpack.c.h.bf16 %v737_v16  ;;  %v637_v32 = vunpack.c.l.bf16 %v738_v20 }
  0x1a   :  { %545 = vst.msk [vmem:[%s1285_s3 + $0x28] sm:$0xf] %vm534_vm0, %v480_v24  ;;  %v482_v34 = vpack.c.bf16 %v418_v30, %v418_v30  ;;  %vm291_vm14 = vcmp.gt.f32.partialorder %v227_v26, 0.0  ;;  %v355_v35 = vmul.f32 0.2, %v227_v26  ;;  %v160_v36 = vmul.f32 %v792_v1, %v633_v27 }
  0x1b   :  { %546 = vst.msk [vmem:[%s1285_s3 + $0x2c] sm:$0xf] %vm534_vm0, %v481_v29  ;;  %v161_v37 = vmul.f32 %v792_v1, %v634_v31  ;;  %v162_v38 = vmul.f32 %v792_v1, %v637_v32  ;;  %v638_v39 = vunpack.c.h.bf16 %v738_v20  ;;  %v641_v40 = vunpack.c.l.bf16 %v739_v28 }
  0x1c   :  { %547 = vst.msk [vmem:[%s1285_s3 + $0x30] sm:$0xf] %vm534_vm0, %v482_v34  ;;  %v419_v41 = vsel %vm291_vm14, %v227_v26, %v355_v35  ;;  %v228_v42 = vadd.f32 %v797_v3, %v160_v36  ;;  %v642_v43 = vunpack.c.h.bf16 %v739_v28  ;;  %v645_v44 = vunpack.c.l.bf16 %v897_v33 }
  0x1d   :  { %v483_v45 = vpack.c.bf16 %v419_v41, %v419_v41  ;;  %v229_v46 = vadd.f32 %v797_v3, %v161_v37  ;;  %v230_v47 = vadd.f32 %v797_v3, %v162_v38  ;;  %v163_v48 = vmul.f32 %v792_v1, %v638_v39 }
  0x1e   :  { %vm292_vm15 = vcmp.gt.f32.partialorder %v228_v42, 0.0  ;;  %v356_v49 = vmul.f32 0.2, %v228_v42  ;;  %v164_v50 = vmul.f32 %v792_v1, %v641_v40  ;;  %v165_v51 = vmul.f32 %v792_v1, %v642_v43  ;;  %v744_v43 = vld [vmem:[%s1282_s0 + $0x70] sm:$0xff]  }
  0x1f   :  { %548 = vst.msk [vmem:[%s1285_s3 + $0x34] sm:$0xf] %vm534_vm0, %v483_v45  ;;  %vm293_vm1 = vcmp.gt.f32.partialorder %v229_v46, 0.0  ;;  %v357_v52 = vmul.f32 0.2, %v229_v46  ;;  %vm294_vm2 = vcmp.gt.f32.partialorder %v230_v47, 0.0  ;;  %v231_v53 = vadd.f32 %v797_v3, %v163_v48 }
  0x20   :  { %v420_v54 = vsel %vm292_vm15, %v228_v42, %v356_v49  ;;  %v358_v55 = vmul.f32 0.2, %v230_v47  ;;  %v232_v56 = vadd.f32 %v797_v3, %v164_v50  ;;  %v233_v57 = vadd.f32 %v797_v3, %v165_v51  ;;  %v745_v48 = vld [vmem:[%s1282_s0 + $0x78] sm:$0xff]  }
  0x21   :  { %v484_v58 = vpack.c.bf16 %v420_v54, %v420_v54  ;;  %v421_v59 = vsel %vm293_vm1, %v229_v46, %v357_v52  ;;  %vm295_vm3 = vcmp.gt.f32.partialorder %v231_v53, 0.0  ;;  %v359_v60 = vmul.f32 0.2, %v231_v53 }
  0x22   :  { %v485_v61 = vpack.c.bf16 %v421_v59, %v421_v59  ;;  %v422_v62 = vsel %vm294_vm2, %v230_v47, %v358_v55  ;;  %vm296_vm4 = vcmp.gt.f32.partialorder %v232_v56, 0.0  ;;  %v360_v63 = vmul.f32 0.2, %v232_v56  ;;  %v746_v59 = vld [vmem:[%s1282_s0 + $0x80] sm:$0xff]  }
  0x23   :  { %549 = vst.msk [vmem:[%s1285_s3 + $0x38] sm:$0xf] %vm534_vm0, %v484_v58  ;;  %v486_v2 = vpack.c.bf16 %v422_v62, %v422_v62  ;;  %v423_v4 = vsel %vm295_vm3, %v231_v53, %v359_v60  ;;  %vm297_vm5 = vcmp.gt.f32.partialorder %v233_v57, 0.0  ;;  %v361_v5 = vmul.f32 0.2, %v233_v57 }
  0x24   :  { %550 = vst.msk [vmem:[%s1285_s3 + $0x3c] sm:$0xf] %vm534_vm0, %v485_v61  ;;  %v487_v7 = vpack.c.bf16 %v423_v4, %v423_v4  ;;  %v424_v8 = vsel %vm296_vm4, %v232_v56, %v360_v63  ;;  %v166_v9 = vmul.f32 %v792_v1, %v645_v44  ;;  %v646_v10 = vunpack.c.h.bf16 %v897_v33 }
  0x25   :  { %551 = vst.msk [vmem:[%s1285_s3 + $0x40] sm:$0xf] %vm534_vm0, %v486_v2  ;;  %v488_v12 = vpack.c.bf16 %v424_v8, %v424_v8  ;;  %v425_v13 = vsel %vm297_vm5, %v233_v57, %v361_v5  ;;  %v649_v14 = vunpack.c.l.bf16 %v741_v0  ;;  %v650_v15 = vunpack.c.h.bf16 %v741_v0 }
  0x26   :  { %552 = vst.msk [vmem:[%s1285_s3 + $0x44] sm:$0xf] %vm534_vm0, %v487_v7  ;;  %v489_v16 = vpack.c.bf16 %v425_v13, %v425_v13  ;;  %v234_v17 = vadd.f32 %v797_v3, %v166_v9  ;;  %v167_v18 = vmul.f32 %v792_v1, %v646_v10  ;;  %v653_v19 = vunpack.c.l.bf16 %v742_v6 }
  0x27   :  { %553 = vst.msk [vmem:[%s1285_s3 + $0x48] sm:$0xf] %vm534_vm0, %v488_v12  ;;  %v168_v20 = vmul.f32 %v792_v1, %v649_v14  ;;  %v169_v21 = vmul.f32 %v792_v1, %v650_v15  ;;  %v654_v22 = vunpack.c.h.bf16 %v742_v6  ;;  %v657_v23 = vunpack.c.l.bf16 %v743_v11 }
  0x28   :  { %554 = vst.msk [vmem:[%s1285_s3 + $0x4c] sm:$0xf] %vm534_vm0, %v489_v16  ;;  %vm298_vm6 = vcmp.gt.f32.partialorder %v234_v17, 0.0  ;;  %v362_v24 = vmul.f32 0.2, %v234_v17  ;;  %v235_v25 = vadd.f32 %v797_v3, %v167_v18  ;;  %v170_v26 = vmul.f32 %v792_v1, %v653_v19  ;;  %v747_v18 = vld [vmem:[%s1282_s0 + $0x88] sm:$0xff]  }
  0x29   :  { %v236_v27 = vadd.f32 %v797_v3, %v168_v20  ;;  %v237_v28 = vadd.f32 %v797_v3, %v169_v21  ;;  %v171_v29 = vmul.f32 %v792_v1, %v654_v22  ;;  %v172_v30 = vmul.f32 %v792_v1, %v657_v23 }
  0x2a   :  { %v426_v31 = vsel %vm298_vm6, %v234_v17, %v362_v24  ;;  %vm299_vm7 = vcmp.gt.f32.partialorder %v235_v25, 0.0  ;;  %v363_v32 = vmul.f32 0.2, %v235_v25  ;;  %v238_v33 = vadd.f32 %v797_v3, %v170_v26  ;;  %v748_v26 = vld [vmem:[%s1282_s0 + $0x90] sm:$0xff]  }
  0x2b   :  { %v490_v34 = vpack.c.bf16 %v426_v31, %v426_v31  ;;  %vm300_vm8 = vcmp.gt.f32.partialorder %v236_v27, 0.0  ;;  %v364_v35 = vmul.f32 0.2, %v236_v27  ;;  %vm301_vm9 = vcmp.gt.f32.partialorder %v237_v28, 0.0  ;;  %v749_v31 = vld [vmem:[%s1282_s0 + $0x98] sm:$0xff]  }
  0x2c   :  { %v427_v36 = vsel %vm299_vm7, %v235_v25, %v363_v32  ;;  %v365_v37 = vmul.f32 0.2, %v237_v28  ;;  %vm302_vm10 = vcmp.gt.f32.partialorder %v238_v33, 0.0  ;;  %v366_v38 = vmul.f32 0.2, %v238_v33 }
  0x2d   :  { %555 = vst.msk [vmem:[%s1285_s3 + $0x50] sm:$0xf] %vm534_vm0, %v490_v34  ;;  %v491_v39 = vpack.c.bf16 %v427_v36, %v427_v36  ;;  %v428_v40 = vsel %vm300_vm8, %v236_v27, %v364_v35  ;;  %v239_v41 = vadd.f32 %v797_v3, %v171_v29  ;;  %v240_v42 = vadd.f32 %v797_v3, %v172_v30 }
  0x2e   :  { %v492_v44 = vpack.c.bf16 %v428_v40, %v428_v40  ;;  %v429_v45 = vsel %vm301_vm9, %v237_v28, %v365_v37  ;;  %v430_v46 = vsel %vm302_vm10, %v238_v33, %v366_v38  ;;  %v658_v47 = vunpack.c.h.bf16 %v743_v11 }
  0x2f   :  { %556 = vst.msk [vmem:[%s1285_s3 + $0x54] sm:$0xf] %vm534_vm0, %v491_v39  ;;  %v493_v49 = vpack.c.bf16 %v429_v45, %v429_v45  ;;  %v494_v50 = vpack.c.bf16 %v430_v46, %v430_v46  ;;  %vm303_vm11 = vcmp.gt.f32.partialorder %v239_v41, 0.0  ;;  %v367_v51 = vmul.f32 0.2, %v239_v41 }
  0x30   :  { %557 = vst.msk [vmem:[%s1285_s3 + $0x58] sm:$0xf] %vm534_vm0, %v492_v44  ;;  %vm304_vm12 = vcmp.gt.f32.partialorder %v240_v42, 0.0  ;;  %v368_v52 = vmul.f32 0.2, %v240_v42  ;;  %v173_v53 = vmul.f32 %v792_v1, %v658_v47  ;;  %v661_v54 = vunpack.c.l.bf16 %v744_v43 }
  0x31   :  { %558 = vst.msk [vmem:[%s1285_s3 + $0x5c] sm:$0xf] %vm534_vm0, %v493_v49  ;;  %v431_v55 = vsel %vm303_vm11, %v239_v41, %v367_v51  ;;  %v662_v56 = vunpack.c.h.bf16 %v744_v43  ;;  %v665_v57 = vunpack.c.l.bf16 %v745_v48  ;;  %v666_v58 = vunpack.c.h.bf16 %v745_v48 }
  0x32   :  { %559 = vst.msk [vmem:[%s1285_s3 + $0x60] sm:$0xf] %vm534_vm0, %v494_v50  ;;  %v495_v60 = vpack.c.bf16 %v431_v55, %v431_v55  ;;  %v432_v61 = vsel %vm304_vm12, %v240_v42, %v368_v52  ;;  %v241_v62 = vadd.f32 %v797_v3, %v173_v53  ;;  %v174_v63 = vmul.f32 %v792_v1, %v661_v54  ;;  %v750_v50 = vld [vmem:[%s1282_s0 + $0xa0] sm:$0xff]  }
  0x33   :  { %v496_v0 = vpack.c.bf16 %v432_v61, %v432_v61  ;;  %v175_v2 = vmul.f32 %v792_v1, %v662_v56  ;;  %v176_v4 = vmul.f32 %v792_v1, %v665_v57  ;;  %v177_v5 = vmul.f32 %v792_v1, %v666_v58 }
  0x34   :  { %560 = vst.msk [vmem:[%s1285_s3 + $0x64] sm:$0xf] %vm534_vm0, %v495_v60  ;;  %vm305_vm13 = vcmp.gt.f32.partialorder %v241_v62, 0.0  ;;  %v369_v6 = vmul.f32 0.2, %v241_v62  ;;  %v242_v7 = vadd.f32 %v797_v3, %v174_v63  ;;  %v669_v8 = vunpack.c.l.bf16 %v746_v59 }
  0x35   :  { %561 = vst.msk [vmem:[%s1285_s3 + $0x68] sm:$0xf] %vm534_vm0, %v496_v0  ;;  %v243_v9 = vadd.f32 %v797_v3, %v175_v2  ;;  %v244_v10 = vadd.f32 %v797_v3, %v176_v4  ;;  %v245_v11 = vadd.f32 %v797_v3, %v177_v5  ;;  %v670_v12 = vunpack.c.h.bf16 %v746_v59 }
  0x36   :  { %v433_v13 = vsel %vm305_vm13, %v241_v62, %v369_v6  ;;  %vm306_vm14 = vcmp.gt.f32.partialorder %v242_v7, 0.0  ;;  %v370_v14 = vmul.f32 0.2, %v242_v7  ;;  %v178_v15 = vmul.f32 %v792_v1, %v669_v8 }
  0x37   :  { %v497_v16 = vpack.c.bf16 %v433_v13, %v433_v13  ;;  %vm307_vm15 = vcmp.gt.f32.partialorder %v243_v9, 0.0  ;;  %v371_v17 = vmul.f32 0.2, %v243_v9  ;;  %vm308_vm1 = vcmp.gt.f32.partialorder %v244_v10, 0.0 }
  0x38   :  { %v434_v19 = vsel %vm306_vm14, %v242_v7, %v370_v14  ;;  %v372_v20 = vmul.f32 0.2, %v244_v10  ;;  %vm309_vm2 = vcmp.gt.f32.partialorder %v245_v11, 0.0  ;;  %v373_v21 = vmul.f32 0.2, %v245_v11  ;;  %v751_v7 = vld [vmem:[%s1282_s0 + $0xa8] sm:$0xff]  }
  0x39   :  { %562 = vst.msk [vmem:[%s1285_s3 + $0x6c] sm:$0xf] %vm534_vm0, %v497_v16  ;;  %v498_v22 = vpack.c.bf16 %v434_v19, %v434_v19  ;;  %v435_v23 = vsel %vm307_vm15, %v243_v9, %v371_v17  ;;  %v246_v24 = vadd.f32 %v797_v3, %v178_v15  ;;  %v179_v25 = vmul.f32 %v792_v1, %v670_v12  ;;  %v752_v16 = vld [vmem:[%s1282_s0 + $0xb0] sm:$0xff]  }
  0x3a   :  { %v499_v27 = vpack.c.bf16 %v435_v23, %v435_v23  ;;  %v436_v28 = vsel %vm308_vm1, %v244_v10, %v372_v20  ;;  %v437_v29 = vsel %vm309_vm2, %v245_v11, %v373_v21  ;;  %v673_v30 = vunpack.c.l.bf16 %v747_v18  ;;  %v753_v21 = vld [vmem:[%s1282_s0 + $0xb8] sm:$0xff]  }
  0x3b   :  { %563 = vst.msk [vmem:[%s1285_s3 + $0x70] sm:$0xf] %vm534_vm0, %v498_v22  ;;  %v500_v32 = vpack.c.bf16 %v436_v28, %v436_v28  ;;  %v501_v33 = vpack.c.bf16 %v437_v29, %v437_v29  ;;  %vm310_vm3 = vcmp.gt.f32.partialorder %v246_v24, 0.0  ;;  %v374_v34 = vmul.f32 0.2, %v246_v24 }
  0x3c   :  { %564 = vst.msk [vmem:[%s1285_s3 + $0x74] sm:$0xf] %vm534_vm0, %v499_v27  ;;  %v247_v35 = vadd.f32 %v797_v3, %v179_v25  ;;  %v180_v36 = vmul.f32 %v792_v1, %v673_v30  ;;  %v674_v37 = vunpack.c.h.bf16 %v747_v18  ;;  %v677_v38 = vunpack.c.l.bf16 %v748_v26 }
  0x3d   :  { %565 = vst.msk [vmem:[%s1285_s3 + $0x78] sm:$0xf] %vm534_vm0, %v500_v32  ;;  %v438_v39 = vsel %vm310_vm3, %v246_v24, %v374_v34  ;;  %v678_v40 = vunpack.c.h.bf16 %v748_v26  ;;  %v681_v41 = vunpack.c.l.bf16 %v749_v31  ;;  %v682_v42 = vunpack.c.h.bf16 %v749_v31 }
  0x3e   :  { %566 = vst.msk [vmem:[%s1285_s3 + $0x7c] sm:$0xf] %vm534_vm0, %v501_v33  ;;  %v502_v43 = vpack.c.bf16 %v438_v39, %v438_v39  ;;  %vm311_vm4 = vcmp.gt.f32.partialorder %v247_v35, 0.0  ;;  %v375_v44 = vmul.f32 0.2, %v247_v35  ;;  %v248_v45 = vadd.f32 %v797_v3, %v180_v36 }
  0x3f   :  { %v181_v46 = vmul.f32 %v792_v1, %v674_v37  ;;  %v182_v47 = vmul.f32 %v792_v1, %v677_v38  ;;  %v183_v48 = vmul.f32 %v792_v1, %v678_v40  ;;  %v184_v49 = vmul.f32 %v792_v1, %v681_v41 }
  0x40   :  { %567 = vst.msk [vmem:[%s1285_s3 + $0x80] sm:$0xf] %vm534_vm0, %v502_v43  ;;  %v439_v51 = vsel %vm311_vm4, %v247_v35, %v375_v44  ;;  %vm312_vm5 = vcmp.gt.f32.partialorder %v248_v45, 0.0  ;;  %v376_v52 = vmul.f32 0.2, %v248_v45  ;;  %v185_v53 = vmul.f32 %v792_v1, %v682_v42 }
  0x41   :  { %v503_v54 = vpack.c.bf16 %v439_v51, %v439_v51  ;;  %v249_v55 = vadd.f32 %v797_v3, %v181_v46  ;;  %v250_v56 = vadd.f32 %v797_v3, %v182_v47  ;;  %v251_v57 = vadd.f32 %v797_v3, %v183_v48 }
  0x42   :  { %v440_v58 = vsel %vm312_vm5, %v248_v45, %v376_v52  ;;  %v252_v59 = vadd.f32 %v797_v3, %v184_v49  ;;  %v253_v60 = vadd.f32 %v797_v3, %v185_v53  ;;  %v685_v61 = vunpack.c.l.bf16 %v750_v50  ;;  %v754_v52 = vld [vmem:[%s1282_s0 + $0xc0] sm:$0xff]   ;;  %v755_v53 = vld [vmem:[%s1282_s0 + $0xc8] sm:$0xff]  }
  0x43   :  { %568 = vst.msk [vmem:[%s1285_s3 + $0x84] sm:$0xf] %vm534_vm0, %v503_v54  ;;  %v504_v62 = vpack.c.bf16 %v440_v58, %v440_v58  ;;  %vm313_vm6 = vcmp.gt.f32.partialorder %v249_v55, 0.0  ;;  %v377_v63 = vmul.f32 0.2, %v249_v55  ;;  %vm314_vm7 = vcmp.gt.f32.partialorder %v250_v56, 0.0 }
  0x44   :  { %v378_v0 = vmul.f32 0.2, %v250_v56  ;;  %vm315_vm8 = vcmp.gt.f32.partialorder %v251_v57, 0.0  ;;  %v379_v2 = vmul.f32 0.2, %v251_v57  ;;  %vm316_vm9 = vcmp.gt.f32.partialorder %v252_v59, 0.0 }
  0x45   :  { %569 = vst.msk [vmem:[%s1285_s3 + $0x88] sm:$0xf] %vm534_vm0, %v504_v62  ;;  %v441_v4 = vsel %vm313_vm6, %v249_v55, %v377_v63  ;;  %v380_v5 = vmul.f32 0.2, %v252_v59  ;;  %vm317_vm10 = vcmp.gt.f32.partialorder %v253_v60, 0.0  ;;  %v186_v6 = vmul.f32 %v792_v1, %v685_v61 }
  0x46   :  { %v505_v8 = vpack.c.bf16 %v441_v4, %v441_v4  ;;  %v442_v9 = vsel %vm314_vm7, %v250_v56, %v378_v0  ;;  %v443_v10 = vsel %vm315_vm8, %v251_v57, %v379_v2  ;;  %v381_v11 = vmul.f32 0.2, %v253_v60  ;;  %v756_v2 = vld [vmem:[%s1282_s0 + $0xd0] sm:$0xff]  }
  0x47   :  { %v506_v12 = vpack.c.bf16 %v442_v9, %v442_v9  ;;  %v507_v13 = vpack.c.bf16 %v443_v10, %v443_v10  ;;  %v444_v14 = vsel %vm316_vm9, %v252_v59, %v380_v5  ;;  %v254_v15 = vadd.f32 %v797_v3, %v186_v6 }
  0x48   :  { %570 = vst.msk [vmem:[%s1285_s3 + $0x8c] sm:$0xf] %vm534_vm0, %v505_v8  ;;  %v508_v17 = vpack.c.bf16 %v444_v14, %v444_v14  ;;  %v445_v18 = vsel %vm317_vm10, %v253_v60, %v381_v11  ;;  %v686_v19 = vunpack.c.h.bf16 %v750_v50  ;;  %v689_v20 = vunpack.c.l.bf16 %v751_v7  ;;  %v757_v11 = vld [vmem:[%s1282_s0 + $0xd8] sm:$0xff]  }
  0x49   :  { %571 = vst.msk [vmem:[%s1285_s3 + $0x90] sm:$0xf] %vm534_vm0, %v506_v12  ;;  %v509_v22 = vpack.c.bf16 %v445_v18, %v445_v18  ;;  %vm318_vm11 = vcmp.gt.f32.partialorder %v254_v15, 0.0  ;;  %v382_v23 = vmul.f32 0.2, %v254_v15  ;;  %v690_v24 = vunpack.c.h.bf16 %v751_v7 }
  0x4a   :  { %572 = vst.msk [vmem:[%s1285_s3 + $0x94] sm:$0xf] %vm534_vm0, %v507_v13  ;;  %v187_v25 = vmul.f32 %v792_v1, %v686_v19  ;;  %v188_v26 = vmul.f32 %v792_v1, %v689_v20  ;;  %v693_v27 = vunpack.c.l.bf16 %v752_v16  ;;  %v694_v28 = vunpack.c.h.bf16 %v752_v16 }
  0x4b   :  { %573 = vst.msk [vmem:[%s1285_s3 + $0x98] sm:$0xf] %vm534_vm0, %v508_v17  ;;  %v446_v29 = vsel %vm318_vm11, %v254_v15, %v382_v23  ;;  %v189_v30 = vmul.f32 %v792_v1, %v690_v24  ;;  %v697_v31 = vunpack.c.l.bf16 %v753_v21  ;;  %v698_v32 = vunpack.c.h.bf16 %v753_v21 }
  0x4c   :  { %574 = vst.msk [vmem:[%s1285_s3 + $0x9c] sm:$0xf] %vm534_vm0, %v509_v22  ;;  %v510_v33 = vpack.c.bf16 %v446_v29, %v446_v29  ;;  %v255_v34 = vadd.f32 %v797_v3, %v187_v25  ;;  %v256_v35 = vadd.f32 %v797_v3, %v188_v26  ;;  %v190_v36 = vmul.f32 %v792_v1, %v693_v27 }
  0x4d   :  { %v257_v37 = vadd.f32 %v797_v3, %v189_v30  ;;  %v191_v38 = vmul.f32 %v792_v1, %v694_v28  ;;  %v192_v39 = vmul.f32 %v792_v1, %v697_v31  ;;  %v193_v40 = vmul.f32 %v792_v1, %v698_v32 }
  0x4e   :  { %575 = vst.msk [vmem:[%s1285_s3 + $0xa0] sm:$0xf] %vm534_vm0, %v510_v33  ;;  %vm319_vm12 = vcmp.gt.f32.partialorder %v255_v34, 0.0  ;;  %v383_v41 = vmul.f32 0.2, %v255_v34  ;;  %vm320_vm13 = vcmp.gt.f32.partialorder %v256_v35, 0.0  ;;  %v258_v42 = vadd.f32 %v797_v3, %v190_v36 }
  0x4f   :  { %v384_v43 = vmul.f32 0.2, %v256_v35  ;;  %vm321_vm14 = vcmp.gt.f32.partialorder %v257_v37, 0.0  ;;  %v385_v44 = vmul.f32 0.2, %v257_v37  ;;  %v259_v45 = vadd.f32 %v797_v3, %v191_v38  ;;  %v758_v36 = vld [vmem:[%s1282_s0 + $0xe0] sm:$0xff]  }
  0x50   :  { %v447_v46 = vsel %vm319_vm12, %v255_v34, %v383_v41  ;;  %vm322_vm15 = vcmp.gt.f32.partialorder %v258_v42, 0.0  ;;  %v386_v47 = vmul.f32 0.2, %v258_v42  ;;  %v260_v48 = vadd.f32 %v797_v3, %v192_v39 }
  0x51   :  { %v511_v49 = vpack.c.bf16 %v447_v46, %v447_v46  ;;  %v448_v50 = vsel %vm320_vm13, %v256_v35, %v384_v43  ;;  %v449_v51 = vsel %vm321_vm14, %v257_v37, %v385_v44  ;;  %vm323_vm1 = vcmp.gt.f32.partialorder %v259_v45, 0.0 }
  0x52   :  { %v512_v54 = vpack.c.bf16 %v448_v50, %v448_v50  ;;  %v513_v55 = vpack.c.bf16 %v449_v51, %v449_v51  ;;  %v450_v56 = vsel %vm322_vm15, %v258_v42, %v386_v47  ;;  %v387_v57 = vmul.f32 0.2, %v259_v45  ;;  %v759_v47 = vld [vmem:[%s1282_s0 + $0xe8] sm:$0xff]  }
  0x53   :  { %576 = vst.msk [vmem:[%s1285_s3 + $0xa4] sm:$0xf] %vm534_vm0, %v511_v49  ;;  %v514_v58 = vpack.c.bf16 %v450_v56, %v450_v56  ;;  %vm324_vm2 = vcmp.gt.f32.partialorder %v260_v48, 0.0  ;;  %v388_v59 = vmul.f32 0.2, %v260_v48  ;;  %v261_v60 = vadd.f32 %v797_v3, %v193_v40 }
  0x54   :  { %577 = vst.msk [vmem:[%s1285_s3 + $0xa8] sm:$0xf] %vm534_vm0, %v512_v54  ;;  %v451_v61 = vsel %vm323_vm1, %v259_v45, %v387_v57  ;;  %v701_v62 = vunpack.c.l.bf16 %v754_v52  ;;  %v702_v63 = vunpack.c.h.bf16 %v754_v52  ;;  %v705_v0 = vunpack.c.l.bf16 %v755_v53 }
  0x55   :  { %578 = vst.msk [vmem:[%s1285_s3 + $0xac] sm:$0xf] %vm534_vm0, %v513_v55  ;;  %v515_v4 = vpack.c.bf16 %v451_v61, %v451_v61  ;;  %v452_v5 = vsel %vm324_vm2, %v260_v48, %v388_v59  ;;  %vm325_vm3 = vcmp.gt.f32.partialorder %v261_v60, 0.0  ;;  %v389_v6 = vmul.f32 0.2, %v261_v60  ;;  %v760_v55 = vld [vmem:[%s1282_s0 + $0xf0] sm:$0xff]  }
  0x56   :  { %579 = vst.msk [vmem:[%s1285_s3 + $0xb0] sm:$0xf] %vm534_vm0, %v514_v58  ;;  %v516_v7 = vpack.c.bf16 %v452_v5, %v452_v5  ;;  %v194_v8 = vmul.f32 %v792_v1, %v701_v62  ;;  %v195_v9 = vmul.f32 %v792_v1, %v702_v63  ;;  %v196_v10 = vmul.f32 %v792_v1, %v705_v0 }
  0x57   :  { %580 = vst.msk [vmem:[%s1285_s3 + $0xb4] sm:$0xf] %vm534_vm0, %v515_v4  ;;  %v453_v12 = vsel %vm325_vm3, %v261_v60, %v389_v6  ;;  %v706_v13 = vunpack.c.h.bf16 %v755_v53  ;;  %v709_v14 = vunpack.c.l.bf16 %v756_v2  ;;  %v710_v15 = vunpack.c.h.bf16 %v756_v2 }
  0x58   :  { %581 = vst.msk [vmem:[%s1285_s3 + $0xb8] sm:$0xf] %vm534_vm0, %v516_v7  ;;  %v517_v16 = vpack.c.bf16 %v453_v12, %v453_v12  ;;  %v262_v17 = vadd.f32 %v797_v3, %v194_v8  ;;  %v263_v18 = vadd.f32 %v797_v3, %v195_v9  ;;  %v264_v19 = vadd.f32 %v797_v3, %v196_v10 }
  0x59   :  { %v197_v20 = vmul.f32 %v792_v1, %v706_v13  ;;  %v198_v21 = vmul.f32 %v792_v1, %v709_v14  ;;  %v199_v22 = vmul.f32 %v792_v1, %v710_v15  ;;  %v713_v23 = vunpack.c.l.bf16 %v757_v11  ;;  %v761_v15 = vld [vmem:[%s1282_s0 + $0xf8] sm:$0xff]  }
  0x5a   :  { %582 = vst.msk [vmem:[%s1285_s3 + $0xbc] sm:$0xf] %vm534_vm0, %v517_v16  ;;  %vm326_vm4 = vcmp.gt.f32.partialorder %v262_v17, 0.0  ;;  %v390_v24 = vmul.f32 0.2, %v262_v17  ;;  %vm327_vm5 = vcmp.gt.f32.partialorder %v263_v18, 0.0  ;;  %v714_v25 = vunpack.c.h.bf16 %v757_v11 }
  0x5b   :  { %v391_v26 = vmul.f32 0.2, %v263_v18  ;;  %vm328_vm6 = vcmp.gt.f32.partialorder %v264_v19, 0.0  ;;  %v392_v27 = vmul.f32 0.2, %v264_v19  ;;  %v265_v28 = vadd.f32 %v797_v3, %v197_v20 }
  0x5c   :  { %v454_v29 = vsel %vm326_vm4, %v262_v17, %v390_v24  ;;  %v266_v30 = vadd.f32 %v797_v3, %v198_v21  ;;  %v267_v31 = vadd.f32 %v797_v3, %v199_v22  ;;  %v200_v32 = vmul.f32 %v792_v1, %v713_v23 }
  0x5d   :  { %v518_v33 = vpack.c.bf16 %v454_v29, %v454_v29  ;;  %v455_v34 = vsel %vm327_vm5, %v263_v18, %v391_v26  ;;  %v456_v35 = vsel %vm328_vm6, %v264_v19, %v392_v27  ;;  %vm329_vm7 = vcmp.gt.f32.partialorder %v265_v28, 0.0 }
  0x5e   :  { %v519_v37 = vpack.c.bf16 %v455_v34, %v455_v34  ;;  %v520_v38 = vpack.c.bf16 %v456_v35, %v456_v35  ;;  %v393_v39 = vmul.f32 0.2, %v265_v28  ;;  %vm330_vm8 = vcmp.gt.f32.partialorder %v266_v30, 0.0  ;;  %v765_v35 = vld [vmem:[%s1284_s2] ss:$0 sm:$0xff] }
  0x5f   :  { %583 = vst.msk [vmem:[%s1285_s3 + $0xc0] sm:$0xf] %vm534_vm0, %v518_v33  ;;  %v394_v40 = vmul.f32 0.2, %v266_v30  ;;  %vm331_vm9 = vcmp.gt.f32.partialorder %v267_v31, 0.0  ;;  %v268_v41 = vadd.f32 %v797_v3, %v200_v32  ;;  %v201_v42 = vmul.f32 %v792_v1, %v714_v25 }
  0x60   :  { %584 = vst.msk [vmem:[%s1285_s3 + $0xc4] sm:$0xf] %vm534_vm0, %v519_v37  ;;  %v457_v43 = vsel %vm329_vm7, %v265_v28, %v393_v39  ;;  %v395_v44 = vmul.f32 0.2, %v267_v31  ;;  %v717_v45 = vunpack.c.l.bf16 %v758_v36  ;;  %v718_v46 = vunpack.c.h.bf16 %v758_v36  ;;  %v764_v28 = vld [vmem:[%s1283_s1] ss:$0 sm:$0xff] }
  0x61   :  { %585 = vst.msk [vmem:[%s1285_s3 + $0xc8] sm:$0xf] %vm534_vm0, %v520_v38  ;;  %v521_v48 = vpack.c.bf16 %v457_v43, %v457_v43  ;;  %v458_v49 = vsel %vm330_vm8, %v266_v30, %v394_v40  ;;  %vm332_vm10 = vcmp.gt.f32.partialorder %v268_v41, 0.0  ;;  %v396_v50 = vmul.f32 0.2, %v268_v41 }
  0x62   :  { %v522_v51 = vpack.c.bf16 %v458_v49, %v458_v49  ;;  %v459_v52 = vsel %vm331_vm9, %v267_v31, %v395_v44  ;;  %v269_v53 = vadd.f32 %v797_v3, %v201_v42  ;;  %v202_v54 = vmul.f32 %v792_v1, %v717_v45 }
  0x63   :  { %586 = vst.msk [vmem:[%s1285_s3 + $0xcc] sm:$0xf] %vm534_vm0, %v521_v48  ;;  %v523_v56 = vpack.c.bf16 %v459_v52, %v459_v52  ;;  %v460_v57 = vsel %vm332_vm10, %v268_v41, %v396_v50  ;;  %v203_v58 = vmul.f32 %v792_v1, %v718_v46  ;;  %v721_v59 = vunpack.c.l.bf16 %v759_v47 }
  0x64   :  { %587 = vst.msk [vmem:[%s1285_s3 + $0xd0] sm:$0xf] %vm534_vm0, %v522_v51  ;;  %v524_v60 = vpack.c.bf16 %v460_v57, %v460_v57  ;;  %vm333_vm11 = vcmp.gt.f32.partialorder %v269_v53, 0.0  ;;  %v397_v61 = vmul.f32 0.2, %v269_v53  ;;  %v270_v62 = vadd.f32 %v797_v3, %v202_v54 }
  0x65   :  { %588 = vst.msk [vmem:[%s1285_s3 + $0xd4] sm:$0xf] %vm534_vm0, %v523_v56  ;;  %v271_v63 = vadd.f32 %v797_v3, %v203_v58  ;;  %v204_v0 = vmul.f32 %v792_v1, %v721_v59  ;;  %v722_v2 = vunpack.c.h.bf16 %v759_v47  ;;  %v725_v4 = vunpack.c.l.bf16 %v760_v55 }
  0x66   :  { %589 = vst.msk [vmem:[%s1285_s3 + $0xd8] sm:$0xf] %vm534_vm0, %v524_v60  ;;  %v461_v5 = vsel %vm333_vm11, %v269_v53, %v397_v61  ;;  %vm334_vm12 = vcmp.gt.f32.partialorder %v270_v62, 0.0  ;;  %v398_v6 = vmul.f32 0.2, %v270_v62  ;;  %v726_v7 = vunpack.c.h.bf16 %v760_v55 }
  0x67   :  { %v525_v8 = vpack.c.bf16 %v461_v5, %v461_v5  ;;  %vm335_vm13 = vcmp.gt.f32.partialorder %v271_v63, 0.0  ;;  %v399_v9 = vmul.f32 0.2, %v271_v63  ;;  %v272_v10 = vadd.f32 %v797_v3, %v204_v0 }
  0x68   :  { %v462_v11 = vsel %vm334_vm12, %v270_v62, %v398_v6  ;;  %v205_v12 = vmul.f32 %v792_v1, %v722_v2  ;;  %v206_v13 = vmul.f32 %v792_v1, %v725_v4  ;;  %v207_v14 = vmul.f32 %v792_v1, %v726_v7 }
  0x69   :  { %590 = vst.msk [vmem:[%s1285_s3 + $0xdc] sm:$0xf] %vm534_vm0, %v525_v8  ;;  %v526_v16 = vpack.c.bf16 %v462_v11, %v462_v11  ;;  %v463_v17 = vsel %vm335_vm13, %v271_v63, %v399_v9  ;;  %vm336_vm14 = vcmp.gt.f32.partialorder %v272_v10, 0.0  ;;  %v400_v18 = vmul.f32 0.2, %v272_v10 }
  0x6a   :  { %v527_v19 = vpack.c.bf16 %v463_v17, %v463_v17  ;;  %v273_v20 = vadd.f32 %v797_v3, %v205_v12  ;;  %v274_v21 = vadd.f32 %v797_v3, %v206_v13  ;;  %v275_v1 = vadd.f32 %v797_v3, %v207_v14 }
  0x6b   :  { %591 = vst.msk [vmem:[%s1285_s3 + $0xe0] sm:$0xf] %vm534_vm0, %v526_v16  ;;  %v464_v22 = vsel %vm336_vm14, %v272_v10, %v400_v18  ;;  %v729_v23 = vunpack.c.l.bf16 %v761_v15  ;;  %v730_v24 = vunpack.c.h.bf16 %v761_v15 }
  0x6c   :  { %592 = vst.msk [vmem:[%s1285_s3 + $0xe4] sm:$0xf] %vm534_vm0, %v527_v19  ;;  %v528_v25 = vpack.c.bf16 %v464_v22, %v464_v22  ;;  %vm337_vm15 = vcmp.gt.f32.partialorder %v273_v20, 0.0  ;;  %v401_v26 = vmul.f32 0.2, %v273_v20  ;;  %vm338_vm1 = vcmp.gt.f32.partialorder %v274_v21, 0.0 }
  0x6d   :  { %v402_v27 = vmul.f32 0.2, %v274_v21  ;;  %vm339_vm2 = vcmp.gt.f32.partialorder %v275_v1, 0.0  ;;  %v403_v3 = vmul.f32 0.2, %v275_v1  ;;  %v208_v29 = vmul.f32 %v764_v28, %v729_v23 }
  0x6e   :  { %593 = vst.msk [vmem:[%s1285_s3 + $0xe8] sm:$0xf] %vm534_vm0, %v528_v25  ;;  %v465_v30 = vsel %vm337_vm15, %v273_v20, %v401_v26  ;;  %v209_v31 = vmul.f32 %v764_v28, %v730_v24 }
  0x6f   :  { %v529_v32 = vpack.c.bf16 %v465_v30, %v465_v30  ;;  %v466_v33 = vsel %vm338_vm1, %v274_v21, %v402_v27  ;;  %v467_v34 = vsel %vm339_vm2, %v275_v1, %v403_v3  ;;  %v276_v36 = vadd.f32 %v765_v35, %v208_v29 }
  0x70   :  { %v530_v37 = vpack.c.bf16 %v466_v33, %v466_v33  ;;  %v531_v38 = vpack.c.bf16 %v467_v34, %v467_v34  ;;  %v277_v39 = vadd.f32 %v765_v35, %v209_v31 }
  0x71   :  { %594 = vst.msk [vmem:[%s1285_s3 + $0xec] sm:$0xf] %vm534_vm0, %v529_v32  ;;  %vm340_vm3 = vcmp.gt.f32.partialorder %v276_v36, 0.0  ;;  %v404_v40 = vmul.f32 0.2, %v276_v36 }
  0x72   :  { %595 = vst.msk [vmem:[%s1285_s3 + $0xf0] sm:$0xf] %vm534_vm0, %v530_v37  ;;  %vm341_vm4 = vcmp.gt.f32.partialorder %v277_v39, 0.0  ;;  %v405_v41 = vmul.f32 0.2, %v277_v39 }
  0x73   :  { %596 = vst.msk [vmem:[%s1285_s3 + $0xf4] sm:$0xf] %vm534_vm0, %v531_v38  ;;  %v468_v42 = vsel %vm340_vm3, %v276_v36, %v404_v40 }
  0x74   :  { %v532_v43 = vpack.c.bf16 %v468_v42, %v468_v42  ;;  %v469_v44 = vsel %vm341_vm4, %v277_v39, %v405_v41 }
  0x75   :  { %v533_v45 = vpack.c.bf16 %v469_v44, %v469_v44 }
  0x76   :  { %597 = vst.msk [vmem:[%s1285_s3 + $0xf8] sm:$0xf] %vm534_vm0, %v532_v43 }
  0x77   :  { %598 = vst.msk [vmem:[%s1285_s3 + $0xfc] sm:$0xf] %vm534_vm0, %v533_v45 }

// kernel: _lambda_.12
= control target key start
LH: loop header
LB: loop body
LE: loop exit
PB: predicated region body
PF: predicated region fallthrough
CT: control target
= control target key end

     0   :  { %vm150_vm0 = vcmask 257024   ;;  %s362_s0 = inlined_call_operand.vmem [shape: bf16[128,32], index: 0, kind: input, shape index: {}]   ;;  %s363_s1 = inlined_call_operand.vmem [shape: f32[1,32], index: 1, kind: input, shape index: {}]   ;;  %s364_s2 = inlined_call_operand.vmem [shape: f32[1,32], index: 2, kind: input, shape index: {}]   ;;  %s365_s3 = inlined_call_operand.vmem [shape: bf16[128,32], index: 3, kind: output, shape index: {}]  }
   0x1   :  { %v172_v0 = vld [vmem:[%s362_s0] sm:$0xff]   ;;  %v203_v5 = vld [vmem:[%s362_s0 + $0x8] sm:$0xff]   ;;  %v204_v8 = vld [vmem:[%s362_s0 + $0x10] sm:$0xff]  }
   0x2   :  { %v238_v1 = vld [vmem:[%s363_s1] ss:$0 sm:$0xff]  ;;  %v173_v2 = vunpack.c.l.bf16 %v172_v0  ;;  %v174_v4 = vunpack.c.h.bf16 %v172_v0  ;;  %v177_v6 = vunpack.c.l.bf16 %v203_v5  ;;  %v178_v7 = vunpack.c.h.bf16 %v203_v5  ;;  %v205_v9 = vld [vmem:[%s362_s0 + $0x18] sm:$0xff]   ;;  %v207_v39 = vld [vmem:[%s362_s0 + $0x28] sm:$0xff]  }
   0x3   :  { %v243_v3 = vld [vmem:[%s364_s2] ss:$0 sm:$0xff]  ;;  %v181_v12 = vunpack.c.l.bf16 %v204_v8  ;;  %v182_v13 = vunpack.c.h.bf16 %v204_v8  ;;  %v185_v16 = vunpack.c.l.bf16 %v205_v9  ;;  %v186_v17 = vunpack.c.h.bf16 %v205_v9  ;;  %v208_v53 = vld [vmem:[%s362_s0 + $0x30] sm:$0xff]  }
   0x4   :  { %v50_v10 = vmul.f32 %v238_v1, %v173_v2  ;;  %v51_v11 = vmul.f32 %v238_v1, %v174_v4  ;;  %v52_v14 = vmul.f32 %v238_v1, %v177_v6  ;;  %v53_v15 = vmul.f32 %v238_v1, %v178_v7  ;;  %v206_v38 = vld [vmem:[%s362_s0 + $0x20] sm:$0xff]  }
   0x5   :  { %v54_v20 = vmul.f32 %v238_v1, %v181_v12  ;;  %v55_v21 = vmul.f32 %v238_v1, %v182_v13  ;;  %v56_v24 = vmul.f32 %v238_v1, %v185_v16  ;;  %v57_v25 = vmul.f32 %v238_v1, %v186_v17  ;;  %v209_v16 = vld [vmem:[%s362_s0 + $0x38] sm:$0xff]  }
   0x6   :  { %v70_v18 = vadd.f32 %v243_v3, %v50_v10  ;;  %v71_v19 = vadd.f32 %v243_v3, %v51_v11  ;;  %v72_v22 = vadd.f32 %v243_v3, %v52_v14  ;;  %v73_v23 = vadd.f32 %v243_v3, %v53_v15 }
   0x7   :  { %v74_v32 = vadd.f32 %v243_v3, %v54_v20  ;;  %v75_v33 = vadd.f32 %v243_v3, %v55_v21  ;;  %v76_v44 = vadd.f32 %v243_v3, %v56_v24  ;;  %v77_v45 = vadd.f32 %v243_v3, %v57_v25 }
   0x8   :  { %vm86_vm1 = vcmp.gt.f32.partialorder %v70_v18, 0.0  ;;  %v102_v26 = vmul.f32 0.2, %v70_v18  ;;  %vm87_vm2 = vcmp.gt.f32.partialorder %v71_v19, 0.0  ;;  %v103_v27 = vmul.f32 0.2, %v71_v19 }
   0x9   :  { %vm88_vm3 = vcmp.gt.f32.partialorder %v72_v22, 0.0  ;;  %v104_v28 = vmul.f32 0.2, %v72_v22  ;;  %vm89_vm4 = vcmp.gt.f32.partialorder %v73_v23, 0.0  ;;  %v105_v29 = vmul.f32 0.2, %v73_v23 }
   0xa   :  { %v118_v30 = vsel %vm86_vm1, %v70_v18, %v102_v26  ;;  %v119_v31 = vsel %vm87_vm2, %v71_v19, %v103_v27  ;;  %vm90_vm5 = vcmp.gt.f32.partialorder %v74_v32, 0.0  ;;  %v106_v42 = vmul.f32 0.2, %v74_v32 }
   0xb   :  { %v134_v34 = vpack.c.bf16 %v118_v30, %v118_v30  ;;  %v135_v35 = vpack.c.bf16 %v119_v31, %v119_v31  ;;  %v120_v36 = vsel %vm88_vm3, %v72_v22, %v104_v28  ;;  %v121_v37 = vsel %vm89_vm4, %v73_v23, %v105_v29 }
   0xc   :  { %v136_v40 = vpack.c.bf16 %v120_v36, %v120_v36  ;;  %v137_v41 = vpack.c.bf16 %v121_v37, %v121_v37  ;;  %vm91_vm6 = vcmp.gt.f32.partialorder %v75_v33, 0.0  ;;  %v107_v43 = vmul.f32 0.2, %v75_v33 }
   0xd   :  { %151 = vst.msk [vmem:[%s365_s3] sm:$0xf] %vm150_vm0, %v134_v34  ;;  %v122_v46 = vsel %vm90_vm5, %v74_v32, %v106_v42  ;;  %v189_v47 = vunpack.c.l.bf16 %v206_v38  ;;  %v190_v48 = vunpack.c.h.bf16 %v206_v38  ;;  %v193_v49 = vunpack.c.l.bf16 %v207_v39 }
   0xe   :  { %152 = vst.msk [vmem:[%s365_s3 + $0x4] sm:$0xf] %vm150_vm0, %v135_v35  ;;  %v138_v50 = vpack.c.bf16 %v122_v46, %v122_v46  ;;  %v123_v51 = vsel %vm91_vm6, %v75_v33, %v107_v43  ;;  %vm92_vm7 = vcmp.gt.f32.partialorder %v76_v44, 0.0  ;;  %v108_v52 = vmul.f32 0.2, %v76_v44 }
   0xf   :  { %153 = vst.msk [vmem:[%s365_s3 + $0x8] sm:$0xf] %vm150_vm0, %v136_v40  ;;  %v139_v54 = vpack.c.bf16 %v123_v51, %v123_v51  ;;  %vm93_vm8 = vcmp.gt.f32.partialorder %v77_v45, 0.0  ;;  %v109_v55 = vmul.f32 0.2, %v77_v45  ;;  %v58_v56 = vmul.f32 %v238_v1, %v189_v47 }
  0x10   :  { %154 = vst.msk [vmem:[%s365_s3 + $0xc] sm:$0xf] %vm150_vm0, %v137_v41  ;;  %v124_v57 = vsel %vm92_vm7, %v76_v44, %v108_v52  ;;  %v59_v58 = vmul.f32 %v238_v1, %v190_v48  ;;  %v60_v59 = vmul.f32 %v238_v1, %v193_v49  ;;  %v194_v60 = vunpack.c.h.bf16 %v207_v39 }
  0x11   :  { %155 = vst.msk [vmem:[%s365_s3 + $0x10] sm:$0xf] %vm150_vm0, %v138_v50  ;;  %v140_v61 = vpack.c.bf16 %v124_v57, %v124_v57  ;;  %v125_v62 = vsel %vm93_vm8, %v77_v45, %v109_v55  ;;  %v78_v63 = vadd.f32 %v243_v3, %v58_v56  ;;  %v197_v0 = vunpack.c.l.bf16 %v208_v53 }
  0x12   :  { %156 = vst.msk [vmem:[%s365_s3 + $0x14] sm:$0xf] %vm150_vm0, %v139_v54  ;;  %v141_v2 = vpack.c.bf16 %v125_v62, %v125_v62  ;;  %v79_v4 = vadd.f32 %v243_v3, %v59_v58  ;;  %v80_v5 = vadd.f32 %v243_v3, %v60_v59  ;;  %v61_v6 = vmul.f32 %v238_v1, %v194_v60 }
  0x13   :  { %157 = vst.msk [vmem:[%s365_s3 + $0x18] sm:$0xf] %vm150_vm0, %v140_v61  ;;  %vm94_vm9 = vcmp.gt.f32.partialorder %v78_v63, 0.0  ;;  %v110_v7 = vmul.f32 0.2, %v78_v63  ;;  %v62_v8 = vmul.f32 %v238_v1, %v197_v0  ;;  %v198_v9 = vunpack.c.h.bf16 %v208_v53 }
  0x14   :  { %158 = vst.msk [vmem:[%s365_s3 + $0x1c] sm:$0xf] %vm150_vm0, %v141_v2  ;;  %vm95_vm10 = vcmp.gt.f32.partialorder %v79_v4, 0.0  ;;  %v111_v10 = vmul.f32 0.2, %v79_v4  ;;  %vm96_vm11 = vcmp.gt.f32.partialorder %v80_v5, 0.0  ;;  %v81_v11 = vadd.f32 %v243_v3, %v61_v6 }
  0x15   :  { %v126_v12 = vsel %vm94_vm9, %v78_v63, %v110_v7  ;;  %v112_v13 = vmul.f32 0.2, %v80_v5  ;;  %v82_v14 = vadd.f32 %v243_v3, %v62_v8  ;;  %v63_v15 = vmul.f32 %v238_v1, %v198_v9 }
  0x16   :  { %v142_v17 = vpack.c.bf16 %v126_v12, %v126_v12  ;;  %v127_v18 = vsel %vm95_vm10, %v79_v4, %v111_v10  ;;  %vm97_vm12 = vcmp.gt.f32.partialorder %v81_v11, 0.0  ;;  %v113_v19 = vmul.f32 0.2, %v81_v11 }
  0x17   :  { %v143_v20 = vpack.c.bf16 %v127_v18, %v127_v18  ;;  %v128_v21 = vsel %vm96_vm11, %v80_v5, %v112_v13  ;;  %vm98_vm13 = vcmp.gt.f32.partialorder %v82_v14, 0.0  ;;  %v114_v22 = vmul.f32 0.2, %v82_v14 }
  0x18   :  { %159 = vst.msk [vmem:[%s365_s3 + $0x20] sm:$0xf] %vm150_vm0, %v142_v17  ;;  %v144_v23 = vpack.c.bf16 %v128_v21, %v128_v21  ;;  %v129_v24 = vsel %vm97_vm12, %v81_v11, %v113_v19  ;;  %v83_v25 = vadd.f32 %v243_v3, %v63_v15  ;;  %v201_v26 = vunpack.c.l.bf16 %v209_v16 }
  0x19   :  { %160 = vst.msk [vmem:[%s365_s3 + $0x24] sm:$0xf] %vm150_vm0, %v143_v20  ;;  %v145_v27 = vpack.c.bf16 %v129_v24, %v129_v24  ;;  %v130_v28 = vsel %vm98_vm13, %v82_v14, %v114_v22  ;;  %v202_v29 = vunpack.c.h.bf16 %v209_v16 }
  0x1a   :  { %161 = vst.msk [vmem:[%s365_s3 + $0x28] sm:$0xf] %vm150_vm0, %v144_v23  ;;  %v146_v30 = vpack.c.bf16 %v130_v28, %v130_v28  ;;  %vm99_vm14 = vcmp.gt.f32.partialorder %v83_v25, 0.0  ;;  %v115_v31 = vmul.f32 0.2, %v83_v25  ;;  %v64_v32 = vmul.f32 %v238_v1, %v201_v26 }
  0x1b   :  { %162 = vst.msk [vmem:[%s365_s3 + $0x2c] sm:$0xf] %vm150_vm0, %v145_v27  ;;  %v65_v33 = vmul.f32 %v238_v1, %v202_v29 }
  0x1c   :  { %163 = vst.msk [vmem:[%s365_s3 + $0x30] sm:$0xf] %vm150_vm0, %v146_v30  ;;  %v131_v34 = vsel %vm99_vm14, %v83_v25, %v115_v31  ;;  %v84_v35 = vadd.f32 %v243_v3, %v64_v32 }
  0x1d   :  { %v147_v36 = vpack.c.bf16 %v131_v34, %v131_v34  ;;  %v85_v37 = vadd.f32 %v243_v3, %v65_v33 }
  0x1e   :  { %vm100_vm15 = vcmp.gt.f32.partialorder %v84_v35, 0.0  ;;  %v116_v38 = vmul.f32 0.2, %v84_v35 }
  0x1f   :  { %164 = vst.msk [vmem:[%s365_s3 + $0x34] sm:$0xf] %vm150_vm0, %v147_v36  ;;  %vm101_vm1 = vcmp.gt.f32.partialorder %v85_v37, 0.0  ;;  %v117_v1 = vmul.f32 0.2, %v85_v37 }
  0x20   :  { %v132_v39 = vsel %vm100_vm15, %v84_v35, %v116_v38 }
  0x21   :  { %v148_v40 = vpack.c.bf16 %v132_v39, %v132_v39  ;;  %v133_v41 = vsel %vm101_vm1, %v85_v37, %v117_v1 }
  0x22   :  { %v149_v42 = vpack.c.bf16 %v133_v41, %v133_v41 }
  0x23   :  { %165 = vst.msk [vmem:[%s365_s3 + $0x38] sm:$0xf] %vm150_vm0, %v148_v40 }
  0x24   :  { %166 = vst.msk [vmem:[%s365_s3 + $0x3c] sm:$0xf] %vm150_vm0, %v149_v42 }

// kernel: _lambda_.11
= control target key start
LH: loop header
LB: loop body
LE: loop exit
PB: predicated region body
PF: predicated region fallthrough
CT: control target
= control target key end

     0   :  { %s1645_s15 = smov 0   ;;  %s1839_s0 = inlined_call_operand.vmem [shape: bf16[2,40,10,16], index: 0, kind: input, shape index: {}]   ;;  %s1840_s1 = inlined_call_operand.vmem [shape: bf16[25,16,32], index: 1, kind: input, shape index: {}]   ;;  %s1841_s2 = inlined_call_operand.vmem [shape: f32[1,32], index: 2, kind: input, shape index: {}]   ;;  %s1842_s3 = inlined_call_operand.vmem [shape: bf16[2,8,8,32], index: 3, kind: output, shape index: {0}]   ;;  %s1843_s4 = inlined_call_operand.vmem [shape: f32[2,2,32], index: 4, kind: output, shape index: {1}]  }
   0x1 LB: > { %s1259_s16 = sadd.s32 4294967295, %s1602_s15   ;;  %p1263_p0 = scmp.ge.s32.totalorder %s1602_s15, 1  ;;  %s1602_s15 = sphi %s1645_s15, %s15_s15  }
   0x2   : > { %p165_p1 = scmp.lt.s32.totalorder %s1602_s15, 3 }
   0x4   : > { %p166_p2 = pnand %p1263_p0, %p165_p1 }
   0x5   : > { %p195_p3 = scmp.lt.s32.totalorder (!%p166_p2), %s1259_s16, 1  ;;  %s1675_s5 = smov (!%p166_p2), 0  }
   0x6   : > { %169 = sbr.rel (%p166_p2) target bundleno = 292 (0x124), region = 32 }
   0xb   : > { %v1656_v0 = vld [vmem:[%s1841_s2] sm:$0x1]  ;;  %s1846_s16 = smov (!%p195_p3, %s1259_s16), 1  ;;  %v1673_v1 = vmov 0.0  }
   0xc   : > { %s1539_s19 = smul.u32 320, %s1846_s16  ;;  %s1507_s20 = sshll.u32 %s1846_s16, 5 }
   0xd   : > { %s1661_s23 = scalar_lea.vmem %s1842_s3, %s1507_s20  ;;  %s1267_s24 = sshll.u32 %s1846_s16, 1 }
   0xe   : > { %s1666_s27 = scalar_lea.vmem %s1839_s0, %s1539_s19  ;;  %s1671_s30 = scalar_lea.vmem %s1843_s4, %s1267_s24 }
   0xf LB: >> { %v1510_v2 = vld [vmem:[%s1840_s1 + $0x8] sm:$0xff]  ;;  %v1509_v3 = vld [vmem:[%s1840_s1] sm:$0xff]  ;;  %v1513_v5 = vld [vmem:[%s1840_s1 + $0x18] sm:$0xff]  ;;  %s1508_s17 = sshll.u32 %s1610_s5, 3  ;;  %vm238_vm0 = vcmask 130048   ;;  %vm1089_vm1 = vcmask 261120   ;;  %s1610_s5 = sphi %s1675_s5, %s216_s5   ;;  %v1606_v1 = vphi %v1673_v1, %v1844_v1  }
  0x10   : >> { %v1514_v4 = vld [vmem:[%s1840_s1 + $0x20] sm:$0xff]  ;;  %v1511_v6 = vld [vmem:[%s1840_s1 + $0x10] sm:$0xff]  ;;  %249 = vmatpush.bf16.msra.mxu0 %v1510_v2  ;;  %271 = vmatpush.bf16.msra.mxu1 %v1509_v3  ;;  %v1517_v8 = vld [vmem:[%s1840_s1 + $0x38] sm:$0xff]  ;;  %s1709_s25 = scalar_lea.vmem %s1666_s27, %s1508_s17  ;;  %vm1087_vm2 = vcmask 257024  }
  0x11   : >> { %v1516_v7 = vld [vmem:[%s1840_s1 + $0x30] sm:$0xff]  ;;  %v1515_v9 = vld [vmem:[%s1840_s1 + $0x28] sm:$0xff]  ;;  %350 = vmatpush.bf16.msra.mxu3 %v1513_v5  ;;  %v1519_v10 = vld [vmem:[%s1840_s1 + $0x40] sm:$0xff]  ;;  %310 = vmatpush.bf16.msra.mxu2 %v1511_v6 }
  0x12   : >> { %v1520_v11 = vld [vmem:[%s1840_s1 + $0x48] sm:$0xff]  ;;  %v1271_v12 = vld [vmem:[%s1709_s25 + $0x50] sm:$0xf]  ;;  %v221_v13 = vld [vmem:[%s1709_s25] sm:$0xf] }
  0x13   : >> { %v1297_v14 = vld [vmem:[%s1709_s25 + $0x50] sm:$0xf]  ;;  %1278 = vmatmul.msk.bf16.vlgmr.msra.gmra.mxu0 %vm238_vm0, %v1271_v12  ;;  %1283 = vmatmul.msk.bf16.vlgmr.msra.gmra.mxu1 %vm238_vm0, %v221_v13  ;;  %v1512_v15 = vld [vmem:[%s1709_s25 + $0x50] sm:$0x10]  ;;  %v277_v16 = vld [vmem:[%s1709_s25] sm:$0xf] }
  0x14   : >> { %381 = vmatpush.bf16.msrb.mxu0 %v1514_v4  ;;  %v278_v17 = vld [vmem:[%s1709_s25 + $0x4] sm:$0x1]  ;;  %v1298_v18 = vor.u32 %v1512_v15, %v1297_v14  ;;  %v284_v19 = vunpack.c.l.b16 %v277_v16  ;;  %412 = vmatpush.bf16.msrb.mxu1 %v1515_v9  ;;  %v357_v21 = vld [vmem:[%s1709_s25] sm:$0xe]  ;;  %v1522_v33 = vld [vmem:[%s1840_s1 + $0x58] sm:$0xff] }
  0x15   : >> { %483 = vmatpush.bf16.msrb.mxu3 %v1517_v8  ;;  %v285_v20 = vunpack.c.l.b16 %v278_v17  ;;  %443 = vmatpush.bf16.msrb.mxu2 %v1516_v7  ;;  %v1329_v22 = vld [vmem:[%s1709_s25 + $0xa0] sm:$0xf]  ;;  %v1330_v23 = vld [vmem:[%s1709_s25 + $0xa4] sm:$0x1]  ;;  %v362_v27 = vunpack.c.l.b16 %v357_v21  ;;  %v1521_v37 = vld [vmem:[%s1840_s1 + $0x50] sm:$0xff] }
  0x16   : >> { %v328_v24 = vshrl.u32 %v1298_v18, 16  ;;  %v330_v25 = vshll.u32 %v1298_v18, 16  ;;  %v457_v28 = vunpack.c.l.b16 %v1329_v22  ;;  %v458_v32 = vunpack.c.l.b16 %v1330_v23  ;;  %v1312_v41 = vld [vmem:[%s1709_s25 + $0xa0] sm:$0xf]  ;;  %v1344_v42 = vld [vmem:[%s1709_s25 + $0xf0] sm:$0xf] }
  0x17   : >> { %v286_v26 = vpack.c.b16 %v285_v20, %v284_v19  ;;  %v363_v36 = vpack.c.b16 %v285_v20, %v362_v27  ;;  %v1518_v44 = vld [vmem:[%s1709_s25 + $0xf0] sm:$0x10]  ;;  %v1523_v45 = vld [vmem:[%s1840_s1 + $0x60] sm:$0xff]  ;;  %v1525_v46 = vld [vmem:[%s1840_s1 + $0x68] sm:$0xff] }
  0x18   : >> { %523 = vmatpush.bf16.msra.mxu0 %v1519_v10  ;;  %554 = vmatpush.bf16.msra.mxu1 %v1520_v11  ;;  %v332_v29 = vrot.slane %v330_v25, 1  ;;  %v459_v39 = vpack.c.b16 %v458_v32, %v457_v28  ;;  %v1345_v47 = vor.u32 %v1518_v44, %v1344_v42  ;;  %v1351_v50 = vld [vmem:[%s1709_s25 + $0xa0] sm:$0xe]  ;;  %v1527_v54 = vld [vmem:[%s1840_s1 + $0x78] sm:$0xff]  ;;  %v1321_v55 = vld [vmem:[%s1709_s25 + $0xf0] sm:$0xf] }
  0x19   : >> { %v288_v30 = vshrl.u32 %v286_v26, 16  ;;  %v290_v31 = vshll.u32 %v286_v26, 16  ;;  %v364_v40 = vrot.slane %v363_v36, 1  ;;  %v535_v52 = vunpack.c.l.b16 %v1351_v50  ;;  %v1526_v59 = vld [vmem:[%s1840_s1 + $0x70] sm:$0xff]  ;;  %v1377_v60 = vld [vmem:[%s1709_s25 + $0x8] sm:$0xf] }
  0x1a   : >> { %v333_v34 = vor.u32 %v332_v29, %v328_v24  ;;  %v463_v43 = vshll.u32 %v459_v39, 16  ;;  %v461_v48 = vshrl.u32 %v459_v39, 16  ;;  %v503_v51 = vshll.u32 %v1345_v47, 16  ;;  %v1378_v61 = vld [vmem:[%s1709_s25 + $0xc] sm:$0x1]  ;;  %v1528_v5 = vld [vmem:[%s1840_s1 + $0x80] sm:$0xff] }
  0x1b   : >> { %v292_v35 = vrot.slane %v290_v31, 1  ;;  %v501_v56 = vshrl.u32 %v1345_v47, 16  ;;  %v536_v58 = vpack.c.b16 %v458_v32, %v535_v52  ;;  %v630_v2 = vunpack.c.l.b16 %v1377_v60  ;;  %v1392_v4 = vld [vmem:[%s1709_s25 + $0x58] sm:$0xf]  ;;  %v1524_v6 = vld [vmem:[%s1709_s25 + $0x58] sm:$0x10] }
  0x1c   : >> { %1303 = vmatmul.msk.bf16.vlgmr.msra.gmra.mxu3 %vm238_vm0, %v333_v34  ;;  %v465_v49 = vrot.slane %v463_v43, 1  ;;  %v505_v57 = vrot.slane %v503_v51, 1  ;;  %v631_v3 = vunpack.c.l.b16 %v1378_v61  ;;  %v1529_v7 = vld [vmem:[%s1840_s1 + $0x88] sm:$0xff]  ;;  %v1393_v9 = vor.u32 %v1524_v6, %v1392_v4  ;;  %v1369_v12 = vld [vmem:[%s1709_s25 + $0x58] sm:$0xf]  ;;  %v1531_v19 = vld [vmem:[%s1840_s1 + $0x90] sm:$0xff] }
  0x1d   : >> { %v293_v38 = vor.u32 %v292_v35, %v288_v30  ;;  %616 = vmatpush.bf16.msra.mxu3 %v1522_v33  ;;  %v537_v63 = vrot.slane %v536_v58, 1  ;;  %v1532_v13 = vld [vmem:[%s1840_s1 + $0x98] sm:$0xff]  ;;  %v1360_v14 = vld [vmem:[%s1709_s25 + $0x8] sm:$0xf]  ;;  %v1426_v21 = vld [vmem:[%s1709_s25 + $0xac] sm:$0x1] }
  0x1e   : >> { %v466_v53 = vor.u32 %v465_v49, %v461_v48  ;;  %v506_v62 = vor.u32 %v505_v57, %v501_v56  ;;  %v632_v8 = vpack.c.b16 %v631_v3, %v630_v2  ;;  %v676_v11 = vshll.u32 %v1393_v9, 16  ;;  %v1425_v20 = vld [vmem:[%s1709_s25 + $0xa8] sm:$0xf]  ;;  %v1533_v27 = vld [vmem:[%s1840_s1 + $0xa0] sm:$0xff]  ;;  %v1537_v34 = vld [vmem:[%s1840_s1 + $0xb8] sm:$0xff] }
  0x1f   : >> { %1290 = vmatmul.msk.bf16.vlgmr.msra.gmra.mxu2 %vm238_vm0, %v293_v38  ;;  %v674_v17 = vshrl.u32 %v1393_v9, 16  ;;  %v1399_v24 = vld [vmem:[%s1709_s25 + $0x8] sm:$0xe]  ;;  %v803_v25 = vunpack.c.l.b16 %v1425_v20  ;;  %v804_v26 = vunpack.c.l.b16 %v1426_v21  ;;  %v1440_v38 = vld [vmem:[%s1709_s25 + $0xf8] sm:$0xf] }
  0x20   : >> { %585 = vmatpush.bf16.msra.mxu2 %v1521_v37  ;;  %v636_v10 = vshll.u32 %v632_v8, 16  ;;  %v634_v15 = vshrl.u32 %v632_v8, 16  ;;  %v678_v18 = vrot.slane %v676_v11, 1  ;;  %v1534_v28 = vld [vmem:[%s1840_s1 + $0xa8] sm:$0xff]  ;;  %v708_v29 = vunpack.c.l.b16 %v1399_v24  ;;  %v1530_v39 = vld [vmem:[%s1709_s25 + $0xf8] sm:$0x10] }
  0x21   : >> { %v805_v30 = vpack.c.b16 %v804_v26, %v803_v25  ;;  %v1408_v33 = vld [vmem:[%s1709_s25 + $0xa8] sm:$0xf]  ;;  %v1441_v42 = vor.u32 %v1530_v39, %v1440_v38  ;;  %v1417_v44 = vld [vmem:[%s1709_s25 + $0xf8] sm:$0xf]  ;;  %v1473_v51 = vld [vmem:[%s1709_s25 + $0x10] sm:$0xf] }
  0x22   : >> { %v638_v16 = vrot.slane %v636_v10, 1  ;;  %v679_v23 = vor.u32 %v678_v18, %v674_v17  ;;  %v709_v31 = vpack.c.b16 %v631_v3, %v708_v29  ;;  %v1474_v52 = vld [vmem:[%s1709_s25 + $0x14] sm:$0x1]  ;;  %v976_v57 = vunpack.c.l.b16 %v1473_v51  ;;  %v1456_v61 = vld [vmem:[%s1709_s25 + $0x10] sm:$0xf] }
  0x23   : >> { %1310 = vmatmul.msk.bf16.vlgmr.msrb.gmra.mxu0 %vm238_vm0, %v364_v40  ;;  %1319 = vmatmul.msk.bf16.vlgmr.msrb.gmra.mxu1 %vm238_vm0, %v1312_v41  ;;  %v809_v32 = vshll.u32 %v805_v30, 16  ;;  %v807_v36 = vshrl.u32 %v805_v30, 16  ;;  %v1535_v40 = vld [vmem:[%s1840_s1 + $0xb0] sm:$0xff]  ;;  %v1447_v41 = vld [vmem:[%s1709_s25 + $0xa8] sm:$0xe]  ;;  %v849_v47 = vshll.u32 %v1441_v42, 16  ;;  %v977_v58 = vunpack.c.l.b16 %v1474_v52 }
  0x24   : >> { %656 = vmatpush.bf16.msrb.mxu0 %v1523_v45  ;;  %696 = vmatpush.bf16.msrb.mxu1 %v1525_v46  ;;  %v639_v22 = vor.u32 %v638_v16, %v634_v15  ;;  %v710_v35 = vrot.slane %v709_v31, 1  ;;  %v881_v45 = vunpack.c.l.b16 %v1447_v41  ;;  %v1538_v46 = vld [vmem:[%s1840_s1 + $0xc0] sm:$0xff]  ;;  %v847_v49 = vshrl.u32 %v1441_v42, 16 }
  0x25   : >> { %v811_v37 = vrot.slane %v809_v32, 1  ;;  %v851_v50 = vrot.slane %v849_v47, 1  ;;  %v978_v60 = vpack.c.b16 %v977_v58, %v976_v57 }
  0x26   : >> { %v882_v48 = vpack.c.b16 %v804_v26, %v881_v45 }
  0x27   : >> { %v812_v43 = vor.u32 %v811_v37, %v807_v36  ;;  %v852_v56 = vor.u32 %v851_v50, %v847_v49  ;;  %v982_v2 = vshll.u32 %v978_v60, 16  ;;  %v980_v6 = vshrl.u32 %v978_v60, 16 }
  0x2c   : >> { %1337 = vmatmul.msk.bf16.vlgmr.msrb.gmra.mxu3 %vm238_vm0, %v466_v53  ;;  %v883_v53 = vrot.slane %v882_v48, 1 }
  0x2d   : >> { %758 = vmatpush.bf16.msrb.mxu3 %v1527_v54  ;;  %v1488_v54 = vld [vmem:[%s1709_s25 + $0x60] sm:$0xf] }
  0x2f   : >> { %1328 = vmatmul.msk.bf16.vlgmr.msrb.gmra.mxu2 %vm238_vm0, %v1321_v55  ;;  %v1536_v55 = vld [vmem:[%s1709_s25 + $0x60] sm:$0x10] }
  0x30   : >> { %727 = vmatpush.bf16.msrb.mxu2 %v1526_v59  ;;  %v1489_v59 = vor.u32 %v1536_v55, %v1488_v54 }
  0x32   : >> { %v1020_v3 = vshrl.u32 %v1489_v59, 16 }
  0x33   : >> { %1350 = vmatmul.msk.bf16.vlgmr.msra.gmra.mxu0 %vm238_vm0, %v506_v62  ;;  %1358 = vmatmul.msk.bf16.vlgmr.msra.gmra.mxu1 %vm238_vm0, %v537_v63  ;;  %v1465_v62 = vld [vmem:[%s1709_s25 + $0x60] sm:$0xf]  ;;  %v1022_v63 = vshll.u32 %v1489_v59, 16 }
  0x34   : >> { %789 = vmatpush.bf16.msra.mxu0 %v1528_v5  ;;  %829 = vmatpush.bf16.msra.mxu1 %v1529_v7  ;;  %v1495_v5 = vld [vmem:[%s1709_s25 + $0x10] sm:$0xe]  ;;  %v984_v7 = vrot.slane %v982_v2, 1  ;;  %s1503_s25 = sshll.u32 %s1610_s5, 2  ;;  %s216_s5 = sadd.s32 1, %s1610_s5  }
  0x35   : >> { %v1024_v4 = vrot.slane %v1022_v63, 1  ;;  %v1054_v8 = vunpack.c.l.b16 %v1495_v5  ;;  %s1086_s18 = scalar_lea.vmem %s1661_s23, %s1503_s25  ;;  %p213_p4 = scmp.ge.s32.totalorder %s216_s5, 8  }
  0x36   : >> { %v985_v10 = vor.u32 %v984_v7, %v980_v6  ;;  %s1616_s19 = smov (%p213_p4), 0  }
  0x37   : >> { %v1025_v9 = vor.u32 %v1024_v4, %v1020_v3  ;;  %v1055_v11 = vpack.c.b16 %v977_v58, %v1054_v8 }
  0x3c   : >> { %1376 = vmatmul.msk.bf16.vlgmr.msra.gmra.mxu3 %vm238_vm0, %v1369_v12  ;;  %v1056_v12 = vrot.slane %v1055_v11, 1 }
  0x3d   : >> { %900 = vmatpush.bf16.msra.mxu3 %v1532_v13 }
  0x3f   : >> { %1367 = vmatmul.msk.bf16.vlgmr.msra.gmra.mxu2 %vm238_vm0, %v1360_v14 }
  0x40   : >> { %869 = vmatpush.bf16.msra.mxu2 %v1531_v19 }
  0x43   : >> { %1385 = vmatmul.msk.bf16.vlgmr.msrb.gmra.mxu0 %vm238_vm0, %v639_v22  ;;  %1398 = vmatmul.msk.bf16.vlgmr.msrb.gmra.mxu1 %vm238_vm0, %v679_v23 }
  0x44   : >> { %931 = vmatpush.bf16.msrb.mxu0 %v1533_v27  ;;  %962 = vmatpush.bf16.msrb.mxu1 %v1534_v28 }
  0x4c   : >> { %1415 = vmatmul.msk.bf16.vlgmr.msrb.gmra.mxu3 %vm238_vm0, %v1408_v33 }
  0x4d   : >> { %1042 = vmatpush.bf16.msrb.mxu3 %v1537_v34 }
  0x4f   : >> { %1406 = vmatmul.msk.bf16.vlgmr.msrb.gmra.mxu2 %vm238_vm0, %v710_v35 }
  0x50   : >> { %1002 = vmatpush.bf16.msrb.mxu2 %v1535_v40 }
  0x53   : >> { %1424 = vmatmul.msk.bf16.vlgmr.msra.gmra.mxu0 %vm238_vm0, %v1417_v44  ;;  %1433 = vmatmul.msk.bf16.vlgmr.msra.gmra.mxu1 %vm238_vm0, %v812_v43 }
  0x54   : >> { %1073 = vmatpush.bf16.msra.mxu0 %v1538_v46 }
  0x5c   : >> { %1454 = vmatmul.msk.bf16.vlgmr.msra.gmra.mxu3 %vm238_vm0, %v883_v53 }
  0x5f   : >> { %1446 = vmatmul.msk.bf16.vlgmr.msra.gmra.mxu2 %vm238_vm0, %v852_v56 }
  0x63   : >> { %1463 = vmatmul.msk.bf16.vlgmr.msrb.gmra.mxu0 %vm238_vm0, %v1456_v61  ;;  %1472 = vmatmul.msk.bf16.vlgmr.msrb.gmra.mxu1 %vm238_vm0, %v1465_v62 }
  0x6c   : >> { %1494 = vmatmul.msk.bf16.vlgmr.msrb.gmra.mxu3 %vm238_vm0, %v1025_v9 }
  0x6f   : >> { %1481 = vmatmul.msk.bf16.vlgmr.msrb.gmra.mxu2 %vm238_vm0, %v985_v10 }
  0x73   : >> { %1502 = vmatmul.msk.bf16.vlgmr.msra.gmra.mxu0 %vm238_vm0, %v1056_v12 }
  0x90   : >> { %v251_v13 = vpop.f32.mrf.mxu0  ;;  %v273_v14 = vpop.f32.mrf.mxu1 }
  0x91   : >> { %v274_v25 = vadd.f32 %v273_v14, %v251_v13 }
  0x98   : >> { %v253_v15 = vpop.f32.mrf.mxu0  ;;  %v275_v16 = vpop.f32.mrf.mxu1 }
  0x9f   : >> { %v352_v17 = vpop.f32.mrf.mxu3 }
  0xa0   : >> { %v383_v18 = vpop.f32.mrf.mxu0  ;;  %v414_v19 = vpop.f32.mrf.mxu1 }
  0xa2   : >> { %v312_v20 = vpop.f32.mrf.mxu2 }
  0xa3   : >> { %v316_v26 = vadd.f32 %v312_v20, %v274_v25 }
  0xa5   : >> { %v356_v28 = vadd.f32 %v352_v17, %v316_v26 }
  0xa7   : >> { %v354_v21 = vpop.f32.mrf.mxu3  ;;  %v387_v32 = vadd.f32 %v383_v18, %v356_v28 }
  0xa8   : >> { %v385_v22 = vpop.f32.mrf.mxu0  ;;  %v416_v23 = vpop.f32.mrf.mxu1  ;;  %v1081_v21 = vperm.slane %v1656_v0, 0 }
  0xa9   : >> { %v418_v34 = vadd.f32 %v414_v19, %v387_v32 }
  0xaa   : >> { %v314_v24 = vpop.f32.mrf.mxu2 }
  0xaf   : >> { %v485_v27 = vpop.f32.mrf.mxu3 }
  0xb0   : >> { %v525_v29 = vpop.f32.mrf.mxu0  ;;  %v556_v30 = vpop.f32.mrf.mxu1 }
  0xb2   : >> { %v445_v31 = vpop.f32.mrf.mxu2 }
  0xb3   : >> { %v449_v38 = vadd.f32 %v445_v31, %v418_v34 }
  0xb5   : >> { %v489_v39 = vadd.f32 %v485_v27, %v449_v38 }
  0xb7   : >> { %v487_v33 = vpop.f32.mrf.mxu3  ;;  %v529_v44 = vadd.f32 %v525_v29, %v489_v39 }
  0xb8   : >> { %v527_v35 = vpop.f32.mrf.mxu0  ;;  %v558_v36 = vpop.f32.mrf.mxu1 }
  0xb9   : >> { %v560_v45 = vadd.f32 %v556_v30, %v529_v44 }
  0xba   : >> { %v447_v37 = vpop.f32.mrf.mxu2 }
  0xbb   : > { %v1612_v37 = vmov (%p213_p4), 0.0  }
  0xbf   : >> { %v618_v40 = vpop.f32.mrf.mxu3 }
  0xc0   : >> { %v658_v41 = vpop.f32.mrf.mxu0  ;;  %v698_v42 = vpop.f32.mrf.mxu1 }
  0xc2   : >> { %v587_v43 = vpop.f32.mrf.mxu2 }
  0xc3   : >> { %v591_v47 = vadd.f32 %v587_v43, %v560_v45 }
  0xc5   : >> { %v622_v51 = vadd.f32 %v618_v40, %v591_v47 }
  0xc7   : >> { %v620_v46 = vpop.f32.mrf.mxu3  ;;  %v662_v53 = vadd.f32 %v658_v41, %v622_v51 }
  0xc8   : >> { %v660_v48 = vpop.f32.mrf.mxu0  ;;  %v700_v49 = vpop.f32.mrf.mxu1 }
  0xc9   : >> { %v702_v57 = vadd.f32 %v698_v42, %v662_v53 }
  0xca   : >> { %v589_v50 = vpop.f32.mrf.mxu2 }
  0xcf   : >> { %v760_v52 = vpop.f32.mrf.mxu3 }
  0xd0   : >> { %v791_v54 = vpop.f32.mrf.mxu0  ;;  %v831_v55 = vpop.f32.mrf.mxu1 }
  0xd2   : >> { %v729_v56 = vpop.f32.mrf.mxu2 }
  0xd3   : >> { %v733_v58 = vadd.f32 %v729_v56, %v702_v57 }
  0xd5   : >> { %v764_v63 = vadd.f32 %v760_v52, %v733_v58 }
  0xd7   : >> { %v762_v59 = vpop.f32.mrf.mxu3  ;;  %v795_v2 = vadd.f32 %v791_v54, %v764_v63 }
  0xd8   : >> { %v793_v60 = vpop.f32.mrf.mxu0  ;;  %v833_v61 = vpop.f32.mrf.mxu1 }
  0xd9   : >> { %v835_v7 = vadd.f32 %v831_v55, %v795_v2 }
  0xda   : >> { %v731_v62 = vpop.f32.mrf.mxu2 }
  0xdf   : >> { %v902_v3 = vpop.f32.mrf.mxu3 }
  0xe0   : >> { %v933_v4 = vpop.f32.mrf.mxu0  ;;  %v964_v5 = vpop.f32.mrf.mxu1 }
  0xe2   : >> { %v871_v6 = vpop.f32.mrf.mxu2 }
  0xe3   : >> { %v875_v8 = vadd.f32 %v871_v6, %v835_v7 }
  0xe5   : >> { %v906_v10 = vadd.f32 %v902_v3, %v875_v8 }
  0xe7   : >> { %v904_v9 = vpop.f32.mrf.mxu3  ;;  %v937_v14 = vadd.f32 %v933_v4, %v906_v10 }
  0xe8   : >> { %v935_v11 = vpop.f32.mrf.mxu0  ;;  %v966_v12 = vpop.f32.mrf.mxu1 }
  0xe9   : >> { %v968_v16 = vadd.f32 %v964_v5, %v937_v14 }
  0xea   : >> { %v873_v13 = vpop.f32.mrf.mxu2 }
  0xef   : >> { %v1044_v15 = vpop.f32.mrf.mxu3 }
  0xf0   : >> { %v1075_v17 = vpop.f32.mrf.mxu0 }
  0xf2   : >> { %v1004_v18 = vpop.f32.mrf.mxu2 }
  0xf3   : >> { %v1008_v19 = vadd.f32 %v1004_v18, %v968_v16 }
  0xf5   : >> { %v1048_v20 = vadd.f32 %v1044_v15, %v1008_v19 }
  0xf7   : >> { %v1079_v22 = vadd.f32 %v1075_v17, %v1048_v20  ;;  %v1046_v23 = vpop.f32.mrf.mxu3 }
  0xf8   : >> { %v1077_v25 = vpop.f32.mrf.mxu0 }
  0xf9   : >> { %v1083_v24 = vadd.f32 %v1081_v21, %v1079_v22 }
  0xfa   : >> { %v1006_v26 = vpop.f32.mrf.mxu2 }
  0xfb   : >> { %v1084_v27 = vpack.c.bf16 %v1083_v24, %v1083_v24  ;;  %v1090_v28 = vsel %vm1089_vm1, %v1083_v24, 0.0 }
  0xfc   : >> { %v1091_v29 = vrot.slane %v1090_v28, 4 }
  0xfd   : >> { %1088 = vst.msk [vmem:[%s1086_s18] sm:$0xf] %vm1087_vm2, %v1084_v27 }
  0xfe   : >> { %v1092_v30 = vadd.f32 %v1091_v29, %v1090_v28 }
 0x100   : >> { %v1093_v31 = vrot.slane %v1092_v30, 2 }
 0x102   : >> { %v1094_v32 = vadd.f32 %v1093_v31, %v1092_v30 }
 0x104   : >> { %v1095_v33 = vrot.slane %v1094_v32, 1 }
 0x106   : >> { %v1096_v34 = vadd.f32 %v1095_v33, %v1094_v32  ;;  %215 = sbr.rel (!%p213_p4) target bundleno = 15 (0xf), region = 124 }
 0x108   : >> { %v1097_v35 = vadd.f32 %v1606_v1, %v1096_v34  }
 0x10a   : >> { %v1844_v1 = vmov %v1097_v35  ;;  %v1098_v36 = vmul.f32 (%p213_p4), 0.015625, %v1097_v35 }
 0x10b LB: >> { %s1504_s20 = sshll.u32 %s1618_s19, 2  ;;  %s1104_s19 = sadd.s32 1, %s1618_s19   ;;  %s1618_s19 = sphi %s1616_s19, %s1104_s19   ;;  %v1614_v37 = vphi %v1612_v37, %v1613_v37  }
 0x10c   : >> { %s1107_s21 = scalar_lea.vmem %s1661_s23, %s1504_s20  ;;  %p1101_p5 = scmp.ge.s32.totalorder %s1104_s19, 8  }
 0x10d   : >> { %v1108_v38 = vld [vmem:[%s1107_s21] sm:$0xf]  ;;  %vm1121_vm3 = vcmask (%p1101_p5), 253952  }
 0x10e   : >> { %v1109_v1 = vunpack.c.l.bf16 %v1108_v38  ;;  %1122 = vst.msk [vmem:[%s1671_s30] sm:$0x1] (%p1101_p5), %vm1121_vm3, %v1098_v36 }
 0x110   : >> { %v1110_v39 = vsub.f32 %v1109_v1, %v1098_v36 }
 0x112   : >> { %v1111_v40 = vmul.f32 %v1110_v39, %v1110_v39 }
 0x114   : >> { %v1113_v41 = vsel %vm1089_vm1, %v1111_v40, 0.0 }
 0x115   : >> { %v1114_v42 = vrot.slane %v1113_v41, 4 }
 0x117   : >> { %v1115_v43 = vadd.f32 %v1114_v42, %v1113_v41 }
 0x119   : >> { %v1116_v44 = vrot.slane %v1115_v43, 2 }
 0x11b   : >> { %v1117_v45 = vadd.f32 %v1116_v44, %v1115_v43 }
 0x11d   : >> { %v1118_v0 = vrot.slane %v1117_v45, 1 }
 0x11f   : >> { %v1119_v46 = vadd.f32 %v1118_v0, %v1117_v45  ;;  %1103 = sbr.rel (!%p1101_p5) target bundleno = 267 (0x10b), region = 135 }
 0x121   : >> { %v1120_v47 = vadd.f32 %v1614_v37, %v1119_v46  }
 0x123   : >> { %v1613_v37 = vmov %v1120_v47   ;;  %1123 = vst.msk [vmem:[%s1671_s30 + $0x1] sm:$0x1] (%p1101_p5), %vm1121_vm3, %v1120_v47 }
 0x124 PF: > { %s15_s15 = sadd.s32 1, %s1602_s15  }
 0x125   : > { %p12_p6 = scmp.ge.s32.totalorder %s15_s15, 4  }
 0x127   :  { %14 = sbr.rel (!%p12_p6) target bundleno = 1 (0x1), region = 146 }

// kernel: _lambda_.14
= control target key start
LH: loop header
LB: loop body
LE: loop exit
PB: predicated region body
PF: predicated region fallthrough
CT: control target
= control target key end

     0   :  { %vm54_vm4 = vcmask 519168   ;;  %s118_s0 = inlined_call_operand.vmem [shape: bf16[32,64], index: 0, kind: input, shape index: {}]   ;;  %s119_s1 = inlined_call_operand.vmem [shape: f32[1,64], index: 1, kind: input, shape index: {}]   ;;  %s120_s2 = inlined_call_operand.vmem [shape: f32[1,64], index: 2, kind: input, shape index: {}]   ;;  %s121_s3 = inlined_call_operand.vmem [shape: bf16[32,64], index: 3, kind: output, shape index: {}]  }
   0x1   :  { %v64_v0 = vld [vmem:[%s118_s0] sm:$0xff]   ;;  %v71_v5 = vld [vmem:[%s118_s0 + $0x8] sm:$0xff]  }
   0x2   :  { %v72_v1 = vld [vmem:[%s119_s1] ss:$0 sm:$0xff]  ;;  %v65_v2 = vunpack.c.l.bf16 %v64_v0  ;;  %v66_v4 = vunpack.c.h.bf16 %v64_v0  ;;  %v69_v6 = vunpack.c.l.bf16 %v71_v5  ;;  %v70_v7 = vunpack.c.h.bf16 %v71_v5 }
   0x3   :  { %v73_v3 = vld [vmem:[%s120_s2] ss:$0 sm:$0xff] }
   0x4   :  { %v26_v8 = vmul.f32 %v72_v1, %v65_v2  ;;  %v27_v9 = vmul.f32 %v72_v1, %v66_v4  ;;  %v28_v10 = vmul.f32 %v72_v1, %v69_v6  ;;  %v29_v11 = vmul.f32 %v72_v1, %v70_v7 }
   0x6   :  { %v34_v12 = vadd.f32 %v73_v3, %v26_v8  ;;  %v35_v13 = vadd.f32 %v73_v3, %v27_v9  ;;  %v36_v14 = vadd.f32 %v73_v3, %v28_v10  ;;  %v37_v15 = vadd.f32 %v73_v3, %v29_v11 }
   0x8   :  { %vm38_vm0 = vcmp.gt.f32.partialorder %v34_v12, 0.0  ;;  %v42_v16 = vmul.f32 0.2, %v34_v12  ;;  %vm39_vm1 = vcmp.gt.f32.partialorder %v35_v13, 0.0  ;;  %v43_v17 = vmul.f32 0.2, %v35_v13 }
   0x9   :  { %vm40_vm2 = vcmp.gt.f32.partialorder %v36_v14, 0.0  ;;  %v44_v18 = vmul.f32 0.2, %v36_v14  ;;  %vm41_vm3 = vcmp.gt.f32.partialorder %v37_v15, 0.0  ;;  %v45_v19 = vmul.f32 0.2, %v37_v15 }
   0xa   :  { %v46_v20 = vsel %vm38_vm0, %v34_v12, %v42_v16  ;;  %v47_v21 = vsel %vm39_vm1, %v35_v13, %v43_v17 }
   0xb   :  { %v50_v22 = vpack.c.bf16 %v46_v20, %v46_v20  ;;  %v51_v23 = vpack.c.bf16 %v47_v21, %v47_v21  ;;  %v48_v24 = vsel %vm40_vm2, %v36_v14, %v44_v18  ;;  %v49_v25 = vsel %vm41_vm3, %v37_v15, %v45_v19 }
   0xc   :  { %v52_v26 = vpack.c.bf16 %v48_v24, %v48_v24  ;;  %v53_v27 = vpack.c.bf16 %v49_v25, %v49_v25 }
   0xd   :  { %55 = vst.msk [vmem:[%s121_s3] sm:$0xf] %vm54_vm4, %v50_v22 }
   0xe   :  { %56 = vst.msk [vmem:[%s121_s3 + $0x4] sm:$0xf] %vm54_vm4, %v51_v23 }
   0xf   :  { %57 = vst.msk [vmem:[%s121_s3 + $0x8] sm:$0xf] %vm54_vm4, %v52_v26 }
  0x10   :  { %58 = vst.msk [vmem:[%s121_s3 + $0xc] sm:$0xf] %vm54_vm4, %v53_v27 }

// kernel: _lambda_.15
= control target key start
LH: loop header
LB: loop body
LE: loop exit
PB: predicated region body
PF: predicated region fallthrough
CT: control target
= control target key end

     0   :  { %vm674_vm3 = vcmask 1024   ;;  %s1226_s1 = inlined_call_operand.vmem [shape: bf16[1024,1], index: 1, kind: input, shape index: {}]   ;;  %s1227_s0 = inlined_call_operand.vmem [shape: bf16[2,1024], index: 0, kind: input, shape index: {}]   ;;  %s1228_s2 = inlined_call_operand.<no memory space> [shape: f32[1,1], index: 2, kind: input, shape index: {}]   ;;  %s1229_s3 = inlined_call_operand.vmem [shape: f32[2,1], index: 3, kind: output, shape index: {}]  }
   0x1   :  { %v943_v0 = vld [vmem:[%s1226_s1 + $0x38] sm:$0xff]  ;;  %v942_v4 = vld [vmem:[%s1226_s1 + $0x30] sm:$0xff]  ;;  %v941_v8 = vld [vmem:[%s1226_s1 + $0x28] sm:$0xff]  ;;  %v8_v43 = vstv %s1228_s2 }
   0x2   :  { %v951_v1 = vld [vmem:[%s1226_s1 + $0x78] sm:$0xff]  ;;  %551 = vmatpush.bf16.msra.mxu0 %v943_v0  ;;  %v950_v5 = vld [vmem:[%s1226_s1 + $0x70] sm:$0xff]  ;;  %v949_v9 = vld [vmem:[%s1226_s1 + $0x68] sm:$0xff]  ;;  %9 = vst [vmem:[#allocation2] sm:$0x1] %v8_v43 }
   0x3   :  { %v959_v2 = vld [vmem:[%s1226_s1 + $0xb8] sm:$0xff]  ;;  %564 = vmatpush.bf16.msra.mxu1 %v951_v1  ;;  %v958_v6 = vld [vmem:[%s1226_s1 + $0xb0] sm:$0xff]  ;;  %v957_v10 = vld [vmem:[%s1226_s1 + $0xa8] sm:$0xff] }
   0x4   :  { %v967_v3 = vld [vmem:[%s1226_s1 + $0xf8] sm:$0xff]  ;;  %577 = vmatpush.bf16.msra.mxu2 %v959_v2  ;;  %v966_v7 = vld [vmem:[%s1226_s1 + $0xf0] sm:$0xff]  ;;  %v965_v11 = vld [vmem:[%s1226_s1 + $0xe8] sm:$0xff] }
   0x5   :  { %590 = vmatpush.bf16.msra.mxu3 %v967_v3  ;;  %v940_v12 = vld [vmem:[%s1226_s1 + $0x20] sm:$0xff]  ;;  %v939_v17 = vld [vmem:[%s1226_s1 + $0x18] sm:$0xff]  ;;  %v938_v21 = vld [vmem:[%s1226_s1 + $0x10] sm:$0xff] }
   0x6   :  { %552 = vmatpush.bf16.msra.mxu0 %v942_v4  ;;  %v948_v13 = vld [vmem:[%s1226_s1 + $0x60] sm:$0xff]  ;;  %v947_v18 = vld [vmem:[%s1226_s1 + $0x58] sm:$0xff]  ;;  %v946_v22 = vld [vmem:[%s1226_s1 + $0x50] sm:$0xff] }
   0x7   :  { %565 = vmatpush.bf16.msra.mxu1 %v950_v5  ;;  %v956_v14 = vld [vmem:[%s1226_s1 + $0xa0] sm:$0xff]  ;;  %v955_v19 = vld [vmem:[%s1226_s1 + $0x98] sm:$0xff]  ;;  %v954_v23 = vld [vmem:[%s1226_s1 + $0x90] sm:$0xff] }
   0x8   :  { %578 = vmatpush.bf16.msra.mxu2 %v958_v6  ;;  %v964_v15 = vld [vmem:[%s1226_s1 + $0xe0] sm:$0xff]  ;;  %v963_v20 = vld [vmem:[%s1226_s1 + $0xd8] sm:$0xff]  ;;  %v962_v24 = vld [vmem:[%s1226_s1 + $0xd0] sm:$0xff] }
   0x9   :  { %591 = vmatpush.bf16.msra.mxu3 %v966_v7  ;;  %v16_v16 = vld [vmem:[%s1227_s0] sm:$0xff]  ;;  %v937_v25 = vld [vmem:[%s1226_s1 + $0x8] sm:$0xff]  ;;  %v975_v33 = vld [vmem:[%s1226_s1 + $0x138] sm:$0xff] }
   0xa   :  { %553 = vmatpush.bf16.msra.mxu0 %v941_v8  ;;  %150 = vst [vmem:[#allocation1] ss:$9 sm:$0xff] %v16_v16  ;;  %v945_v26 = vld [vmem:[%s1226_s1 + $0x48] sm:$0xff]  ;;  %v936_v29 = vld [vmem:[%s1226_s1] sm:$0xff]  ;;  %v983_v34 = vld [vmem:[%s1226_s1 + $0x178] sm:$0xff] }
   0xb   :  { %566 = vmatpush.bf16.msra.mxu1 %v949_v9  ;;  %v953_v27 = vld [vmem:[%s1226_s1 + $0x88] sm:$0xff]  ;;  %v944_v30 = vld [vmem:[%s1226_s1 + $0x40] sm:$0xff]  ;;  %v991_v35 = vld [vmem:[%s1226_s1 + $0x1b8] sm:$0xff] }
   0xc   :  { %579 = vmatpush.bf16.msra.mxu2 %v957_v10  ;;  %v961_v28 = vld [vmem:[%s1226_s1 + $0xc8] sm:$0xff]  ;;  %v952_v31 = vld [vmem:[%s1226_s1 + $0x80] sm:$0xff]  ;;  %v999_v36 = vld [vmem:[%s1226_s1 + $0x1f8] sm:$0xff] }
   0xd   :  { %592 = vmatpush.bf16.msra.mxu3 %v965_v11  ;;  %v960_v32 = vld [vmem:[%s1226_s1 + $0xc0] sm:$0xff]  ;;  %v974_v37 = vld [vmem:[%s1226_s1 + $0x130] sm:$0xff]  ;;  %v973_v46 = vld [vmem:[%s1226_s1 + $0x128] sm:$0xff] }
   0xe   :  { %554 = vmatpush.bf16.msra.mxu0 %v940_v12  ;;  %v982_v40 = vld [vmem:[%s1226_s1 + $0x170] sm:$0xff]  ;;  %v981_v47 = vld [vmem:[%s1226_s1 + $0x168] sm:$0xff]  ;;  %v972_v50 = vld [vmem:[%s1226_s1 + $0x120] sm:$0xff] }
   0xf   :  { %567 = vmatpush.bf16.msra.mxu1 %v948_v13  ;;  %v990_v44 = vld [vmem:[%s1226_s1 + $0x1b0] sm:$0xff]  ;;  %v989_v48 = vld [vmem:[%s1226_s1 + $0x1a8] sm:$0xff]  ;;  %v980_v51 = vld [vmem:[%s1226_s1 + $0x160] sm:$0xff] }
  0x10   :  { %580 = vmatpush.bf16.msra.mxu2 %v956_v14  ;;  %v998_v45 = vld [vmem:[%s1226_s1 + $0x1f0] sm:$0xff]  ;;  %v997_v49 = vld [vmem:[%s1226_s1 + $0x1e8] sm:$0xff]  ;;  %v988_v52 = vld [vmem:[%s1226_s1 + $0x1a0] sm:$0xff] }
  0x11   :  { %593 = vmatpush.bf16.msra.mxu3 %v964_v15  ;;  %v153_v38 = vld [vmem:[#allocation1 + $0x12] sm:$0xff]  ;;  %v151_v39 = vld [vmem:[#allocation1] sm:$0xff]  ;;  %v152_v42 = vld [vmem:[#allocation1 + $0x9] sm:$0xff] }
  0x12   :  { %555 = vmatpush.bf16.msra.mxu0 %v939_v17  ;;  %v154_v41 = vld [vmem:[#allocation1 + $0x1b] sm:$0xff]  ;;  %v970_v58 = vld [vmem:[%s1226_s1 + $0x110] sm:$0xff]  ;;  %v969_v62 = vld [vmem:[%s1226_s1 + $0x108] sm:$0xff] }
  0x13   :  { %568 = vmatpush.bf16.msra.mxu1 %v947_v18  ;;  %v996_v53 = vld [vmem:[%s1226_s1 + $0x1e0] sm:$0xff]  ;;  %v971_v54 = vld [vmem:[%s1226_s1 + $0x118] sm:$0xff]  ;;  %v978_v59 = vld [vmem:[%s1226_s1 + $0x150] sm:$0xff] }
  0x14   :  { %581 = vmatpush.bf16.msra.mxu2 %v955_v19  ;;  %v979_v55 = vld [vmem:[%s1226_s1 + $0x158] sm:$0xff]  ;;  %v986_v60 = vld [vmem:[%s1226_s1 + $0x190] sm:$0xff]  ;;  %v977_v63 = vld [vmem:[%s1226_s1 + $0x148] sm:$0xff] }
  0x15   :  { %594 = vmatpush.bf16.msra.mxu3 %v963_v20  ;;  %v987_v56 = vld [vmem:[%s1226_s1 + $0x198] sm:$0xff]  ;;  %v994_v61 = vld [vmem:[%s1226_s1 + $0x1d0] sm:$0xff]  ;;  %v985_v0 = vld [vmem:[%s1226_s1 + $0x188] sm:$0xff] }
  0x16   :  { %556 = vmatpush.bf16.msra.mxu0 %v938_v21  ;;  %v995_v57 = vld [vmem:[%s1226_s1 + $0x1d8] sm:$0xff]  ;;  %v993_v1 = vld [vmem:[%s1226_s1 + $0x1c8] sm:$0xff]  ;;  %v968_v2 = vld [vmem:[%s1226_s1 + $0x100] sm:$0xff] }
  0x17   :  { %569 = vmatpush.bf16.msra.mxu1 %v946_v22  ;;  %v976_v3 = vld [vmem:[%s1226_s1 + $0x140] sm:$0xff]  ;;  %v156_v7 = vld [vmem:[#allocation1 + $0x2d] sm:$0xff]  ;;  %v157_v8 = vld [vmem:[#allocation1 + $0x36] sm:$0xff] }
  0x18   :  { %582 = vmatpush.bf16.msra.mxu2 %v954_v23  ;;  %v984_v4 = vld [vmem:[%s1226_s1 + $0x180] sm:$0xff]  ;;  %v1000_v16 = vld [vmem:[#allocation2] ss:$0 sm:$0xff] }
  0x19   :  { %595 = vmatpush.bf16.msra.mxu3 %v962_v24  ;;  %v992_v5 = vld [vmem:[%s1226_s1 + $0x1c0] sm:$0xff] }
  0x1a   :  { %557 = vmatpush.bf16.msra.mxu0 %v937_v25  ;;  %v155_v6 = vld [vmem:[#allocation1 + $0x24] sm:$0xff] }
  0x1b   :  { %570 = vmatpush.bf16.msra.mxu1 %v945_v26  ;;  %v158_v9 = vld [vmem:[#allocation1 + $0x3f] sm:$0xff] }
  0x1c   :  { %583 = vmatpush.bf16.msra.mxu2 %v953_v27 }
  0x1d   :  { %596 = vmatpush.bf16.msra.mxu3 %v961_v28 }
  0x1e   :  { %558 = vmatpush.bf16.msra.mxu0 %v936_v29 }
  0x1f   :  { %571 = vmatpush.bf16.msra.mxu1 %v944_v30 }
  0x20   :  { %584 = vmatpush.bf16.msra.mxu2 %v952_v31 }
  0x21   :  { %597 = vmatpush.bf16.msra.mxu3 %v960_v32  ;;  %559 = vmatmul.bf16.vlgmr.msra.gmra.mxu0 %v151_v39 }
  0x22   :  { %603 = vmatpush.bf16.msrb.mxu0 %v975_v33  ;;  %572 = vmatmul.bf16.vlgmr.msra.gmra.mxu1 %v152_v42 }
  0x23   :  { %616 = vmatpush.bf16.msrb.mxu1 %v983_v34  ;;  %585 = vmatmul.bf16.vlgmr.msra.gmra.mxu2 %v153_v38 }
  0x24   :  { %629 = vmatpush.bf16.msrb.mxu2 %v991_v35  ;;  %598 = vmatmul.bf16.vlgmr.msra.gmra.mxu3 %v154_v41 }
  0x25   :  { %642 = vmatpush.bf16.msrb.mxu3 %v999_v36 }
  0x26   :  { %604 = vmatpush.bf16.msrb.mxu0 %v974_v37 }
  0x27   :  { %617 = vmatpush.bf16.msrb.mxu1 %v982_v40 }
  0x28   :  { %630 = vmatpush.bf16.msrb.mxu2 %v990_v44 }
  0x29   :  { %643 = vmatpush.bf16.msrb.mxu3 %v998_v45 }
  0x2a   :  { %605 = vmatpush.bf16.msrb.mxu0 %v973_v46 }
  0x2b   :  { %618 = vmatpush.bf16.msrb.mxu1 %v981_v47 }
  0x2c   :  { %631 = vmatpush.bf16.msrb.mxu2 %v989_v48 }
  0x2d   :  { %644 = vmatpush.bf16.msrb.mxu3 %v997_v49 }
  0x2e   :  { %606 = vmatpush.bf16.msrb.mxu0 %v972_v50 }
  0x2f   :  { %619 = vmatpush.bf16.msrb.mxu1 %v980_v51 }
  0x30   :  { %632 = vmatpush.bf16.msrb.mxu2 %v988_v52 }
  0x31   :  { %645 = vmatpush.bf16.msrb.mxu3 %v996_v53 }
  0x32   :  { %607 = vmatpush.bf16.msrb.mxu0 %v971_v54 }
  0x33   :  { %620 = vmatpush.bf16.msrb.mxu1 %v979_v55 }
  0x34   :  { %633 = vmatpush.bf16.msrb.mxu2 %v987_v56 }
  0x35   :  { %646 = vmatpush.bf16.msrb.mxu3 %v995_v57 }
  0x36   :  { %608 = vmatpush.bf16.msrb.mxu0 %v970_v58 }
  0x37   :  { %621 = vmatpush.bf16.msrb.mxu1 %v978_v59 }
  0x38   :  { %634 = vmatpush.bf16.msrb.mxu2 %v986_v60 }
  0x39   :  { %647 = vmatpush.bf16.msrb.mxu3 %v994_v61 }
  0x3a   :  { %609 = vmatpush.bf16.msrb.mxu0 %v969_v62 }
  0x3b   :  { %622 = vmatpush.bf16.msrb.mxu1 %v977_v63 }
  0x3c   :  { %635 = vmatpush.bf16.msrb.mxu2 %v985_v0 }
  0x3d   :  { %648 = vmatpush.bf16.msrb.mxu3 %v993_v1 }
  0x3e   :  { %610 = vmatpush.bf16.msrb.mxu0 %v968_v2 }
  0x3f   :  { %623 = vmatpush.bf16.msrb.mxu1 %v976_v3 }
  0x40   :  { %636 = vmatpush.bf16.msrb.mxu2 %v984_v4 }
  0x41   :  { %649 = vmatpush.bf16.msrb.mxu3 %v992_v5  ;;  %611 = vmatmul.bf16.vlgmr.msrb.gmra.mxu0 %v155_v6 }
  0x42   :  { %624 = vmatmul.bf16.vlgmr.msrb.gmra.mxu1 %v156_v7 }
  0x43   :  { %637 = vmatmul.bf16.vlgmr.msrb.gmra.mxu2 %v157_v8 }
  0x44   :  { %650 = vmatmul.bf16.vlgmr.msrb.gmra.mxu3 %v158_v9 }
  0x9e   :  { %v560_v10 = vpop.f32.mrf.mxu0 }
  0x9f   :  { %v573_v11 = vpop.f32.mrf.mxu1  ;;  %v561_v19 = vadd.f32 %v1000_v16, %v560_v10 }
  0xa1   :  { %v574_v20 = vadd.f32 %v573_v11, %v561_v19 }
  0xa6   :  { %v586_v12 = vpop.f32.mrf.mxu2  ;;  %v562_v14 = vpop.f32.mrf.mxu0 }
  0xa7   :  { %v599_v13 = vpop.f32.mrf.mxu3  ;;  %v575_v15 = vpop.f32.mrf.mxu1  ;;  %v587_v21 = vadd.f32 %v586_v12, %v574_v20 }
  0xa9   :  { %v600_v22 = vadd.f32 %v599_v13, %v587_v21 }
  0xae   :  { %v588_v17 = vpop.f32.mrf.mxu2 }
  0xaf   :  { %v601_v18 = vpop.f32.mrf.mxu3 }
  0xbe   :  { %v612_v23 = vpop.f32.mrf.mxu0 }
  0xbf   :  { %v625_v24 = vpop.f32.mrf.mxu1  ;;  %v613_v25 = vadd.f32 %v612_v23, %v600_v22 }
  0xc1   :  { %v626_v26 = vadd.f32 %v625_v24, %v613_v25 }
  0xc6   :  { %v638_v27 = vpop.f32.mrf.mxu2  ;;  %v614_v30 = vpop.f32.mrf.mxu0 }
  0xc7   :  { %v651_v28 = vpop.f32.mrf.mxu3  ;;  %v639_v29 = vadd.f32 %v638_v27, %v626_v26  ;;  %v627_v31 = vpop.f32.mrf.mxu1 }
  0xc9   :  { %v652_v32 = vadd.f32 %v651_v28, %v639_v29 }
  0xcb   :  { %v655_v33 = vsub.f32 0.0, %v652_v32 }
  0xcd   :  { %v656_v34 = vmul.f32 1.442695, %v655_v33 }
  0xce   :  { %v640_v35 = vpop.f32.mrf.mxu2 }
  0xcf   :  { %v653_v36 = vpop.f32.mrf.mxu3  ;;  %1001 = vpow2.f32 %v656_v34 }
  0xd5   :  { %v1002_v37 = vpop.eup %1001 }
  0xd6   :  { %v658_v38 = vadd.f32 1.0, %v1002_v37 }
  0xd8   :  { %1003 = vrcp.f32 %v658_v38  ;;  %v670_v42 = vand.u32 2147483648, %v658_v38  ;;  %v668_v44 = vand.u32 2147483647, %v658_v38  ;;  %vm664_vm1 = vweird.f32 %v658_v38 }
  0xda   :  { %v671_v46 = vor.u32 1.1754944e-38, %v670_v42  ;;  %vm669_vm4 = vcmp.eq.f32.partialorder %v668_v44, 8.507059e+37 }
  0xde   :  { %v1004_v39 = vpop.eup %1003 }
  0xdf   :  { %v660_v40 = vmul.f32 %v1004_v39, %v658_v38  ;;  %vm665_vm0 = vweird.f32 %v1004_v39 }
  0xe0   :  { %vm666_vm2 = vmor %vm664_vm1, %vm665_vm0 }
  0xe1   :  { %v661_v41 = vsub.f32 1.0, %v660_v40 }
  0xe3   :  { %v662_v43 = vmul.f32 %v1004_v39, %v661_v41 }
  0xe5   :  { %v663_v45 = vadd.f32 %v1004_v39, %v662_v43 }
  0xe7   :  { %v667_v47 = vsel %vm666_vm2, %v1004_v39, %v663_v45 }
  0xe8   :  { %v672_v48 = vsel %vm669_vm4, %v671_v46, %v667_v47 }
  0xe9   :  { %675 = vst.msk [vmem:[%s1229_s3] sm:$0x3] %vm674_vm3, %v672_v48 }

// kernel: _lambda_.13
= control target key start
LH: loop header
LB: loop body
LE: loop exit
PB: predicated region body
PF: predicated region fallthrough
CT: control target
= control target key end

     0   :  { %s1942_s15 = smov 0   ;;  %s2201_s0 = inlined_call_operand.vmem [shape: bf16[2,24,6,32], index: 0, kind: input, shape index: {}]   ;;  %s2202_s1 = inlined_call_operand.vmem [shape: bf16[25,32,64], index: 1, kind: input, shape index: {}]   ;;  %s2203_s2 = inlined_call_operand.vmem [shape: f32[1,64], index: 2, kind: input, shape index: {}]   ;;  %s2204_s3 = inlined_call_operand.vmem [shape: bf16[2,4,4,64], index: 3, kind: output, shape index: {0}]   ;;  %s2205_s4 = inlined_call_operand.vmem [shape: f32[2,2,64], index: 4, kind: output, shape index: {1}]  }
   0x1 LB: > { %s1419_s16 = sadd.s32 4294967295, %s1899_s15   ;;  %p1423_p0 = scmp.ge.s32.totalorder %s1899_s15, 1  ;;  %s1899_s15 = sphi %s1942_s15, %s15_s15  }
   0x2   : > { %p165_p1 = scmp.lt.s32.totalorder %s1899_s15, 3 }
   0x4   : > { %p166_p2 = pnand %p1423_p0, %p165_p1 }
   0x5   : > { %p195_p3 = scmp.lt.s32.totalorder (!%p166_p2), %s1419_s16, 1  ;;  %s1972_s5 = smov (!%p166_p2), 0  }
   0x6   : > { %169 = sbr.rel (%p166_p2) target bundleno = 291 (0x123), region = 32 }
   0xb   : > { %v1953_v0 = vld [vmem:[%s2203_s2] sm:$0x1]  ;;  %s2208_s16 = smov (!%p195_p3, %s1419_s16), 1  ;;  %v1970_v1 = vmov 0.0  }
   0xc   : > { %s1836_s19 = smul.u32 96, %s2208_s16  ;;  %s1785_s20 = sshll.u32 %s2208_s16, 3 }
   0xd   : > { %s1958_s23 = scalar_lea.vmem %s2204_s3, %s1785_s20  ;;  %s1427_s24 = sshll.u32 %s2208_s16, 1 }
   0xe   : > { %s1963_s27 = scalar_lea.vmem %s2201_s0, %s1836_s19  ;;  %s1968_s30 = scalar_lea.vmem %s2205_s4, %s1427_s24 }
   0xf LB: >> { %v1789_v2 = vld [vmem:[%s2202_s1 + $0x18] sm:$0xff]  ;;  %v1787_v3 = vld [vmem:[%s2202_s1 + $0x8] sm:$0xff]  ;;  %v1788_v6 = vld [vmem:[%s2202_s1 + $0x10] sm:$0xff]  ;;  %s1428_s19 = sshll.u32 %s1907_s5, 2  ;;  %vm246_vm0 = vcmask 261120   ;;  %vm1249_vm1 = vcmask 519168   ;;  %s1907_s5 = sphi %s1972_s5, %s216_s5   ;;  %v1903_v1 = vphi %v1970_v1, %v2206_v1  }
  0x10   : >> { %v1791_v4 = vld [vmem:[%s2202_s1 + $0x28] sm:$0xff]  ;;  %v1793_v5 = vld [vmem:[%s2202_s1 + $0x38] sm:$0xff]  ;;  %256 = vmatpush.bf16.msra.mxu0 %v1789_v2  ;;  %284 = vmatpush.bf16.msra.mxu1 %v1787_v3  ;;  %v1786_v7 = vld [vmem:[%s2202_s1] sm:$0xff]  ;;  %s2000_s20 = scalar_lea.vmem %s1963_s27, %s1428_s19  ;;  %vm1247_vm2 = vcmask 517120  }
  0x11   : >> { %328 = vmatpush.bf16.msra.mxu2 %v1791_v4  ;;  %373 = vmatpush.bf16.msra.mxu3 %v1793_v5  ;;  %v1795_v8 = vld [vmem:[%s2202_s1 + $0x48] sm:$0xff]  ;;  %v1790_v9 = vld [vmem:[%s2202_s1 + $0x20] sm:$0xff]  ;;  %v1792_v10 = vld [vmem:[%s2202_s1 + $0x30] sm:$0xff] }
  0x12   : >> { %v291_v11 = vld [vmem:[%s2000_s20] sm:$0x7]  ;;  %v1799_v12 = vld [vmem:[%s2202_s1 + $0x68] sm:$0xff]  ;;  %v1466_v14 = vld [vmem:[%s2000_s20 + $0x18] sm:$0x7] }
  0x13   : >> { %v298_v13 = vunpack.c.l.b16 %v291_v11  ;;  %v1801_v15 = vld [vmem:[%s2202_s1 + $0x78] sm:$0xff]  ;;  %v220_v17 = vld [vmem:[%s2000_s20] sm:$0x3]  ;;  %v343_v18 = vunpack.c.l.b16 %v1466_v14  ;;  %v1803_v24 = vld [vmem:[%s2202_s1 + $0x88] sm:$0xff] }
  0x14   : >> { %257 = vmatpush.bf16.msra.mxu0 %v1788_v6  ;;  %285 = vmatpush.bf16.msra.mxu1 %v1786_v7  ;;  %v1430_v16 = vld [vmem:[%s2000_s20 + $0x18] sm:$0x3]  ;;  %v1794_v21 = vld [vmem:[%s2202_s1 + $0x40] sm:$0xff]  ;;  %v1523_v27 = vld [vmem:[%s2000_s20 + $0x30] sm:$0x7] }
  0x15   : >> { %v1797_v19 = vld [vmem:[%s2202_s1 + $0x58] sm:$0xff]  ;;  %329 = vmatpush.bf16.msra.mxu2 %v1790_v9  ;;  %v299_v20 = vpack.c.b16 %v298_v13, %v298_v13  ;;  %374 = vmatpush.bf16.msra.mxu3 %v1792_v10  ;;  %v344_v22 = vpack.c.b16 %v343_v18, %v343_v18  ;;  %v1798_v23 = vld [vmem:[%s2202_s1 + $0x60] sm:$0xff]  ;;  %v1796_v30 = vld [vmem:[%s2202_s1 + $0x50] sm:$0xff]  ;;  %v503_v36 = vunpack.c.l.b16 %v1523_v27 }
  0x16   : >> { %v381_v31 = vld [vmem:[%s2000_s20] sm:$0x6]  ;;  %v1800_v32 = vld [vmem:[%s2202_s1 + $0x70] sm:$0xff]  ;;  %v1805_v34 = vld [vmem:[%s2202_s1 + $0x98] sm:$0xff] }
  0x17   : >> { %1443 = vmatmul.msk.bf16.vlgmr.msra.gmra.mxu0 %vm246_vm0, %v1430_v16  ;;  %1452 = vmatmul.msk.bf16.vlgmr.msra.gmra.mxu1 %vm246_vm0, %v220_v17  ;;  %v301_v25 = vshrl.u32 %v299_v20, 16  ;;  %v303_v26 = vshll.u32 %v299_v20, 16  ;;  %v346_v28 = vshrl.u32 %v344_v22, 16  ;;  %v348_v29 = vshll.u32 %v344_v22, 16  ;;  %v1807_v37 = vld [vmem:[%s2202_s1 + $0xa8] sm:$0xff]  ;;  %v1802_v40 = vld [vmem:[%s2202_s1 + $0x80] sm:$0xff] }
  0x18   : >> { %412 = vmatpush.bf16.msrb.mxu0 %v1795_v8  ;;  %450 = vmatpush.bf16.msrb.mxu1 %v1797_v19  ;;  %v388_v39 = vunpack.c.l.b16 %v381_v31  ;;  %v1809_v41 = vld [vmem:[%s2202_s1 + $0xb8] sm:$0xff]  ;;  %v1804_v43 = vld [vmem:[%s2202_s1 + $0x90] sm:$0xff]  ;;  %v504_v44 = vpack.c.b16 %v503_v36, %v503_v36  ;;  %v1806_v45 = vld [vmem:[%s2202_s1 + $0xa0] sm:$0xff] }
  0x19   : >> { %488 = vmatpush.bf16.msrb.mxu2 %v1799_v12  ;;  %533 = vmatpush.bf16.msrb.mxu3 %v1801_v15  ;;  %v305_v33 = vrot.slane %v303_v26, 1  ;;  %v350_v35 = vrot.slane %v348_v29, 1  ;;  %v1808_v47 = vld [vmem:[%s2202_s1 + $0xb0] sm:$0xff]  ;;  %v1537_v48 = vld [vmem:[%s2000_s20 + $0x48] sm:$0x7]  ;;  %v1813_v54 = vld [vmem:[%s2202_s1 + $0xd8] sm:$0xff] }
  0x1a   : >> { %v389_v46 = vpack.c.b16 %v388_v39, %v388_v39  ;;  %v508_v49 = vshll.u32 %v504_v44, 16  ;;  %v548_v51 = vunpack.c.l.b16 %v1537_v48  ;;  %v1494_v52 = vld [vmem:[%s2000_s20 + $0x30] sm:$0x3]  ;;  %v1811_v53 = vld [vmem:[%s2202_s1 + $0xc8] sm:$0xff]  ;;  %v506_v55 = vshrl.u32 %v504_v44, 16  ;;  %v1810_v59 = vld [vmem:[%s2202_s1 + $0xc0] sm:$0xff] }
  0x1b   : >> { %v306_v38 = vor.u32 %v305_v33, %v301_v25  ;;  %v351_v42 = vor.u32 %v350_v35, %v346_v28  ;;  %v1551_v58 = vld [vmem:[%s2000_s20 + $0x30] sm:$0x6]  ;;  %v1509_v61 = vld [vmem:[%s2000_s20 + $0x48] sm:$0x3]  ;;  %v1817_v4 = vld [vmem:[%s2202_s1 + $0xf8] sm:$0xff] }
  0x1c   : >> { %413 = vmatpush.bf16.msrb.mxu0 %v1794_v21  ;;  %451 = vmatpush.bf16.msrb.mxu1 %v1796_v30  ;;  %v390_v50 = vrot.slane %v389_v46, 1  ;;  %v510_v56 = vrot.slane %v508_v49, 1  ;;  %v549_v57 = vpack.c.b16 %v548_v51, %v548_v51  ;;  %v1812_v60 = vld [vmem:[%s2202_s1 + $0xd0] sm:$0xff]  ;;  %v1815_v63 = vld [vmem:[%s2202_s1 + $0xe8] sm:$0xff]  ;;  %v593_v3 = vunpack.c.l.b16 %v1551_v58  ;;  %v1814_v5 = vld [vmem:[%s2202_s1 + $0xe0] sm:$0xff] }
  0x1d   : >> { %489 = vmatpush.bf16.msrb.mxu2 %v1798_v23  ;;  %534 = vmatpush.bf16.msrb.mxu3 %v1800_v32  ;;  %v1816_v9 = vld [vmem:[%s2202_s1 + $0xf0] sm:$0xff]  ;;  %v1595_v10 = vld [vmem:[%s2000_s20 + $0x4] sm:$0x7]  ;;  %v1609_v11 = vld [vmem:[%s2000_s20 + $0x1c] sm:$0x7] }
  0x1e   : >> { %1465 = vmatmul.msk.bf16.vlgmr.msra.gmra.mxu2 %vm246_vm0, %v306_v38  ;;  %1479 = vmatmul.msk.bf16.vlgmr.msra.gmra.mxu3 %vm246_vm0, %v351_v42  ;;  %v511_v62 = vor.u32 %v510_v56, %v506_v55  ;;  %v553_v2 = vshll.u32 %v549_v57, 16  ;;  %v551_v6 = vshrl.u32 %v549_v57, 16  ;;  %v594_v8 = vpack.c.b16 %v593_v3, %v593_v3  ;;  %v1819_v16 = vld [vmem:[%s2202_s1 + $0x108] sm:$0xff]  ;;  %v1821_v17 = vld [vmem:[%s2202_s1 + $0x118] sm:$0xff]  ;;  %v1818_v20 = vld [vmem:[%s2202_s1 + $0x100] sm:$0xff] }
  0x1f   : >> { %v708_v14 = vunpack.c.l.b16 %v1595_v10  ;;  %v753_v15 = vunpack.c.l.b16 %v1609_v11  ;;  %v1820_v21 = vld [vmem:[%s2202_s1 + $0x110] sm:$0xff]  ;;  %v1566_v22 = vld [vmem:[%s2000_s20 + $0x4] sm:$0x3]  ;;  %v1823_v23 = vld [vmem:[%s2202_s1 + $0x128] sm:$0xff] }
  0x20   : >> { %578 = vmatpush.bf16.msra.mxu0 %v1803_v24  ;;  %617 = vmatpush.bf16.msra.mxu1 %v1805_v34  ;;  %v555_v7 = vrot.slane %v553_v2, 1  ;;  %v595_v13 = vrot.slane %v594_v8, 1  ;;  %v1581_v24 = vld [vmem:[%s2000_s20 + $0x1c] sm:$0x3]  ;;  %v1623_v28 = vld [vmem:[%s2000_s20 + $0x4] sm:$0x6] }
  0x21   : >> { %655 = vmatpush.bf16.msra.mxu2 %v1807_v37  ;;  %693 = vmatpush.bf16.msra.mxu3 %v1809_v41  ;;  %v709_v18 = vpack.c.b16 %v708_v14, %v708_v14  ;;  %v754_v19 = vpack.c.b16 %v753_v15, %v753_v15  ;;  %v1825_v27 = vld [vmem:[%s2202_s1 + $0x138] sm:$0xff]  ;;  %v1822_v29 = vld [vmem:[%s2202_s1 + $0x120] sm:$0xff]  ;;  %v1824_v34 = vld [vmem:[%s2202_s1 + $0x130] sm:$0xff]  ;;  %v798_v36 = vunpack.c.l.b16 %v1623_v28 }
  0x22   : >> { %v556_v12 = vor.u32 %v555_v7, %v551_v6  ;;  %v1667_v35 = vld [vmem:[%s2000_s20 + $0x34] sm:$0x7]  ;;  %v1829_v41 = vld [vmem:[%s2202_s1 + $0x158] sm:$0xff]  ;;  %v1831_v49 = vld [vmem:[%s2202_s1 + $0x168] sm:$0xff] }
  0x23   : >> { %v713_v25 = vshll.u32 %v709_v18, 16  ;;  %v758_v26 = vshll.u32 %v754_v19, 16  ;;  %v711_v30 = vshrl.u32 %v709_v18, 16  ;;  %v756_v32 = vshrl.u32 %v754_v19, 16  ;;  %v1828_v46 = vld [vmem:[%s2202_s1 + $0x150] sm:$0xff]  ;;  %v1834_v7 = vld [vmem:[%s2202_s1 + $0x180] sm:$0xff] }
  0x24   : >> { %579 = vmatpush.bf16.msra.mxu0 %v1802_v40  ;;  %618 = vmatpush.bf16.msra.mxu1 %v1804_v43  ;;  %v913_v39 = vunpack.c.l.b16 %v1667_v35  ;;  %v1827_v40 = vld [vmem:[%s2202_s1 + $0x148] sm:$0xff]  ;;  %v799_v42 = vpack.c.b16 %v798_v36, %v798_v36  ;;  %v1695_v57 = vld [vmem:[%s2000_s20 + $0x34] sm:$0x6]  ;;  %v1753_v6 = vld [vmem:[%s2000_s20 + $0x20] sm:$0x7] }
  0x25   : >> { %656 = vmatpush.bf16.msra.mxu2 %v1806_v45  ;;  %694 = vmatpush.bf16.msra.mxu3 %v1808_v47  ;;  %v715_v31 = vrot.slane %v713_v25, 1  ;;  %v760_v33 = vrot.slane %v758_v26, 1  ;;  %v1681_v43 = vld [vmem:[%s2000_s20 + $0x4c] sm:$0x7]  ;;  %v1826_v45 = vld [vmem:[%s2202_s1 + $0x140] sm:$0xff]  ;;  %v1832_v58 = vld [vmem:[%s2202_s1 + $0x170] sm:$0xff]  ;;  %v1163_v11 = vunpack.c.l.b16 %v1753_v6 }
  0x26   : >> { %v914_v44 = vpack.c.b16 %v913_v39, %v913_v39  ;;  %v800_v47 = vrot.slane %v799_v42, 1  ;;  %v958_v48 = vunpack.c.l.b16 %v1681_v43 }
  0x27   : >> { %1492 = vmatmul.msk.bf16.vlgmr.msrb.gmra.mxu0 %vm246_vm0, %v390_v50  ;;  %1507 = vmatmul.msk.bf16.vlgmr.msrb.gmra.mxu1 %vm246_vm0, %v1494_v52  ;;  %v716_v37 = vor.u32 %v715_v31, %v711_v30  ;;  %v761_v38 = vor.u32 %v760_v33, %v756_v32  ;;  %v1638_v50 = vld [vmem:[%s2000_s20 + $0x34] sm:$0x3]  ;;  %v1833_v52 = vld [vmem:[%s2202_s1 + $0x178] sm:$0xff] }
  0x28   : >> { %738 = vmatpush.bf16.msrb.mxu0 %v1811_v53  ;;  %783 = vmatpush.bf16.msrb.mxu1 %v1813_v54  ;;  %v918_v51 = vshll.u32 %v914_v44, 16  ;;  %v959_v53 = vpack.c.b16 %v958_v48, %v958_v48  ;;  %v1830_v54 = vld [vmem:[%s2202_s1 + $0x160] sm:$0xff]  ;;  %v916_v55 = vshrl.u32 %v914_v44, 16 }
  0x2a   : >> { %v920_v56 = vrot.slane %v918_v51, 1  ;;  %v961_v2 = vshrl.u32 %v959_v53, 16 }
  0x2c   : >> { %739 = vmatpush.bf16.msrb.mxu0 %v1810_v59  ;;  %784 = vmatpush.bf16.msrb.mxu1 %v1812_v60  ;;  %v963_v59 = vshll.u32 %v959_v53, 16  ;;  %v1003_v60 = vunpack.c.l.b16 %v1695_v57 }
  0x2e   : >> { %1522 = vmatmul.msk.bf16.vlgmr.msrb.gmra.mxu2 %vm246_vm0, %v1509_v61  ;;  %1536 = vmatmul.msk.bf16.vlgmr.msrb.gmra.mxu3 %vm246_vm0, %v511_v62  ;;  %v921_v61 = vor.u32 %v920_v56, %v916_v55  ;;  %v1653_v62 = vld [vmem:[%s2000_s20 + $0x4c] sm:$0x3]  ;;  %v965_v3 = vrot.slane %v963_v59, 1 }
  0x2f   : >> { %822 = vmatpush.bf16.msrb.mxu2 %v1815_v63  ;;  %860 = vmatpush.bf16.msrb.mxu3 %v1817_v4  ;;  %v1835_v63 = vld [vmem:[%s2202_s1 + $0x188] sm:$0xff]  ;;  %v1004_v4 = vpack.c.b16 %v1003_v60, %v1003_v60 }
  0x30   : >> { %v966_v8 = vor.u32 %v965_v3, %v961_v2 }
  0x31   : >> { %v1005_v10 = vrot.slane %v1004_v4, 1 }
  0x33   : >> { %823 = vmatpush.bf16.msrb.mxu2 %v1814_v5  ;;  %861 = vmatpush.bf16.msrb.mxu3 %v1816_v9  ;;  %v1739_v5 = vld [vmem:[%s2000_s20 + $0x8] sm:$0x7] }
  0x34   : >> { %v1118_v9 = vunpack.c.l.b16 %v1739_v5 }
  0x37   : >> { %1550 = vmatmul.msk.bf16.vlgmr.msra.gmra.mxu0 %vm246_vm0, %v556_v12  ;;  %1564 = vmatmul.msk.bf16.vlgmr.msra.gmra.mxu1 %vm246_vm0, %v595_v13  ;;  %v1119_v12 = vpack.c.b16 %v1118_v9, %v1118_v9  ;;  %v1164_v13 = vpack.c.b16 %v1163_v11, %v1163_v11 }
  0x38   : >> { %898 = vmatpush.bf16.msra.mxu0 %v1819_v16  ;;  %943 = vmatpush.bf16.msra.mxu1 %v1821_v17  ;;  %v1710_v16 = vld [vmem:[%s2000_s20 + $0x8] sm:$0x3]  ;;  %v1725_v17 = vld [vmem:[%s2000_s20 + $0x20] sm:$0x3] }
  0x39   : >> { %v1123_v14 = vshll.u32 %v1119_v12, 16  ;;  %v1168_v15 = vshll.u32 %v1164_v13, 16  ;;  %v1121_v18 = vshrl.u32 %v1119_v12, 16 }
  0x3b   : >> { %v1125_v19 = vrot.slane %v1123_v14, 1 }
  0x3c   : >> { %899 = vmatpush.bf16.msra.mxu0 %v1818_v20  ;;  %944 = vmatpush.bf16.msra.mxu1 %v1820_v21  ;;  %v1166_v20 = vshrl.u32 %v1164_v13, 16  ;;  %v1170_v21 = vrot.slane %v1168_v15, 1 }
  0x3e   : >> { %1579 = vmatmul.msk.bf16.vlgmr.msra.gmra.mxu2 %vm246_vm0, %v1566_v22  ;;  %1594 = vmatmul.msk.bf16.vlgmr.msra.gmra.mxu3 %vm246_vm0, %v1581_v24  ;;  %v1767_v22 = vld [vmem:[%s2000_s20 + $0x8] sm:$0x6]  ;;  %v1171_v24 = vor.u32 %v1170_v21, %v1166_v20  ;;  %s1781_s20 = sshll.u32 %s1907_s5, 1  ;;  %s216_s5 = sadd.s32 1, %s1907_s5  }
  0x3f   : >> { %988 = vmatpush.bf16.msra.mxu2 %v1823_v23  ;;  %1027 = vmatpush.bf16.msra.mxu3 %v1825_v27  ;;  %v1126_v23 = vor.u32 %v1125_v19, %v1121_v18  ;;  %v1208_v25 = vunpack.c.l.b16 %v1767_v22  ;;  %s1246_s7 = scalar_lea.vmem %s1958_s23, %s1781_s20  ;;  %p213_p4 = scmp.ge.s32.totalorder %s216_s5, 4  }
  0x40   : > { %s1913_s8 = smov (%p213_p4), 0  }
  0x41   : >> { %v1209_v26 = vpack.c.b16 %v1208_v25, %v1208_v25 }
  0x43   : >> { %989 = vmatpush.bf16.msra.mxu2 %v1822_v29  ;;  %1028 = vmatpush.bf16.msra.mxu3 %v1824_v34  ;;  %v1210_v27 = vrot.slane %v1209_v26, 1 }
  0x47   : >> { %1608 = vmatmul.msk.bf16.vlgmr.msrb.gmra.mxu0 %vm246_vm0, %v716_v37  ;;  %1622 = vmatmul.msk.bf16.vlgmr.msrb.gmra.mxu1 %vm246_vm0, %v761_v38 }
  0x48   : >> { %1065 = vmatpush.bf16.msrb.mxu0 %v1827_v40  ;;  %1103 = vmatpush.bf16.msrb.mxu1 %v1829_v41 }
  0x4c   : >> { %1066 = vmatpush.bf16.msrb.mxu0 %v1826_v45  ;;  %1104 = vmatpush.bf16.msrb.mxu1 %v1828_v46 }
  0x4e   : >> { %1636 = vmatmul.msk.bf16.vlgmr.msrb.gmra.mxu2 %vm246_vm0, %v800_v47  ;;  %1651 = vmatmul.msk.bf16.vlgmr.msrb.gmra.mxu3 %vm246_vm0, %v1638_v50 }
  0x4f   : >> { %1148 = vmatpush.bf16.msrb.mxu2 %v1831_v49  ;;  %1193 = vmatpush.bf16.msrb.mxu3 %v1833_v52 }
  0x53   : >> { %1149 = vmatpush.bf16.msrb.mxu2 %v1830_v54  ;;  %1194 = vmatpush.bf16.msrb.mxu3 %v1832_v58 }
  0x57   : >> { %1666 = vmatmul.msk.bf16.vlgmr.msra.gmra.mxu0 %vm246_vm0, %v1653_v62  ;;  %1680 = vmatmul.msk.bf16.vlgmr.msra.gmra.mxu1 %vm246_vm0, %v921_v61 }
  0x58   : >> { %1232 = vmatpush.bf16.msra.mxu0 %v1835_v63 }
  0x5c   : >> { %1233 = vmatpush.bf16.msra.mxu0 %v1834_v7 }
  0x5e   : >> { %1694 = vmatmul.msk.bf16.vlgmr.msra.gmra.mxu2 %vm246_vm0, %v966_v8  ;;  %1708 = vmatmul.msk.bf16.vlgmr.msra.gmra.mxu3 %vm246_vm0, %v1005_v10 }
  0x67   : >> { %1723 = vmatmul.msk.bf16.vlgmr.msrb.gmra.mxu0 %vm246_vm0, %v1710_v16  ;;  %1738 = vmatmul.msk.bf16.vlgmr.msrb.gmra.mxu1 %vm246_vm0, %v1725_v17 }
  0x6e   : >> { %1752 = vmatmul.msk.bf16.vlgmr.msrb.gmra.mxu2 %vm246_vm0, %v1126_v23  ;;  %1766 = vmatmul.msk.bf16.vlgmr.msrb.gmra.mxu3 %vm246_vm0, %v1171_v24 }
  0x77   : >> { %1780 = vmatmul.msk.bf16.vlgmr.msra.gmra.mxu0 %vm246_vm0, %v1210_v27 }
  0x94   : >> { %v259_v28 = vpop.f32.mrf.mxu0  ;;  %v287_v29 = vpop.f32.mrf.mxu1 }
  0x95   : >> { %v288_v37 = vadd.f32 %v287_v29, %v259_v28 }
  0x9c   : >> { %v261_v30 = vpop.f32.mrf.mxu0  ;;  %v289_v31 = vpop.f32.mrf.mxu1 }
  0xa1   : >> { %v331_v32 = vpop.f32.mrf.mxu2  ;;  %v376_v33 = vpop.f32.mrf.mxu3 }
  0xa2   : >> { %v335_v39 = vadd.f32 %v331_v32, %v288_v37 }
  0xa4   : >> { %v415_v34 = vpop.f32.mrf.mxu0  ;;  %v453_v35 = vpop.f32.mrf.mxu1  ;;  %v380_v42 = vadd.f32 %v376_v33, %v335_v39 }
  0xa6   : >> { %v419_v45 = vadd.f32 %v415_v34, %v380_v42 }
  0xa8   : >> { %v457_v48 = vadd.f32 %v453_v35, %v419_v45  ;;  %v1241_v35 = vperm.slane %v1953_v0, 0 }
  0xa9   : >> { %v333_v36 = vpop.f32.mrf.mxu2  ;;  %v378_v38 = vpop.f32.mrf.mxu3 }
  0xac   : >> { %v417_v40 = vpop.f32.mrf.mxu0  ;;  %v455_v41 = vpop.f32.mrf.mxu1 }
  0xb1   : >> { %v491_v43 = vpop.f32.mrf.mxu2  ;;  %v536_v44 = vpop.f32.mrf.mxu3 }
  0xb2   : >> { %v495_v50 = vadd.f32 %v491_v43, %v457_v48 }
  0xb4   : >> { %v581_v46 = vpop.f32.mrf.mxu0  ;;  %v620_v47 = vpop.f32.mrf.mxu1  ;;  %v540_v54 = vadd.f32 %v536_v44, %v495_v50 }
  0xb6   : >> { %v585_v56 = vadd.f32 %v581_v46, %v540_v54 }
  0xb8   : >> { %v624_v60 = vadd.f32 %v620_v47, %v585_v56 }
  0xb9   : >> { %v493_v49 = vpop.f32.mrf.mxu2  ;;  %v538_v51 = vpop.f32.mrf.mxu3 }
  0xbc   : >> { %v583_v52 = vpop.f32.mrf.mxu0  ;;  %v622_v53 = vpop.f32.mrf.mxu1 }
  0xbd   : > { %v1909_v52 = vmov (%p213_p4), 0.0  }
  0xc1   : >> { %v658_v55 = vpop.f32.mrf.mxu2  ;;  %v696_v57 = vpop.f32.mrf.mxu3 }
  0xc2   : >> { %v662_v61 = vadd.f32 %v658_v55, %v624_v60 }
  0xc4   : >> { %v741_v58 = vpop.f32.mrf.mxu0  ;;  %v786_v59 = vpop.f32.mrf.mxu1  ;;  %v700_v2 = vadd.f32 %v696_v57, %v662_v61 }
  0xc6   : >> { %v745_v5 = vadd.f32 %v741_v58, %v700_v2 }
  0xc8   : >> { %v790_v8 = vadd.f32 %v786_v59, %v745_v5 }
  0xc9   : >> { %v660_v62 = vpop.f32.mrf.mxu2  ;;  %v698_v63 = vpop.f32.mrf.mxu3 }
  0xcc   : >> { %v743_v3 = vpop.f32.mrf.mxu0  ;;  %v788_v4 = vpop.f32.mrf.mxu1 }
  0xd1   : >> { %v825_v6 = vpop.f32.mrf.mxu2  ;;  %v863_v7 = vpop.f32.mrf.mxu3 }
  0xd2   : >> { %v829_v11 = vadd.f32 %v825_v6, %v790_v8 }
  0xd4   : >> { %v901_v9 = vpop.f32.mrf.mxu0  ;;  %v946_v10 = vpop.f32.mrf.mxu1  ;;  %v867_v13 = vadd.f32 %v863_v7, %v829_v11 }
  0xd6   : >> { %v905_v17 = vadd.f32 %v901_v9, %v867_v13 }
  0xd8   : >> { %v950_v19 = vadd.f32 %v946_v10, %v905_v17 }
  0xd9   : >> { %v827_v12 = vpop.f32.mrf.mxu2  ;;  %v865_v14 = vpop.f32.mrf.mxu3 }
  0xdc   : >> { %v903_v15 = vpop.f32.mrf.mxu0  ;;  %v948_v16 = vpop.f32.mrf.mxu1 }
  0xe1   : >> { %v991_v18 = vpop.f32.mrf.mxu2  ;;  %v1030_v20 = vpop.f32.mrf.mxu3 }
  0xe2   : >> { %v995_v21 = vadd.f32 %v991_v18, %v950_v19 }
  0xe4   : >> { %v1068_v22 = vpop.f32.mrf.mxu0  ;;  %v1106_v23 = vpop.f32.mrf.mxu1  ;;  %v1034_v24 = vadd.f32 %v1030_v20, %v995_v21 }
  0xe6   : >> { %v1072_v27 = vadd.f32 %v1068_v22, %v1034_v24 }
  0xe8   : >> { %v1110_v30 = vadd.f32 %v1106_v23, %v1072_v27 }
  0xe9   : >> { %v993_v25 = vpop.f32.mrf.mxu2  ;;  %v1032_v26 = vpop.f32.mrf.mxu3 }
  0xec   : >> { %v1070_v28 = vpop.f32.mrf.mxu0  ;;  %v1108_v29 = vpop.f32.mrf.mxu1 }
  0xf1   : >> { %v1151_v31 = vpop.f32.mrf.mxu2  ;;  %v1196_v33 = vpop.f32.mrf.mxu3 }
  0xf2   : >> { %v1155_v32 = vadd.f32 %v1151_v31, %v1110_v30 }
  0xf4   : >> { %v1200_v34 = vadd.f32 %v1196_v33, %v1155_v32  ;;  %v1235_v36 = vpop.f32.mrf.mxu0 }
  0xf6   : >> { %v1239_v37 = vadd.f32 %v1235_v36, %v1200_v34 }
  0xf8   : >> { %v1243_v38 = vadd.f32 %v1241_v35, %v1239_v37 }
  0xf9   : >> { %v1153_v39 = vpop.f32.mrf.mxu2  ;;  %v1198_v42 = vpop.f32.mrf.mxu3 }
  0xfa   : >> { %v1244_v40 = vpack.c.bf16 %v1243_v38, %v1243_v38  ;;  %v1250_v41 = vsel %vm1249_vm1, %v1243_v38, 0.0 }
  0xfb   : >> { %v1251_v43 = vrot.slane %v1250_v41, 4 }
  0xfc   : >> { %1248 = vst.msk [vmem:[%s1246_s7] sm:$0x3] %vm1247_vm2, %v1244_v40  ;;  %v1237_v45 = vpop.f32.mrf.mxu0 }
  0xfd   : >> { %v1252_v44 = vadd.f32 %v1251_v43, %v1250_v41 }
  0xff   : >> { %v1253_v46 = vrot.slane %v1252_v44, 2 }
 0x101   : >> { %v1254_v47 = vadd.f32 %v1253_v46, %v1252_v44 }
 0x103   : >> { %v1255_v48 = vrot.slane %v1254_v47, 1 }
 0x105   : >> { %v1256_v49 = vadd.f32 %v1255_v48, %v1254_v47  ;;  %215 = sbr.rel (!%p213_p4) target bundleno = 15 (0xf), region = 124 }
 0x107   : >> { %v1257_v50 = vadd.f32 %v1903_v1, %v1256_v49  }
 0x109   : >> { %v2206_v1 = vmov %v1257_v50  ;;  %v1258_v51 = vmul.f32 (%p213_p4), 0.0625, %v1257_v50 }
 0x10a LB: >> { %s1782_s9 = sshll.u32 %s1915_s8, 1  ;;  %s1264_s8 = sadd.s32 1, %s1915_s8   ;;  %s1915_s8 = sphi %s1913_s8, %s1264_s8   ;;  %v1911_v52 = vphi %v1909_v52, %v1910_v52  }
 0x10b   : >> { %s1267_s10 = scalar_lea.vmem %s1958_s23, %s1782_s9  ;;  %p1261_p5 = scmp.ge.s32.totalorder %s1264_s8, 4  }
 0x10c   : >> { %v1268_v53 = vld [vmem:[%s1267_s10] sm:$0x3]  ;;  %vm1281_vm3 = vcmask (%p1261_p5), 516096  }
 0x10d   : >> { %v1269_v1 = vunpack.c.l.bf16 %v1268_v53  ;;  %1282 = vst.msk [vmem:[%s1968_s30] sm:$0x1] (%p1261_p5), %vm1281_vm3, %v1258_v51 }
 0x10f   : >> { %v1270_v54 = vsub.f32 %v1269_v1, %v1258_v51 }
 0x111   : >> { %v1271_v55 = vmul.f32 %v1270_v54, %v1270_v54 }
 0x113   : >> { %v1273_v56 = vsel %vm1249_vm1, %v1271_v55, 0.0 }
 0x114   : >> { %v1274_v57 = vrot.slane %v1273_v56, 4 }
 0x116   : >> { %v1275_v58 = vadd.f32 %v1274_v57, %v1273_v56 }
 0x118   : >> { %v1276_v59 = vrot.slane %v1275_v58, 2 }
 0x11a   : >> { %v1277_v60 = vadd.f32 %v1276_v59, %v1275_v58 }
 0x11c   : >> { %v1278_v0 = vrot.slane %v1277_v60, 1 }
 0x11e   : >> { %v1279_v61 = vadd.f32 %v1278_v0, %v1277_v60  ;;  %1263 = sbr.rel (!%p1261_p5) target bundleno = 266 (0x10a), region = 135 }
 0x120   : >> { %v1280_v62 = vadd.f32 %v1911_v52, %v1279_v61  }
 0x122   : >> { %v1910_v52 = vmov %v1280_v62   ;;  %1283 = vst.msk [vmem:[%s1968_s30 + $0x1] sm:$0x1] (%p1261_p5), %vm1281_vm3, %v1280_v62 }
 0x123 PF: > { %s15_s15 = sadd.s32 1, %s1899_s15  }
 0x124   : > { %p12_p6 = scmp.ge.s32.totalorder %s15_s15, 4  }
 0x126   :  { %14 = sbr.rel (!%p12_p6) target bundleno = 1 (0x1), region = 146 }

</bundles_post_ra>
